<compile_context>
chip_gen: v7x
topology: tpu7x:2x2x1
jax: 0.10.0
libtpu: 0.0.40
codegen_flags: <defaults>
</compile_context>

<pallas_src>
import functools

import numpy as np
import jax
import jax.numpy as jnp
from jax import lax
from jax.experimental import pallas as pl
from jax.experimental.pallas import tpu as pltpu

_LANE = 128


def _round_up(x, m):
    return ((x + m - 1) // m) * m


@functools.lru_cache(maxsize=1)
def _chip_config():
    """Chip-aware (vmem_limit_bytes, preferred Cout tile width)."""
    kind = ""
    try:
        kind = jax.devices()[0].device_kind.lower()
    except Exception:
        pass
    cap = None
    try:
        cap = int(pltpu.get_tpu_info().vmem_capacity_bytes)
    except Exception:
        cap = None
    if cap is None:
        if "v7" in kind:
            cap = 64 * 2**20
        elif any(v in kind for v in ("v4", "v5", "v6")):
            cap = 128 * 2**20
        else:
            cap = 32 * 2**20
    vmem_limit = max(min(cap - 16 * 2**20, 80 * 2**20), 16 * 2**20)
    # v6e/v7x have 2x256^2 MXUs -> 256-wide output tiles; older parts use 128.
    prefer_tc = 256 if ("v6" in kind or "v7" in kind) else 128
    return int(vmem_limit), prefer_tc


def _pick_row_tile(hout, wout, parallel_rest):
    """Largest legal row tile whose matmul M dim (th*wout) is <= ~256 rows,
    keeping at least 2 parallel grid steps overall (v7x has 2 TensorCores)."""
    candidates = [t for t in range(1, hout + 1)
                  if hout % t == 0 and ((t * wout) % 8 == 0 or t == hout)]
    small = [t for t in candidates if t * wout <= 256]
    best = max(small) if small else min(candidates)
    if parallel_rest * (hout // best) < 2:
        split = [t for t in candidates if hout // t >= 2]
        if split:
            best = max(split)
    return best


# ---------------------------------------------------------------------------
# Fused conv3x3/1x1 (stride 1) + folded-BN bias + ReLU [+ fused 1x1 epilogue]
# ---------------------------------------------------------------------------
def _conv_body(x_ref, w_ref, b_ref, we_ref, be_ref, o_ref, acc_ref, *,
               th, wout, dilation, apply_relu):
    """One (batch, cout-tile, row-tile) grid step.

    x_ref : (1, Hp, Wp, Cin)   spatially padded input (resident per batch elem)
    w_ref : (KH, KW, Cin, TC)  BN-scale-folded weights for this Cout tile
    b_ref : (1, TC)            folded bias (f32)
    we_ref: (Cp, CE) or None   fused 1x1 classifier weights
    be_ref: (1, CE)  or None   classifier bias (f32)
    o_ref : (1, th*wout, TC or CE) lane-dense output slab
    acc_ref: (th*wout, TC) f32 VMEM scratch accumulator
    """
    kh_taps, kw_taps, cin, _ = w_ref.shape
    row0 = pl.program_id(2) * th
    if th % 8 == 0:
        row0 = pl.multiple_of(row0, 8)

    # One aligned (th, Wp, Cin) row slab per kh tap; kw windows are static value
    # slices of that slab (3 reads per tile instead of 9 misaligned ones).
    for kh in range(kh_taps):
        slab = x_ref[0, pl.ds(row0 + kh * dilation, th), :, :]
        for kw in range(kw_taps):
            c0 = kw * dilation
            if c0 == 0 and slab.shape[1] == wout:
                win = slab
            else:
                win = slab[:, c0:c0 + wout, :]
            lhs = win.reshape(th * wout, cin).astype(w_ref.dtype)
            contrib = jnp.dot(lhs, w_ref[kh, kw],
                              preferred_element_type=jnp.float32)
            if kh == 0 and kw == 0:
                acc_ref[...] = contrib          # init from first tap (no zero-fill)
            else:
                acc_ref[...] += contrib

    y = acc_ref[...] + b_ref[...]
    if apply_relu:
        y = jnp.maximum(y, 0.0)
    if we_ref is not None:
        y = jnp.dot(y.astype(we_ref.dtype), we_ref[...],
                    preferred_element_type=jnp.float32) + be_ref[...]
    o_ref[0] = y.astype(o_ref.dtype)


def _conv_kernel(x_ref, w_ref, b_ref, o_ref, acc_ref, *, th, wout, dilation,
                 apply_relu):
    _conv_body(x_ref, w_ref, b_ref, None, None, o_ref, acc_ref,
               th=th, wout=wout, dilation=dilation, apply_relu=apply_relu)


def _conv_epilogue_kernel(x_ref, w_ref, b_ref, we_ref, be_ref, o_ref, acc_ref,
                          *, th, wout, dilation, apply_relu):
    _conv_body(x_ref, w_ref, b_ref, we_ref, be_ref, o_ref, acc_ref,
               th=th, wout=wout, dilation=dilation, apply_relu=apply_relu)


def conv2d_bn_act(x_nhwc, w_oihw, *, bn=None, conv_bias=None, relu=False,
                  padding=0, dilation=1, eps=1e-5, mxu_dtype=jnp.bfloat16,
                  out_dtype=None, epilogue_w=None, epilogue_b=None):
    """Stride-1 NHWC conv2d with BatchNorm folded into the weights, optional
    ReLU, and an optional fused 1x1 classifier epilogue (y @ We + be).

    The output channel dim is zero-padded to a multiple of 128 (extra channels
    are exactly zero).  Extra (padded) input channels are ignored by
    construction: the weight matrix has zero rows over them.
    """
    n, h, w, cx = x_nhwc.shape
    cout, cin_w, kh, kw = w_oihw.shape
    assert cx >= cin_w, "input channels must cover the conv's input channels"
    vmem_limit, prefer_tc = _chip_config()

    # --- fold BN (inference running stats) / conv bias into scale & shift
    if bn is not None:
        gamma, beta, mean, var = bn
        scale = gamma.astype(jnp.float32) / jnp.sqrt(var.astype(jnp.float32) + eps)
        shift = beta.astype(jnp.float32) - mean.astype(jnp.float32) * scale
    else:
        scale = jnp.ones((cout,), jnp.float32)
        shift = jnp.zeros((cout,), jnp.float32)
    if conv_bias is not None:
        shift = shift + scale * conv_bias.astype(jnp.float32)

    # --- OIHW -> HWIO, fold BN scale, zero-pad Cin to input width, Cout to 128k
    w_hwio = (jnp.transpose(w_oihw, (2, 3, 1, 0)).astype(jnp.float32)
              * scale[None, None, None, :])
    cp = _round_up(cout, _LANE)
    w_hwio = jnp.pad(w_hwio, ((0, 0), (0, 0), (0, cx - cin_w), (0, cp - cout)))
    w_hwio = w_hwio.astype(mxu_dtype)
    shift = jnp.pad(shift, (0, cp - cout)).reshape(1, cp)

    # --- optional fused 1x1 classifier epilogue
    has_epi = epilogue_w is not None
    if has_epi:
        ce_out = epilogue_w.shape[0]
        ce = _round_up(ce_out, _LANE)
        we = jnp.transpose(epilogue_w.reshape(ce_out, cout)).astype(jnp.float32)
        we = jnp.pad(we, ((0, cp - cout), (0, ce - ce_out))).astype(mxu_dtype)
        if epilogue_b is None:
            be = jnp.zeros((1, ce), jnp.float32)
        else:
            be = jnp.pad(epilogue_b.astype(jnp.float32),
                         (0, ce - ce_out)).reshape(1, ce)

    # --- spatial zero padding (one-time XLA op); stride 1 only
    xp = jnp.pad(x_nhwc, ((0, 0), (padding, padding), (padding, padding), (0, 0)))
    if xp.dtype != mxu_dtype:
        xp = xp.astype(mxu_dtype)
    hp, wp = h + 2 * padding, w + 2 * padding
    hout = hp - dilation * (kh - 1)
    wout = wp - dilation * (kw - 1)

    # --- tiling: the epilogue needs every conv channel in a single tile
    if has_epi:
        tc = cp
    else:
        tc = 256 if (cp % 256 == 0 and prefer_tc >= 256) else _LANE
    n_c = cp // tc
    th = _pick_row_tile(hout, wout, n * n_c)
    n_h = hout // th
    c_last = ce if has_epi else cp
    tc_out = ce if has_epi else tc
    out_dtype = out_dtype or x_nhwc.dtype

    in_specs = [
        # Full padded image per batch element; block index depends only on the
        # batch axis so it stays VMEM-resident across the Cout/row axes.
        # TODO(synk): halo row tiling / pl.Buffered(1) for feature maps too big
        # to keep resident in v7x's 64 MiB VMEM.
        pl.BlockSpec((1, hp, wp, cx), lambda b, c, i: (b, 0, 0, 0)),
        # Cout axis is OUTER to the row axis so weight tiles are not re-DMA'd
        # on every row step when n_c > 1.
        pl.BlockSpec((kh, kw, cx, tc), lambda b, c, i: (0, 0, 0, c)),
        pl.BlockSpec((1, tc), lambda b, c, i: (0, c)),
    ]
    args = [xp, w_hwio, shift]
    if has_epi:
        in_specs += [pl.BlockSpec((cp, ce), lambda b, c, i: (0, 0)),
                     pl.BlockSpec((1, ce), lambda b, c, i: (0, 0))]
        args += [we, be]
        kern = _conv_epilogue_kernel
    else:
        kern = _conv_kernel

    kernel = functools.partial(kern, th=th, wout=wout, dilation=dilation,
                               apply_relu=relu)
    out = pl.pallas_call(
        kernel,
        out_shape=jax.ShapeDtypeStruct((n, hout * wout, c_last), out_dtype),
        grid_spec=pltpu.PrefetchScalarGridSpec(
            num_scalar_prefetch=0,
            grid=(n, n_c, n_h),
            in_specs=in_specs,
            out_specs=pl.BlockSpec((1, th * wout, tc_out),
                                   lambda b, c, i: (b, i, c)),
            scratch_shapes=[pltpu.VMEM((th * wout, tc), jnp.float32)],
        ),
        compiler_params=pltpu.CompilerParams(
            dimension_semantics=("parallel", "parallel", "parallel"),
            vmem_limit_bytes=vmem_limit),
    )(*args)
    return out.reshape(n, hout, wout, c_last)


# ---------------------------------------------------------------------------
# Stage 1: fused conv1x1+BN+ReLU (low-level) || bilinear upsample(x) || concat
# ---------------------------------------------------------------------------
def _interp_matrix_align_corners(out_size, in_size):
    m = np.zeros((out_size, in_size), np.float32)
    if out_size == 1 or in_size == 1:
        m[:, 0] = 1.0
        return m
    pos = np.arange(out_size, dtype=np.float64) * (in_size - 1) / (out_size - 1)
    lo = np.clip(np.floor(pos).astype(np.int64), 0, in_size - 1)
    hi = np.minimum(lo + 1, in_size - 1)
    frac = (pos - lo).astype(np.float32)
    idx = np.arange(out_size)
    m[idx, lo] += 1.0 - frac
    m[idx, hi] += frac
    return m


def _llf_resize_cat_kernel(low_ref, w1_ref, b1_ref, m_ref, xr_ref, o_ref):
    """Fused: relu(bn1(conv1x1(low))) || bilinear-upsample(x), concatenated.

    low_ref: (1, Hl*Wl, Cin_pad)  low-level features (channels zero-padded)
    w1_ref : (Cin_pad, Cpad)      conv1 weights; only cols [0, 48) non-zero
    b1_ref : (1, Cpad) f32        folded bias; only cols [0, 48) non-zero
    m_ref  : (Hl*Wl, Hx*Wx)       kron(Ah, Aw) bilinear (align_corners) matrix
    xr_ref : (1, Hx*Wx, Cpad)     x with its channels embedded at lanes 48..111
    o_ref  : (1, Hl*Wl, Cpad)     concatenated tensor (padding lanes are zero)
    """
    llf = jnp.dot(low_ref[0], w1_ref[...], preferred_element_type=jnp.float32)
    llf = jnp.maximum(llf + b1_ref[...], 0.0)      # exactly zero in lanes >= 48
    xup = jnp.dot(m_ref[...], xr_ref[0], preferred_element_type=jnp.float32)
    o_ref[0] = (llf + xup).astype(o_ref.dtype)     # channel concat == lane add


def fused_llf_upsample_concat(low_nhwc, x_nhwc, conv1_w, bn1, *, eps=1e-5,
                              mxu_dtype=jnp.bfloat16, out_dtype=None):
    n, hl, wl, cll = low_nhwc.shape
    nx, hx, wx, cxc = x_nhwc.shape
    assert n == nx
    c48 = conv1_w.shape[0]
    cat_c = c48 + cxc
    cat_p = _round_up(cat_c, _LANE)
    vmem_limit, _ = _chip_config()

    gamma, beta, mean, var = bn1
    scale = gamma.astype(jnp.float32) / jnp.sqrt(var.astype(jnp.float32) + eps)
    shift = beta.astype(jnp.float32) - mean.astype(jnp.float32) * scale

    cin_p = _round_up(cll, _LANE)
    w1 = jnp.transpose(conv1_w.reshape(c48, cll)).astype(jnp.float32) * scale[None, :]
    w1 = jnp.pad(w1, ((0, cin_p - cll), (0, cat_p - c48))).astype(mxu_dtype)
    b1 = jnp.pad(shift, (0, cat_p - c48)).reshape(1, cat_p)

    low2d = jnp.pad(low_nhwc, ((0, 0), (0, 0), (0, 0), (0, cin_p - cll)))
    low2d = low2d.reshape(n, hl * wl, cin_p).astype(mxu_dtype)

    # embed x's channels at lanes [c48, c48+cxc) so the concat is a lane add
    xr = jnp.pad(x_nhwc, ((0, 0), (0, 0), (0, 0), (c48, cat_p - cat_c)))
    xr = xr.reshape(n, hx * wx, cat_p).astype(mxu_dtype)

    # kron(Ah, Aw): one bilinear(align_corners=True) matmul per image.
    # TODO(synk): separable rows-then-cols resize for large resolutions (the
    # kron matrix grows as (Hl*Wl) x (Hx*Wx) and would not fit v7x VMEM).
    m = np.kron(_interp_matrix_align_corners(hl, hx),
                _interp_matrix_align_corners(wl, wx))
    m = jnp.asarray(m).astype(mxu_dtype)

    out_dtype = out_dtype or mxu_dtype
    out = pl.pallas_call(
        _llf_resize_cat_kernel,
        out_shape=jax.ShapeDtypeStruct((n, hl * wl, cat_p), out_dtype),
        grid_spec=pltpu.PrefetchScalarGridSpec(
            num_scalar_prefetch=0,
            grid=(n,),
            in_specs=[
                pl.BlockSpec((1, hl * wl, cin_p), lambda b: (b, 0, 0)),
                pl.BlockSpec((cin_p, cat_p), lambda b: (0, 0)),
                pl.BlockSpec((1, cat_p), lambda b: (0, 0)),
                pl.BlockSpec((hl * wl, hx * wx), lambda b: (0, 0)),
                pl.BlockSpec((1, hx * wx, cat_p), lambda b: (b, 0, 0)),
            ],
            out_specs=pl.BlockSpec((1, hl * wl, cat_p), lambda b: (b, 0, 0)),
        ),
        compiler_params=pltpu.CompilerParams(
            dimension_semantics=("parallel",),
            vmem_limit_bytes=vmem_limit),
    )(low2d, w1, b1, m, xr)
    return out.reshape(n, hl, wl, cat_p)


# ---------------------------------------------------------------------------
# Decoder forward
# ---------------------------------------------------------------------------
def decoder_forward(x_nchw, low_nchw, params, *, eps=1e-5,
                    mxu_dtype=jnp.bfloat16):
    """Pallas implementation of Decoder.forward (NCHW in / NCHW out, eval mode).

    mxu_dtype=jnp.bfloat16 (default): bf16 MXU inputs, f32 accumulation, bf16
    intermediate feature maps.  mxu_dtype=jnp.float32: full-f32 validation path.
    """
    num_classes = params["cls_w"].shape[0]

    # single NCHW -> NHWC transposes at the module boundary
    low = jnp.transpose(low_nchw, (0, 2, 3, 1))
    x = jnp.transpose(x_nchw, (0, 2, 3, 1))

    # stage 1: conv1x1+BN+ReLU on low-level feats, bilinear upsample of x,
    #          channel concat -- all in one kernel (no llf/xup/cat HBM trips)
    cat = fused_llf_upsample_concat(low, x, params["conv1_w"], params["bn1"],
                                    eps=eps, mxu_dtype=mxu_dtype,
                                    out_dtype=mxu_dtype)

    # stage 2: conv3x3(112->256) + BN + ReLU
    y = conv2d_bn_act(cat, params["out0_w"], bn=params["out0_bn"], relu=True,
                      padding=1, eps=eps, mxu_dtype=mxu_dtype,
                      out_dtype=mxu_dtype)

    # stage 3: conv3x3(256->256) + BN + ReLU, Dropout(0.1) (identity in eval),
    #          and the final 1x1 classifier (+bias) fused as an epilogue so the
    #          256-channel feature map never touches HBM.
    y = conv2d_bn_act(y, params["out1_w"], bn=params["out1_bn"], relu=True,
                      padding=1, eps=eps, mxu_dtype=mxu_dtype,
                      out_dtype=x_nchw.dtype,
                      epilogue_w=params["cls_w"], epilogue_b=params["cls_b"])

    # strip channel padding; NHWC -> NCHW once at the boundary
    return jnp.transpose(y[..., :num_classes], (0, 3, 1, 2))


# ---------------------------------------------------------------------------
# Pure-JAX reference (lax conv) for correctness checking
# ---------------------------------------------------------------------------
def _reference_decoder(x_nchw, low_nchw, params, eps=1e-5):
    def conv(v, w, padding=0):
        return lax.conv_general_dilated(
            v.astype(jnp.float32), w.astype(jnp.float32), (1, 1),
            [(padding, padding), (padding, padding)],
            dimension_numbers=("NCHW", "OIHW", "NCHW"))

    def bn(v, p):
        gamma, beta, mean, var = p
        inv = 1.0 / jnp.sqrt(var + eps)
        return ((v - mean[None, :, None, None]) * inv[None, :, None, None]
                * gamma[None, :, None, None] + beta[None, :, None, None])

    llf = jax.nn.relu(bn(conv(low_nchw, params["conv1_w"]), params["bn1"]))
    hl, wl = llf.shape[2], llf.shape[3]
    ah = jnp.asarray(_interp_matrix_align_corners(hl, x_nchw.shape[2]))
    aw = jnp.asarray(_interp_matrix_align_corners(wl, x_nchw.shape[3]))
    xup = jnp.einsum("hi,wj,ncij->nchw", ah, aw, x_nchw.astype(jnp.float32))
    y = jnp.concatenate([llf, xup], axis=1)
    y = jax.nn.relu(bn(conv(y, params["out0_w"], padding=1), params["out0_bn"]))
    y = jax.nn.relu(bn(conv(y, params["out1_w"], padding=1), params["out1_bn"]))
    y = conv(y, params["cls_w"]) + params["cls_b"][None, :, None, None]
    return y


if __name__ == "__main__":
    key = jax.random.PRNGKey(0)
    keys = jax.random.split(key, 10)

    # Decoder(low_level_channels=4, num_classes=6); the ASPP branch `x` has 64 channels.
    N = 2
    low_level_channels, num_classes = 4, 6
    Hl = Wl = 16     # low-level feature resolution (conv output resolution)
    Hx = Wx = 8      # ASPP feature resolution (bilinearly upsampled to 16x16)

    low = jax.random.normal(keys[0], (N, low_level_channels, Hl, Wl), jnp.float32)
    x = jax.random.normal(keys[1], (N, 64, Hx, Wx), jnp.float32)

    def bn_params(k, c):
        k1, k2, k3, k4 = jax.random.split(k, 4)
        gamma = 1.0 + 0.1 * jax.random.normal(k1, (c,), jnp.float32)
        beta = 0.1 * jax.random.normal(k2, (c,), jnp.float32)
        mean = 0.1 * jax.random.normal(k3, (c,), jnp.float32)
        var = jnp.abs(jax.random.normal(k4, (c,), jnp.float32)) + 0.5
        return (gamma, beta, mean, var)

    params = {
        "conv1_w": 0.3 * jax.random.normal(keys[2], (48, low_level_channels, 1, 1), jnp.float32),
        "bn1": bn_params(keys[3], 48),
        "out0_w": 0.05 * jax.random.normal(keys[4], (256, 48 + 64, 3, 3), jnp.float32),
        "out0_bn": bn_params(keys[5], 256),
        "out1_w": 0.03 * jax.random.normal(keys[6], (256, 256, 3, 3), jnp.float32),
        "out1_bn": bn_params(keys[7], 256),
        "cls_w": 0.05 * jax.random.normal(keys[8], (num_classes, 256, 1, 1), jnp.float32),
        "cls_b": 0.1 * jax.random.normal(keys[9], (num_classes,), jnp.float32),
    }

    ref = jax.block_until_ready(_reference_decoder(x, low, params))

    # default fast path: bf16 MXU inputs / bf16 intermediates, f32 accumulation
    out_bf16 = jax.block_until_ready(jax.jit(decoder_forward)(x, low, params))
    assert out_bf16.shape == (N, num_classes, Hl, Wl), out_bf16.shape

    # f32 validation path: tight check against the lax reference
    f32_fwd = jax.jit(functools.partial(decoder_forward, mxu_dtype=jnp.float32))
    out_f32 = jax.block_until_ready(f32_fwd(x, low, params))
    err_f32 = float(jnp.max(jnp.abs(out_f32 - ref)))
    assert jnp.allclose(out_f32, ref, atol=3e-3, rtol=3e-3), \
        f"f32 path mismatch vs reference, max|err|={err_f32}"

    # bf16 default path: looser tolerance (bf16 inputs, f32 accumulation)
    err_bf16 = float(jnp.max(jnp.abs(out_bf16 - ref)))
    assert jnp.allclose(out_bf16, ref, atol=2.5e-1, rtol=5e-2), \
        f"bf16 path mismatch vs reference, max|err|={err_bf16}"

    print("KERNEL_OK")
</pallas_src>

<mosaic_0001>
module attributes {stable_mosaic.version = 11 : i64} {
  func.func @_llf_resize_cat_kernel(%arg0: i32, %arg1: memref<1x256x128xbf16, #tpu.memory_space<vmem>>, %arg2: memref<128x128xbf16, #tpu.memory_space<vmem>>, %arg3: memref<1x128xf32, #tpu.memory_space<vmem>>, %arg4: memref<256x64xbf16, #tpu.memory_space<vmem>>, %arg5: memref<1x64x128xbf16, #tpu.memory_space<vmem>>, %arg6: memref<1x256x128xbf16, #tpu.memory_space<vmem>>) attributes {dimension_semantics = [#tpu.dimension_semantics<parallel>], iteration_bounds = array<i64: 2>, scalar_prefetch = 0 : i64, scratch_operands = 0 : i64, tpu.core_type = #tpu.core_type<tc>, window_params = [{transform_indices = @transform_0, window_bounds = array<i64: 1, 256, 128>}, {pipeline_mode = #tpu.pipeline_mode<synchronous>, transform_indices = @transform_1, window_bounds = array<i64: 128, 128>}, {pipeline_mode = #tpu.pipeline_mode<synchronous>, transform_indices = @transform_2, window_bounds = array<i64: 1, 128>}, {pipeline_mode = #tpu.pipeline_mode<synchronous>, transform_indices = @transform_3, window_bounds = array<i64: 256, 64>}, {transform_indices = @transform_4, window_bounds = array<i64: 1, 64, 128>}, {transform_indices = @transform_5, window_bounds = array<i64: 1, 256, 128>}]} {
    %c0 = arith.constant 0 : index
    %c0_0 = arith.constant 0 : index
    %c0_1 = arith.constant 0 : index
    %0 = vector.load %arg1[%c0, %c0_0, %c0_1] : memref<1x256x128xbf16, #tpu.memory_space<vmem>>, vector<1x256x128xbf16>
    %1 = vector.shape_cast %0 : vector<1x256x128xbf16> to vector<256x128xbf16>
    %c0_2 = arith.constant 0 : index
    %c0_3 = arith.constant 0 : index
    %2 = vector.load %arg2[%c0_2, %c0_3] : memref<128x128xbf16, #tpu.memory_space<vmem>>, vector<128x128xbf16>
    %cst = arith.constant dense<0.000000e+00> : vector<256x128xf32>
    %3 = tpu.matmul %1, %2, %cst {dimension_numbers = #tpu.dot_dimension_numbers<[1], [0], [0], [1], [0, 0, 1, 1], [], []>} : vector<256x128xbf16>, vector<128x128xbf16>, vector<256x128xf32> -> vector<256x128xf32>
    %c0_4 = arith.constant 0 : index
    %c0_5 = arith.constant 0 : index
    %4 = vector.load %arg3[%c0_4, %c0_5] : memref<1x128xf32, #tpu.memory_space<vmem>>, vector<1x128xf32>
    %5 = vector.broadcast %4 : vector<1x128xf32> to vector<256x128xf32>
    %6 = arith.addf %3, %5 : vector<256x128xf32>
    %cst_6 = arith.constant 0.000000e+00 : f32
    %7 = vector.broadcast %cst_6 : f32 to vector<256x128xf32>
    %8 = arith.maximumf %6, %7 : vector<256x128xf32>
    %c0_7 = arith.constant 0 : index
    %c0_8 = arith.constant 0 : index
    %9 = vector.load %arg4[%c0_7, %c0_8] : memref<256x64xbf16, #tpu.memory_space<vmem>>, vector<256x64xbf16>
    %c0_9 = arith.constant 0 : index
    %c0_10 = arith.constant 0 : index
    %c0_11 = arith.constant 0 : index
    %10 = vector.load %arg5[%c0_9, %c0_10, %c0_11] : memref<1x64x128xbf16, #tpu.memory_space<vmem>>, vector<1x64x128xbf16>
    %11 = vector.shape_cast %10 : vector<1x64x128xbf16> to vector<64x128xbf16>
    %cst_12 = arith.constant dense<0.000000e+00> : vector<256x128xf32>
    %12 = tpu.matmul %9, %11, %cst_12 {dimension_numbers = #tpu.dot_dimension_numbers<[1], [0], [0], [1], [0, 0, 1, 1], [], []>} : vector<256x64xbf16>, vector<64x128xbf16>, vector<256x128xf32> -> vector<256x128xf32>
    %13 = arith.addf %8, %12 : vector<256x128xf32>
    %14 = arith.truncf %13 : vector<256x128xf32> to vector<256x128xbf16>
    %c0_13 = arith.constant 0 : index
    %c0_14 = arith.constant 0 : index
    %c0_15 = arith.constant 0 : index
    %15 = vector.load %arg6[%c0_13, %c0_14, %c0_15] : memref<1x256x128xbf16, #tpu.memory_space<vmem>>, vector<1x256x128xbf16>
    %16 = vector.shape_cast %15 : vector<1x256x128xbf16> to vector<256x128xbf16>
    %17 = vector.shape_cast %14 : vector<256x128xbf16> to vector<1x256x128xbf16>
    tpu.vector_store %arg6[%c0_13, %c0_14, %c0_15], %17 {strides = array<i32>} : memref<1x256x128xbf16, #tpu.memory_space<vmem>>, vector<1x256x128xbf16>,
    return
  }
  func.func @transform_0(%arg0: i32) -> (i32, i32, i32) {
    %c0_i32 = arith.constant 0 : i32
    %c0_i32_0 = arith.constant 0 : i32
    %c0_i32_1 = arith.constant 0 : i32
    return %arg0, %c0_i32, %c0_i32_0 : i32, i32, i32
  }
  func.func @transform_1(%arg0: i32) -> (i32, i32) {
    %c0_i32 = arith.constant 0 : i32
    %c0_i32_0 = arith.constant 0 : i32
    %c0_i32_1 = arith.constant 0 : i32
    return %c0_i32, %c0_i32_0 : i32, i32
  }
  func.func @transform_2(%arg0: i32) -> (i32, i32) {
    %c0_i32 = arith.constant 0 : i32
    %c0_i32_0 = arith.constant 0 : i32
    %c0_i32_1 = arith.constant 0 : i32
    return %c0_i32, %c0_i32_0 : i32, i32
  }
  func.func @transform_3(%arg0: i32) -> (i32, i32) {
    %c0_i32 = arith.constant 0 : i32
    %c0_i32_0 = arith.constant 0 : i32
    %c0_i32_1 = arith.constant 0 : i32
    return %c0_i32, %c0_i32_0 : i32, i32
  }
  func.func @transform_4(%arg0: i32) -> (i32, i32, i32) {
    %c0_i32 = arith.constant 0 : i32
    %c0_i32_0 = arith.constant 0 : i32
    %c0_i32_1 = arith.constant 0 : i32
    return %arg0, %c0_i32, %c0_i32_0 : i32, i32, i32
  }
  func.func @transform_5(%arg0: i32) -> (i32, i32, i32) {
    %c0_i32 = arith.constant 0 : i32
    %c0_i32_0 = arith.constant 0 : i32
    %c0_i32_1 = arith.constant 0 : i32
    return %arg0, %c0_i32, %c0_i32_0 : i32, i32, i32
  }
}

module attributes {stable_mosaic.version = 11 : i64} {
  func.func @_conv_kernel(%arg0: i32, %arg1: i32, %arg2: i32, %arg3: memref<1x18x18x128xbf16, #tpu.memory_space<vmem>>, %arg4: memref<3x3x128x128xbf16, #tpu.memory_space<vmem>>, %arg5: memref<1x128xf32, #tpu.memory_space<vmem>>, %arg6: memref<1x256x128xbf16, #tpu.memory_space<vmem>>, %arg7: memref<256x128xf32, #tpu.memory_space<vmem>>) attributes {dimension_semantics = [#tpu.dimension_semantics<parallel>, #tpu.dimension_semantics<parallel>, #tpu.dimension_semantics<parallel>], iteration_bounds = array<i64: 2, 2, 1>, scalar_prefetch = 0 : i64, scratch_operands = 1 : i64, tpu.core_type = #tpu.core_type<tc>, window_params = [{transform_indices = @transform_0, window_bounds = array<i64: 1, 18, 18, 128>}, {transform_indices = @transform_1, window_bounds = array<i64: 3, 3, 128, 128>}, {transform_indices = @transform_2, window_bounds = array<i64: 1, 128>}, {transform_indices = @transform_3, window_bounds = array<i64: 1, 256, 128>}]} {
    %c16_i32 = arith.constant 16 : i32
    %0 = arith.muli %arg2, %c16_i32 : i32
    %1 = tpu.assume_multiple %0, 8 : i32
    %c0_i32 = arith.constant 0 : i32
    %2 = arith.addi %1, %c0_i32 : i32
    %c0 = arith.constant 0 : index
    %3 = arith.index_cast %2 : i32 to index
    %c0_0 = arith.constant 0 : index
    %c0_1 = arith.constant 0 : index
    %4 = vector.load %arg3[%c0, %3, %c0_0, %c0_1] : memref<1x18x18x128xbf16, #tpu.memory_space<vmem>>, vector<1x16x18x128xbf16>
    %5 = vector.shape_cast %4 : vector<1x16x18x128xbf16> to vector<16x18x128xbf16>
    %6 = vector.extract_strided_slice %5 {offsets = [0, 0, 0], sizes = [16, 16, 128], strides = [1, 1, 1]} : vector<16x18x128xbf16> to vector<16x16x128xbf16>
    %7 = vector.shape_cast %6 : vector<16x16x128xbf16> to vector<256x128xbf16>
    %c0_2 = arith.constant 0 : index
    %c0_3 = arith.constant 0 : index
    %c0_4 = arith.constant 0 : index
    %c0_5 = arith.constant 0 : index
    %8 = vector.load %arg4[%c0_2, %c0_3, %c0_4, %c0_5] : memref<3x3x128x128xbf16, #tpu.memory_space<vmem>>, vector<1x1x128x128xbf16>
    %9 = vector.shape_cast %8 : vector<1x1x128x128xbf16> to vector<128x128xbf16>
    %cst = arith.constant dense<0.000000e+00> : vector<256x128xf32>
    %10 = tpu.matmul %7, %9, %cst {dimension_numbers = #tpu.dot_dimension_numbers<[1], [0], [0], [1], [0, 0, 1, 1], [], []>} : vector<256x128xbf16>, vector<128x128xbf16>, vector<256x128xf32> -> vector<256x128xf32>
    %c0_6 = arith.constant 0 : index
    %c0_7 = arith.constant 0 : index
    %11 = vector.load %arg7[%c0_6, %c0_7] : memref<256x128xf32, #tpu.memory_space<vmem>>, vector<256x128xf32>
    tpu.vector_store %arg7[%c0_6, %c0_7], %10 {strides = array<i32>} : memref<256x128xf32, #tpu.memory_space<vmem>>, vector<256x128xf32>,
    %12 = vector.extract_strided_slice %5 {offsets = [0, 1, 0], sizes = [16, 16, 128], strides = [1, 1, 1]} : vector<16x18x128xbf16> to vector<16x16x128xbf16>
    %13 = vector.shape_cast %12 : vector<16x16x128xbf16> to vector<256x128xbf16>
    %c0_8 = arith.constant 0 : index
    %c1 = arith.constant 1 : index
    %c0_9 = arith.constant 0 : index
    %c0_10 = arith.constant 0 : index
    %14 = vector.load %arg4[%c0_8, %c1, %c0_9, %c0_10] : memref<3x3x128x128xbf16, #tpu.memory_space<vmem>>, vector<1x1x128x128xbf16>
    %15 = vector.shape_cast %14 : vector<1x1x128x128xbf16> to vector<128x128xbf16>
    %cst_11 = arith.constant dense<0.000000e+00> : vector<256x128xf32>
    %16 = tpu.matmul %13, %15, %cst_11 {dimension_numbers = #tpu.dot_dimension_numbers<[1], [0], [0], [1], [0, 0, 1, 1], [], []>} : vector<256x128xbf16>, vector<128x128xbf16>, vector<256x128xf32> -> vector<256x128xf32>
    %c0_12 = arith.constant 0 : index
    %c0_13 = arith.constant 0 : index
    %17 = vector.load %arg7[%c0_12, %c0_13] : memref<256x128xf32, #tpu.memory_space<vmem>>, vector<256x128xf32>
    %18 = arith.addf %17, %16 : vector<256x128xf32>
    %c0_14 = arith.constant 0 : index
    %c0_15 = arith.constant 0 : index
    %19 = vector.load %arg7[%c0_14, %c0_15] : memref<256x128xf32, #tpu.memory_space<vmem>>, vector<256x128xf32>
    tpu.vector_store %arg7[%c0_14, %c0_15], %18 {strides = array<i32>} : memref<256x128xf32, #tpu.memory_space<vmem>>, vector<256x128xf32>,
    %20 = vector.extract_strided_slice %5 {offsets = [0, 2, 0], sizes = [16, 16, 128], strides = [1, 1, 1]} : vector<16x18x128xbf16> to vector<16x16x128xbf16>
    %21 = vector.shape_cast %20 : vector<16x16x128xbf16> to vector<256x128xbf16>
    %c0_16 = arith.constant 0 : index
    %c2 = arith.constant 2 : index
    %c0_17 = arith.constant 0 : index
    %c0_18 = arith.constant 0 : index
    %22 = vector.load %arg4[%c0_16, %c2, %c0_17, %c0_18] : memref<3x3x128x128xbf16, #tpu.memory_space<vmem>>, vector<1x1x128x128xbf16>
    %23 = vector.shape_cast %22 : vector<1x1x128x128xbf16> to vector<128x128xbf16>
    %cst_19 = arith.constant dense<0.000000e+00> : vector<256x128xf32>
    %24 = tpu.matmul %21, %23, %cst_19 {dimension_numbers = #tpu.dot_dimension_numbers<[1], [0], [0], [1], [0, 0, 1, 1], [], []>} : vector<256x128xbf16>, vector<128x128xbf16>, vector<256x128xf32> -> vector<256x128xf32>
    %c0_20 = arith.constant 0 : index
    %c0_21 = arith.constant 0 : index
    %25 = vector.load %arg7[%c0_20, %c0_21] : memref<256x128xf32, #tpu.memory_space<vmem>>, vector<256x128xf32>
    %26 = arith.addf %25, %24 : vector<256x128xf32>
    %c0_22 = arith.constant 0 : index
    %c0_23 = arith.constant 0 : index
    %27 = vector.load %arg7[%c0_22, %c0_23] : memref<256x128xf32, #tpu.memory_space<vmem>>, vector<256x128xf32>
    tpu.vector_store %arg7[%c0_22, %c0_23], %26 {strides = array<i32>} : memref<256x128xf32, #tpu.memory_space<vmem>>, vector<256x128xf32>,
    %c1_i32 = arith.constant 1 : i32
    %28 = arith.addi %1, %c1_i32 : i32
    %c0_24 = arith.constant 0 : index
    %29 = arith.index_cast %28 : i32 to index
    %c0_25 = arith.constant 0 : index
    %c0_26 = arith.constant 0 : index
    %30 = vector.load %arg3[%c0_24, %29, %c0_25, %c0_26] : memref<1x18x18x128xbf16, #tpu.memory_space<vmem>>, vector<1x16x18x128xbf16>
    %31 = vector.shape_cast %30 : vector<1x16x18x128xbf16> to vector<16x18x128xbf16>
    %32 = vector.extract_strided_slice %31 {offsets = [0, 0, 0], sizes = [16, 16, 128], strides = [1, 1, 1]} : vector<16x18x128xbf16> to vector<16x16x128xbf16>
    %33 = vector.shape_cast %32 : vector<16x16x128xbf16> to vector<256x128xbf16>
    %c1_27 = arith.constant 1 : index
    %c0_28 = arith.constant 0 : index
    %c0_29 = arith.constant 0 : index
    %c0_30 = arith.constant 0 : index
    %34 = vector.load %arg4[%c1_27, %c0_28, %c0_29, %c0_30] : memref<3x3x128x128xbf16, #tpu.memory_space<vmem>>, vector<1x1x128x128xbf16>
    %35 = vector.shape_cast %34 : vector<1x1x128x128xbf16> to vector<128x128xbf16>
    %cst_31 = arith.constant dense<0.000000e+00> : vector<256x128xf32>
    %36 = tpu.matmul %33, %35, %cst_31 {dimension_numbers = #tpu.dot_dimension_numbers<[1], [0], [0], [1], [0, 0, 1, 1], [], []>} : vector<256x128xbf16>, vector<128x128xbf16>, vector<256x128xf32> -> vector<256x128xf32>
    %c0_32 = arith.constant 0 : index
    %c0_33 = arith.constant 0 : index
    %37 = vector.load %arg7[%c0_32, %c0_33] : memref<256x128xf32, #tpu.memory_space<vmem>>, vector<256x128xf32>
    %38 = arith.addf %37, %36 : vector<256x128xf32>
    %c0_34 = arith.constant 0 : index
    %c0_35 = arith.constant 0 : index
    %39 = vector.load %arg7[%c0_34, %c0_35] : memref<256x128xf32, #tpu.memory_space<vmem>>, vector<256x128xf32>
    tpu.vector_store %arg7[%c0_34, %c0_35], %38 {strides = array<i32>} : memref<256x128xf32, #tpu.memory_space<vmem>>, vector<256x128xf32>,
    %40 = vector.extract_strided_slice %31 {offsets = [0, 1, 0], sizes = [16, 16, 128], strides = [1, 1, 1]} : vector<16x18x128xbf16> to vector<16x16x128xbf16>
    %41 = vector.shape_cast %40 : vector<16x16x128xbf16> to vector<256x128xbf16>
    %c1_36 = arith.constant 1 : index
    %c1_37 = arith.constant 1 : index
    %c0_38 = arith.constant 0 : index
    %c0_39 = arith.constant 0 : index
    %42 = vector.load %arg4[%c1_36, %c1_37, %c0_38, %c0_39] : memref<3x3x128x128xbf16, #tpu.memory_space<vmem>>, vector<1x1x128x128xbf16>
    %43 = vector.shape_cast %42 : vector<1x1x128x128xbf16> to vector<128x128xbf16>
    %cst_40 = arith.constant dense<0.000000e+00> : vector<256x128xf32>
    %44 = tpu.matmul %41, %43, %cst_40 {dimension_numbers = #tpu.dot_dimension_numbers<[1], [0], [0], [1], [0, 0, 1, 1], [], []>} : vector<256x128xbf16>, vector<128x128xbf16>, vector<256x128xf32> -> vector<256x128xf32>
    %c0_41 = arith.constant 0 : index
    %c0_42 = arith.constant 0 : index
    %45 = vector.load %arg7[%c0_41, %c0_42] : memref<256x128xf32, #tpu.memory_space<vmem>>, vector<256x128xf32>
    %46 = arith.addf %45, %44 : vector<256x128xf32>
    %c0_43 = arith.constant 0 : index
    %c0_44 = arith.constant 0 : index
    %47 = vector.load %arg7[%c0_43, %c0_44] : memref<256x128xf32, #tpu.memory_space<vmem>>, vector<256x128xf32>
    tpu.vector_store %arg7[%c0_43, %c0_44], %46 {strides = array<i32>} : memref<256x128xf32, #tpu.memory_space<vmem>>, vector<256x128xf32>,
    %48 = vector.extract_strided_slice %31 {offsets = [0, 2, 0], sizes = [16, 16, 128], strides = [1, 1, 1]} : vector<16x18x128xbf16> to vector<16x16x128xbf16>
    %49 = vector.shape_cast %48 : vector<16x16x128xbf16> to vector<256x128xbf16>
    %c1_45 = arith.constant 1 : index
    %c2_46 = arith.constant 2 : index
    %c0_47 = arith.constant 0 : index
    %c0_48 = arith.constant 0 : index
    %50 = vector.load %arg4[%c1_45, %c2_46, %c0_47, %c0_48] : memref<3x3x128x128xbf16, #tpu.memory_space<vmem>>, vector<1x1x128x128xbf16>
    %51 = vector.shape_cast %50 : vector<1x1x128x128xbf16> to vector<128x128xbf16>
    %cst_49 = arith.constant dense<0.000000e+00> : vector<256x128xf32>
    %52 = tpu.matmul %49, %51, %cst_49 {dimension_numbers = #tpu.dot_dimension_numbers<[1], [0], [0], [1], [0, 0, 1, 1], [], []>} : vector<256x128xbf16>, vector<128x128xbf16>, vector<256x128xf32> -> vector<256x128xf32>
    %c0_50 = arith.constant 0 : index
    %c0_51 = arith.constant 0 : index
    %53 = vector.load %arg7[%c0_50, %c0_51] : memref<256x128xf32, #tpu.memory_space<vmem>>, vector<256x128xf32>
    %54 = arith.addf %53, %52 : vector<256x128xf32>
    %c0_52 = arith.constant 0 : index
    %c0_53 = arith.constant 0 : index
    %55 = vector.load %arg7[%c0_52, %c0_53] : memref<256x128xf32, #tpu.memory_space<vmem>>, vector<256x128xf32>
    tpu.vector_store %arg7[%c0_52, %c0_53], %54 {strides = array<i32>} : memref<256x128xf32, #tpu.memory_space<vmem>>, vector<256x128xf32>,
    %c2_i32 = arith.constant 2 : i32
    %56 = arith.addi %1, %c2_i32 : i32
    %c0_54 = arith.constant 0 : index
    %57 = arith.index_cast %56 : i32 to index
    %c0_55 = arith.constant 0 : index
    %c0_56 = arith.constant 0 : index
    %58 = vector.load %arg3[%c0_54, %57, %c0_55, %c0_56] : memref<1x18x18x128xbf16, #tpu.memory_space<vmem>>, vector<1x16x18x128xbf16>
    %59 = vector.shape_cast %58 : vector<1x16x18x128xbf16> to vector<16x18x128xbf16>
    %60 = vector.extract_strided_slice %59 {offsets = [0, 0, 0], sizes = [16, 16, 128], strides = [1, 1, 1]} : vector<16x18x128xbf16> to vector<16x16x128xbf16>
    %61 = vector.shape_cast %60 : vector<16x16x128xbf16> to vector<256x128xbf16>
    %c2_57 = arith.constant 2 : index
    %c0_58 = arith.constant 0 : index
    %c0_59 = arith.constant 0 : index
    %c0_60 = arith.constant 0 : index
    %62 = vector.load %arg4[%c2_57, %c0_58, %c0_59, %c0_60] : memref<3x3x128x128xbf16, #tpu.memory_space<vmem>>, vector<1x1x128x128xbf16>
    %63 = vector.shape_cast %62 : vector<1x1x128x128xbf16> to vector<128x128xbf16>
    %cst_61 = arith.constant dense<0.000000e+00> : vector<256x128xf32>
    %64 = tpu.matmul %61, %63, %cst_61 {dimension_numbers = #tpu.dot_dimension_numbers<[1], [0], [0], [1], [0, 0, 1, 1], [], []>} : vector<256x128xbf16>, vector<128x128xbf16>, vector<256x128xf32> -> vector<256x128xf32>
    %c0_62 = arith.constant 0 : index
    %c0_63 = arith.constant 0 : index
    %65 = vector.load %arg7[%c0_62, %c0_63] : memref<256x128xf32, #tpu.memory_space<vmem>>, vector<256x128xf32>
    %66 = arith.addf %65, %64 : vector<256x128xf32>
    %c0_64 = arith.constant 0 : index
    %c0_65 = arith.constant 0 : index
    %67 = vector.load %arg7[%c0_64, %c0_65] : memref<256x128xf32, #tpu.memory_space<vmem>>, vector<256x128xf32>
    tpu.vector_store %arg7[%c0_64, %c0_65], %66 {strides = array<i32>} : memref<256x128xf32, #tpu.memory_space<vmem>>, vector<256x128xf32>,
    %68 = vector.extract_strided_slice %59 {offsets = [0, 1, 0], sizes = [16, 16, 128], strides = [1, 1, 1]} : vector<16x18x128xbf16> to vector<16x16x128xbf16>
    %69 = vector.shape_cast %68 : vector<16x16x128xbf16> to vector<256x128xbf16>
    %c2_66 = arith.constant 2 : index
    %c1_67 = arith.constant 1 : index
    %c0_68 = arith.constant 0 : index
    %c0_69 = arith.constant 0 : index
    %70 = vector.load %arg4[%c2_66, %c1_67, %c0_68, %c0_69] : memref<3x3x128x128xbf16, #tpu.memory_space<vmem>>, vector<1x1x128x128xbf16>
    %71 = vector.shape_cast %70 : vector<1x1x128x128xbf16> to vector<128x128xbf16>
    %cst_70 = arith.constant dense<0.000000e+00> : vector<256x128xf32>
    %72 = tpu.matmul %69, %71, %cst_70 {dimension_numbers = #tpu.dot_dimension_numbers<[1], [0], [0], [1], [0, 0, 1, 1], [], []>} : vector<256x128xbf16>, vector<128x128xbf16>, vector<256x128xf32> -> vector<256x128xf32>
    %c0_71 = arith.constant 0 : index
    %c0_72 = arith.constant 0 : index
    %73 = vector.load %arg7[%c0_71, %c0_72] : memref<256x128xf32, #tpu.memory_space<vmem>>, vector<256x128xf32>
    %74 = arith.addf %73, %72 : vector<256x128xf32>
    %c0_73 = arith.constant 0 : index
    %c0_74 = arith.constant 0 : index
    %75 = vector.load %arg7[%c0_73, %c0_74] : memref<256x128xf32, #tpu.memory_space<vmem>>, vector<256x128xf32>
    tpu.vector_store %arg7[%c0_73, %c0_74], %74 {strides = array<i32>} : memref<256x128xf32, #tpu.memory_space<vmem>>, vector<256x128xf32>,
    %76 = vector.extract_strided_slice %59 {offsets = [0, 2, 0], sizes = [16, 16, 128], strides = [1, 1, 1]} : vector<16x18x128xbf16> to vector<16x16x128xbf16>
    %77 = vector.shape_cast %76 : vector<16x16x128xbf16> to vector<256x128xbf16>
    %c2_75 = arith.constant 2 : index
    %c2_76 = arith.constant 2 : index
    %c0_77 = arith.constant 0 : index
    %c0_78 = arith.constant 0 : index
    %78 = vector.load %arg4[%c2_75, %c2_76, %c0_77, %c0_78] : memref<3x3x128x128xbf16, #tpu.memory_space<vmem>>, vector<1x1x128x128xbf16>
    %79 = vector.shape_cast %78 : vector<1x1x128x128xbf16> to vector<128x128xbf16>
    %cst_79 = arith.constant dense<0.000000e+00> : vector<256x128xf32>
    %80 = tpu.matmul %77, %79, %cst_79 {dimension_numbers = #tpu.dot_dimension_numbers<[1], [0], [0], [1], [0, 0, 1, 1], [], []>} : vector<256x128xbf16>, vector<128x128xbf16>, vector<256x128xf32> -> vector<256x128xf32>
    %c0_80 = arith.constant 0 : index
    %c0_81 = arith.constant 0 : index
    %81 = vector.load %arg7[%c0_80, %c0_81] : memref<256x128xf32, #tpu.memory_space<vmem>>, vector<256x128xf32>
    %82 = arith.addf %81, %80 : vector<256x128xf32>
    %c0_82 = arith.constant 0 : index
    %c0_83 = arith.constant 0 : index
    %83 = vector.load %arg7[%c0_82, %c0_83] : memref<256x128xf32, #tpu.memory_space<vmem>>, vector<256x128xf32>
    tpu.vector_store %arg7[%c0_82, %c0_83], %82 {strides = array<i32>} : memref<256x128xf32, #tpu.memory_space<vmem>>, vector<256x128xf32>,
    %c0_84 = arith.constant 0 : index
    %c0_85 = arith.constant 0 : index
    %84 = vector.load %arg7[%c0_84, %c0_85] : memref<256x128xf32, #tpu.memory_space<vmem>>, vector<256x128xf32>
    %c0_86 = arith.constant 0 : index
    %c0_87 = arith.constant 0 : index
    %85 = vector.load %arg5[%c0_86, %c0_87] : memref<1x128xf32, #tpu.memory_space<vmem>>, vector<1x128xf32>
    %86 = vector.broadcast %85 : vector<1x128xf32> to vector<256x128xf32>
    %87 = arith.addf %84, %86 : vector<256x128xf32>
    %cst_88 = arith.constant 0.000000e+00 : f32
    %88 = vector.broadcast %cst_88 : f32 to vector<256x128xf32>
    %89 = arith.maximumf %87, %88 : vector<256x128xf32>
    %90 = arith.truncf %89 : vector<256x128xf32> to vector<256x128xbf16>
    %c0_89 = arith.constant 0 : index
    %c0_90 = arith.constant 0 : index
    %c0_91 = arith.constant 0 : index
    %91 = vector.load %arg6[%c0_89, %c0_90, %c0_91] : memref<1x256x128xbf16, #tpu.memory_space<vmem>>, vector<1x256x128xbf16>
    %92 = vector.shape_cast %91 : vector<1x256x128xbf16> to vector<256x128xbf16>
    %93 = vector.shape_cast %90 : vector<256x128xbf16> to vector<1x256x128xbf16>
    tpu.vector_store %arg6[%c0_89, %c0_90, %c0_91], %93 {strides = array<i32>} : memref<1x256x128xbf16, #tpu.memory_space<vmem>>, vector<1x256x128xbf16>,
    return
  }
  func.func @transform_0(%arg0: i32, %arg1: i32, %arg2: i32) -> (i32, i32, i32, i32) {
    %c0_i32 = arith.constant 0 : i32
    %c0_i32_0 = arith.constant 0 : i32
    %c0_i32_1 = arith.constant 0 : i32
    %c0_i32_2 = arith.constant 0 : i32
    return %arg0, %c0_i32, %c0_i32_0, %c0_i32_1 : i32, i32, i32, i32
  }
  func.func @transform_1(%arg0: i32, %arg1: i32, %arg2: i32) -> (i32, i32, i32, i32) {
    %c0_i32 = arith.constant 0 : i32
    %c0_i32_0 = arith.constant 0 : i32
    %c0_i32_1 = arith.constant 0 : i32
    %c0_i32_2 = arith.constant 0 : i32
    return %c0_i32, %c0_i32_0, %c0_i32_1, %arg1 : i32, i32, i32, i32
  }
  func.func @transform_2(%arg0: i32, %arg1: i32, %arg2: i32) -> (i32, i32) {
    %c0_i32 = arith.constant 0 : i32
    %c0_i32_0 = arith.constant 0 : i32
    return %c0_i32, %arg1 : i32, i32
  }
  func.func @transform_3(%arg0: i32, %arg1: i32, %arg2: i32) -> (i32, i32, i32) {
    %c0_i32 = arith.constant 0 : i32
    return %arg0, %arg2, %arg1 : i32, i32, i32
  }
}

module attributes {stable_mosaic.version = 11 : i64} {
  func.func @_conv_epilogue_kernel(%arg0: i32, %arg1: i32, %arg2: i32, %arg3: memref<1x18x18x256xbf16, #tpu.memory_space<vmem>>, %arg4: memref<3x3x256x256xbf16, #tpu.memory_space<vmem>>, %arg5: memref<1x256xf32, #tpu.memory_space<vmem>>, %arg6: memref<256x128xbf16, #tpu.memory_space<vmem>>, %arg7: memref<1x128xf32, #tpu.memory_space<vmem>>, %arg8: memref<1x256x128xf32, #tpu.memory_space<vmem>>, %arg9: memref<256x256xf32, #tpu.memory_space<vmem>>) attributes {dimension_semantics = [#tpu.dimension_semantics<parallel>, #tpu.dimension_semantics<parallel>, #tpu.dimension_semantics<parallel>], iteration_bounds = array<i64: 2, 1, 1>, scalar_prefetch = 0 : i64, scratch_operands = 1 : i64, tpu.core_type = #tpu.core_type<tc>, window_params = [{transform_indices = @transform_0, window_bounds = array<i64: 1, 18, 18, 256>}, {transform_indices = @transform_1, window_bounds = array<i64: 3, 3, 256, 256>}, {transform_indices = @transform_2, window_bounds = array<i64: 1, 256>}, {pipeline_mode = #tpu.pipeline_mode<synchronous>, transform_indices = @transform_3, window_bounds = array<i64: 256, 128>}, {pipeline_mode = #tpu.pipeline_mode<synchronous>, transform_indices = @transform_4, window_bounds = array<i64: 1, 128>}, {transform_indices = @transform_5, window_bounds = array<i64: 1, 256, 128>}]} {
    %c16_i32 = arith.constant 16 : i32
    %0 = arith.muli %arg2, %c16_i32 : i32
    %1 = tpu.assume_multiple %0, 8 : i32
    %c0_i32 = arith.constant 0 : i32
    %2 = arith.addi %1, %c0_i32 : i32
    %c0 = arith.constant 0 : index
    %3 = arith.index_cast %2 : i32 to index
    %c0_0 = arith.constant 0 : index
    %c0_1 = arith.constant 0 : index
    %4 = vector.load %arg3[%c0, %3, %c0_0, %c0_1] : memref<1x18x18x256xbf16, #tpu.memory_space<vmem>>, vector<1x16x18x256xbf16>
    %5 = vector.shape_cast %4 : vector<1x16x18x256xbf16> to vector<16x18x256xbf16>
    %6 = vector.extract_strided_slice %5 {offsets = [0, 0, 0], sizes = [16, 16, 256], strides = [1, 1, 1]} : vector<16x18x256xbf16> to vector<16x16x256xbf16>
    %7 = vector.shape_cast %6 : vector<16x16x256xbf16> to vector<256x256xbf16>
    %c0_2 = arith.constant 0 : index
    %c0_3 = arith.constant 0 : index
    %c0_4 = arith.constant 0 : index
    %c0_5 = arith.constant 0 : index
    %8 = vector.load %arg4[%c0_2, %c0_3, %c0_4, %c0_5] : memref<3x3x256x256xbf16, #tpu.memory_space<vmem>>, vector<1x1x256x256xbf16>
    %9 = vector.shape_cast %8 : vector<1x1x256x256xbf16> to vector<256x256xbf16>
    %cst = arith.constant dense<0.000000e+00> : vector<256x256xf32>
    %10 = tpu.matmul %7, %9, %cst {dimension_numbers = #tpu.dot_dimension_numbers<[1], [0], [0], [1], [0, 0, 1, 1], [], []>} : vector<256x256xbf16>, vector<256x256xbf16>, vector<256x256xf32> -> vector<256x256xf32>
    %c0_6 = arith.constant 0 : index
    %c0_7 = arith.constant 0 : index
    %11 = vector.load %arg9[%c0_6, %c0_7] : memref<256x256xf32, #tpu.memory_space<vmem>>, vector<256x256xf32>
    tpu.vector_store %arg9[%c0_6, %c0_7], %10 {strides = array<i32>} : memref<256x256xf32, #tpu.memory_space<vmem>>, vector<256x256xf32>,
    %12 = vector.extract_strided_slice %5 {offsets = [0, 1, 0], sizes = [16, 16, 256], strides = [1, 1, 1]} : vector<16x18x256xbf16> to vector<16x16x256xbf16>
    %13 = vector.shape_cast %12 : vector<16x16x256xbf16> to vector<256x256xbf16>
    %c0_8 = arith.constant 0 : index
    %c1 = arith.constant 1 : index
    %c0_9 = arith.constant 0 : index
    %c0_10 = arith.constant 0 : index
    %14 = vector.load %arg4[%c0_8, %c1, %c0_9, %c0_10] : memref<3x3x256x256xbf16, #tpu.memory_space<vmem>>, vector<1x1x256x256xbf16>
    %15 = vector.shape_cast %14 : vector<1x1x256x256xbf16> to vector<256x256xbf16>
    %cst_11 = arith.constant dense<0.000000e+00> : vector<256x256xf32>
    %16 = tpu.matmul %13, %15, %cst_11 {dimension_numbers = #tpu.dot_dimension_numbers<[1], [0], [0], [1], [0, 0, 1, 1], [], []>} : vector<256x256xbf16>, vector<256x256xbf16>, vector<256x256xf32> -> vector<256x256xf32>
    %c0_12 = arith.constant 0 : index
    %c0_13 = arith.constant 0 : index
    %17 = vector.load %arg9[%c0_12, %c0_13] : memref<256x256xf32, #tpu.memory_space<vmem>>, vector<256x256xf32>
    %18 = arith.addf %17, %16 : vector<256x256xf32>
    %c0_14 = arith.constant 0 : index
    %c0_15 = arith.constant 0 : index
    %19 = vector.load %arg9[%c0_14, %c0_15] : memref<256x256xf32, #tpu.memory_space<vmem>>, vector<256x256xf32>
    tpu.vector_store %arg9[%c0_14, %c0_15], %18 {strides = array<i32>} : memref<256x256xf32, #tpu.memory_space<vmem>>, vector<256x256xf32>,
    %20 = vector.extract_strided_slice %5 {offsets = [0, 2, 0], sizes = [16, 16, 256], strides = [1, 1, 1]} : vector<16x18x256xbf16> to vector<16x16x256xbf16>
    %21 = vector.shape_cast %20 : vector<16x16x256xbf16> to vector<256x256xbf16>
    %c0_16 = arith.constant 0 : index
    %c2 = arith.constant 2 : index
    %c0_17 = arith.constant 0 : index
    %c0_18 = arith.constant 0 : index
    %22 = vector.load %arg4[%c0_16, %c2, %c0_17, %c0_18] : memref<3x3x256x256xbf16, #tpu.memory_space<vmem>>, vector<1x1x256x256xbf16>
    %23 = vector.shape_cast %22 : vector<1x1x256x256xbf16> to vector<256x256xbf16>
    %cst_19 = arith.constant dense<0.000000e+00> : vector<256x256xf32>
    %24 = tpu.matmul %21, %23, %cst_19 {dimension_numbers = #tpu.dot_dimension_numbers<[1], [0], [0], [1], [0, 0, 1, 1], [], []>} : vector<256x256xbf16>, vector<256x256xbf16>, vector<256x256xf32> -> vector<256x256xf32>
    %c0_20 = arith.constant 0 : index
    %c0_21 = arith.constant 0 : index
    %25 = vector.load %arg9[%c0_20, %c0_21] : memref<256x256xf32, #tpu.memory_space<vmem>>, vector<256x256xf32>
    %26 = arith.addf %25, %24 : vector<256x256xf32>
    %c0_22 = arith.constant 0 : index
    %c0_23 = arith.constant 0 : index
    %27 = vector.load %arg9[%c0_22, %c0_23] : memref<256x256xf32, #tpu.memory_space<vmem>>, vector<256x256xf32>
    tpu.vector_store %arg9[%c0_22, %c0_23], %26 {strides = array<i32>} : memref<256x256xf32, #tpu.memory_space<vmem>>, vector<256x256xf32>,
    %c1_i32 = arith.constant 1 : i32
    %28 = arith.addi %1, %c1_i32 : i32
    %c0_24 = arith.constant 0 : index
    %29 = arith.index_cast %28 : i32 to index
    %c0_25 = arith.constant 0 : index
    %c0_26 = arith.constant 0 : index
    %30 = vector.load %arg3[%c0_24, %29, %c0_25, %c0_26] : memref<1x18x18x256xbf16, #tpu.memory_space<vmem>>, vector<1x16x18x256xbf16>
    %31 = vector.shape_cast %30 : vector<1x16x18x256xbf16> to vector<16x18x256xbf16>
    %32 = vector.extract_strided_slice %31 {offsets = [0, 0, 0], sizes = [16, 16, 256], strides = [1, 1, 1]} : vector<16x18x256xbf16> to vector<16x16x256xbf16>
    %33 = vector.shape_cast %32 : vector<16x16x256xbf16> to vector<256x256xbf16>
    %c1_27 = arith.constant 1 : index
    %c0_28 = arith.constant 0 : index
    %c0_29 = arith.constant 0 : index
    %c0_30 = arith.constant 0 : index
    %34 = vector.load %arg4[%c1_27, %c0_28, %c0_29, %c0_30] : memref<3x3x256x256xbf16, #tpu.memory_space<vmem>>, vector<1x1x256x256xbf16>
    %35 = vector.shape_cast %34 : vector<1x1x256x256xbf16> to vector<256x256xbf16>
    %cst_31 = arith.constant dense<0.000000e+00> : vector<256x256xf32>
    %36 = tpu.matmul %33, %35, %cst_31 {dimension_numbers = #tpu.dot_dimension_numbers<[1], [0], [0], [1], [0, 0, 1, 1], [], []>} : vector<256x256xbf16>, vector<256x256xbf16>, vector<256x256xf32> -> vector<256x256xf32>
    %c0_32 = arith.constant 0 : index
    %c0_33 = arith.constant 0 : index
    %37 = vector.load %arg9[%c0_32, %c0_33] : memref<256x256xf32, #tpu.memory_space<vmem>>, vector<256x256xf32>
    %38 = arith.addf %37, %36 : vector<256x256xf32>
    %c0_34 = arith.constant 0 : index
    %c0_35 = arith.constant 0 : index
    %39 = vector.load %arg9[%c0_34, %c0_35] : memref<256x256xf32, #tpu.memory_space<vmem>>, vector<256x256xf32>
    tpu.vector_store %arg9[%c0_34, %c0_35], %38 {strides = array<i32>} : memref<256x256xf32, #tpu.memory_space<vmem>>, vector<256x256xf32>,
    %40 = vector.extract_strided_slice %31 {offsets = [0, 1, 0], sizes = [16, 16, 256], strides = [1, 1, 1]} : vector<16x18x256xbf16> to vector<16x16x256xbf16>
    %41 = vector.shape_cast %40 : vector<16x16x256xbf16> to vector<256x256xbf16>
    %c1_36 = arith.constant 1 : index
    %c1_37 = arith.constant 1 : index
    %c0_38 = arith.constant 0 : index
    %c0_39 = arith.constant 0 : index
    %42 = vector.load %arg4[%c1_36, %c1_37, %c0_38, %c0_39] : memref<3x3x256x256xbf16, #tpu.memory_space<vmem>>, vector<1x1x256x256xbf16>
    %43 = vector.shape_cast %42 : vector<1x1x256x256xbf16> to vector<256x256xbf16>
    %cst_40 = arith.constant dense<0.000000e+00> : vector<256x256xf32>
    %44 = tpu.matmul %41, %43, %cst_40 {dimension_numbers = #tpu.dot_dimension_numbers<[1], [0], [0], [1], [0, 0, 1, 1], [], []>} : vector<256x256xbf16>, vector<256x256xbf16>, vector<256x256xf32> -> vector<256x256xf32>
    %c0_41 = arith.constant 0 : index
    %c0_42 = arith.constant 0 : index
    %45 = vector.load %arg9[%c0_41, %c0_42] : memref<256x256xf32, #tpu.memory_space<vmem>>, vector<256x256xf32>
    %46 = arith.addf %45, %44 : vector<256x256xf32>
    %c0_43 = arith.constant 0 : index
    %c0_44 = arith.constant 0 : index
    %47 = vector.load %arg9[%c0_43, %c0_44] : memref<256x256xf32, #tpu.memory_space<vmem>>, vector<256x256xf32>
    tpu.vector_store %arg9[%c0_43, %c0_44], %46 {strides = array<i32>} : memref<256x256xf32, #tpu.memory_space<vmem>>, vector<256x256xf32>,
    %48 = vector.extract_strided_slice %31 {offsets = [0, 2, 0], sizes = [16, 16, 256], strides = [1, 1, 1]} : vector<16x18x256xbf16> to vector<16x16x256xbf16>
    %49 = vector.shape_cast %48 : vector<16x16x256xbf16> to vector<256x256xbf16>
    %c1_45 = arith.constant 1 : index
    %c2_46 = arith.constant 2 : index
    %c0_47 = arith.constant 0 : index
    %c0_48 = arith.constant 0 : index
    %50 = vector.load %arg4[%c1_45, %c2_46, %c0_47, %c0_48] : memref<3x3x256x256xbf16, #tpu.memory_space<vmem>>, vector<1x1x256x256xbf16>
    %51 = vector.shape_cast %50 : vector<1x1x256x256xbf16> to vector<256x256xbf16>
    %cst_49 = arith.constant dense<0.000000e+00> : vector<256x256xf32>
    %52 = tpu.matmul %49, %51, %cst_49 {dimension_numbers = #tpu.dot_dimension_numbers<[1], [0], [0], [1], [0, 0, 1, 1], [], []>} : vector<256x256xbf16>, vector<256x256xbf16>, vector<256x256xf32> -> vector<256x256xf32>
    %c0_50 = arith.constant 0 : index
    %c0_51 = arith.constant 0 : index
    %53 = vector.load %arg9[%c0_50, %c0_51] : memref<256x256xf32, #tpu.memory_space<vmem>>, vector<256x256xf32>
    %54 = arith.addf %53, %52 : vector<256x256xf32>
    %c0_52 = arith.constant 0 : index
    %c0_53 = arith.constant 0 : index
    %55 = vector.load %arg9[%c0_52, %c0_53] : memref<256x256xf32, #tpu.memory_space<vmem>>, vector<256x256xf32>
    tpu.vector_store %arg9[%c0_52, %c0_53], %54 {strides = array<i32>} : memref<256x256xf32, #tpu.memory_space<vmem>>, vector<256x256xf32>,
    %c2_i32 = arith.constant 2 : i32
    %56 = arith.addi %1, %c2_i32 : i32
    %c0_54 = arith.constant 0 : index
    %57 = arith.index_cast %56 : i32 to index
    %c0_55 = arith.constant 0 : index
    %c0_56 = arith.constant 0 : index
    %58 = vector.load %arg3[%c0_54, %57, %c0_55, %c0_56] : memref<1x18x18x256xbf16, #tpu.memory_space<vmem>>, vector<1x16x18x256xbf16>
    %59 = vector.shape_cast %58 : vector<1x16x18x256xbf16> to vector<16x18x256xbf16>
    %60 = vector.extract_strided_slice %59 {offsets = [0, 0, 0], sizes = [16, 16, 256], strides = [1, 1, 1]} : vector<16x18x256xbf16> to vector<16x16x256xbf16>
    %61 = vector.shape_cast %60 : vector<16x16x256xbf16> to vector<256x256xbf16>
    %c2_57 = arith.constant 2 : index
    %c0_58 = arith.constant 0 : index
    %c0_59 = arith.constant 0 : index
    %c0_60 = arith.constant 0 : index
    %62 = vector.load %arg4[%c2_57, %c0_58, %c0_59, %c0_60] : memref<3x3x256x256xbf16, #tpu.memory_space<vmem>>, vector<1x1x256x256xbf16>
    %63 = vector.shape_cast %62 : vector<1x1x256x256xbf16> to vector<256x256xbf16>
    %cst_61 = arith.constant dense<0.000000e+00> : vector<256x256xf32>
    %64 = tpu.matmul %61, %63, %cst_61 {dimension_numbers = #tpu.dot_dimension_numbers<[1], [0], [0], [1], [0, 0, 1, 1], [], []>} : vector<256x256xbf16>, vector<256x256xbf16>, vector<256x256xf32> -> vector<256x256xf32>
    %c0_62 = arith.constant 0 : index
    %c0_63 = arith.constant 0 : index
    %65 = vector.load %arg9[%c0_62, %c0_63] : memref<256x256xf32, #tpu.memory_space<vmem>>, vector<256x256xf32>
    %66 = arith.addf %65, %64 : vector<256x256xf32>
    %c0_64 = arith.constant 0 : index
    %c0_65 = arith.constant 0 : index
    %67 = vector.load %arg9[%c0_64, %c0_65] : memref<256x256xf32, #tpu.memory_space<vmem>>, vector<256x256xf32>
    tpu.vector_store %arg9[%c0_64, %c0_65], %66 {strides = array<i32>} : memref<256x256xf32, #tpu.memory_space<vmem>>, vector<256x256xf32>,
    %68 = vector.extract_strided_slice %59 {offsets = [0, 1, 0], sizes = [16, 16, 256], strides = [1, 1, 1]} : vector<16x18x256xbf16> to vector<16x16x256xbf16>
    %69 = vector.shape_cast %68 : vector<16x16x256xbf16> to vector<256x256xbf16>
    %c2_66 = arith.constant 2 : index
    %c1_67 = arith.constant 1 : index
    %c0_68 = arith.constant 0 : index
    %c0_69 = arith.constant 0 : index
    %70 = vector.load %arg4[%c2_66, %c1_67, %c0_68, %c0_69] : memref<3x3x256x256xbf16, #tpu.memory_space<vmem>>, vector<1x1x256x256xbf16>
    %71 = vector.shape_cast %70 : vector<1x1x256x256xbf16> to vector<256x256xbf16>
    %cst_70 = arith.constant dense<0.000000e+00> : vector<256x256xf32>
    %72 = tpu.matmul %69, %71, %cst_70 {dimension_numbers = #tpu.dot_dimension_numbers<[1], [0], [0], [1], [0, 0, 1, 1], [], []>} : vector<256x256xbf16>, vector<256x256xbf16>, vector<256x256xf32> -> vector<256x256xf32>
    %c0_71 = arith.constant 0 : index
    %c0_72 = arith.constant 0 : index
    %73 = vector.load %arg9[%c0_71, %c0_72] : memref<256x256xf32, #tpu.memory_space<vmem>>, vector<256x256xf32>
    %74 = arith.addf %73, %72 : vector<256x256xf32>
    %c0_73 = arith.constant 0 : index
    %c0_74 = arith.constant 0 : index
    %75 = vector.load %arg9[%c0_73, %c0_74] : memref<256x256xf32, #tpu.memory_space<vmem>>, vector<256x256xf32>
    tpu.vector_store %arg9[%c0_73, %c0_74], %74 {strides = array<i32>} : memref<256x256xf32, #tpu.memory_space<vmem>>, vector<256x256xf32>,
    %76 = vector.extract_strided_slice %59 {offsets = [0, 2, 0], sizes = [16, 16, 256], strides = [1, 1, 1]} : vector<16x18x256xbf16> to vector<16x16x256xbf16>
    %77 = vector.shape_cast %76 : vector<16x16x256xbf16> to vector<256x256xbf16>
    %c2_75 = arith.constant 2 : index
    %c2_76 = arith.constant 2 : index
    %c0_77 = arith.constant 0 : index
    %c0_78 = arith.constant 0 : index
    %78 = vector.load %arg4[%c2_75, %c2_76, %c0_77, %c0_78] : memref<3x3x256x256xbf16, #tpu.memory_space<vmem>>, vector<1x1x256x256xbf16>
    %79 = vector.shape_cast %78 : vector<1x1x256x256xbf16> to vector<256x256xbf16>
    %cst_79 = arith.constant dense<0.000000e+00> : vector<256x256xf32>
    %80 = tpu.matmul %77, %79, %cst_79 {dimension_numbers = #tpu.dot_dimension_numbers<[1], [0], [0], [1], [0, 0, 1, 1], [], []>} : vector<256x256xbf16>, vector<256x256xbf16>, vector<256x256xf32> -> vector<256x256xf32>
    %c0_80 = arith.constant 0 : index
    %c0_81 = arith.constant 0 : index
    %81 = vector.load %arg9[%c0_80, %c0_81] : memref<256x256xf32, #tpu.memory_space<vmem>>, vector<256x256xf32>
    %82 = arith.addf %81, %80 : vector<256x256xf32>
    %c0_82 = arith.constant 0 : index
    %c0_83 = arith.constant 0 : index
    %83 = vector.load %arg9[%c0_82, %c0_83] : memref<256x256xf32, #tpu.memory_space<vmem>>, vector<256x256xf32>
    tpu.vector_store %arg9[%c0_82, %c0_83], %82 {strides = array<i32>} : memref<256x256xf32, #tpu.memory_space<vmem>>, vector<256x256xf32>,
    %c0_84 = arith.constant 0 : index
    %c0_85 = arith.constant 0 : index
    %84 = vector.load %arg9[%c0_84, %c0_85] : memref<256x256xf32, #tpu.memory_space<vmem>>, vector<256x256xf32>
    %c0_86 = arith.constant 0 : index
    %c0_87 = arith.constant 0 : index
    %85 = vector.load %arg5[%c0_86, %c0_87] : memref<1x256xf32, #tpu.memory_space<vmem>>, vector<1x256xf32>
    %86 = vector.broadcast %85 : vector<1x256xf32> to vector<256x256xf32>
    %87 = arith.addf %84, %86 : vector<256x256xf32>
    %cst_88 = arith.constant 0.000000e+00 : f32
    %88 = vector.broadcast %cst_88 : f32 to vector<256x256xf32>
    %89 = arith.maximumf %87, %88 : vector<256x256xf32>
    %90 = arith.truncf %89 : vector<256x256xf32> to vector<256x256xbf16>
    %c0_89 = arith.constant 0 : index
    %c0_90 = arith.constant 0 : index
    %91 = vector.load %arg6[%c0_89, %c0_90] : memref<256x128xbf16, #tpu.memory_space<vmem>>, vector<256x128xbf16>
    %cst_91 = arith.constant dense<0.000000e+00> : vector<256x128xf32>
    %92 = tpu.matmul %90, %91, %cst_91 {dimension_numbers = #tpu.dot_dimension_numbers<[1], [0], [0], [1], [0, 0, 1, 1], [], []>} : vector<256x256xbf16>, vector<256x128xbf16>, vector<256x128xf32> -> vector<256x128xf32>
    %c0_92 = arith.constant 0 : index
    %c0_93 = arith.constant 0 : index
    %93 = vector.load %arg7[%c0_92, %c0_93] : memref<1x128xf32, #tpu.memory_space<vmem>>, vector<1x128xf32>
    %94 = vector.broadcast %93 : vector<1x128xf32> to vector<256x128xf32>
    %95 = arith.addf %92, %94 : vector<256x128xf32>
    %c0_94 = arith.constant 0 : index
    %c0_95 = arith.constant 0 : index
    %c0_96 = arith.constant 0 : index
    %96 = vector.load %arg8[%c0_94, %c0_95, %c0_96] : memref<1x256x128xf32, #tpu.memory_space<vmem>>, vector<1x256x128xf32>
    %97 = vector.shape_cast %96 : vector<1x256x128xf32> to vector<256x128xf32>
    %98 = vector.shape_cast %95 : vector<256x128xf32> to vector<1x256x128xf32>
    tpu.vector_store %arg8[%c0_94, %c0_95, %c0_96], %98 {strides = array<i32>} : memref<1x256x128xf32, #tpu.memory_space<vmem>>, vector<1x256x128xf32>,
    return
  }
  func.func @transform_0(%arg0: i32, %arg1: i32, %arg2: i32) -> (i32, i32, i32, i32) {
    %c0_i32 = arith.constant 0 : i32
    %c0_i32_0 = arith.constant 0 : i32
    %c0_i32_1 = arith.constant 0 : i32
    %c0_i32_2 = arith.constant 0 : i32
    return %arg0, %c0_i32, %c0_i32_0, %c0_i32_1 : i32, i32, i32, i32
  }
  func.func @transform_1(%arg0: i32, %arg1: i32, %arg2: i32) -> (i32, i32, i32, i32) {
    %c0_i32 = arith.constant 0 : i32
    %c0_i32_0 = arith.constant 0 : i32
    %c0_i32_1 = arith.constant 0 : i32
    %c0_i32_2 = arith.constant 0 : i32
    return %c0_i32, %c0_i32_0, %c0_i32_1, %arg1 : i32, i32, i32, i32
  }
  func.func @transform_2(%arg0: i32, %arg1: i32, %arg2: i32) -> (i32, i32) {
    %c0_i32 = arith.constant 0 : i32
    %c0_i32_0 = arith.constant 0 : i32
    return %c0_i32, %arg1 : i32, i32
  }
  func.func @transform_3(%arg0: i32, %arg1: i32, %arg2: i32) -> (i32, i32) {
    %c0_i32 = arith.constant 0 : i32
    %c0_i32_0 = arith.constant 0 : i32
    %c0_i32_1 = arith.constant 0 : i32
    return %c0_i32, %c0_i32_0 : i32, i32
  }
  func.func @transform_4(%arg0: i32, %arg1: i32, %arg2: i32) -> (i32, i32) {
    %c0_i32 = arith.constant 0 : i32
    %c0_i32_0 = arith.constant 0 : i32
    %c0_i32_1 = arith.constant 0 : i32
    return %c0_i32, %c0_i32_0 : i32, i32
  }
  func.func @transform_5(%arg0: i32, %arg1: i32, %arg2: i32) -> (i32, i32, i32) {
    %c0_i32 = arith.constant 0 : i32
    return %arg0, %arg2, %arg1 : i32, i32, i32
  }
}

</mosaic_0001>

<bundles_post_ra>
// kernel: decoder_forward.3
= control target key start
LH: loop header
LB: loop body
LE: loop exit
PB: predicated region body
PF: predicated region fallthrough
CT: control target
= control target key end

     0   :  { %10 = vsyncpa [#allocation3], 0  ;;  %s1786_s18 = smov 0   ;;  %s1966_s0 = inlined_call_operand.vmem [shape: bf16[2,256,128], index: 0, kind: input, shape index: {}]   ;;  %s1967_s1 = inlined_call_operand.vmem [shape: bf16[128,128], index: 1, kind: input, shape index: {}]   ;;  %s1968_s2 = inlined_call_operand.vmem [shape: f32[1,128], index: 2, kind: input, shape index: {}]   ;;  %s1969_s3 = inlined_call_operand.hbm [shape: bf16[256,64], index: 3, kind: input, shape index: {}]   ;;  %s1970_s4 = inlined_call_operand.vmem [shape: bf16[2,64,128], index: 4, kind: input, shape index: {}]   ;;  %s1971_s5 = inlined_call_operand.vmem [shape: bf16[2,256,128], index: 5, kind: output, shape index: {}]  }
   0x1 LB: > { %s1792_s19 = sadd.s32 4294967295, %s1751_s18   ;;  %p1280_p0 = scmp.ge.s32.totalorder %s1751_s18, 1  ;;  %s1751_s18 = sphi %s1786_s18, %s16_s18  }
   0x2   : > { %p162_p1 = scmp.lt.s32.totalorder %s1751_s18, 3  ;;  %s1753_s20 = smov [#allocation2]  }
   0x3   : > { %s180_s21 = sshll.u32 %s1753_s20, 4  ;;  %p1972_p3 = scmp.eq.s32.totalorder %s1792_s19, 0  ;;  %s181_s21 = int_to_ptr.vmem [resolvable:$true] %s180_s21 }
   0x4   : > { %p1796_p2 = pnand %p1280_p0, %p162_p1  ;;  %s1713_s26 = scalar_lea.hbm %s1969_s3, 2048 }
   0x5   : > { %p1714_p6 = scmp.ne.s32.totalorder %s1969_s3, %s1713_s26  ;;  %p1720_p10 = scmp.lt.u32.totalorder %s1713_s26, %s1969_s3 }
   0x6   : > { %s1974_s22 = scalar_select %p1796_p2, 1, 0 }
   0x7   : > { %p1652_p4 = pneg %p1796_p2 }
   0x9   : > { %p1805_p5 = pnand %p1972_p3, %p1652_p4 }
   0xb   : > { %p1715_p7 = pneg %p1805_p5 }
   0xd   : > { %p1716_p8 = pnand %p1715_p7, %p1714_p6 }
   0xf   : > { %p1717_p9 = pneg %p1716_p8 }
  0x11   : > { %p1722_p11 = pnand %p1720_p10, %p1717_p9 }
  0x13   : > { %1725 = shalt.err (!%p1722_p11)
}
  0x14   : > { %s1726_s6 = scalar_lea.vmem %s181_s21, 2048  ;;  %p1734_p1 = scmp.lt.s32.totalorder %s181_s21, %s181_s21 }
  0x15   : > { %p1727_p12 = scmp.ne.s32.totalorder %s181_s21, %s1726_s6  ;;  %p1735_p4 = scmp.lt.s32.totalorder %s1726_s6, %s1726_s6 }
  0x17   : > { %p1729_p13 = pnand %p1727_p12, %p1715_p7  ;;  %p1736_p3 = por %p1735_p4, %p1734_p1 }
  0x19   : > { %p1730_p0 = pneg %p1729_p13 }
  0x1b   : > { %p1737_p2 = pnand %p1736_p3, %p1730_p0 }
  0x1d   : > { %1740 = shalt.err (!%p1737_p2)
}
  0x1e   : > { %s1754_s7 = smov 64   ;;  %s1755_s8 = smov 4  }
  0x1f   : > { %1655 = dma.hbm_to_vmem [thread:$0]  (!%p1805_p5), %s1969_s3, 2048, %s181_s21, [#allocation3], %s1754_s7, %s1754_s7, %s1755_s8  }
  0x20   : > { %p1976_p6 = scmp.ne.s32.totalorder %s1974_s22, 0 }
  0x21   : > { %p1977_p8 = scmp.eq.s32.totalorder (!%p1976_p6), %s1792_s19, 0 }
  0x22   : > { %212 = sbr.rel (%p1976_p6) target bundleno = 355 (0x163), region = 40 }
  0x29   : > { %1746 = dma.done.wait (%p1977_p8), [#allocation3], 2048   ;;  %p1978_p7 = pmov %p1977_p8 }
  0x2a   : > { %p245_p2 = scmp.lt.s32.totalorder %s1792_s19, 1  ;;  %v1669_v0 = vld [vmem:[%s1967_s1] sm:$0xff]   ;;  %v1670_v1 = vld [vmem:[%s1967_s1 + $0x8] sm:$0xff]   ;;  %v1671_v2 = vld [vmem:[%s1967_s1 + $0x10] sm:$0xff]   ;;  %vm797_vm0 = vcmask 523264  }
  0x2b   : > { %1748 = vsyncadd (%p1978_p7), [#allocation3], 4294965248  ;;  %1560 = vmatprep.subr.bf16.mxu0 %v1669_v0  ;;  %v1672_v5 = vld [vmem:[%s1967_s1 + $0x18] sm:$0xff]   ;;  %v1673_v7 = vld [vmem:[%s1967_s1 + $0x20] sm:$0xff]  }
  0x2c   : > { %s1980_s19 = smov (!%p245_p2, %s1792_s19), 1  ;;  %1561 = vmatpush3.bf16.msra.mxu0 %v1669_v0  ;;  %v1683_v10 = vld [vmem:[#allocation2] sm:$0xff]   ;;  %v1675_v11 = vld [vmem:[%s1967_s1 + $0x28] sm:$0xff]   ;;  %v1677_v12 = vld [vmem:[%s1967_s1 + $0x30] sm:$0xff]  }
  0x2d   : > { %s1387_s11 = sshll.u32 %s1980_s19, 5  ;;  %1562 = vmatprep.subr.bf16.mxu0 %v1670_v1  ;;  %s1386_s23 = sshll.u32 %s1980_s19, 7  ;;  %1616 = vmatprep.mubr.msk.bf16.mxu1 %vm797_vm0, %v1683_v10  ;;  %v1684_v13 = vld [vmem:[#allocation2 + $0x8] sm:$0xff]   ;;  %v1687_v14 = vld [vmem:[#allocation2 + $0x10] sm:$0xff]   ;;  %v1679_v15 = vld [vmem:[%s1967_s1 + $0x38] sm:$0xff]  }
  0x2e   : > { %s254_s20 = scalar_lea.vmem %s1970_s4, %s1387_s11  ;;  %s1857_s28 = scalar_lea.vmem %s1966_s0, %s1386_s23  ;;  %v1688_v16 = vld [vmem:[#allocation2 + $0x18] sm:$0xff]   ;;  %v1691_v17 = vld [vmem:[#allocation2 + $0x20] sm:$0xff]   ;;  %v1692_v20 = vld [vmem:[#allocation2 + $0x28] sm:$0xff]  }
  0x2f   : > { %v1674_v3 = vld [vmem:[%s254_s20] sm:$0xff]   ;;  %v1676_v4 = vld [vmem:[%s254_s20 + $0x8] sm:$0xff]   ;;  %v1678_v6 = vld [vmem:[%s254_s20 + $0x10] sm:$0xff]   ;;  %s1917_s16 = scalar_lea.vmem %s1971_s5, %s1386_s23 }
  0x30   : > { %1563 = vmatpush3.bf16.msra.mxu0 %v1670_v1  ;;  %1608 = vmatprep.subr.bf16.mxu1 %v1674_v3  ;;  %v1681_v8 = vld [vmem:[%s1857_s28] sm:$0xff]   ;;  %v1680_v9 = vld [vmem:[%s254_s20 + $0x18] sm:$0xff]   ;;  %v1682_v18 = vld [vmem:[%s1857_s28 + $0x8] sm:$0xff]  }
  0x31   : > { %1564 = vmatprep.subr.bf16.mxu0 %v1671_v2  ;;  %1609 = vmatpush3.bf16.msra.mxu1 %v1674_v3  ;;  %v1685_v19 = vld [vmem:[%s1857_s28 + $0x10] sm:$0xff]   ;;  %v1686_v22 = vld [vmem:[%s1857_s28 + $0x18] sm:$0xff]   ;;  %v1689_v23 = vld [vmem:[%s1857_s28 + $0x20] sm:$0xff]  }
  0x32   : > { %1610 = vmatprep.subr.bf16.mxu1 %v1676_v4  ;;  %1576 = vmatprep.mubr.bf16.mxu0 %v1681_v8  ;;  %v1695_v21 = vld [vmem:[#allocation2 + $0x30] sm:$0xff]   ;;  %v1696_v24 = vld [vmem:[#allocation2 + $0x38] sm:$0xff]   ;;  %v1699_v25 = vld [vmem:[#allocation2 + $0x40] sm:$0xff]  }
  0x33   : > { %v1690_v26 = vld [vmem:[%s1857_s28 + $0x28] sm:$0xff]   ;;  %v1693_v27 = vld [vmem:[%s1857_s28 + $0x30] sm:$0xff]   ;;  %v1694_v30 = vld [vmem:[%s1857_s28 + $0x38] sm:$0xff]  }
  0x34   : > { %1565 = vmatpush3.bf16.msra.mxu0 %v1671_v2  ;;  %v1700_v28 = vld [vmem:[#allocation2 + $0x48] sm:$0xff]   ;;  %v1703_v29 = vld [vmem:[#allocation2 + $0x50] sm:$0xff]   ;;  %v1697_v31 = vld [vmem:[%s1857_s28 + $0x40] sm:$0xff]  }
  0x35   : > { %1566 = vmatprep.subr.bf16.mxu0 %v1672_v5  ;;  %1611 = vmatpush3.bf16.msra.mxu1 %v1676_v4  ;;  %v1704_v32 = vld [vmem:[#allocation2 + $0x58] sm:$0xff]   ;;  %v1707_v33 = vld [vmem:[#allocation2 + $0x60] sm:$0xff]   ;;  %v1698_v34 = vld [vmem:[%s1857_s28 + $0x48] sm:$0xff]  }
  0x36   : > { %1612 = vmatprep.subr.bf16.mxu1 %v1678_v6  ;;  %v1701_v35 = vld [vmem:[%s1857_s28 + $0x50] sm:$0xff]   ;;  %v1708_v36 = vld [vmem:[#allocation2 + $0x68] sm:$0xff]   ;;  %v1702_v38 = vld [vmem:[%s1857_s28 + $0x58] sm:$0xff]  }
  0x37   : > { %v1711_v37 = vld [vmem:[#allocation2 + $0x70] sm:$0xff]   ;;  %v1705_v39 = vld [vmem:[%s1857_s28 + $0x60] sm:$0xff]   ;;  %v1712_v40 = vld [vmem:[#allocation2 + $0x78] sm:$0xff]  }
  0x38   : > { %1567 = vmatpush3.bf16.msra.mxu0 %v1672_v5  ;;  %v1706_v41 = vld [vmem:[%s1857_s28 + $0x68] sm:$0xff]   ;;  %v1709_v42 = vld [vmem:[%s1857_s28 + $0x70] sm:$0xff]   ;;  %v1710_v43 = vld [vmem:[%s1857_s28 + $0x78] sm:$0xff]  }
  0x39   : > { %1568 = vmatprep.subr.bf16.mxu0 %v1673_v7  ;;  %1613 = vmatpush3.bf16.msra.mxu1 %v1678_v6  ;;  %v1906_v49 = vld [vmem:[%s1968_s2] ss:$0 sm:$0xff] }
  0x3a   : > { %1614 = vmatprep.subr.bf16.mxu1 %v1680_v9 }
  0x3c   : > { %1569 = vmatpush3.bf16.msra.mxu0 %v1673_v7 }
  0x3d   : > { %1570 = vmatprep.subr.bf16.mxu0 %v1675_v11  ;;  %1615 = vmatpush3.bf16.msra.mxu1 %v1680_v9 }
  0x40   : > { %1571 = vmatpush3.bf16.msra.mxu0 %v1675_v11  ;;  %1617 = vmatmul.mubr.msk.bf16.vlgmr.msra.gmra.mrb[0].mxu1 %vm797_vm0, %v1684_v13 }
  0x41   : > { %1572 = vmatprep.subr.bf16.mxu0 %v1677_v12  ;;  %1620 = vmatprep.mubr.msk.bf16.mxu1 %vm797_vm0, %v1687_v14 }
  0x44   : > { %1573 = vmatpush3.bf16.msra.mxu0 %v1677_v12 }
  0x45   : > { %1574 = vmatprep.subr.bf16.mxu0 %v1679_v15 }
  0x48   : > { %1575 = vmatpush3.bf16.msra.mxu0 %v1679_v15  ;;  %1621 = vmatmul.mubr.msk.bf16.gmra.mrb[4].mxu1 %vm797_vm0, %v1688_v16 }
  0x49   : > { %1624 = vmatprep.mubr.msk.bf16.mxu1 %vm797_vm0, %v1691_v17 }
  0x4b   : > { %1577 = vmatmul.mubr.bf16.vlgmr.msra.gmra.mrb[0].mxu0 %v1682_v18 }
  0x4c   : > { %1580 = vmatprep.mubr.bf16.mxu0 %v1685_v19 }
  0x50   : > { %1625 = vmatmul.mubr.msk.bf16.gmra.mrb[8].mxu1 %vm797_vm0, %v1692_v20 }
  0x51   : > { %1628 = vmatprep.mubr.msk.bf16.mxu1 %vm797_vm0, %v1695_v21 }
  0x53   : > { %1581 = vmatmul.mubr.bf16.gmra.mrb[4].mxu0 %v1686_v22 }
  0x54   : > { %1584 = vmatprep.mubr.bf16.mxu0 %v1689_v23 }
  0x58   : > { %1629 = vmatmul.mubr.msk.bf16.gmra.mrb[12].mxu1 %vm797_vm0, %v1696_v24 }
  0x59   : > { %1632 = vmatprep.mubr.msk.bf16.mxu1 %vm797_vm0, %v1699_v25 }
  0x5b   : > { %1585 = vmatmul.mubr.bf16.gmra.mrb[8].mxu0 %v1690_v26 }
  0x5c   : > { %1588 = vmatprep.mubr.bf16.mxu0 %v1693_v27 }
  0x60   : > { %1633 = vmatmul.mubr.msk.bf16.gmra.mrb[16].mxu1 %vm797_vm0, %v1700_v28 }
  0x61   : > { %1636 = vmatprep.mubr.msk.bf16.mxu1 %vm797_vm0, %v1703_v29 }
  0x63   : > { %1589 = vmatmul.mubr.bf16.gmra.mrb[12].mxu0 %v1694_v30 }
  0x64   : > { %1592 = vmatprep.mubr.bf16.mxu0 %v1697_v31 }
  0x68   : > { %1637 = vmatmul.mubr.msk.bf16.gmra.mrb[20].mxu1 %vm797_vm0, %v1704_v32 }
  0x69   : > { %1640 = vmatprep.mubr.msk.bf16.mxu1 %vm797_vm0, %v1707_v33 }
  0x6b   : > { %1593 = vmatmul.mubr.bf16.gmra.mrb[16].mxu0 %v1698_v34 }
  0x6c   : > { %1596 = vmatprep.mubr.bf16.mxu0 %v1701_v35 }
  0x70   : > { %1641 = vmatmul.mubr.msk.bf16.gmra.mrb[24].mxu1 %vm797_vm0, %v1708_v36 }
  0x71   : > { %1644 = vmatprep.mubr.msk.bf16.mxu1 %vm797_vm0, %v1711_v37 }
  0x73   : > { %1597 = vmatmul.mubr.bf16.gmra.mrb[20].mxu0 %v1702_v38 }
  0x74   : > { %1600 = vmatprep.mubr.bf16.mxu0 %v1705_v39 }
  0x78   : > { %1645 = vmatmul.mubr.msk.bf16.gmra.mrb[28].mxu1 %vm797_vm0, %v1712_v40 }
  0x7b   : > { %1601 = vmatmul.mubr.bf16.gmra.mrb[24].mxu0 %v1706_v41 }
  0x7c   : > { %1604 = vmatprep.mubr.bf16.mxu0 %v1709_v42 }
  0x83   : > { %1605 = vmatmul.mubr.bf16.gmra.mrb[28].mxu0 %v1710_v43 }
 0x113   : > { %v1618_v44 = vpop.f32.mrb[0].mxu1 }
 0x114   : > { %v880_v45 = vpop.f32.mrb[1].mxu1 }
 0x115   : > { %v1619_v46 = vpop.f32.mrb[2].mxu1 }
 0x116   : > { %v883_v47 = vpop.f32.mrb[3].mxu1 }
 0x11b   : > { %v1622_v48 = vpop.f32.mrb[4].mxu1 }
 0x11c   : > { %v896_v50 = vpop.f32.mrb[5].mxu1 }
 0x11d   : > { %v1623_v51 = vpop.f32.mrb[6].mxu1 }
 0x11e   : > { %v1578_v52 = vpop.f32.mrb[0].mxu0  ;;  %v899_v53 = vpop.f32.mrb[7].mxu1 }
 0x11f   : > { %v503_v54 = vadd.f32 %v1578_v52, %v1906_v49  ;;  %v494_v55 = vpop.f32.mrb[1].mxu0 }
 0x120   : > { %v495_v56 = vadd.f32 %v1906_v49, %v494_v55  ;;  %v1579_v57 = vpop.f32.mrb[2].mxu0 }
 0x121   : > { %v623_v58 = vmax.f32 %v503_v54, 0.0  ;;  %v506_v59 = vadd.f32 %v1579_v57, %v1906_v49  ;;  %v497_v60 = vpop.f32.mrb[3].mxu0 }
 0x122   : > { %v621_v61 = vmax.f32 %v495_v56, 0.0  ;;  %v498_v62 = vadd.f32 %v1906_v49, %v497_v60 }
 0x123   : > { %v1009_v63 = vadd.f32 %v1618_v44, %v623_v58  ;;  %v624_v0 = vmax.f32 %v506_v59, 0.0  ;;  %v1626_v1 = vpop.f32.mrb[8].mxu1 }
 0x124   : > { %v1007_v2 = vadd.f32 %v880_v45, %v621_v61  ;;  %v622_v3 = vmax.f32 %v498_v62, 0.0  ;;  %v912_v4 = vpop.f32.mrb[9].mxu1 }
 0x125   : > { %v1010_v5 = vadd.f32 %v1619_v46, %v624_v0  ;;  %v1627_v6 = vpop.f32.mrb[10].mxu1 }
 0x126   : > { %v1008_v7 = vadd.f32 %v883_v47, %v622_v3  ;;  %v1582_v8 = vpop.f32.mrb[4].mxu0  ;;  %v915_v9 = vpop.f32.mrb[11].mxu1 }
 0x127   : > { %v1429_v10 = vpack.c.bf16 %v1010_v5, %v1009_v63  ;;  %v519_v11 = vadd.f32 %v1582_v8, %v1906_v49  ;;  %v510_v12 = vpop.f32.mrb[5].mxu0 }
 0x128   : > { %v1424_v13 = vpack.c.bf16 %v1008_v7, %v1007_v2  ;;  %v511_v14 = vadd.f32 %v1906_v49, %v510_v12  ;;  %v1583_v15 = vpop.f32.mrb[6].mxu0 }
 0x129   : > { %1501 = vst [vmem:[%s1917_s16 + $0x8] sm:$0xff] %v1429_v10   ;;  %v627_v16 = vmax.f32 %v519_v11, 0.0  ;;  %v522_v17 = vadd.f32 %v1583_v15, %v1906_v49  ;;  %v513_v18 = vpop.f32.mrb[7].mxu0 }
 0x12a   : > { %1425 = vst [vmem:[%s1917_s16] sm:$0xff] %v1424_v13   ;;  %v625_v19 = vmax.f32 %v511_v14, 0.0  ;;  %v514_v20 = vadd.f32 %v1906_v49, %v513_v18 }
 0x12b   : > { %v1013_v21 = vadd.f32 %v1622_v48, %v627_v16  ;;  %v628_v22 = vmax.f32 %v522_v17, 0.0  ;;  %v1630_v23 = vpop.f32.mrb[12].mxu1 }
 0x12c   : > { %v1011_v24 = vadd.f32 %v896_v50, %v625_v19  ;;  %v626_v25 = vmax.f32 %v514_v20, 0.0  ;;  %v928_v26 = vpop.f32.mrb[13].mxu1 }
 0x12d   : > { %v1014_v27 = vadd.f32 %v1623_v51, %v628_v22  ;;  %v1631_v28 = vpop.f32.mrb[14].mxu1 }
 0x12e   : > { %v1012_v29 = vadd.f32 %v899_v53, %v626_v25  ;;  %v1586_v30 = vpop.f32.mrb[8].mxu0  ;;  %v931_v31 = vpop.f32.mrb[15].mxu1 }
 0x12f   : > { %v1439_v32 = vpack.c.bf16 %v1014_v27, %v1013_v21  ;;  %v535_v33 = vadd.f32 %v1586_v30, %v1906_v49  ;;  %v526_v34 = vpop.f32.mrb[9].mxu0 }
 0x130   : > { %v1434_v35 = vpack.c.bf16 %v1012_v29, %v1011_v24  ;;  %v527_v36 = vadd.f32 %v1906_v49, %v526_v34  ;;  %v1587_v37 = vpop.f32.mrb[10].mxu0 }
 0x131   : > { %1503 = vst [vmem:[%s1917_s16 + $0x18] sm:$0xff] %v1439_v32   ;;  %v631_v38 = vmax.f32 %v535_v33, 0.0  ;;  %v538_v39 = vadd.f32 %v1587_v37, %v1906_v49  ;;  %v529_v40 = vpop.f32.mrb[11].mxu0 }
 0x132   : > { %1502 = vst [vmem:[%s1917_s16 + $0x10] sm:$0xff] %v1434_v35   ;;  %v629_v41 = vmax.f32 %v527_v36, 0.0  ;;  %v530_v42 = vadd.f32 %v1906_v49, %v529_v40 }
 0x133   : > { %v1017_v43 = vadd.f32 %v1626_v1, %v631_v38  ;;  %v632_v44 = vmax.f32 %v538_v39, 0.0  ;;  %v1634_v45 = vpop.f32.mrb[16].mxu1 }
 0x134   : > { %v1015_v46 = vadd.f32 %v912_v4, %v629_v41  ;;  %v630_v47 = vmax.f32 %v530_v42, 0.0  ;;  %v944_v48 = vpop.f32.mrb[17].mxu1 }
 0x135   : > { %v1018_v50 = vadd.f32 %v1627_v6, %v632_v44  ;;  %v1635_v51 = vpop.f32.mrb[18].mxu1 }
 0x136   : > { %v1016_v52 = vadd.f32 %v915_v9, %v630_v47  ;;  %v1590_v53 = vpop.f32.mrb[12].mxu0  ;;  %v947_v54 = vpop.f32.mrb[19].mxu1 }
 0x137   : > { %v1449_v55 = vpack.c.bf16 %v1018_v50, %v1017_v43  ;;  %v551_v56 = vadd.f32 %v1590_v53, %v1906_v49  ;;  %v542_v57 = vpop.f32.mrb[13].mxu0 }
 0x138   : > { %v1444_v58 = vpack.c.bf16 %v1016_v52, %v1015_v46  ;;  %v543_v59 = vadd.f32 %v1906_v49, %v542_v57  ;;  %v1591_v60 = vpop.f32.mrb[14].mxu0 }
 0x139   : > { %1505 = vst [vmem:[%s1917_s16 + $0x28] sm:$0xff] %v1449_v55   ;;  %v635_v61 = vmax.f32 %v551_v56, 0.0  ;;  %v554_v62 = vadd.f32 %v1591_v60, %v1906_v49  ;;  %v545_v63 = vpop.f32.mrb[15].mxu0 }
 0x13a   : > { %1504 = vst [vmem:[%s1917_s16 + $0x20] sm:$0xff] %v1444_v58   ;;  %v633_v0 = vmax.f32 %v543_v59, 0.0  ;;  %v546_v1 = vadd.f32 %v1906_v49, %v545_v63 }
 0x13b   : > { %v1021_v2 = vadd.f32 %v1630_v23, %v635_v61  ;;  %v636_v3 = vmax.f32 %v554_v62, 0.0  ;;  %v1638_v4 = vpop.f32.mrb[20].mxu1 }
 0x13c   : > { %v1019_v5 = vadd.f32 %v928_v26, %v633_v0  ;;  %v634_v6 = vmax.f32 %v546_v1, 0.0  ;;  %v960_v7 = vpop.f32.mrb[21].mxu1 }
 0x13d   : > { %v1022_v8 = vadd.f32 %v1631_v28, %v636_v3  ;;  %v1639_v9 = vpop.f32.mrb[22].mxu1 }
 0x13e   : > { %v1020_v10 = vadd.f32 %v931_v31, %v634_v6  ;;  %v1594_v11 = vpop.f32.mrb[16].mxu0  ;;  %v963_v12 = vpop.f32.mrb[23].mxu1 }
 0x13f   : > { %v1459_v13 = vpack.c.bf16 %v1022_v8, %v1021_v2  ;;  %v567_v14 = vadd.f32 %v1594_v11, %v1906_v49  ;;  %v558_v15 = vpop.f32.mrb[17].mxu0 }
 0x140   : > { %v1454_v16 = vpack.c.bf16 %v1020_v10, %v1019_v5  ;;  %v559_v17 = vadd.f32 %v1906_v49, %v558_v15  ;;  %v1595_v18 = vpop.f32.mrb[18].mxu0 }
 0x141   : > { %1507 = vst [vmem:[%s1917_s16 + $0x38] sm:$0xff] %v1459_v13   ;;  %v639_v19 = vmax.f32 %v567_v14, 0.0  ;;  %v570_v20 = vadd.f32 %v1595_v18, %v1906_v49  ;;  %v561_v21 = vpop.f32.mrb[19].mxu0 }
 0x142   : > { %1506 = vst [vmem:[%s1917_s16 + $0x30] sm:$0xff] %v1454_v16   ;;  %v637_v22 = vmax.f32 %v559_v17, 0.0  ;;  %v562_v23 = vadd.f32 %v1906_v49, %v561_v21 }
 0x143   : > { %v1025_v24 = vadd.f32 %v1634_v45, %v639_v19  ;;  %v640_v25 = vmax.f32 %v570_v20, 0.0  ;;  %v1642_v26 = vpop.f32.mrb[24].mxu1 }
 0x144   : > { %v1023_v27 = vadd.f32 %v944_v48, %v637_v22  ;;  %v638_v28 = vmax.f32 %v562_v23, 0.0  ;;  %v976_v29 = vpop.f32.mrb[25].mxu1 }
 0x145   : > { %v1026_v30 = vadd.f32 %v1635_v51, %v640_v25  ;;  %v1643_v31 = vpop.f32.mrb[26].mxu1 }
 0x146   : > { %v1024_v32 = vadd.f32 %v947_v54, %v638_v28  ;;  %v1598_v33 = vpop.f32.mrb[20].mxu0  ;;  %v979_v34 = vpop.f32.mrb[27].mxu1 }
 0x147   : > { %v1469_v35 = vpack.c.bf16 %v1026_v30, %v1025_v24  ;;  %v583_v36 = vadd.f32 %v1598_v33, %v1906_v49  ;;  %v574_v37 = vpop.f32.mrb[21].mxu0 }
 0x148   : > { %v1464_v38 = vpack.c.bf16 %v1024_v32, %v1023_v27  ;;  %v575_v39 = vadd.f32 %v1906_v49, %v574_v37  ;;  %v1599_v40 = vpop.f32.mrb[22].mxu0 }
 0x149   : > { %1509 = vst [vmem:[%s1917_s16 + $0x48] sm:$0xff] %v1469_v35   ;;  %v643_v41 = vmax.f32 %v583_v36, 0.0  ;;  %v586_v42 = vadd.f32 %v1599_v40, %v1906_v49  ;;  %v577_v43 = vpop.f32.mrb[23].mxu0 }
 0x14a   : > { %1508 = vst [vmem:[%s1917_s16 + $0x40] sm:$0xff] %v1464_v38   ;;  %v641_v44 = vmax.f32 %v575_v39, 0.0  ;;  %v578_v45 = vadd.f32 %v1906_v49, %v577_v43 }
 0x14b   : > { %v1029_v46 = vadd.f32 %v1638_v4, %v643_v41  ;;  %v644_v47 = vmax.f32 %v586_v42, 0.0  ;;  %v1646_v48 = vpop.f32.mrb[28].mxu1 }
 0x14c   : > { %v1027_v50 = vadd.f32 %v960_v7, %v641_v44  ;;  %v642_v51 = vmax.f32 %v578_v45, 0.0  ;;  %v992_v52 = vpop.f32.mrb[29].mxu1 }
 0x14d   : > { %v1030_v53 = vadd.f32 %v1639_v9, %v644_v47  ;;  %v1647_v54 = vpop.f32.mrb[30].mxu1 }
 0x14e   : > { %v1028_v55 = vadd.f32 %v963_v12, %v642_v51  ;;  %v1602_v56 = vpop.f32.mrb[24].mxu0  ;;  %v995_v57 = vpop.f32.mrb[31].mxu1 }
 0x14f   : > { %v1479_v58 = vpack.c.bf16 %v1030_v53, %v1029_v46  ;;  %v599_v59 = vadd.f32 %v1602_v56, %v1906_v49  ;;  %v590_v60 = vpop.f32.mrb[25].mxu0 }
 0x150   : > { %v1474_v61 = vpack.c.bf16 %v1028_v55, %v1027_v50  ;;  %v591_v62 = vadd.f32 %v1906_v49, %v590_v60  ;;  %v1603_v63 = vpop.f32.mrb[26].mxu0 }
 0x151   : > { %1511 = vst [vmem:[%s1917_s16 + $0x58] sm:$0xff] %v1479_v58   ;;  %v647_v0 = vmax.f32 %v599_v59, 0.0  ;;  %v602_v1 = vadd.f32 %v1603_v63, %v1906_v49  ;;  %v593_v2 = vpop.f32.mrb[27].mxu0 }
 0x152   : > { %1510 = vst [vmem:[%s1917_s16 + $0x50] sm:$0xff] %v1474_v61   ;;  %v645_v3 = vmax.f32 %v591_v62, 0.0  ;;  %v594_v4 = vadd.f32 %v1906_v49, %v593_v2 }
 0x153   : > { %v1033_v5 = vadd.f32 %v1642_v26, %v647_v0  ;;  %v648_v6 = vmax.f32 %v602_v1, 0.0 }
 0x154   : > { %v1031_v7 = vadd.f32 %v976_v29, %v645_v3  ;;  %v646_v8 = vmax.f32 %v594_v4, 0.0 }
 0x155   : > { %v1034_v9 = vadd.f32 %v1643_v31, %v648_v6 }
 0x156   : > { %v1032_v10 = vadd.f32 %v979_v34, %v646_v8  ;;  %v1606_v11 = vpop.f32.mrb[28].mxu0 }
 0x157   : > { %v1489_v12 = vpack.c.bf16 %v1034_v9, %v1033_v5  ;;  %v615_v13 = vadd.f32 %v1606_v11, %v1906_v49  ;;  %v606_v14 = vpop.f32.mrb[29].mxu0 }
 0x158   : > { %v1484_v15 = vpack.c.bf16 %v1032_v10, %v1031_v7  ;;  %v607_v16 = vadd.f32 %v1906_v49, %v606_v14  ;;  %v1607_v17 = vpop.f32.mrb[30].mxu0 }
 0x159   : > { %1513 = vst [vmem:[%s1917_s16 + $0x68] sm:$0xff] %v1489_v12   ;;  %v651_v18 = vmax.f32 %v615_v13, 0.0  ;;  %v618_v19 = vadd.f32 %v1607_v17, %v1906_v49  ;;  %v609_v20 = vpop.f32.mrb[31].mxu0 }
 0x15a   : > { %1512 = vst [vmem:[%s1917_s16 + $0x60] sm:$0xff] %v1484_v15   ;;  %v649_v21 = vmax.f32 %v607_v16, 0.0  ;;  %v610_v22 = vadd.f32 %v1906_v49, %v609_v20 }
 0x15b   : > { %v1037_v23 = vadd.f32 %v1646_v48, %v651_v18  ;;  %v652_v24 = vmax.f32 %v618_v19, 0.0 }
 0x15c   : > { %v1035_v25 = vadd.f32 %v992_v52, %v649_v21  ;;  %v650_v26 = vmax.f32 %v610_v22, 0.0 }
 0x15d   : > { %v1038_v27 = vadd.f32 %v1647_v54, %v652_v24 }
 0x15e   : > { %v1036_v28 = vadd.f32 %v995_v57, %v650_v26 }
 0x15f   : > { %v1499_v29 = vpack.c.bf16 %v1038_v27, %v1037_v23 }
 0x160   : > { %v1494_v30 = vpack.c.bf16 %v1036_v28, %v1035_v25 }
 0x161   : > { %1515 = vst [vmem:[%s1917_s16 + $0x78] sm:$0xff] %v1499_v29  }
 0x162   : > { %1514 = vst [vmem:[%s1917_s16 + $0x70] sm:$0xff] %v1494_v30  }
 0x163 PF: > { %s16_s18 = sadd.s32 1, %s1751_s18  }
 0x164   : > { %p13_p3 = scmp.ge.s32.totalorder %s16_s18, 4  }
 0x166   :  { %15 = sbr.rel (!%p13_p3) target bundleno = 1 (0x1), region = 78 }
 0x16d   :  { %1220 = vsyncpa [#allocation3], 1 }
 0x16e   :  { %1222 = vsyncpa [#allocation3 + $0x1], 1 }

// kernel: decoder_forward.4
= control target key start
LH: loop header
LB: loop body
LE: loop exit
PB: predicated region body
PF: predicated region fallthrough
CT: control target
= control target key end

     0   :  { %s8561_s12 = smov 0   ;;  %s8563_s13 = smov 0   ;;  %s11055_s0 = inlined_call_operand.vmem [shape: bf16[2,18,18,128], index: 0, kind: input, shape index: {}]   ;;  %s11056_s1 = inlined_call_operand.vmem [shape: bf16[3,3,128,256], index: 1, kind: input, shape index: {}]   ;;  %s11057_s2 = inlined_call_operand.vmem [shape: f32[1,256], index: 2, kind: input, shape index: {}]   ;;  %s11058_s3 = inlined_call_operand.vmem [shape: bf16[2,256,256], index: 3, kind: output, shape index: {}]  }
   0x1   :  { %s8565_s14 = smov 0   ;;  %s8567_s15 = smov 0  }
   0x2   :  { %s8569_s16 = smov 0   ;;  %s8571_s17 = smov 0  }
   0x3   :  { %s8573_s18 = smov 0   ;;  %s8575_s19 = smov 0  }
   0x4   :  { %s8577_s20 = smov 0  }
   0x5 LB: > { %s6586_s21 = sadd.s32 4294967295, %s8539_s20   ;;  %s28_s22 = sadd.s32 1, %s8531_s18  ;;  %s8539_s20 = sphi %s8577_s20, %s13_s20   ;;  %s8535_s19 = sphi %s8575_s19, %s11252_s19   ;;  %s8531_s18 = sphi %s8573_s18, %s11251_s18   ;;  %s8527_s17 = sphi %s8571_s17, %s11250_s17   ;;  %s8523_s16 = sphi %s8569_s16, %s11249_s16   ;;  %s8519_s15 = sphi %s8567_s15, %s11248_s15   ;;  %s8515_s14 = sphi %s8565_s14, %s11247_s14   ;;  %s8511_s13 = sphi %s8563_s13, %s11246_s13   ;;  %s8507_s12 = sphi %s8561_s12, %s11245_s12  }
   0x6   : > { %p30_p0 = scmp.ge.s32.totalorder %s28_s22, 2  ;;  %s32_s23 = sadd.s32 1, %s8535_s19 }
   0x7   : > { %s65_s24 = sadd.s32 1, %s8519_s15  ;;  %p72_p1 = scmp.ne.s32.totalorder %s8519_s15, %s8515_s14 }
   0x8   : > { %s11254_s22 = smov (%p30_p0, %s28_s22), 0  ;;  %s11256_s23 = smov (!%p30_p0, %s32_s23), %s8535_s19 }
   0x9   : > { %s62_s25 = ssub.s32 %s8531_s18, %s11254_s22  ;;  %p73_p2 = scmp.eq.s32.totalorder %s8539_s20, 0 }
   0xa   : > { %p34_p3 = scmp.ge.s32.totalorder %s11256_s23, 2  ;;  %p63_p4 = scmp.eq.s32.totalorder %s62_s25, 0 }
   0xb   : > { %p74_p5 = por %p73_p2, %p72_p1  ;;  %s121_s26 = sadd.s32 1, %s8511_s13 }
   0xc   : > { %s11258_s23 = smov (%p34_p3, %s11256_s23), 0  ;;  %p131_p6 = scmp.ne.s32.totalorder %s8511_s13, %s8507_s12 }
   0xd   : > { %s8622_s27 = scalar_select %p63_p4, %s8519_s15, %s65_s24  }
   0xe   : > { %s114_s28 = ssub.s32 %s8535_s19, %s11258_s23  ;;  %p132_p7 = scmp.eq.s32.totalorder %s6586_s21, 3 }
   0xf   : > { %s118_s29 = sor.u32 %s114_s28, %s62_s25  ;;  %p6589_p10 = scmp.ge.s32.totalorder %s8539_s20, 4 }
  0x10   : > { %p119_p8 = scmp.eq.s32.totalorder %s118_s29, 0  ;;  %p8628_p9 = por %p132_p7, %p131_p6 }
  0x11   : > { %154 = sbr.rel (%p6589_p10) target bundleno = 124 (0x7c), region = 16 }
  0x12   : > { %s8633_s4 = scalar_select %p119_p8, %s8511_s13, %s121_s26  }
  0x18   : > { %165 = sbr.rel (!%p74_p5) target bundleno = 124 (0x7c), region = 24  ;;  %s167_s5 = sand.u32 (%p74_p5), 1, %s8519_s15  }
  0x19   : > { %s6590_s6 = sshll.u32 (%p74_p5), %s8531_s18, 2  ;;  %s8167_s7 = smul.u32 (%p74_p5), 576, %s167_s5 }
  0x1a   : > { %s8641_s10 = scalar_lea.vmem (%p74_p5), %s11056_s1, %s6590_s6 }
  0x1b   : > { %v187_v0 = vld [vmem:[%s8641_s10] sm:$0xf] (%p74_p5)  ;;  %v189_v1 = vld [vmem:[%s8641_s10 + $0x8] sm:$0xf] (%p74_p5)  ;;  %v191_v2 = vld [vmem:[%s8641_s10 + $0x10] sm:$0xf] (%p74_p5) }
  0x1c   : > { %v193_v3 = vld [vmem:[%s8641_s10 + $0x18] sm:$0xf] (%p74_p5)  ;;  %v195_v4 = vld [vmem:[%s8641_s10 + $0x20] sm:$0xf] (%p74_p5)  ;;  %s8648_s11 = scalar_lea.vmem (%p74_p5), [#allocation3], %s8167_s7 }
  0x1d   : > { %188 = vst [vmem:[%s8648_s11] sm:$0xf] (%p74_p5), %v187_v0  ;;  %190 = vst [vmem:[%s8648_s11 + $0x4] sm:$0xf] (%p74_p5), %v189_v1  ;;  %v197_v5 = vld [vmem:[%s8641_s10 + $0x28] sm:$0xf] (%p74_p5) }
  0x1e   : > { %192 = vst [vmem:[%s8648_s11 + $0x8] sm:$0xf] (%p74_p5), %v191_v2  ;;  %194 = vst [vmem:[%s8648_s11 + $0xc] sm:$0xf] (%p74_p5), %v193_v3  ;;  %v199_v6 = vld [vmem:[%s8641_s10 + $0x30] sm:$0xf] (%p74_p5) }
  0x1f   : > { %196 = vst [vmem:[%s8648_s11 + $0x10] sm:$0xf] %v195_v4  ;;  %v201_v7 = vld [vmem:[%s8641_s10 + $0x38] sm:$0xf]  ;;  %198 = vst [vmem:[%s8648_s11 + $0x14] sm:$0xf] %v197_v5 }
  0x20   : > { %200 = vst [vmem:[%s8648_s11 + $0x18] sm:$0xf] %v199_v6  ;;  %202 = vst [vmem:[%s8648_s11 + $0x1c] sm:$0xf] %v201_v7  ;;  %v203_v8 = vld [vmem:[%s8641_s10 + $0x40] sm:$0xf] }
  0x21   : > { %v205_v9 = vld [vmem:[%s8641_s10 + $0x48] sm:$0xf]  ;;  %v207_v10 = vld [vmem:[%s8641_s10 + $0x50] sm:$0xf]  ;;  %204 = vst [vmem:[%s8648_s11 + $0x20] sm:$0xf] %v203_v8 }
  0x22   : > { %206 = vst [vmem:[%s8648_s11 + $0x24] sm:$0xf] %v205_v9  ;;  %208 = vst [vmem:[%s8648_s11 + $0x28] sm:$0xf] %v207_v10  ;;  %v209_v11 = vld [vmem:[%s8641_s10 + $0x58] sm:$0xf] }
  0x23   : > { %v211_v12 = vld [vmem:[%s8641_s10 + $0x60] sm:$0xf]  ;;  %v213_v13 = vld [vmem:[%s8641_s10 + $0x68] sm:$0xf]  ;;  %210 = vst [vmem:[%s8648_s11 + $0x2c] sm:$0xf] %v209_v11 }
  0x24   : > { %212 = vst [vmem:[%s8648_s11 + $0x30] sm:$0xf] %v211_v12  ;;  %214 = vst [vmem:[%s8648_s11 + $0x34] sm:$0xf] %v213_v13  ;;  %v215_v14 = vld [vmem:[%s8641_s10 + $0x70] sm:$0xf] }
  0x25   : > { %v217_v15 = vld [vmem:[%s8641_s10 + $0x78] sm:$0xf]  ;;  %v219_v16 = vld [vmem:[%s8641_s10 + $0x80] sm:$0xf]  ;;  %216 = vst [vmem:[%s8648_s11 + $0x38] sm:$0xf] %v215_v14 }
  0x26   : > { %218 = vst [vmem:[%s8648_s11 + $0x3c] sm:$0xf] %v217_v15  ;;  %220 = vst [vmem:[%s8648_s11 + $0x40] sm:$0xf] %v219_v16  ;;  %v221_v17 = vld [vmem:[%s8641_s10 + $0x88] sm:$0xf] }
  0x27   : > { %v223_v18 = vld [vmem:[%s8641_s10 + $0x90] sm:$0xf]  ;;  %v225_v19 = vld [vmem:[%s8641_s10 + $0x98] sm:$0xf]  ;;  %222 = vst [vmem:[%s8648_s11 + $0x44] sm:$0xf] %v221_v17 }
  0x28   : > { %224 = vst [vmem:[%s8648_s11 + $0x48] sm:$0xf] %v223_v18  ;;  %226 = vst [vmem:[%s8648_s11 + $0x4c] sm:$0xf] %v225_v19  ;;  %v227_v20 = vld [vmem:[%s8641_s10 + $0xa0] sm:$0xf] }
  0x29   : > { %v229_v21 = vld [vmem:[%s8641_s10 + $0xa8] sm:$0xf]  ;;  %v231_v22 = vld [vmem:[%s8641_s10 + $0xb0] sm:$0xf]  ;;  %228 = vst [vmem:[%s8648_s11 + $0x50] sm:$0xf] %v227_v20 }
  0x2a   : > { %230 = vst [vmem:[%s8648_s11 + $0x54] sm:$0xf] %v229_v21  ;;  %232 = vst [vmem:[%s8648_s11 + $0x58] sm:$0xf] %v231_v22  ;;  %v233_v23 = vld [vmem:[%s8641_s10 + $0xb8] sm:$0xf] }
  0x2b   : > { %v235_v24 = vld [vmem:[%s8641_s10 + $0xc0] sm:$0xf]  ;;  %v237_v25 = vld [vmem:[%s8641_s10 + $0xc8] sm:$0xf]  ;;  %234 = vst [vmem:[%s8648_s11 + $0x5c] sm:$0xf] %v233_v23 }
  0x2c   : > { %236 = vst [vmem:[%s8648_s11 + $0x60] sm:$0xf] %v235_v24  ;;  %238 = vst [vmem:[%s8648_s11 + $0x64] sm:$0xf] %v237_v25  ;;  %v239_v26 = vld [vmem:[%s8641_s10 + $0xd0] sm:$0xf] }
  0x2d   : > { %v241_v27 = vld [vmem:[%s8641_s10 + $0xd8] sm:$0xf]  ;;  %v243_v28 = vld [vmem:[%s8641_s10 + $0xe0] sm:$0xf]  ;;  %240 = vst [vmem:[%s8648_s11 + $0x68] sm:$0xf] %v239_v26 }
  0x2e   : > { %242 = vst [vmem:[%s8648_s11 + $0x6c] sm:$0xf] %v241_v27  ;;  %244 = vst [vmem:[%s8648_s11 + $0x70] sm:$0xf] %v243_v28  ;;  %v245_v29 = vld [vmem:[%s8641_s10 + $0xe8] sm:$0xf] }
  0x2f   : > { %v247_v30 = vld [vmem:[%s8641_s10 + $0xf0] sm:$0xf]  ;;  %v249_v31 = vld [vmem:[%s8641_s10 + $0xf8] sm:$0xf]  ;;  %246 = vst [vmem:[%s8648_s11 + $0x74] sm:$0xf] %v245_v29 }
  0x30   : > { %248 = vst [vmem:[%s8648_s11 + $0x78] sm:$0xf] %v247_v30  ;;  %250 = vst [vmem:[%s8648_s11 + $0x7c] sm:$0xf] %v249_v31  ;;  %v251_v32 = vld [vmem:[%s8641_s10 + $0x100] sm:$0xf] }
  0x31   : > { %v253_v33 = vld [vmem:[%s8641_s10 + $0x108] sm:$0xf]  ;;  %v255_v34 = vld [vmem:[%s8641_s10 + $0x110] sm:$0xf]  ;;  %252 = vst [vmem:[%s8648_s11 + $0x80] sm:$0xf] %v251_v32 }
  0x32   : > { %254 = vst [vmem:[%s8648_s11 + $0x84] sm:$0xf] %v253_v33  ;;  %256 = vst [vmem:[%s8648_s11 + $0x88] sm:$0xf] %v255_v34  ;;  %v257_v35 = vld [vmem:[%s8641_s10 + $0x118] sm:$0xf] }
  0x33   : > { %v259_v36 = vld [vmem:[%s8641_s10 + $0x120] sm:$0xf]  ;;  %v261_v37 = vld [vmem:[%s8641_s10 + $0x128] sm:$0xf]  ;;  %258 = vst [vmem:[%s8648_s11 + $0x8c] sm:$0xf] %v257_v35 }
  0x34   : > { %260 = vst [vmem:[%s8648_s11 + $0x90] sm:$0xf] %v259_v36  ;;  %262 = vst [vmem:[%s8648_s11 + $0x94] sm:$0xf] %v261_v37  ;;  %v263_v38 = vld [vmem:[%s8641_s10 + $0x130] sm:$0xf] }
  0x35   : > { %v265_v39 = vld [vmem:[%s8641_s10 + $0x138] sm:$0xf]  ;;  %v267_v40 = vld [vmem:[%s8641_s10 + $0x140] sm:$0xf]  ;;  %264 = vst [vmem:[%s8648_s11 + $0x98] sm:$0xf] %v263_v38 }
  0x36   : > { %266 = vst [vmem:[%s8648_s11 + $0x9c] sm:$0xf] %v265_v39  ;;  %268 = vst [vmem:[%s8648_s11 + $0xa0] sm:$0xf] %v267_v40  ;;  %v269_v41 = vld [vmem:[%s8641_s10 + $0x148] sm:$0xf] }
  0x37   : > { %v271_v42 = vld [vmem:[%s8641_s10 + $0x150] sm:$0xf]  ;;  %v273_v43 = vld [vmem:[%s8641_s10 + $0x158] sm:$0xf]  ;;  %270 = vst [vmem:[%s8648_s11 + $0xa4] sm:$0xf] %v269_v41 }
  0x38   : > { %272 = vst [vmem:[%s8648_s11 + $0xa8] sm:$0xf] %v271_v42  ;;  %274 = vst [vmem:[%s8648_s11 + $0xac] sm:$0xf] %v273_v43  ;;  %v275_v44 = vld [vmem:[%s8641_s10 + $0x160] sm:$0xf] }
  0x39   : > { %v277_v45 = vld [vmem:[%s8641_s10 + $0x168] sm:$0xf]  ;;  %v279_v46 = vld [vmem:[%s8641_s10 + $0x170] sm:$0xf]  ;;  %276 = vst [vmem:[%s8648_s11 + $0xb0] sm:$0xf] %v275_v44 }
  0x3a   : > { %278 = vst [vmem:[%s8648_s11 + $0xb4] sm:$0xf] %v277_v45  ;;  %280 = vst [vmem:[%s8648_s11 + $0xb8] sm:$0xf] %v279_v46  ;;  %v281_v47 = vld [vmem:[%s8641_s10 + $0x178] sm:$0xf] }
  0x3b   : > { %v283_v48 = vld [vmem:[%s8641_s10 + $0x180] sm:$0xf]  ;;  %v285_v49 = vld [vmem:[%s8641_s10 + $0x188] sm:$0xf]  ;;  %282 = vst [vmem:[%s8648_s11 + $0xbc] sm:$0xf] %v281_v47 }
  0x3c   : > { %284 = vst [vmem:[%s8648_s11 + $0xc0] sm:$0xf] %v283_v48  ;;  %286 = vst [vmem:[%s8648_s11 + $0xc4] sm:$0xf] %v285_v49  ;;  %v287_v50 = vld [vmem:[%s8641_s10 + $0x190] sm:$0xf] }
  0x3d   : > { %v289_v51 = vld [vmem:[%s8641_s10 + $0x198] sm:$0xf]  ;;  %v291_v52 = vld [vmem:[%s8641_s10 + $0x1a0] sm:$0xf]  ;;  %288 = vst [vmem:[%s8648_s11 + $0xc8] sm:$0xf] %v287_v50 }
  0x3e   : > { %290 = vst [vmem:[%s8648_s11 + $0xcc] sm:$0xf] %v289_v51  ;;  %292 = vst [vmem:[%s8648_s11 + $0xd0] sm:$0xf] %v291_v52  ;;  %v293_v53 = vld [vmem:[%s8641_s10 + $0x1a8] sm:$0xf] }
  0x3f   : > { %v295_v54 = vld [vmem:[%s8641_s10 + $0x1b0] sm:$0xf]  ;;  %v297_v55 = vld [vmem:[%s8641_s10 + $0x1b8] sm:$0xf]  ;;  %294 = vst [vmem:[%s8648_s11 + $0xd4] sm:$0xf] %v293_v53 }
  0x40   : > { %296 = vst [vmem:[%s8648_s11 + $0xd8] sm:$0xf] %v295_v54  ;;  %298 = vst [vmem:[%s8648_s11 + $0xdc] sm:$0xf] %v297_v55  ;;  %v299_v56 = vld [vmem:[%s8641_s10 + $0x1c0] sm:$0xf] }
  0x41   : > { %v301_v57 = vld [vmem:[%s8641_s10 + $0x1c8] sm:$0xf]  ;;  %v303_v58 = vld [vmem:[%s8641_s10 + $0x1d0] sm:$0xf]  ;;  %300 = vst [vmem:[%s8648_s11 + $0xe0] sm:$0xf] %v299_v56 }
  0x42   : > { %302 = vst [vmem:[%s8648_s11 + $0xe4] sm:$0xf] %v301_v57  ;;  %304 = vst [vmem:[%s8648_s11 + $0xe8] sm:$0xf] %v303_v58  ;;  %v305_v59 = vld [vmem:[%s8641_s10 + $0x1d8] sm:$0xf] }
  0x43   : > { %v307_v60 = vld [vmem:[%s8641_s10 + $0x1e0] sm:$0xf]  ;;  %v309_v61 = vld [vmem:[%s8641_s10 + $0x1e8] sm:$0xf]  ;;  %306 = vst [vmem:[%s8648_s11 + $0xec] sm:$0xf] %v305_v59 }
  0x44   : > { %308 = vst [vmem:[%s8648_s11 + $0xf0] sm:$0xf] %v307_v60  ;;  %310 = vst [vmem:[%s8648_s11 + $0xf4] sm:$0xf] %v309_v61  ;;  %v311_v62 = vld [vmem:[%s8641_s10 + $0x1f0] sm:$0xf] }
  0x45   : > { %v313_v63 = vld [vmem:[%s8641_s10 + $0x1f8] sm:$0xf]  ;;  %v315_v0 = vld [vmem:[%s8641_s10 + $0x200] sm:$0xf]  ;;  %312 = vst [vmem:[%s8648_s11 + $0xf8] sm:$0xf] %v311_v62 }
  0x46   : > { %314 = vst [vmem:[%s8648_s11 + $0xfc] sm:$0xf] %v313_v63  ;;  %316 = vst [vmem:[%s8648_s11 + $0x100] sm:$0xf] %v315_v0  ;;  %v317_v1 = vld [vmem:[%s8641_s10 + $0x208] sm:$0xf] }
  0x47   : > { %v319_v2 = vld [vmem:[%s8641_s10 + $0x210] sm:$0xf]  ;;  %v321_v3 = vld [vmem:[%s8641_s10 + $0x218] sm:$0xf]  ;;  %318 = vst [vmem:[%s8648_s11 + $0x104] sm:$0xf] %v317_v1 }
  0x48   : > { %320 = vst [vmem:[%s8648_s11 + $0x108] sm:$0xf] %v319_v2  ;;  %322 = vst [vmem:[%s8648_s11 + $0x10c] sm:$0xf] %v321_v3  ;;  %v323_v4 = vld [vmem:[%s8641_s10 + $0x220] sm:$0xf] }
  0x49   : > { %v325_v5 = vld [vmem:[%s8641_s10 + $0x228] sm:$0xf]  ;;  %v327_v6 = vld [vmem:[%s8641_s10 + $0x230] sm:$0xf]  ;;  %324 = vst [vmem:[%s8648_s11 + $0x110] sm:$0xf] %v323_v4 }
  0x4a   : > { %326 = vst [vmem:[%s8648_s11 + $0x114] sm:$0xf] %v325_v5  ;;  %328 = vst [vmem:[%s8648_s11 + $0x118] sm:$0xf] %v327_v6  ;;  %v329_v7 = vld [vmem:[%s8641_s10 + $0x238] sm:$0xf] }
  0x4b   : > { %v331_v8 = vld [vmem:[%s8641_s10 + $0x240] sm:$0xf]  ;;  %v333_v9 = vld [vmem:[%s8641_s10 + $0x248] sm:$0xf]  ;;  %330 = vst [vmem:[%s8648_s11 + $0x11c] sm:$0xf] %v329_v7 }
  0x4c   : > { %332 = vst [vmem:[%s8648_s11 + $0x120] sm:$0xf] %v331_v8  ;;  %334 = vst [vmem:[%s8648_s11 + $0x124] sm:$0xf] %v333_v9  ;;  %v335_v10 = vld [vmem:[%s8641_s10 + $0x250] sm:$0xf] }
  0x4d   : > { %v337_v11 = vld [vmem:[%s8641_s10 + $0x258] sm:$0xf]  ;;  %v339_v12 = vld [vmem:[%s8641_s10 + $0x260] sm:$0xf]  ;;  %336 = vst [vmem:[%s8648_s11 + $0x128] sm:$0xf] %v335_v10 }
  0x4e   : > { %338 = vst [vmem:[%s8648_s11 + $0x12c] sm:$0xf] %v337_v11  ;;  %340 = vst [vmem:[%s8648_s11 + $0x130] sm:$0xf] %v339_v12  ;;  %v341_v13 = vld [vmem:[%s8641_s10 + $0x268] sm:$0xf] }
  0x4f   : > { %v343_v14 = vld [vmem:[%s8641_s10 + $0x270] sm:$0xf]  ;;  %v345_v15 = vld [vmem:[%s8641_s10 + $0x278] sm:$0xf]  ;;  %342 = vst [vmem:[%s8648_s11 + $0x134] sm:$0xf] %v341_v13 }
  0x50   : > { %344 = vst [vmem:[%s8648_s11 + $0x138] sm:$0xf] %v343_v14  ;;  %346 = vst [vmem:[%s8648_s11 + $0x13c] sm:$0xf] %v345_v15  ;;  %v347_v16 = vld [vmem:[%s8641_s10 + $0x280] sm:$0xf] }
  0x51   : > { %v349_v17 = vld [vmem:[%s8641_s10 + $0x288] sm:$0xf]  ;;  %v351_v18 = vld [vmem:[%s8641_s10 + $0x290] sm:$0xf]  ;;  %348 = vst [vmem:[%s8648_s11 + $0x140] sm:$0xf] %v347_v16 }
  0x52   : > { %350 = vst [vmem:[%s8648_s11 + $0x144] sm:$0xf] %v349_v17  ;;  %352 = vst [vmem:[%s8648_s11 + $0x148] sm:$0xf] %v351_v18  ;;  %v353_v19 = vld [vmem:[%s8641_s10 + $0x298] sm:$0xf] }
  0x53   : > { %v355_v20 = vld [vmem:[%s8641_s10 + $0x2a0] sm:$0xf]  ;;  %v357_v21 = vld [vmem:[%s8641_s10 + $0x2a8] sm:$0xf]  ;;  %354 = vst [vmem:[%s8648_s11 + $0x14c] sm:$0xf] %v353_v19 }
  0x54   : > { %356 = vst [vmem:[%s8648_s11 + $0x150] sm:$0xf] %v355_v20  ;;  %358 = vst [vmem:[%s8648_s11 + $0x154] sm:$0xf] %v357_v21  ;;  %v359_v22 = vld [vmem:[%s8641_s10 + $0x2b0] sm:$0xf] }
  0x55   : > { %v361_v23 = vld [vmem:[%s8641_s10 + $0x2b8] sm:$0xf]  ;;  %v363_v24 = vld [vmem:[%s8641_s10 + $0x2c0] sm:$0xf]  ;;  %360 = vst [vmem:[%s8648_s11 + $0x158] sm:$0xf] %v359_v22 }
  0x56   : > { %362 = vst [vmem:[%s8648_s11 + $0x15c] sm:$0xf] %v361_v23  ;;  %364 = vst [vmem:[%s8648_s11 + $0x160] sm:$0xf] %v363_v24  ;;  %v365_v25 = vld [vmem:[%s8641_s10 + $0x2c8] sm:$0xf] }
  0x57   : > { %v367_v26 = vld [vmem:[%s8641_s10 + $0x2d0] sm:$0xf]  ;;  %v369_v27 = vld [vmem:[%s8641_s10 + $0x2d8] sm:$0xf]  ;;  %366 = vst [vmem:[%s8648_s11 + $0x164] sm:$0xf] %v365_v25 }
  0x58   : > { %368 = vst [vmem:[%s8648_s11 + $0x168] sm:$0xf] %v367_v26  ;;  %370 = vst [vmem:[%s8648_s11 + $0x16c] sm:$0xf] %v369_v27  ;;  %v371_v28 = vld [vmem:[%s8641_s10 + $0x2e0] sm:$0xf] }
  0x59   : > { %v373_v29 = vld [vmem:[%s8641_s10 + $0x2e8] sm:$0xf]  ;;  %v375_v30 = vld [vmem:[%s8641_s10 + $0x2f0] sm:$0xf]  ;;  %372 = vst [vmem:[%s8648_s11 + $0x170] sm:$0xf] %v371_v28 }
  0x5a   : > { %374 = vst [vmem:[%s8648_s11 + $0x174] sm:$0xf] %v373_v29  ;;  %376 = vst [vmem:[%s8648_s11 + $0x178] sm:$0xf] %v375_v30  ;;  %v377_v31 = vld [vmem:[%s8641_s10 + $0x2f8] sm:$0xf] }
  0x5b   : > { %v379_v32 = vld [vmem:[%s8641_s10 + $0x300] sm:$0xf]  ;;  %v381_v33 = vld [vmem:[%s8641_s10 + $0x308] sm:$0xf]  ;;  %378 = vst [vmem:[%s8648_s11 + $0x17c] sm:$0xf] %v377_v31 }
  0x5c   : > { %380 = vst [vmem:[%s8648_s11 + $0x180] sm:$0xf] %v379_v32  ;;  %382 = vst [vmem:[%s8648_s11 + $0x184] sm:$0xf] %v381_v33  ;;  %v383_v34 = vld [vmem:[%s8641_s10 + $0x310] sm:$0xf] }
  0x5d   : > { %v385_v35 = vld [vmem:[%s8641_s10 + $0x318] sm:$0xf]  ;;  %v387_v36 = vld [vmem:[%s8641_s10 + $0x320] sm:$0xf]  ;;  %384 = vst [vmem:[%s8648_s11 + $0x188] sm:$0xf] %v383_v34 }
  0x5e   : > { %386 = vst [vmem:[%s8648_s11 + $0x18c] sm:$0xf] %v385_v35  ;;  %388 = vst [vmem:[%s8648_s11 + $0x190] sm:$0xf] %v387_v36  ;;  %v389_v37 = vld [vmem:[%s8641_s10 + $0x328] sm:$0xf] }
  0x5f   : > { %v391_v38 = vld [vmem:[%s8641_s10 + $0x330] sm:$0xf]  ;;  %v393_v39 = vld [vmem:[%s8641_s10 + $0x338] sm:$0xf]  ;;  %390 = vst [vmem:[%s8648_s11 + $0x194] sm:$0xf] %v389_v37 }
  0x60   : > { %392 = vst [vmem:[%s8648_s11 + $0x198] sm:$0xf] %v391_v38  ;;  %394 = vst [vmem:[%s8648_s11 + $0x19c] sm:$0xf] %v393_v39  ;;  %v395_v40 = vld [vmem:[%s8641_s10 + $0x340] sm:$0xf] }
  0x61   : > { %v397_v41 = vld [vmem:[%s8641_s10 + $0x348] sm:$0xf]  ;;  %v399_v42 = vld [vmem:[%s8641_s10 + $0x350] sm:$0xf]  ;;  %396 = vst [vmem:[%s8648_s11 + $0x1a0] sm:$0xf] %v395_v40 }
  0x62   : > { %398 = vst [vmem:[%s8648_s11 + $0x1a4] sm:$0xf] %v397_v41  ;;  %400 = vst [vmem:[%s8648_s11 + $0x1a8] sm:$0xf] %v399_v42  ;;  %v401_v43 = vld [vmem:[%s8641_s10 + $0x358] sm:$0xf] }
  0x63   : > { %v403_v44 = vld [vmem:[%s8641_s10 + $0x360] sm:$0xf]  ;;  %v405_v45 = vld [vmem:[%s8641_s10 + $0x368] sm:$0xf]  ;;  %402 = vst [vmem:[%s8648_s11 + $0x1ac] sm:$0xf] %v401_v43 }
  0x64   : > { %404 = vst [vmem:[%s8648_s11 + $0x1b0] sm:$0xf] %v403_v44  ;;  %406 = vst [vmem:[%s8648_s11 + $0x1b4] sm:$0xf] %v405_v45  ;;  %v407_v46 = vld [vmem:[%s8641_s10 + $0x370] sm:$0xf] }
  0x65   : > { %v409_v47 = vld [vmem:[%s8641_s10 + $0x378] sm:$0xf]  ;;  %v411_v48 = vld [vmem:[%s8641_s10 + $0x380] sm:$0xf]  ;;  %408 = vst [vmem:[%s8648_s11 + $0x1b8] sm:$0xf] %v407_v46 }
  0x66   : > { %410 = vst [vmem:[%s8648_s11 + $0x1bc] sm:$0xf] %v409_v47  ;;  %412 = vst [vmem:[%s8648_s11 + $0x1c0] sm:$0xf] %v411_v48  ;;  %v413_v49 = vld [vmem:[%s8641_s10 + $0x388] sm:$0xf] }
  0x67   : > { %v415_v50 = vld [vmem:[%s8641_s10 + $0x390] sm:$0xf]  ;;  %v417_v51 = vld [vmem:[%s8641_s10 + $0x398] sm:$0xf]  ;;  %414 = vst [vmem:[%s8648_s11 + $0x1c4] sm:$0xf] %v413_v49 }
  0x68   : > { %416 = vst [vmem:[%s8648_s11 + $0x1c8] sm:$0xf] %v415_v50  ;;  %418 = vst [vmem:[%s8648_s11 + $0x1cc] sm:$0xf] %v417_v51  ;;  %v419_v52 = vld [vmem:[%s8641_s10 + $0x3a0] sm:$0xf] }
  0x69   : > { %v421_v53 = vld [vmem:[%s8641_s10 + $0x3a8] sm:$0xf]  ;;  %v423_v54 = vld [vmem:[%s8641_s10 + $0x3b0] sm:$0xf]  ;;  %420 = vst [vmem:[%s8648_s11 + $0x1d0] sm:$0xf] %v419_v52 }
  0x6a   : > { %422 = vst [vmem:[%s8648_s11 + $0x1d4] sm:$0xf] %v421_v53  ;;  %424 = vst [vmem:[%s8648_s11 + $0x1d8] sm:$0xf] %v423_v54  ;;  %v425_v55 = vld [vmem:[%s8641_s10 + $0x3b8] sm:$0xf] }
  0x6b   : > { %v427_v56 = vld [vmem:[%s8641_s10 + $0x3c0] sm:$0xf]  ;;  %v429_v57 = vld [vmem:[%s8641_s10 + $0x3c8] sm:$0xf]  ;;  %426 = vst [vmem:[%s8648_s11 + $0x1dc] sm:$0xf] %v425_v55 }
  0x6c   : > { %428 = vst [vmem:[%s8648_s11 + $0x1e0] sm:$0xf] %v427_v56  ;;  %430 = vst [vmem:[%s8648_s11 + $0x1e4] sm:$0xf] %v429_v57  ;;  %v431_v58 = vld [vmem:[%s8641_s10 + $0x3d0] sm:$0xf] }
  0x6d   : > { %v433_v59 = vld [vmem:[%s8641_s10 + $0x3d8] sm:$0xf]  ;;  %v435_v60 = vld [vmem:[%s8641_s10 + $0x3e0] sm:$0xf]  ;;  %432 = vst [vmem:[%s8648_s11 + $0x1e8] sm:$0xf] %v431_v58 }
  0x6e   : > { %434 = vst [vmem:[%s8648_s11 + $0x1ec] sm:$0xf] %v433_v59  ;;  %436 = vst [vmem:[%s8648_s11 + $0x1f0] sm:$0xf] %v435_v60  ;;  %v437_v61 = vld [vmem:[%s8641_s10 + $0x3e8] sm:$0xf] }
  0x6f   : > { %v439_v62 = vld [vmem:[%s8641_s10 + $0x3f0] sm:$0xf]  ;;  %v441_v63 = vld [vmem:[%s8641_s10 + $0x3f8] sm:$0xf]  ;;  %438 = vst [vmem:[%s8648_s11 + $0x1f4] sm:$0xf] %v437_v61 }
  0x70   : > { %440 = vst [vmem:[%s8648_s11 + $0x1f8] sm:$0xf] %v439_v62  ;;  %442 = vst [vmem:[%s8648_s11 + $0x1fc] sm:$0xf] %v441_v63  ;;  %v443_v0 = vld [vmem:[%s8641_s10 + $0x400] sm:$0xf] }
  0x71   : > { %v445_v1 = vld [vmem:[%s8641_s10 + $0x408] sm:$0xf]  ;;  %v447_v2 = vld [vmem:[%s8641_s10 + $0x410] sm:$0xf]  ;;  %444 = vst [vmem:[%s8648_s11 + $0x200] sm:$0xf] %v443_v0 }
  0x72   : > { %446 = vst [vmem:[%s8648_s11 + $0x204] sm:$0xf] %v445_v1  ;;  %448 = vst [vmem:[%s8648_s11 + $0x208] sm:$0xf] %v447_v2  ;;  %v449_v3 = vld [vmem:[%s8641_s10 + $0x418] sm:$0xf] }
  0x73   : > { %v451_v4 = vld [vmem:[%s8641_s10 + $0x420] sm:$0xf]  ;;  %v453_v5 = vld [vmem:[%s8641_s10 + $0x428] sm:$0xf]  ;;  %450 = vst [vmem:[%s8648_s11 + $0x20c] sm:$0xf] %v449_v3 }
  0x74   : > { %452 = vst [vmem:[%s8648_s11 + $0x210] sm:$0xf] %v451_v4  ;;  %454 = vst [vmem:[%s8648_s11 + $0x214] sm:$0xf] %v453_v5  ;;  %v455_v6 = vld [vmem:[%s8641_s10 + $0x430] sm:$0xf] }
  0x75   : > { %v457_v7 = vld [vmem:[%s8641_s10 + $0x438] sm:$0xf]  ;;  %v459_v8 = vld [vmem:[%s8641_s10 + $0x440] sm:$0xf]  ;;  %456 = vst [vmem:[%s8648_s11 + $0x218] sm:$0xf] %v455_v6 }
  0x76   : > { %458 = vst [vmem:[%s8648_s11 + $0x21c] sm:$0xf] %v457_v7  ;;  %460 = vst [vmem:[%s8648_s11 + $0x220] sm:$0xf] %v459_v8  ;;  %v461_v9 = vld [vmem:[%s8641_s10 + $0x448] sm:$0xf] }
  0x77   : > { %v463_v10 = vld [vmem:[%s8641_s10 + $0x450] sm:$0xf]  ;;  %v465_v11 = vld [vmem:[%s8641_s10 + $0x458] sm:$0xf]  ;;  %462 = vst [vmem:[%s8648_s11 + $0x224] sm:$0xf] %v461_v9 }
  0x78   : > { %464 = vst [vmem:[%s8648_s11 + $0x228] sm:$0xf] %v463_v10  ;;  %466 = vst [vmem:[%s8648_s11 + $0x22c] sm:$0xf] %v465_v11  ;;  %v467_v12 = vld [vmem:[%s8641_s10 + $0x460] sm:$0xf] }
  0x79   : > { %v469_v13 = vld [vmem:[%s8641_s10 + $0x468] sm:$0xf]  ;;  %v471_v14 = vld [vmem:[%s8641_s10 + $0x470] sm:$0xf]  ;;  %468 = vst [vmem:[%s8648_s11 + $0x230] sm:$0xf] %v467_v12 }
  0x7a   : > { %470 = vst [vmem:[%s8648_s11 + $0x234] sm:$0xf] %v469_v13  ;;  %472 = vst [vmem:[%s8648_s11 + $0x238] sm:$0xf] %v471_v14  ;;  %v473_v15 = vld [vmem:[%s8641_s10 + $0x478] sm:$0xf] }
  0x7b   : > { %474 = vst [vmem:[%s8648_s11 + $0x23c] sm:$0xf] %v473_v15 }
  0x7c PF: > { %p6591_p11 = scmp.ge.s32.totalorder %s8539_s20, 1  ;;  %p790_p12 = scmp.lt.s32.totalorder %s8539_s20, 5 }
  0x7e   : > { %p791_p13 = pnand %p6591_p11, %p790_p12 }
  0x80   : > { %794 = sbr.rel (%p791_p13) target bundleno = 710 (0x2c6), region = 69 }
  0x87   : > { %s797_s21 = sand.u32 1, %s8515_s14   ;;  %p827_p0 = scmp.lt.s32.totalorder %s8527_s17, 1  ;;  %vm1242_vm0 = vsmask.f32 3328  ;;  %vm1243_vm1 = vsmask.f32 7440 }
  0x88   : > { %s8168_s24 = smul.u32 576, %s797_s21  ;;  %vm9015_vm2 = vmor %vm1242_vm0, %vm1243_vm1  ;;  %vm2031_vm3 = vcmask 1042432   ;;  %vm2032_vm4 = vcmask 1046532   ;;  %p832_p1 = scmp.lt.s32.totalorder %s8523_s16, 1 }
  0x89   : > { %s828_s14 = scalar_select %p827_p0, %s8527_s17, 1  ;;  %vm9180_vm5 = vmor %vm2031_vm3, %vm2032_vm4 }
  0x8a   : > { %s8936_s25 = scalar_lea.vmem [#allocation3], %s8168_s24  ;;  %s824_s10 = sand.u32 1, %s8507_s12  }
  0x8b   : > { %v8242_v16 = vld [vmem:[%s8936_s25] sm:$0xff]   ;;  %v8244_v18 = vld [vmem:[%s8936_s25 + $0x8] sm:$0xff]   ;;  %v8246_v20 = vld [vmem:[%s8936_s25 + $0x10] sm:$0xff]   ;;  %s8169_s26 = smul.u32 216, %s828_s14  ;;  %s6592_s11 = sshll.u32 %s824_s10, 7 }
  0x8c   : > { %v8243_v17 = vld [vmem:[%s8936_s25 + $0x100] sm:$0xff]   ;;  %7463 = vmatprep.subr.bf16.mxu1 %v8242_v16  ;;  %v8245_v19 = vld [vmem:[%s8936_s25 + $0x108] sm:$0xff]   ;;  %v8247_v21 = vld [vmem:[%s8936_s25 + $0x110] sm:$0xff]   ;;  %s833_s6 = scalar_select %p832_p1, %s8523_s16, 1 }
  0x8d   : > { %7655 = vmatprep.subr.bf16.mxu0 %v8243_v17  ;;  %7464 = vmatpush3.bf16.msra.mxu1 %v8242_v16  ;;  %v8248_v22 = vld [vmem:[%s8936_s25 + $0x18] sm:$0xff]   ;;  %v8250_v24 = vld [vmem:[%s8936_s25 + $0x20] sm:$0xff]   ;;  %s8953_s5 = scalar_lea.vmem %s11055_s0, %s8169_s26  ;;  %v8252_v26 = vld [vmem:[%s8936_s25 + $0x28] sm:$0xff]   ;;  %s10905_s12 = scalar_lea.vmem [#allocation4], %s6592_s11 }
  0x8e   : > { %7656 = vmatpush3.bf16.msra.mxu0 %v8243_v17  ;;  %7465 = vmatprep.subr.bf16.mxu1 %v8244_v18  ;;  %v8249_v23 = vld [vmem:[%s8936_s25 + $0x118] sm:$0xff]   ;;  %v8251_v25 = vld [vmem:[%s8936_s25 + $0x120] sm:$0xff]   ;;  %v8963_v29 = vld [vmem:[%s8953_s5 + $0xc] sm:$0xf]  ;;  %s834_s9 = scalar_lea.vmem %s11057_s2, %s833_s6  ;;  %s7116_s21 = sshll.u32 (%p8628_p9), %s8527_s17, 6 }
  0x8f   : > { %7657 = vmatprep.subr.bf16.mxu0 %v8245_v19  ;;  %v8957_v27 = vld [vmem:[%s8953_s5] sm:$0xf]  ;;  %v8960_v28 = vld [vmem:[%s8953_s5 + $0x4] sm:$0xf]  ;;  %v8253_v30 = vld [vmem:[%s8936_s25 + $0x128] sm:$0xff]   ;;  %v3003_v40 = vshrl.u32 %v8963_v29, 16  ;;  %s6314_s24 = sadd.s32 (%p8628_p9), %s8523_s16, %s7116_s21 }
  0x90   : > { %v6594_v31 = vcombine.low %v8957_v27, %v8960_v28  ;;  %v1246_v32 = vshrl.u32 %v8957_v27, 16  ;;  %v1249_v33 = vshll.u32 %v8957_v27, 16  ;;  %v1255_v34 = vshll.u32 %v8960_v28, 16  ;;  %v8972_v35 = vld [vmem:[%s8953_s5 + $0x10] sm:$0xf]  ;;  %v8256_v60 = vld [vmem:[%s8936_s25 + $0x38] sm:$0xff]  }
  0x91   : > { %7466 = vmatpush3.bf16.msra.mxu1 %v8244_v18  ;;  %v8254_v36 = vld [vmem:[%s8936_s25 + $0x30] sm:$0xff]   ;;  %v1259_v37 = vshrl.u32 %v8960_v28, 16  ;;  %v3006_v45 = vshll.u32 %v8963_v29, 16  ;;  %v8989_v46 = vld [vmem:[%s8953_s5 + $0xc] sm:$0xf]  ;;  %v3005_v48 = vrot.slane %v3003_v40, 4 }
  0x92   : > { %7658 = vmatpush3.bf16.msra.mxu0 %v8245_v19  ;;  %7467 = vmatprep.subr.bf16.mxu1 %v8246_v20  ;;  %v8978_v39 = vld [vmem:[%s8953_s5 + $0x14] sm:$0x1]  ;;  %v8982_v42 = vrot.slane %v1246_v32, 4  ;;  %v8984_v43 = vrot.slane %v1249_v33, 5  ;;  %v8991_v47 = vrot.slane %v1255_v34, 5  ;;  %v3012_v49 = vshll.u32 %v8972_v35, 16 }
  0x93   : > { %7659 = vmatprep.subr.bf16.mxu0 %v8247_v21  ;;  %v8255_v41 = vld [vmem:[%s8936_s25 + $0x130] sm:$0xff]   ;;  %7479 = vmatprep.mubr.bf16.mxu1 %v6594_v31  ;;  %v3016_v50 = vshrl.u32 %v8972_v35, 16  ;;  %v8998_v52 = vrot.slane %v1259_v37, 4  ;;  %v3008_v53 = vrot.slane %v3006_v45, 5  ;;  %v3022_v54 = vshll.u32 %v8978_v39, 16  ;;  %v8257_v2 = vld [vmem:[%s8936_s25 + $0x138] sm:$0xff]  }
  0x94   : > { %v8996_v51 = vld [vmem:[%s8953_s5 + $0x10] sm:$0xf]  ;;  %v3014_v56 = vrot.slane %v3012_v49, 5  ;;  %v1270_v58 = vshrl.u32 %v8989_v46, 16  ;;  %v1273_v59 = vshll.u32 %v8989_v46, 16  ;;  %v9046_v34 = vld [vmem:[%s8936_s25 + $0x140] sm:$0xff]  }
  0x95   : > { %7468 = vmatpush3.bf16.msra.mxu1 %v8246_v20  ;;  %v3018_v57 = vrot.slane %v3016_v50, 4  ;;  %v3009_v61 = vor.u32 %v3008_v53, %v3005_v48  ;;  %v6595_v62 = vcombine.low %v8989_v46, %v8996_v51  ;;  %v1279_v63 = vshll.u32 %v8996_v51, 16  ;;  %v9010_v1 = vld [vmem:[%s8953_s5 + $0x18] sm:$0xf]  ;;  %v9020_v8 = vld [vmem:[%s8953_s5 + $0x1c] sm:$0xf] }
  0x96   : > { %7660 = vmatpush3.bf16.msra.mxu0 %v8247_v21  ;;  %7469 = vmatprep.subr.bf16.mxu1 %v8248_v22  ;;  %v1283_v0 = vshrl.u32 %v8996_v51, 16  ;;  %v3024_v5 = vrot.slane %v3022_v54, 5  ;;  %v1272_v6 = vrot.slane %v1270_v58, 4  ;;  %v1275_v7 = vrot.slane %v1273_v59, 5  ;;  %v9026_v13 = vld [vmem:[%s8953_s5 + $0x20] sm:$0x1] }
  0x97   : > { %7661 = vmatprep.subr.bf16.mxu0 %v8249_v23  ;;  %v3019_v4 = vor.u32 %v3018_v57, %v3014_v56  ;;  %v3010_v9 = vrot.slane %v3009_v61, 4  ;;  %v9022_v10 = vrot.slane %v1279_v63, 5  ;;  %v11059_v12 = vrot.slane %v8996_v51, 5  ;;  %v9056_v48 = vld [vmem:[%s8953_s5 + $0x1c] sm:$0xf]  ;;  %v8265_v57 = vld [vmem:[%s8936_s25 + $0x48] sm:$0xff]  }
  0x98   : > { %v1285_v11 = vrot.slane %v1283_v0, 4  ;;  %v1276_v15 = vor.u32 %v1275_v7, %v1272_v6  ;;  %v3027_v16 = vshrl.u32 %v9010_v1, 16  ;;  %v3030_v17 = vshll.u32 %v9010_v1, 16  ;;  %11094 = vst [vmem:[#allocation6_spill] sm:$0xff] %v9056_v48  ;;  %v9067_v61 = vld [vmem:[%s8953_s5 + $0x28] sm:$0xf] }
  0x99   : > { %7470 = vmatpush3.bf16.msra.mxu1 %v8248_v22  ;;  %v3020_v14 = vrot.slane %v3019_v4, 4  ;;  %v3015_v18 = vsel %vm9015_vm2, %v3010_v9, %v3014_v56  ;;  %v3036_v21 = vshll.u32 %v9020_v8, 16  ;;  %v3040_v33 = vshrl.u32 %v9020_v8, 16  ;;  %v9063_v56 = vld [vmem:[%s8953_s5 + $0x24] sm:$0xf]  ;;  %v8284_v45 = vld [vmem:[%s8936_s25 + $0x68] sm:$0xff]  }
  0x9a   : > { %7662 = vmatpush3.bf16.msra.mxu0 %v8249_v23  ;;  %7471 = vmatprep.subr.bf16.mxu1 %v8250_v24  ;;  %v1286_v19 = vor.u32 %v1285_v11, %v9022_v10  ;;  %v9039_v23 = vrot.slane %v11059_v12, 4  ;;  %v9042_v31 = vrot.slane %v1276_v15, 4  ;;  %v3051_v0 = vshrl.u32 %v9063_v56, 16  ;;  %v9077_v6 = vld [vmem:[%s8953_s5 + $0x24] sm:$0xf]  ;;  %s7117_s30 = sshll.u32 (%p8628_p9), %s6314_s24, 2 }
  0x9b   : > { %7663 = vmatprep.subr.bf16.mxu0 %v8251_v25  ;;  %v3025_v22 = vsel %vm9015_vm2, %v3020_v14, %v3024_v5  ;;  %v3038_v32 = vrot.slane %v3036_v21, 5  ;;  %v3042_v49 = vrot.slane %v3040_v33, 4  ;;  %v3054_v4 = vshll.u32 %v9063_v56, 16  ;;  %11095 = vst [vmem:[#allocation7_spill] sm:$0xff] %v9077_v6  ;;  %v9088_v14 = vld [vmem:[%s8953_s5 + $0x28] sm:$0xf]  ;;  %s10969_s26 = scalar_lea.vmem (%p8628_p9), %s11058_s3, %s7117_s30 }
  0x9c   : > { %11093 = vst [vmem:[#allocation5_spill] sm:$0xff] %v9039_v23  ;;  %v9051_v37 = vrot.slane %v1286_v19, 4  ;;  %v3060_v5 = vshll.u32 %v9067_v61, 16  ;;  %v3064_v9 = vshrl.u32 %v9067_v61, 16  ;;  %11096 = vst [vmem:[#allocation8_spill] sm:$0xff] %v9088_v14  ;;  %v8271_v44 = vld [vmem:[%s8936_s25 + $0x160] sm:$0xff]  }
  0x9d   : > { %7472 = vmatpush3.bf16.msra.mxu1 %v8250_v24  ;;  %v8260_v24 = vld [vmem:[%s8936_s25 + $0x40] sm:$0xff]   ;;  %v3043_v63 = vor.u32 %v3042_v49, %v3038_v32  ;;  %v9160_v12 = vld [vmem:[%s8953_s5 + $0x48] sm:$0xf]  ;;  %v9165_v38 = vld [vmem:[%s8953_s5 + $0x4c] sm:$0xf] }
  0x9e   : > { %7664 = vmatpush3.bf16.msra.mxu0 %v8251_v25  ;;  %7473 = vmatprep.subr.bf16.mxu1 %v8252_v26  ;;  %v3029_v25 = vrot.slane %v3027_v16, 4  ;;  %v3053_v16 = vrot.slane %v3051_v0, 4  ;;  %v3066_v19 = vrot.slane %v3064_v9, 4 }
  0x9f   : > { %7665 = vmatprep.subr.bf16.mxu0 %v8253_v30  ;;  %v3044_v15 = vrot.slane %v3043_v63, 4 }
  0xa1   : > { %7474 = vmatpush3.bf16.msra.mxu1 %v8252_v26  ;;  %v3032_v26 = vrot.slane %v3030_v17, 5  ;;  %v3056_v17 = vrot.slane %v3054_v4, 5  ;;  %v8275_v4 = vld [vmem:[%s8936_s25 + $0x58] sm:$0xff]  }
  0xa2   : > { %7666 = vmatpush3.bf16.msra.mxu0 %v8253_v30  ;;  %7475 = vmatprep.subr.bf16.mxu1 %v8254_v36  ;;  %v6818_v30 = vcombine.low %v3015_v18, %v3025_v22  ;;  %v8262_v18 = vld [vmem:[%s8936_s25 + $0x148] sm:$0xff]   ;;  %v6597_v22 = vcombine.low %v9077_v6, %v9088_v14  ;;  %v8292_v14 = vld [vmem:[%s8936_s25 + $0x78] sm:$0xff]  }
  0xa3   : > { %7667 = vmatprep.subr.bf16.mxu0 %v8255_v41  ;;  %v3033_v40 = vor.u32 %v3032_v26, %v3029_v25  ;;  %v8270_v26 = vld [vmem:[%s8936_s25 + $0x50] sm:$0xff]   ;;  %v9143_v25 = vld [vmem:[%s8953_s5 + $0x3c] sm:$0xf] }
  0xa4   : > { %7671 = vmatprep.mubr.bf16.mxu0 %v6818_v30  ;;  %v3057_v30 = vor.u32 %v3056_v17, %v3053_v16  ;;  %11099 = vst [vmem:[#allocation11_spill] sm:$0xff] %v9143_v25  ;;  %v8272_v17 = vld [vmem:[%s8936_s25 + $0x168] sm:$0xff]  }
  0xa5   : > { %7476 = vmatpush3.bf16.msra.mxu1 %v8254_v36  ;;  %v9049_v36 = vld [vmem:[%s8953_s5 + $0x18] sm:$0xf]  ;;  %v3034_v58 = vrot.slane %v3033_v40, 4  ;;  %v9100_v40 = vld [vmem:[%s8953_s5 + $0x30] sm:$0xf] }
  0xa6   : > { %7668 = vmatpush3.bf16.msra.mxu0 %v8255_v41  ;;  %7477 = vmatprep.subr.bf16.mxu1 %v8256_v60  ;;  %v3046_v41 = vshll.u32 %v9026_v13, 16  ;;  %v6596_v50 = vcombine.low %v9049_v36, %v9056_v48  ;;  %v3075_v63 = vshrl.u32 %v9100_v40, 16  ;;  %v3078_v0 = vshll.u32 %v9100_v40, 16 }
  0xa7   : > { %7669 = vmatprep.subr.bf16.mxu0 %v8257_v2 }
  0xa8   : > { %v3048_v59 = vrot.slane %v3046_v41, 5  ;;  %v9103_v41 = vld [vmem:[%s8953_s5 + $0x34] sm:$0xf]  ;;  %v3080_v16 = vrot.slane %v3078_v0, 5  ;;  %v9123_v0 = vld [vmem:[%s8953_s5 + $0x30] sm:$0xf] }
  0xa9   : > { %7478 = vmatpush3.bf16.msra.mxu1 %v8256_v60  ;;  %v9070_v60 = vld [vmem:[%s8953_s5 + $0x2c] sm:$0x1]  ;;  %v3088_v9 = vshrl.u32 %v9103_v41, 16  ;;  %11097 = vst [vmem:[#allocation9_spill] sm:$0xff] %v9123_v0 }
  0xaa   : > { %7670 = vmatpush3.bf16.msra.mxu0 %v8257_v2  ;;  %7511 = vmatprep.subr.bf16.mxu1 %v8260_v24  ;;  %v3039_v2 = vsel %vm9015_vm2, %v3034_v58, %v3038_v32  ;;  %v3070_v11 = vshll.u32 %v9070_v60, 16  ;;  %v9106_v58 = vld [vmem:[%s8953_s5 + $0x38] sm:$0x1]  ;;  %v9134_v32 = vld [vmem:[%s8953_s5 + $0x40] sm:$0xf] }
  0xab   : > { %7703 = vmatprep.subr.bf16.mxu0 %v9046_v34 }
  0xac   : > { %7480 = vmatmul.mubr.bf16.vlgmr.msra.gmra.mrb[0].mxu1 %v6595_v62  ;;  %v3062_v62 = vrot.slane %v3060_v5, 5  ;;  %v3072_v21 = vrot.slane %v3070_v11, 5  ;;  %v3058_v5 = vrot.slane %v3057_v30, 4  ;;  %v3094_v11 = vshll.u32 %v9106_v58, 16  ;;  %v8266_v30 = vld [vmem:[%s8936_s25 + $0x150] sm:$0xff]  }
  0xad   : > { %7512 = vmatpush3.bf16.msra.mxu1 %v8260_v24  ;;  %7483 = vmatprep.mubr.bf16.mxu1 %v6596_v50  ;;  %v3049_v24 = vsel %vm9015_vm2, %v3044_v15, %v3048_v59  ;;  %v3084_v59 = vshll.u32 %v9103_v41, 16  ;;  %v3077_v15 = vrot.slane %v3075_v63, 4 }
  0xae   : > { %7513 = vmatprep.subr.bf16.mxu1 %v8265_v57  ;;  %v6819_v49 = vcombine.low %v3039_v2, %v3049_v24  ;;  %v3067_v50 = vor.u32 %v3066_v19, %v3062_v62  ;;  %v3063_v19 = vsel %vm9015_vm2, %v3058_v5, %v3062_v62  ;;  %v9129_v62 = vld [vmem:[%s8953_s5 + $0x3c] sm:$0xf] }
  0xaf   : > { %v3086_v24 = vrot.slane %v3084_v59, 5  ;;  %v3081_v63 = vor.u32 %v3080_v16, %v3077_v15  ;;  %v3099_v16 = vshrl.u32 %v9129_v62, 16 }
  0xb0   : > { %7672 = vmatmul.mubr.bf16.vlgmr.msra.gmra.mrb[0].mxu0 %v6819_v49  ;;  %v3068_v2 = vrot.slane %v3067_v50, 4 }
  0xb1   : > { %7514 = vmatpush3.bf16.msra.mxu1 %v8265_v57  ;;  %7704 = vmatpush3.bf16.msra.mxu0 %v9046_v34  ;;  %v3090_v57 = vrot.slane %v3088_v9, 4  ;;  %v9126_v34 = vld [vmem:[%s8953_s5 + $0x34] sm:$0xf]  ;;  %v3096_v9 = vrot.slane %v3094_v11, 5  ;;  %v3101_v7 = vrot.slane %v3099_v16, 4 }
  0xb2   : > { %7515 = vmatprep.subr.bf16.mxu1 %v8270_v26  ;;  %7705 = vmatprep.subr.bf16.mxu0 %v8262_v18  ;;  %v3073_v50 = vsel %vm9015_vm2, %v3068_v2, %v3072_v21  ;;  %11098 = vst [vmem:[#allocation10_spill] sm:$0xff] %v9126_v34  ;;  %v6598_v33 = vcombine.low %v9123_v0, %v9126_v34  ;;  %v9137_v21 = vld [vmem:[%s8953_s5 + $0x44] sm:$0x1]  ;;  %v8267_v2 = vld [vmem:[%s8936_s25 + $0x158] sm:$0xff]  }
  0xb3   : > { %v6820_v5 = vcombine.low %v3063_v19, %v3073_v50  ;;  %v3091_v59 = vor.u32 %v3090_v57, %v3086_v24  ;;  %v8280_v19 = vld [vmem:[%s8936_s25 + $0x60] sm:$0xff]   ;;  %v3102_v57 = vshll.u32 %v9129_v62, 16  ;;  %v3108_v50 = vshll.u32 %v9134_v32, 16 }
  0xb4   : > { %7484 = vmatmul.mubr.bf16.gmra.mrb[4].mxu1 %v6597_v22  ;;  %v3082_v22 = vrot.slane %v3081_v63, 4  ;;  %v9150_v63 = vld [vmem:[%s8953_s5 + $0x40] sm:$0xf] }
  0xb5   : > { %7516 = vmatpush3.bf16.msra.mxu1 %v8270_v26  ;;  %7706 = vmatpush3.bf16.msra.mxu0 %v8262_v18  ;;  %v3092_v11 = vrot.slane %v3091_v59, 4  ;;  %v3112_v26 = vshrl.u32 %v9134_v32, 16  ;;  %11100 = vst [vmem:[#allocation12_spill] sm:$0xff] %v9150_v63  ;;  %v3118_v18 = vshll.u32 %v9137_v21, 16  ;;  %v3104_v54 = vrot.slane %v3102_v57, 5 }
  0xb6   : > { %7517 = vmatprep.subr.bf16.mxu1 %v8275_v4  ;;  %7675 = vmatprep.mubr.bf16.mxu0 %v6820_v5  ;;  %v3087_v15 = vsel %vm9015_vm2, %v3082_v22, %v3086_v24  ;;  %v6599_v5 = vcombine.low %v9143_v25, %v9150_v63  ;;  %v3110_v53 = vrot.slane %v3108_v50, 5  ;;  %v9171_v50 = vld [vmem:[%s8953_s5 + $0x50] sm:$0x1] }
  0xb7   : > { %7707 = vmatprep.subr.bf16.mxu0 %v8266_v30  ;;  %7487 = vmatprep.mubr.bf16.mxu1 %v6598_v33  ;;  %v3097_v59 = vsel %vm9015_vm2, %v3092_v11, %v3096_v9  ;;  %v3114_v20 = vrot.slane %v3112_v26, 4  ;;  %v3120_v16 = vrot.slane %v3118_v18, 5  ;;  %v3105_v9 = vor.u32 %v3104_v54, %v3101_v7 }
  0xb8   : > { %v6821_v24 = vcombine.low %v3087_v15, %v3097_v59  ;;  %v3126_v15 = vshll.u32 %v9160_v12, 16  ;;  %v3132_v26 = vshll.u32 %v9165_v38, 16  ;;  %v3136_v18 = vshrl.u32 %v9165_v38, 16 }
  0xb9   : > { %7518 = vmatpush3.bf16.msra.mxu1 %v8275_v4  ;;  %7708 = vmatpush3.bf16.msra.mxu0 %v8266_v30  ;;  %v3115_v11 = vor.u32 %v3114_v20, %v3110_v53  ;;  %v3123_v4 = vshrl.u32 %v9160_v12, 16  ;;  %v3142_v59 = vshll.u32 %v9171_v50, 16  ;;  %v3106_v54 = vrot.slane %v3105_v9, 4 }
  0xba   : > { %7519 = vmatprep.subr.bf16.mxu1 %v8280_v19  ;;  %7676 = vmatmul.mubr.bf16.gmra.mrb[4].mxu0 %v6821_v24  ;;  %v3128_v57 = vrot.slane %v3126_v15, 5  ;;  %v3134_v22 = vrot.slane %v3132_v26, 5  ;;  %v3138_v33 = vrot.slane %v3136_v18, 4  ;;  %v11105_v15 = vrot.slane %v8972_v35, 5 }
  0xbb   : > { %7709 = vmatprep.subr.bf16.mxu0 %v8267_v2  ;;  %v3116_v7 = vrot.slane %v3115_v11, 4  ;;  %v3125_v24 = vrot.slane %v3123_v4, 4  ;;  %v3144_v55 = vrot.slane %v3142_v59, 5  ;;  %v3111_v49 = vsel %vm9015_vm2, %v3106_v54, %v3110_v53  ;;  %v9194_v11 = vld [vmem:[%s8953_s5 + $0x4c] sm:$0xf] }
  0xbc   : > { %7488 = vmatmul.mubr.bf16.gmra.mrb[8].mxu1 %v6599_v5  ;;  %v9191_v5 = vld [vmem:[%s8953_s5 + $0x48] sm:$0xf]  ;;  %11104 = vst [vmem:[#allocation14_spill] sm:$0xff] %v9194_v11  ;;  %v9197_v4 = vld [vmem:[%s8953_s5 + $0x54] sm:$0xf]  ;;  %v11106_v26 = vrot.slane %v8963_v29, 9  ;;  %v3139_v18 = vor.u32 %v3138_v33, %v3134_v22 }
  0xbd   : > { %7520 = vmatpush3.bf16.msra.mxu1 %v8280_v19  ;;  %7710 = vmatpush3.bf16.msra.mxu0 %v8267_v2  ;;  %v3121_v9 = vsel %vm9015_vm2, %v3116_v7, %v3120_v16  ;;  %11103 = vst [vmem:[#allocation13_spill] sm:$0xff] %v9191_v5  ;;  %v3129_v19 = vor.u32 %v3128_v57, %v3125_v24  ;;  %v9210_v59 = vld [vmem:[%s8953_s5 + $0x58] sm:$0xf]  ;;  %v9213_v54 = vld [vmem:[%s8953_s5 + $0x5c] sm:$0x1]  ;;  %v11107_v33 = vrot.slane %v8972_v35, 5 }
  0xbe   : > { %v9205_v2 = vsel %vm9180_vm5, %v11106_v26, %v11105_v15  ;;  %7521 = vmatprep.subr.bf16.mxu1 %v8284_v45  ;;  %v6822_v53 = vcombine.low %v3111_v49, %v3121_v9  ;;  %7711 = vmatprep.subr.bf16.mxu0 %v8271_v44  ;;  %v6600_v16 = vcombine.low %v9191_v5, %v9194_v11  ;;  %v9216_v7 = vld [vmem:[%s8953_s5 + $0x54] sm:$0xf]  ;;  %v3147_v15 = vshrl.u32 %v9197_v4, 16  ;;  %v9222_v49 = vld [vmem:[%s8953_s5 + $0x58] sm:$0xf] }
  0xbf   : > { %v3792_v57 = vrot.slane %v11107_v33, 4  ;;  %v3130_v24 = vrot.slane %v3129_v19, 4  ;;  %v3140_v9 = vrot.slane %v3139_v18, 4  ;;  %v3150_v26 = vshll.u32 %v9197_v4, 16  ;;  %v9241_v33 = vld [vmem:[%s8953_s5 + $0x64] sm:$0xf] }
  0xc0   : > { %7679 = vmatprep.mubr.bf16.mxu0 %v6822_v53  ;;  %7491 = vmatprep.mubr.bf16.mxu1 %v6600_v16  ;;  %v3156_v29 = vshll.u32 %v9210_v59, 16  ;;  %v3149_v30 = vrot.slane %v3147_v15, 4  ;;  %v3160_v23 = vshrl.u32 %v9210_v59, 16  ;;  %v3166_v63 = vshll.u32 %v9213_v54, 16  ;;  %v8288_v53 = vld [vmem:[%s8936_s25 + $0x70] sm:$0xff]  }
  0xc1   : > { %7712 = vmatpush3.bf16.msra.mxu0 %v8271_v44  ;;  %v6601_v35 = vcombine.low %v9216_v7, %v9222_v49  ;;  %7522 = vmatpush3.bf16.msra.mxu1 %v8284_v45  ;;  %v3135_v19 = vsel %vm9015_vm2, %v3130_v24, %v3134_v22  ;;  %v3145_v18 = vsel %vm9015_vm2, %v3140_v9, %v3144_v55  ;;  %v3152_v44 = vrot.slane %v3150_v26, 5  ;;  %v9238_v15 = vld [vmem:[%s8953_s5 + $0x60] sm:$0xf]  ;;  %v9246_v22 = vld [vmem:[%s8953_s5 + $0x68] sm:$0x1]  ;;  %v8276_v24 = vld [vmem:[%s8936_s25 + $0x170] sm:$0xff]  }
  0xc2   : > { %7713 = vmatprep.subr.bf16.mxu0 %v8272_v17  ;;  %v3158_v16 = vrot.slane %v3156_v29, 5  ;;  %v6823_v25 = vcombine.low %v3135_v19, %v3145_v18  ;;  %v3162_v0 = vrot.slane %v3160_v23, 4  ;;  %7523 = vmatprep.subr.bf16.mxu1 %v8288_v53  ;;  %v3168_v9 = vrot.slane %v3166_v63, 5  ;;  %v9270_v5 = vld [vmem:[%s8953_s5 + $0x60] sm:$0xf] }
  0xc3   : > { %v3153_v55 = vor.u32 %v3152_v44, %v3149_v30  ;;  %v3171_v26 = vshrl.u32 %v9238_v15, 16  ;;  %v3174_v18 = vshll.u32 %v9238_v15, 16  ;;  %v3180_v45 = vshll.u32 %v9241_v33, 16 }
  0xc4   : > { %7492 = vmatmul.mubr.bf16.gmra.mrb[12].mxu1 %v6601_v35  ;;  %7680 = vmatmul.mubr.bf16.gmra.mrb[8].mxu0 %v6823_v25  ;;  %v3163_v19 = vor.u32 %v3162_v0, %v3158_v16  ;;  %v3184_v23 = vshrl.u32 %v9241_v33, 16  ;;  %v8277_v35 = vld [vmem:[%s8936_s25 + $0x178] sm:$0xff]   ;;  %v3190_v44 = vshll.u32 %v9246_v22, 16  ;;  %v11108_v29 = vrot.slane %v8978_v39, 5  ;;  %v9264_v0 = vld [vmem:[%s8936_s25 + $0x80] sm:$0xff]  }
  0xc5   : > { %7524 = vmatpush3.bf16.msra.mxu1 %v8288_v53  ;;  %7714 = vmatpush3.bf16.msra.mxu0 %v8272_v17  ;;  %v3154_v63 = vrot.slane %v3153_v55, 4  ;;  %v3173_v30 = vrot.slane %v3171_v26, 4  ;;  %v3176_v53 = vrot.slane %v3174_v18, 5  ;;  %v3182_v11 = vrot.slane %v3180_v45, 5  ;;  %v9283_v18 = vld [vmem:[%s8953_s5 + $0x70] sm:$0xf] }
  0xc6   : > { %v9261_v25 = vsel %vm9180_vm5, %v3792_v57, %v11108_v29  ;;  %7525 = vmatprep.subr.bf16.mxu1 %v8292_v14  ;;  %v3164_v34 = vrot.slane %v3163_v19, 4  ;;  %v3186_v17 = vrot.slane %v3184_v23, 4  ;;  %7715 = vmatprep.subr.bf16.mxu0 %v8276_v24  ;;  %v3192_v39 = vrot.slane %v3190_v44, 5  ;;  %v9273_v57 = vld [vmem:[%s8953_s5 + $0x64] sm:$0xf] }
  0xc7   : > { %v3159_v55 = vsel %vm9015_vm2, %v3154_v63, %v3158_v16  ;;  %v3177_v6 = vor.u32 %v3176_v53, %v3173_v30  ;;  %v6602_v45 = vcombine.low %v9270_v5, %v9273_v57  ;;  %v9280_v19 = vld [vmem:[%s8953_s5 + $0x6c] sm:$0xf]  ;;  %v6874_v63 = vcombine.low %v9205_v2, %v9261_v25  ;;  %v9294_v53 = vld [vmem:[%s8936_s25 + $0x180] sm:$0xff]  }
  0xc8   : > { %v3169_v29 = vsel %vm9015_vm2, %v3164_v34, %v3168_v9  ;;  %v3187_v48 = vor.u32 %v3186_v17, %v3182_v11  ;;  %v6843_v34 = vrot.slane %v9010_v1, 9  ;;  %v9305_v17 = vld [vmem:[%s8953_s5 + $0x78] sm:$0xf]  ;;  %v9368_v2 = vld [vmem:[%s8953_s5 + $0xa0] sm:$0xf] }
  0xc9   : > { %7526 = vmatpush3.bf16.msra.mxu1 %v8292_v14  ;;  %v6824_v16 = vcombine.low %v3159_v55, %v3169_v29  ;;  %7716 = vmatpush3.bf16.msra.mxu0 %v8276_v24  ;;  %v3178_v9 = vrot.slane %v3177_v6, 4  ;;  %v6603_v14 = vcombine.low %v9280_v19, %v9283_v18  ;;  %v9308_v55 = vld [vmem:[%s8953_s5 + $0x7c] sm:$0xf]  ;;  %v6844_v29 = vrot.slane %v9063_v56, 9 }
  0xca   : > { %7559 = vmatprep.subr.bf16.mxu1 %v9264_v0  ;;  %v3188_v30 = vrot.slane %v3187_v48, 4  ;;  %7717 = vmatprep.subr.bf16.mxu0 %v8277_v35  ;;  %v3797_v48 = vrot.slane %v9020_v8, 5  ;;  %v6604_v8 = vcombine.low %v9305_v17, %v9308_v55 }
  0xcb   : > { %7495 = vmatprep.mubr.bf16.mxu1 %v6602_v45  ;;  %7683 = vmatprep.mubr.bf16.mxu0 %v6824_v16  ;;  %v3183_v24 = vsel %vm9015_vm2, %v3178_v9, %v3182_v11  ;;  %v3804_v45 = vrot.slane %v9067_v61, 5  ;;  %v3807_v11 = vrot.slane %v9070_v60, 5  ;;  %v9316_v9 = vld [vmem:[%s8953_s5 + $0x84] sm:$0xf]  ;;  %v9348_v61 = vld [vmem:[%s8953_s5 + $0x94] sm:$0xf] }
  0xcc   : > { %v3193_v25 = vsel %vm9015_vm2, %v3188_v30, %v3192_v39  ;;  %7496 = vmatmul.mubr.bf16.gmra.mrb[16].mxu1 %v6603_v14  ;;  %v3799_v6 = vrot.slane %v3797_v48, 4  ;;  %v9319_v39 = vld [vmem:[%s8953_s5 + $0x88] sm:$0xf]  ;;  %v3798_v60 = vsel %vm9180_vm5, %v6843_v34, %v3797_v48  ;;  %v11109_v14 = vrot.slane %v9026_v13, 5  ;;  %v9345_v13 = vld [vmem:[%s8953_s5 + $0x90] sm:$0xf] }
  0xcd   : > { %v6825_v16 = vcombine.low %v3183_v24, %v3193_v25  ;;  %7718 = vmatpush3.bf16.msra.mxu0 %v8277_v35  ;;  %7499 = vmatprep.mubr.bf16.mxu1 %v6604_v8  ;;  %v3806_v24 = vrot.slane %v3804_v45, 4  ;;  %v1252_v25 = vor.u32 %v8984_v43, %v8982_v42  ;;  %v6605_v34 = vcombine.low %v9316_v9, %v9319_v39  ;;  %v6747_v43 = vld [vmem:[%s8953_s5 + $0x90] sm:$0xf] }
  0xce   : > { %7751 = vmatprep.subr.bf16.mxu0 %v9294_v53  ;;  %v3801_v56 = vsel %vm9180_vm5, %v3799_v6, %v11109_v14  ;;  %v6845_v35 = vrot.slane %v9100_v40, 9  ;;  %v11110_v6 = vrot.slane %v8960_v28, 5  ;;  %v3814_v40 = vrot.slane %v9106_v58, 5 }
  0xcf   : > { %7684 = vmatmul.mubr.bf16.gmra.mrb[12].mxu0 %v6825_v16  ;;  %v3805_v16 = vsel %vm9180_vm5, %v6844_v29, %v3804_v45  ;;  %v3808_v8 = vsel %vm9180_vm5, %v3806_v24, %v3807_v11  ;;  %v11111_v29 = vrot.slane %v8957_v27, 9  ;;  %v9364_v24 = vld [vmem:[%s8953_s5 + $0x9c] sm:$0xf]  ;;  %v6875_v48 = vcombine.low %v3798_v60, %v3801_v56  ;;  %v8285_v56 = vld [vmem:[%s8936_s25 + $0x188] sm:$0xff]   ;;  %v8289_v60 = vld [vmem:[%s8936_s25 + $0x190] sm:$0xff]  }
  0xd0   : > { %7719 = vmatprep.mubr.bf16.mxu0 %v6874_v63  ;;  %v3811_v63 = vrot.slane %v9103_v41, 5  ;;  %v6606_v41 = vcombine.low %v9345_v13, %v9348_v61  ;;  %v6876_v30 = vcombine.low %v3805_v16, %v3808_v8  ;;  %v6846_v27 = vrot.slane %v9129_v62, 9 }
  0xd1   : > { %v9356_v45 = vsel %vm9180_vm5, %v11111_v29, %v11110_v6  ;;  %v3818_v58 = vrot.slane %v9134_v32, 5  ;;  %v3821_v11 = vrot.slane %v9137_v21, 5  ;;  %v6607_v32 = vcombine.low %v9364_v24, %v9368_v2 }
  0xd2   : > { %v3813_v1 = vrot.slane %v3811_v63, 4  ;;  %v3812_v14 = vsel %vm9180_vm5, %v6845_v35, %v3811_v63  ;;  %v3825_v21 = vrot.slane %v9165_v38, 5  ;;  %v9386_v35 = vld [vmem:[%s8953_s5 + $0xa8] sm:$0xf]  ;;  %v6847_v16 = vrot.slane %v9160_v12, 9 }
  0xd3   : > { %v3820_v8 = vrot.slane %v3818_v58, 4  ;;  %v3819_v63 = vsel %vm9180_vm5, %v6846_v27, %v3818_v58  ;;  %v6848_v58 = vrot.slane %v9197_v4, 9  ;;  %v3835_v27 = vrot.slane %v9213_v54, 5 }
  0xd4   : > { %7500 = vmatmul.mubr.bf16.gmra.mrb[20].mxu1 %v6605_v34  ;;  %v3815_v34 = vsel %vm9180_vm5, %v3813_v1, %v3814_v40  ;;  %v3828_v1 = vrot.slane %v9171_v50, 5  ;;  %v9394_v40 = vld [vmem:[%s8953_s5 + $0xac] sm:$0xf]  ;;  %v3827_v12 = vrot.slane %v3825_v21, 4  ;;  %v6849_v54 = vrot.slane %v9238_v15, 9 }
  0xd5   : > { %7503 = vmatprep.mubr.bf16.mxu1 %v6606_v41  ;;  %v3822_v38 = vsel %vm9180_vm5, %v3820_v8, %v3821_v11  ;;  %v9404_v41 = vld [vmem:[%s8953_s5 + $0xb4] sm:$0xf]  ;;  %v6608_v50 = vcombine.low %v9386_v35, %v9394_v40  ;;  %v1262_v11 = vor.u32 %v8998_v52, %v8991_v47  ;;  %v6877_v8 = vcombine.low %v3812_v14, %v3815_v34  ;;  %v8293_v14 = vld [vmem:[%s8936_s25 + $0x198] sm:$0xff]   ;;  %v9427_v34 = vld [vmem:[%s8953_s5 + $0x8] sm:$0x1] }
  0xd6   : > { %v6878_v62 = vcombine.low %v3819_v63, %v3822_v38  ;;  %v3839_v4 = vrot.slane %v9241_v33, 5  ;;  %v3842_v63 = vrot.slane %v9246_v22, 5  ;;  %v3829_v38 = vsel %vm9180_vm5, %v3827_v12, %v3828_v1  ;;  %v6740_v15 = vld [vmem:[%s8953_s5 + $0x74] sm:$0x1] }
  0xd7   : > { %7720 = vmatmul.mubr.bf16.vlgmr.msra.gmra.mrb[0].mxu0 %v6875_v48  ;;  %v1282_v48 = vsel %vm9015_vm2, %v9042_v31, %v9022_v10  ;;  %v1263_v52 = vrot.slane %v1262_v11, 4  ;;  %v11112_v33 = vrot.slane %v8996_v51, 5  ;;  %v11113_v6 = vrot.slane %v8989_v46, 9  ;;  %v9456_v12 = vld [vmem:[%s8953_s5 + $0x14] sm:$0x1] }
  0xd8   : > { %7752 = vmatpush3.bf16.msra.mxu0 %v9294_v53  ;;  %7723 = vmatprep.mubr.bf16.mxu0 %v6876_v30  ;;  %v3832_v53 = vrot.slane %v9210_v59, 5  ;;  %v9410_v30 = vld [vmem:[%s8953_s5 + $0xb8] sm:$0xf]  ;;  %v9422_v59 = vsel %vm9180_vm5, %v6847_v16, %v3825_v21  ;;  %v1253_v16 = vrot.slane %v1252_v25, 4  ;;  %v6738_v21 = vld [vmem:[%s8953_s5 + $0x6c] sm:$0xf] }
  0xd9   : > { %7753 = vmatprep.subr.bf16.mxu0 %v8285_v56  ;;  %v9447_v22 = vsel %vm9180_vm5, %v11113_v6, %v11112_v33  ;;  %v6609_v42 = vcombine.low %v9404_v41, %v9410_v30  ;;  %v3841_v25 = vrot.slane %v3839_v4, 4  ;;  %v6850_v46 = vrot.slane %v6738_v21, 9  ;;  %v9491_v21 = vld [vmem:[%s8953_s5 + $0x80] sm:$0x1] }
  0xda   : > { %v3834_v29 = vrot.slane %v3832_v53, 4  ;;  %v1258_v1 = vsel %vm9015_vm2, %v1253_v16, %v8991_v47  ;;  %v3849_v6 = vrot.slane %v6740_v15, 5  ;;  %v6879_v11 = vcombine.low %v9422_v59, %v3829_v38  ;;  %11116 = vst [vmem:[#allocation17_spill] sm:$0xff] %v9491_v21 }
  0xdb   : > { %v3833_v33 = vsel %vm9180_vm5, %v6848_v58, %v3832_v53  ;;  %v9466_v16 = vsel %vm9180_vm5, %v6849_v54, %v3839_v4  ;;  %v9475_v58 = vld [vmem:[%s8953_s5 + $0x78] sm:$0xf]  ;;  %v8295_v53 = vld [vmem:[%s8936_s25 + $0x1a0] sm:$0xff]  }
  0xdc   : > { %7754 = vmatpush3.bf16.msra.mxu0 %v8285_v56  ;;  %7504 = vmatmul.mubr.bf16.gmra.mrb[24].mxu1 %v6607_v32  ;;  %v1265_v56 = vshll.u32 %v9427_v34, 16  ;;  %v6739_v32 = vld [vmem:[%s8953_s5 + $0x70] sm:$0xf]  ;;  %v3836_v47 = vsel %vm9180_vm5, %v3834_v29, %v3835_v27  ;;  %11114 = vst [vmem:[#allocation15_spill] sm:$0xff] %v9475_v58 }
  0xdd   : > { %7755 = vmatprep.subr.bf16.mxu0 %v8289_v60  ;;  %7507 = vmatprep.mubr.bf16.mxu1 %v6608_v50  ;;  %v3846_v50 = vrot.slane %v6739_v32, 5  ;;  %v11117_v32 = vshrl.u32 %v9049_v36, 16 }
  0xde   : > { %v1267_v51 = vrot.slane %v1265_v56, 5  ;;  %v6746_v56 = vld [vmem:[%s8953_s5 + $0x8c] sm:$0x1] }
  0xdf   : > { %7724 = vmatmul.mubr.bf16.gmra.mrb[4].mxu0 %v6877_v8  ;;  %v1289_v8 = vshll.u32 %v9456_v12, 16  ;;  %v3848_v59 = vrot.slane %v3846_v50, 4  ;;  %v9481_v4 = vsel %vm9180_vm5, %v6850_v46, %v3846_v50  ;;  %v1296_v15 = vrot.slane %v11117_v32, 4  ;;  %v9503_v46 = vld [vmem:[%s8953_s5 + $0x20] sm:$0x1] }
  0xe0   : > { %7727 = vmatprep.mubr.bf16.mxu0 %v6878_v62  ;;  %7756 = vmatpush3.bf16.msra.mxu0 %v8289_v60  ;;  %v9470_v62 = vsel %vm9180_vm5, %v3841_v25, %v3842_v63  ;;  %v1268_v60 = vsel %vm9015_vm2, %v1263_v52, %v1267_v51  ;;  %v9484_v63 = vld [vmem:[%s8953_s5 + $0x7c] sm:$0xf]  ;;  %v6880_v25 = vcombine.low %v3833_v33, %v3836_v47  ;;  %v6744_v50 = vld [vmem:[%s8953_s5 + $0x84] sm:$0xf]  ;;  %v6851_v33 = vrot.slane %v9475_v58, 9 }
  0xe1   : > { %7757 = vmatprep.subr.bf16.mxu0 %v8293_v14  ;;  %v6634_v27 = vcombine.low %v1258_v1, %v1268_v60  ;;  %v1291_v54 = vrot.slane %v1289_v8, 5  ;;  %11115 = vst [vmem:[#allocation16_spill] sm:$0xff] %v9484_v63  ;;  %v9488_v52 = vsel %vm9180_vm5, %v3848_v59, %v3849_v6  ;;  %v6881_v1 = vcombine.low %v9466_v16, %v9470_v62  ;;  %v6745_v6 = vld [vmem:[%s8953_s5 + $0x88] sm:$0xf]  ;;  %v9566_v8 = vld [vmem:[%s8953_s5 + $0x38] sm:$0x1] }
  0xe2   : > { %v3853_v47 = vrot.slane %v9484_v63, 5  ;;  %v3856_v60 = vrot.slane %v9491_v21, 5  ;;  %v11118_v59 = vshll.u32 %v9049_v36, 16  ;;  %v11130_v16 = vld [vmem:[#allocation10_spill] sm:$0xff]  ;;  %v10014_v21 = vld [vmem:[%s8953_s5 + $0xb8] sm:$0xf] }
  0xe3   : > { %v1292_v51 = vsel %vm9015_vm2, %v9051_v37, %v1291_v54  ;;  %v8297_v37 = vld [vmem:[%s8936_s25 + $0x1a8] sm:$0xff]   ;;  %v1351_v62 = vshll.u32 %v11130_v16, 16 }
  0xe4   : > { %7508 = vmatmul.mubr.bf16.gmra.mrb[28].mxu1 %v6609_v42  ;;  %7758 = vmatpush3.bf16.msra.mxu0 %v8293_v14  ;;  %v6635_v42 = vcombine.low %v1282_v48, %v1292_v51  ;;  %v11119_v54 = vld [vmem:[#allocation6_spill] sm:$0xff]  ;;  %v1313_v48 = vshll.u32 %v9503_v46, 16  ;;  %v6852_v51 = vrot.slane %v6744_v50, 9  ;;  %v3860_v14 = vrot.slane %v6745_v6, 5 }
  0xe5   : > { %7527 = vmatprep.mubr.bf16.mxu1 %v6634_v27  ;;  %7759 = vmatprep.subr.bf16.mxu0 %v8295_v53  ;;  %v1299_v27 = vrot.slane %v11118_v59, 5  ;;  %v1303_v32 = vshll.u32 %v11119_v54, 16  ;;  %v11120_v10 = vshrl.u32 %v11119_v54, 16  ;;  %v9528_v38 = vsel %vm9180_vm5, %v6851_v33, %v3853_v47  ;;  %v8296_v54 = vld [vmem:[%s8936_s25 + $0x88] sm:$0xff]   ;;  %v8299_v33 = vld [vmem:[%s8936_s25 + $0x1b0] sm:$0xff]  }
  0xe6   : > { %v3855_v36 = vrot.slane %v3853_v47, 4  ;;  %v9536_v50 = vsel %vm9180_vm5, %v6852_v51, %v3860_v14  ;;  %v3862_v6 = vrot.slane %v3860_v14, 4 }
  0xe7   : > { %7728 = vmatmul.mubr.bf16.gmra.mrb[8].mxu0 %v6879_v11  ;;  %v1309_v31 = vrot.slane %v11120_v10, 4  ;;  %v1300_v59 = vor.u32 %v1299_v27, %v1296_v15  ;;  %v1305_v29 = vrot.slane %v1303_v32, 5  ;;  %v9531_v11 = vld [vmem:[%s8953_s5 + $0x2c] sm:$0x1]  ;;  %v1315_v10 = vrot.slane %v1313_v48, 5  ;;  %v11121_v27 = vld [vmem:[#allocation7_spill] sm:$0xff] }
  0xe8   : > { %7731 = vmatprep.mubr.bf16.mxu0 %v6880_v25  ;;  %7760 = vmatpush3.bf16.msra.mxu0 %v8295_v53  ;;  %v3863_v25 = vrot.slane %v6746_v56, 5  ;;  %v9542_v53 = vsel %vm9180_vm5, %v3855_v36, %v3856_v60  ;;  %v11122_v32 = vshrl.u32 %v11121_v27, 16  ;;  %v6748_v48 = vld [vmem:[%s8953_s5 + $0x94] sm:$0xf]  ;;  %v11123_v14 = vshll.u32 %v11121_v27, 16  ;;  %v11124_v60 = vld [vmem:[#allocation8_spill] sm:$0xff] }
  0xe9   : > { %7761 = vmatprep.subr.bf16.mxu0 %v8297_v37  ;;  %v1301_v15 = vrot.slane %v1300_v59, 4  ;;  %v1310_v47 = vor.u32 %v1309_v31, %v1305_v29  ;;  %v1327_v36 = vshll.u32 %v11124_v60, 16  ;;  %v6749_v59 = vld [vmem:[%s8953_s5 + $0x98] sm:$0x1]  ;;  %v11125_v23 = vshrl.u32 %v11124_v60, 16  ;;  %v11126_v60 = vld [vmem:[#allocation9_spill] sm:$0xff] }
  0xea   : > { %v1320_v44 = vrot.slane %v11122_v32, 4  ;;  %v9551_v56 = vsel %vm9180_vm5, %v3862_v6, %v3863_v25  ;;  %v1323_v51 = vrot.slane %v11123_v14, 5  ;;  %v1337_v14 = vshll.u32 %v9531_v11, 16 }
  0xeb   : > { %v1306_v31 = vsel %vm9015_vm2, %v1301_v15, %v1305_v29  ;;  %v1311_v32 = vrot.slane %v1310_v47, 4  ;;  %v1333_v6 = vrot.slane %v11125_v23, 4  ;;  %v1329_v27 = vrot.slane %v1327_v36, 5  ;;  %v8298_v29 = vld [vmem:[%s8936_s25 + $0x90] sm:$0xff]  }
  0xec   : > { %7528 = vmatmul.mubr.bf16.vlgmr.msra.gmra.mrb[0].mxu1 %v6635_v42  ;;  %7762 = vmatpush3.bf16.msra.mxu0 %v8297_v37  ;;  %v1324_v25 = vor.u32 %v1323_v51, %v1320_v44  ;;  %v6853_v42 = vrot.slane %v6747_v43, 9  ;;  %v3867_v47 = vrot.slane %v6748_v48, 5  ;;  %v3870_v23 = vrot.slane %v6749_v59, 5  ;;  %v8301_v44 = vld [vmem:[%s8936_s25 + $0x1b8] sm:$0xff]  }
  0xed   : > { %7560 = vmatpush3.bf16.msra.mxu1 %v9264_v0  ;;  %7763 = vmatprep.subr.bf16.mxu0 %v8299_v33  ;;  %v1316_v15 = vsel %vm9015_vm2, %v1311_v32, %v1315_v10  ;;  %v11127_v37 = vshrl.u32 %v11126_v60, 16  ;;  %v6750_v0 = vld [vmem:[%s8953_s5 + $0x9c] sm:$0xf]  ;;  %v1334_v36 = vor.u32 %v1333_v6, %v1329_v27  ;;  %v1339_v58 = vrot.slane %v1337_v14, 5  ;;  %v6752_v14 = vld [vmem:[%s8953_s5 + $0xa4] sm:$0x1] }
  0xee   : > { %7561 = vmatprep.subr.bf16.mxu1 %v8296_v54  ;;  %v6636_v43 = vcombine.low %v1306_v31, %v1316_v15  ;;  %v1325_v51 = vrot.slane %v1324_v25, 4  ;;  %v11128_v10 = vcombine.low %v9481_v4, %v9488_v52  ;;  %v9583_v48 = vsel %vm9180_vm5, %v6853_v42, %v3867_v47  ;;  %v9596_v42 = vld [vmem:[%s8936_s25 + $0x1c0] sm:$0xff]  }
  0xef   : > { %v1344_v26 = vrot.slane %v11127_v37, 4  ;;  %7732 = vmatmul.mubr.bf16.gmra.mrb[12].mxu0 %v6881_v1  ;;  %v3869_v59 = vrot.slane %v3867_v47, 4  ;;  %v11129_v32 = vshll.u32 %v11126_v60, 16  ;;  %v6751_v1 = vld [vmem:[%s8953_s5 + $0xa0] sm:$0xf]  ;;  %v1335_v6 = vrot.slane %v1334_v36, 4 }
  0xf0   : > { %7735 = vmatprep.mubr.bf16.mxu0 %v11128_v10  ;;  %7764 = vmatpush3.bf16.msra.mxu0 %v8299_v33  ;;  %v1330_v31 = vsel %vm9015_vm2, %v1325_v51, %v1329_v27  ;;  %v11131_v4 = vshrl.u32 %v11130_v16, 16  ;;  %v1361_v25 = vshll.u32 %v9566_v8, 16  ;;  %v1353_v47 = vrot.slane %v1351_v62, 5  ;;  %v8300_v27 = vld [vmem:[%s8936_s25 + $0x98] sm:$0xff]   ;;  %v11132_v16 = vld [vmem:[#allocation11_spill] sm:$0xff] }
  0xf1   : > { %v1347_v37 = vrot.slane %v11129_v32, 5  ;;  %7531 = vmatprep.mubr.bf16.mxu1 %v6636_v43  ;;  %7562 = vmatpush3.bf16.msra.mxu1 %v8296_v54  ;;  %v9600_v15 = vsel %vm9180_vm5, %v3869_v59, %v3870_v23  ;;  %v6854_v60 = vrot.slane %v6750_v0, 9  ;;  %v1340_v54 = vsel %vm9015_vm2, %v1335_v6, %v1339_v58  ;;  %v6753_v0 = vld [vmem:[%s8953_s5 + $0xa8] sm:$0xf] }
  0xf2   : > { %v1357_v52 = vrot.slane %v11131_v4, 4  ;;  %7563 = vmatprep.subr.bf16.mxu1 %v8298_v29  ;;  %7765 = vmatprep.subr.bf16.mxu0 %v8301_v44  ;;  %v6885_v43 = vcombine.low %v9583_v48, %v9600_v15  ;;  %v1363_v51 = vrot.slane %v1361_v25, 5  ;;  %v3874_v36 = vrot.slane %v6751_v1, 5  ;;  %v6754_v4 = vld [vmem:[%s8953_s5 + $0xac] sm:$0xf]  ;;  %v11135_v25 = vld [vmem:[#allocation12_spill] sm:$0xff] }
  0xf3   : > { %v1348_v33 = vor.u32 %v1347_v37, %v1344_v26  ;;  %v6637_v10 = vcombine.low %v1330_v31, %v1340_v54  ;;  %v3877_v59 = vrot.slane %v6752_v14, 5  ;;  %v9608_v26 = vld [vmem:[%s8953_s5 + $0x44] sm:$0x1]  ;;  %v11133_v62 = vshrl.u32 %v11132_v16, 16  ;;  %v6755_v54 = vld [vmem:[%s8953_s5 + $0xb0] sm:$0x1] }
  0xf4   : > { %v1358_v23 = vor.u32 %v1357_v52, %v1353_v47  ;;  %7766 = vmatpush3.bf16.msra.mxu0 %v8301_v44  ;;  %v9613_v37 = vsel %vm9180_vm5, %v6854_v60, %v3874_v36  ;;  %v3876_v58 = vrot.slane %v3874_v36, 4  ;;  %v11134_v1 = vshll.u32 %v11132_v16, 16  ;;  %v8303_v36 = vld [vmem:[%s8936_s25 + $0xa0] sm:$0xff]   ;;  %v6761_v15 = vld [vmem:[%s8953_s5 + $0xc8] sm:$0x1] }
  0xf5   : > { %v1349_v32 = vrot.slane %v1348_v33, 4  ;;  %v1368_v6 = vrot.slane %v11133_v62, 4  ;;  %7564 = vmatpush3.bf16.msra.mxu1 %v8298_v29  ;;  %7799 = vmatprep.subr.bf16.mxu0 %v9596_v42  ;;  %v1375_v14 = vshll.u32 %v11135_v25, 16  ;;  %v11136_v33 = vshrl.u32 %v11135_v25, 16  ;;  %v9641_v25 = vld [vmem:[%s8953_s5 + $0x50] sm:$0x1] }
  0xf6   : > { %v1371_v31 = vrot.slane %v11134_v1, 5  ;;  %7532 = vmatmul.mubr.bf16.gmra.mrb[4].mxu1 %v6637_v10  ;;  %v1359_v44 = vrot.slane %v1358_v23, 4  ;;  %7565 = vmatprep.subr.bf16.mxu1 %v8300_v27  ;;  %v11137_v29 = vcombine.low %v9528_v38, %v9542_v53  ;;  %v3878_v10 = vsel %vm9180_vm5, %v3876_v58, %v3877_v59 }
  0xf7   : > { %v1354_v52 = vsel %vm9015_vm2, %v1349_v32, %v1353_v47  ;;  %v1381_v60 = vrot.slane %v11136_v33, 4  ;;  %v1385_v32 = vshll.u32 %v9608_v26, 16  ;;  %v6855_v23 = vrot.slane %v6753_v0, 9  ;;  %v6756_v33 = vld [vmem:[%s8953_s5 + $0xb4] sm:$0xf] }
  0xf8   : > { %7736 = vmatmul.mubr.bf16.gmra.mrb[16].mxu0 %v11137_v29  ;;  %v1372_v47 = vor.u32 %v1371_v31, %v1368_v6  ;;  %v11138_v16 = vcombine.low %v9536_v50, %v9551_v56  ;;  %v1364_v62 = vsel %vm9015_vm2, %v1359_v44, %v1363_v51  ;;  %v6886_v1 = vcombine.low %v9613_v37, %v3878_v10  ;;  %v6757_v0 = vld [vmem:[%s8953_s5 + $0xb8] sm:$0xf]  ;;  %v8307_v29 = vld [vmem:[%s8936_s25 + $0xa8] sm:$0xff]   ;;  %v11139_v37 = vld [vmem:[#allocation13_spill] sm:$0xff] }
  0xf9   : > { %v1377_v38 = vrot.slane %v1375_v14, 5  ;;  %v3881_v53 = vrot.slane %v6754_v4, 5  ;;  %v6638_v59 = vcombine.low %v1354_v52, %v1364_v62  ;;  %v1387_v6 = vrot.slane %v1385_v32, 5  ;;  %7566 = vmatpush3.bf16.msra.mxu1 %v8300_v27  ;;  %v6758_v32 = vld [vmem:[%s8953_s5 + $0xbc] sm:$0x1] }
  0xfa   : > { %7739 = vmatprep.mubr.bf16.mxu0 %v11138_v16  ;;  %v1373_v58 = vrot.slane %v1372_v47, 4  ;;  %v3884_v31 = vrot.slane %v6755_v54, 5  ;;  %v11140_v44 = vshrl.u32 %v11139_v37, 16  ;;  %7567 = vmatprep.subr.bf16.mxu1 %v8303_v36  ;;  %v11141_v14 = vshll.u32 %v11139_v37, 16  ;;  %v11142_v54 = vld [vmem:[#allocation14_spill] sm:$0xff] }
  0xfb   : > { %v1382_v50 = vor.u32 %v1381_v60, %v1377_v38  ;;  %v9648_v56 = vsel %vm9180_vm5, %v6855_v23, %v3881_v53  ;;  %v3883_v51 = vrot.slane %v3881_v53, 4  ;;  %7535 = vmatprep.mubr.bf16.mxu1 %v6638_v59  ;;  %v1399_v60 = vshll.u32 %v11142_v54, 16  ;;  %v9665_v37 = vld [vmem:[%s8953_s5 + $0x5c] sm:$0x1] }
  0xfc   : > { %v1392_v4 = vrot.slane %v11140_v44, 4  ;;  %v1378_v52 = vsel %vm9015_vm2, %v1373_v58, %v1377_v38  ;;  %v1395_v27 = vrot.slane %v11141_v14, 5  ;;  %v11143_v10 = vshrl.u32 %v11142_v54, 16  ;;  %v6759_v14 = vld [vmem:[%s8953_s5 + $0xc0] sm:$0xf] }
  0xfd   : > { %v1383_v23 = vrot.slane %v1382_v50, 4  ;;  %v3885_v16 = vsel %vm9180_vm5, %v3883_v51, %v3884_v31  ;;  %v1409_v62 = vshll.u32 %v9641_v25, 16  ;;  %v6856_v53 = vrot.slane %v6756_v33, 9  ;;  %7568 = vmatpush3.bf16.msra.mxu1 %v8303_v36 }
  0xfe   : > { %v1405_v47 = vrot.slane %v11143_v10, 4  ;;  %v6887_v59 = vcombine.low %v9648_v56, %v3885_v16  ;;  %v1396_v44 = vor.u32 %v1395_v27, %v1392_v4  ;;  %v1401_v38 = vrot.slane %v1399_v60, 5  ;;  %7569 = vmatprep.subr.bf16.mxu1 %v8307_v29  ;;  %v6760_v27 = vld [vmem:[%s8953_s5 + $0xc4] sm:$0xf]  ;;  %v8311_v60 = vld [vmem:[%s8936_s25 + $0xb0] sm:$0xff]  }
  0xff   : > { %v3888_v58 = vrot.slane %v6757_v0, 5  ;;  %v1388_v50 = vsel %vm9015_vm2, %v1383_v23, %v1387_v6  ;;  %v1411_v54 = vrot.slane %v1409_v62, 5  ;;  %v3891_v31 = vrot.slane %v6758_v32, 5 }
 0x100   : > { %v11144_v51 = vshrl.u32 %v9216_v7, 16  ;;  %7740 = vmatmul.mubr.bf16.gmra.mrb[20].mxu0 %v6885_v43  ;;  %v6639_v56 = vcombine.low %v1378_v52, %v1388_v50  ;;  %v1397_v0 = vrot.slane %v1396_v44, 4  ;;  %v1406_v4 = vor.u32 %v1405_v47, %v1401_v38 }
 0x101   : > { %v3889_v36 = vsel %vm9180_vm5, %v6856_v53, %v3888_v58  ;;  %7743 = vmatprep.mubr.bf16.mxu0 %v6886_v1  ;;  %v3890_v6 = vrot.slane %v3888_v58, 4  ;;  %v11145_v10 = vshll.u32 %v9216_v7, 16  ;;  %v1423_v23 = vshll.u32 %v9222_v49, 16  ;;  %7570 = vmatpush3.bf16.msra.mxu1 %v8307_v29 }
 0x102   : > { %v1416_v33 = vrot.slane %v11144_v51, 4  ;;  %v11146_v16 = vshrl.u32 %v9222_v49, 16  ;;  %7536 = vmatmul.mubr.bf16.gmra.mrb[8].mxu1 %v6639_v56  ;;  %v1402_v43 = vsel %vm9015_vm2, %v1397_v0, %v1401_v38  ;;  %v1407_v52 = vrot.slane %v1406_v4, 4  ;;  %v8315_v49 = vld [vmem:[%s8936_s25 + $0xb8] sm:$0xff]   ;;  %v9694_v38 = vld [vmem:[%s8953_s5 + $0x68] sm:$0x1]  ;;  %7571 = vmatprep.subr.bf16.mxu1 %v8311_v60 }
 0x103   : > { %v1419_v32 = vrot.slane %v11145_v10, 5  ;;  %v1433_v1 = vshll.u32 %v9665_v37, 16  ;;  %v6857_v47 = vrot.slane %v6759_v14, 9  ;;  %v3892_v7 = vsel %vm9180_vm5, %v3890_v6, %v3891_v31  ;;  %v9697_v0 = vld [vmem:[%s8953_s5 + $0x18] sm:$0xf] }
 0x104   : > { %v1429_v48 = vrot.slane %v11146_v16, 4  ;;  %v1425_v53 = vrot.slane %v1423_v23, 5  ;;  %v3895_v44 = vrot.slane %v6760_v27, 5  ;;  %v1412_v58 = vsel %vm9015_vm2, %v1407_v52, %v1411_v54  ;;  %v9702_v27 = vld [vmem:[%s8953_s5 + $0x1c] sm:$0xf] }
 0x105   : > { %v1420_v62 = vor.u32 %v1419_v32, %v1416_v33  ;;  %v6888_v50 = vcombine.low %v3889_v36, %v3892_v7  ;;  %v1435_v51 = vrot.slane %v1433_v1, 5  ;;  %v3898_v56 = vrot.slane %v6761_v15, 5  ;;  %7572 = vmatpush3.bf16.msra.mxu1 %v8311_v60  ;;  %v9718_v7 = vld [vmem:[%s8936_s25 + $0xc0] sm:$0xff]  }
 0x106   : > { %v6640_v14 = vcombine.low %v1402_v43, %v1412_v58  ;;  %v1430_v31 = vor.u32 %v1429_v48, %v1425_v53  ;;  %v3896_v33 = vsel %vm9180_vm5, %v6857_v47, %v3895_v44  ;;  %v3897_v29 = vrot.slane %v3895_v44, 4  ;;  %7573 = vmatprep.subr.bf16.mxu1 %v8315_v49 }
 0x107   : > { %v1421_v4 = vrot.slane %v1420_v62, 4  ;;  %v11147_v6 = vshrl.u32 %v9270_v5, 16  ;;  %v11148_v36 = vshll.u32 %v9270_v5, 16  ;;  %v1447_v32 = vshll.u32 %v9273_v57, 16 }
 0x108   : > { %7539 = vmatprep.mubr.bf16.mxu1 %v6640_v14  ;;  %v1431_v16 = vrot.slane %v1430_v31, 4  ;;  %v11149_v48 = vshrl.u32 %v9273_v57, 16  ;;  %v1457_v43 = vshll.u32 %v9694_v38, 16  ;;  %7744 = vmatmul.mubr.bf16.gmra.mrb[24].mxu0 %v6887_v59  ;;  %v3899_v5 = vsel %vm9180_vm5, %v3897_v29, %v3898_v56  ;;  %v9732_v31 = vld [vmem:[%s8953_s5 + $0x28] sm:$0xf] }
 0x109   : > { %v1440_v54 = vrot.slane %v11147_v6, 4  ;;  %v1443_v10 = vrot.slane %v11148_v36, 5  ;;  %v1426_v23 = vsel %vm9015_vm2, %v1421_v4, %v1425_v53  ;;  %v1449_v47 = vrot.slane %v1447_v32, 5  ;;  %7747 = vmatprep.mubr.bf16.mxu0 %v6888_v50  ;;  %v9726_v53 = vld [vmem:[%s8953_s5 + $0x74] sm:$0x1]  ;;  %7574 = vmatpush3.bf16.msra.mxu1 %v8315_v49 }
 0x10a   : > { %v1453_v15 = vrot.slane %v11149_v48, 4  ;;  %v1436_v60 = vsel %vm9015_vm2, %v1431_v16, %v1435_v51  ;;  %v6889_v62 = vcombine.low %v3896_v33, %v3899_v5  ;;  %v6962_v59 = vcombine.low %v9697_v0, %v9702_v27  ;;  %v9729_v4 = vld [vmem:[%s8953_s5 + $0x24] sm:$0xf]  ;;  %v9741_v36 = vld [vmem:[%s8953_s5 + $0x80] sm:$0x1]  ;;  %7607 = vmatprep.subr.bf16.mxu1 %v9718_v7 }
 0x10b   : > { %v1444_v1 = vor.u32 %v1443_v10, %v1440_v54  ;;  %v6641_v44 = vcombine.low %v1426_v23, %v1436_v60  ;;  %v1459_v14 = vrot.slane %v1457_v43, 5  ;;  %v11150_v50 = vshrl.u32 %v9280_v19, 16  ;;  %v9757_v60 = vld [vmem:[%s8953_s5 + $0x30] sm:$0xf]  ;;  %v9879_v29 = vld [vmem:[%s8953_s5 + $0xbc] sm:$0x1] }
 0x10c   : > { %v1454_v56 = vor.u32 %v1453_v15, %v1449_v47  ;;  %v11151_v51 = vshll.u32 %v9280_v19, 16  ;;  %v1471_v54 = vshll.u32 %v9283_v18, 16  ;;  %v11152_v23 = vshrl.u32 %v9283_v18, 16  ;;  %v9847_v15 = vld [vmem:[%s8953_s5 + $0x58] sm:$0xf] }
 0x10d   : > { %v1445_v58 = vrot.slane %v1444_v1, 4  ;;  %v1464_v6 = vrot.slane %v11150_v50, 4  ;;  %7540 = vmatmul.mubr.bf16.gmra.mrb[12].mxu1 %v6641_v44  ;;  %v1481_v48 = vshll.u32 %v9726_v53, 16  ;;  %v9760_v44 = vld [vmem:[%s8953_s5 + $0x34] sm:$0xf]  ;;  %v1519_v52 = vshll.u32 %v9319_v39, 16 }
 0x10e   : > { %v1467_v33 = vrot.slane %v11151_v51, 5  ;;  %v1455_v32 = vrot.slane %v1454_v56, 4  ;;  %v1477_v16 = vrot.slane %v11152_v23, 4  ;;  %v1473_v5 = vrot.slane %v1471_v54, 5 }
 0x10f   : > { %v1450_v10 = vsel %vm9015_vm2, %v1445_v58, %v1449_v47  ;;  %v1483_v1 = vrot.slane %v1481_v48, 5  ;;  %v6963_v47 = vcombine.low %v9729_v4, %v9732_v31  ;;  %v11153_v51 = vshrl.u32 %v9305_v17, 16 }
 0x110   : > { %v1468_v43 = vor.u32 %v1467_v33, %v1464_v6  ;;  %v1460_v49 = vsel %vm9015_vm2, %v1455_v32, %v1459_v14  ;;  %v1478_v50 = vor.u32 %v1477_v16, %v1473_v5  ;;  %7748 = vmatmul.mubr.bf16.gmra.mrb[28].mxu0 %v6889_v62  ;;  %v11154_v14 = vshll.u32 %v9305_v17, 16 }
 0x111   : > { %v6642_v58 = vcombine.low %v1450_v10, %v1460_v49  ;;  %v1488_v6 = vrot.slane %v11153_v51, 4  ;;  %v1495_v54 = vshll.u32 %v9308_v55, 16  ;;  %v11155_v32 = vshrl.u32 %v9308_v55, 16  ;;  %7767 = vmatprep.mubr.bf16.mxu0 %v6962_v59  ;;  %v9781_v59 = vld [vmem:[%s8953_s5 + $0x3c] sm:$0xf] }
 0x112   : > { %v1469_v56 = vrot.slane %v1468_v43, 4  ;;  %v1491_v33 = vrot.slane %v11154_v14, 5  ;;  %v1505_v48 = vshll.u32 %v9741_v36, 16  ;;  %v1479_v16 = vrot.slane %v1478_v50, 4  ;;  %v9778_v14 = vld [vmem:[%s8953_s5 + $0x8c] sm:$0x1] }
 0x113   : > { %v1501_v23 = vrot.slane %v11155_v32, 4  ;;  %7543 = vmatprep.mubr.bf16.mxu1 %v6642_v58  ;;  %v1497_v49 = vrot.slane %v1495_v54, 5  ;;  %v6964_v51 = vcombine.low %v9757_v60, %v9760_v44  ;;  %v9791_v55 = vld [vmem:[%s8953_s5 + $0x40] sm:$0xf] }
 0x114   : > { %v1474_v10 = vsel %vm9015_vm2, %v1469_v56, %v1473_v5  ;;  %v1492_v62 = vor.u32 %v1491_v33, %v1488_v6  ;;  %v1484_v5 = vsel %vm9015_vm2, %v1479_v16, %v1483_v1  ;;  %v1507_v58 = vrot.slane %v1505_v48, 5 }
 0x115   : > { %v11156_v56 = vshrl.u32 %v9316_v9, 16  ;;  %v11157_v6 = vshll.u32 %v9316_v9, 16  ;;  %v6643_v54 = vcombine.low %v1474_v10, %v1484_v5  ;;  %v1502_v57 = vor.u32 %v1501_v23, %v1497_v49  ;;  %v8309_v5 = vld [vmem:[%s8936_s25 + $0x1c8] sm:$0xff]  }
 0x116   : > { %v1493_v32 = vrot.slane %v1492_v62, 4  ;;  %v11158_v1 = vshrl.u32 %v9319_v39, 16  ;;  %v1529_v16 = vshll.u32 %v9778_v14, 16  ;;  %v1521_v62 = vrot.slane %v1519_v52, 5 }
 0x117   : > { %v1512_v50 = vrot.slane %v11156_v56, 4  ;;  %v1515_v33 = vrot.slane %v11157_v6, 5  ;;  %v9798_v56 = vld [vmem:[%s8953_s5 + $0x98] sm:$0x1]  ;;  %7544 = vmatmul.mubr.bf16.gmra.mrb[16].mxu1 %v6643_v54  ;;  %v1503_v23 = vrot.slane %v1502_v57, 4  ;;  %v6965_v39 = vcombine.low %v9781_v59, %v9791_v55 }
 0x118   : > { %v1525_v48 = vrot.slane %v11158_v1, 4  ;;  %v1498_v9 = vsel %vm9015_vm2, %v1493_v32, %v1497_v49  ;;  %v1531_v17 = vrot.slane %v1529_v16, 5  ;;  %7768 = vmatmul.mubr.bf16.vlgmr.msra.gmra.mrb[0].mxu0 %v6963_v47  ;;  %v11159_v57 = vshrl.u32 %v9345_v13, 16  ;;  %v9817_v1 = vld [vmem:[%s8953_s5 + $0x4c] sm:$0xf] }
 0x119   : > { %v1516_v43 = vor.u32 %v1515_v33, %v1512_v50  ;;  %v9808_v33 = vld [vmem:[%s8953_s5 + $0x48] sm:$0xf]  ;;  %v1508_v54 = vsel %vm9015_vm2, %v1503_v23, %v1507_v58  ;;  %7800 = vmatpush3.bf16.msra.mxu0 %v9596_v42  ;;  %7771 = vmatprep.mubr.bf16.mxu0 %v6964_v51  ;;  %v1543_v47 = vshll.u32 %v9348_v61, 16  ;;  %v11161_v58 = vshrl.u32 %v9348_v61, 16  ;;  %v8313_v23 = vld [vmem:[%s8936_s25 + $0x1d0] sm:$0xff]  }
 0x11a   : > { %v1526_v49 = vor.u32 %v1525_v48, %v1521_v62  ;;  %v1536_v52 = vrot.slane %v11159_v57, 4  ;;  %v6644_v16 = vcombine.low %v1498_v9, %v1508_v54  ;;  %7801 = vmatprep.subr.bf16.mxu0 %v8309_v5  ;;  %v1553_v42 = vshll.u32 %v9798_v56, 16  ;;  %v9829_v9 = vld [vmem:[%s8953_s5 + $0xa4] sm:$0x1]  ;;  %v9840_v50 = vld [vmem:[%s8953_s5 + $0x54] sm:$0xf] }
 0x11b   : > { %v1517_v6 = vrot.slane %v1516_v43, 4  ;;  %v11160_v43 = vshll.u32 %v9345_v13, 16  ;;  %v1549_v48 = vrot.slane %v11161_v58, 4  ;;  %v1545_v54 = vrot.slane %v1543_v47, 5 }
 0x11c   : > { %v1527_v13 = vrot.slane %v1526_v49, 4  ;;  %7547 = vmatprep.mubr.bf16.mxu1 %v6644_v16  ;;  %v6966_v61 = vcombine.low %v9808_v33, %v9817_v1  ;;  %v1555_v49 = vrot.slane %v1553_v42, 5  ;;  %v8317_v16 = vld [vmem:[%s8936_s25 + $0x1d8] sm:$0xff]   ;;  %v11163_v51 = vshll.u32 %v9364_v24, 16 }
 0x11d   : > { %v1539_v32 = vrot.slane %v11160_v43, 5  ;;  %v1522_v57 = vsel %vm9015_vm2, %v1517_v6, %v1521_v62  ;;  %7802 = vmatpush3.bf16.msra.mxu0 %v8309_v5  ;;  %v1550_v47 = vor.u32 %v1549_v48, %v1545_v54  ;;  %v1567_v58 = vshll.u32 %v9368_v2, 16 }
 0x11e   : > { %v1532_v62 = vsel %vm9015_vm2, %v1527_v13, %v1531_v17  ;;  %v1563_v18 = vrot.slane %v11163_v51, 5  ;;  %7803 = vmatprep.subr.bf16.mxu0 %v8313_v23  ;;  %v1591_v17 = vshll.u32 %v9394_v40, 16 }
 0x11f   : > { %v1540_v43 = vor.u32 %v1539_v32, %v1536_v52  ;;  %v11162_v52 = vshrl.u32 %v9364_v24, 16  ;;  %v6645_v10 = vcombine.low %v1522_v57, %v1532_v62  ;;  %v1577_v57 = vshll.u32 %v9829_v9, 16  ;;  %v9857_v62 = vld [vmem:[%s8953_s5 + $0xb0] sm:$0x1] }
 0x120   : > { %v1551_v24 = vrot.slane %v1550_v47, 4  ;;  %v1569_v51 = vrot.slane %v1567_v58, 5  ;;  %7772 = vmatmul.mubr.bf16.gmra.mrb[4].mxu0 %v6965_v39  ;;  %v11166_v39 = vshll.u32 %v9386_v35, 16  ;;  %v9872_v47 = vld [vmem:[%s8953_s5 + $0x64] sm:$0xf] }
 0x121   : > { %v1541_v6 = vrot.slane %v1540_v43, 4  ;;  %v1560_v32 = vrot.slane %v11162_v52, 4  ;;  %v11164_v43 = vshrl.u32 %v9368_v2, 16  ;;  %7548 = vmatmul.mubr.bf16.gmra.mrb[20].mxu1 %v6645_v10  ;;  %v9860_v52 = vld [vmem:[%s8953_s5 + $0x60] sm:$0xf]  ;;  %v1579_v13 = vrot.slane %v1577_v57, 5  ;;  %7775 = vmatprep.mubr.bf16.mxu0 %v6966_v61 }
 0x122   : > { %v6967_v2 = vcombine.low %v9840_v50, %v9847_v15  ;;  %7804 = vmatpush3.bf16.msra.mxu0 %v8313_v23  ;;  %v11167_v10 = vshrl.u32 %v9394_v40, 16  ;;  %v8321_v61 = vld [vmem:[%s8936_s25 + $0x1e0] sm:$0xff]   ;;  %v1593_v40 = vrot.slane %v1591_v17, 5  ;;  %v8325_v17 = vld [vmem:[%s8936_s25 + $0x1e8] sm:$0xff]  }
 0x123   : > { %v1573_v42 = vrot.slane %v11164_v43, 4  ;;  %v1546_v5 = vsel %vm9015_vm2, %v1541_v6, %v1545_v54  ;;  %v1564_v48 = vor.u32 %v1563_v18, %v1560_v32  ;;  %v11165_v43 = vshrl.u32 %v9386_v35, 16  ;;  %7805 = vmatprep.subr.bf16.mxu0 %v8317_v16 }
 0x124   : > { %v1556_v18 = vsel %vm9015_vm2, %v1551_v24, %v1555_v49  ;;  %v1587_v32 = vrot.slane %v11166_v39, 5  ;;  %v1597_v19 = vrot.slane %v11167_v10, 4  ;;  %v9889_v10 = vld [vmem:[%s8953_s5 + $0x6c] sm:$0xf]  ;;  %v9897_v39 = vld [vmem:[%s8953_s5 + $0x70] sm:$0xf] }
 0x125   : > { %v1584_v54 = vrot.slane %v11165_v43, 4  ;;  %v1565_v58 = vrot.slane %v1564_v48, 4  ;;  %v1574_v6 = vor.u32 %v1573_v42, %v1569_v51  ;;  %v6646_v57 = vcombine.low %v1546_v5, %v1556_v18 }
 0x126   : > { %v1601_v43 = vshll.u32 %v9857_v62, 16  ;;  %v6968_v48 = vcombine.low %v9860_v52, %v9872_v47  ;;  %7806 = vmatpush3.bf16.msra.mxu0 %v8317_v16  ;;  %v1615_v49 = vshll.u32 %v9410_v30, 16  ;;  %v1625_v16 = vshll.u32 %v9879_v29, 16 }
 0x127   : > { %v1570_v35 = vsel %vm9015_vm2, %v1565_v58, %v1569_v51  ;;  %v1575_v23 = vrot.slane %v1574_v6, 4  ;;  %v1588_v42 = vor.u32 %v1587_v32, %v1584_v54  ;;  %7551 = vmatprep.mubr.bf16.mxu1 %v6646_v57  ;;  %v11168_v6 = vshrl.u32 %v9404_v41, 16  ;;  %7807 = vmatprep.subr.bf16.mxu0 %v8321_v61  ;;  %v9909_v58 = vld [vmem:[%s8953_s5 + $0x78] sm:$0xf] }
 0x128   : > { %v1603_v24 = vrot.slane %v1601_v43, 5  ;;  %v1598_v57 = vor.u32 %v1597_v19, %v1593_v40  ;;  %v11169_v43 = vshll.u32 %v9404_v41, 16  ;;  %7776 = vmatmul.mubr.bf16.gmra.mrb[8].mxu0 %v6967_v2  ;;  %v11171_v2 = vrot.slane %v8960_v28, 5 }
 0x129   : > { %v1580_v18 = vsel %vm9015_vm2, %v1575_v23, %v1579_v13  ;;  %v1589_v51 = vrot.slane %v1588_v42, 4  ;;  %v1608_v54 = vrot.slane %v11168_v6, 4  ;;  %v11170_v42 = vshrl.u32 %v9410_v30, 16  ;;  %7779 = vmatprep.mubr.bf16.mxu0 %v6968_v48  ;;  %v8367_v13 = vld [vmem:[%s8953_s5 + $0x34] sm:$0xf] }
 0x12a   : > { %v6647_v32 = vcombine.low %v1570_v35, %v1580_v18  ;;  %v1611_v5 = vrot.slane %v11169_v43, 5  ;;  %v1599_v19 = vrot.slane %v1598_v57, 4  ;;  %v1617_v18 = vrot.slane %v1615_v49, 5  ;;  %v9914_v43 = vld [vmem:[%s8953_s5 + $0x7c] sm:$0xf]  ;;  %7808 = vmatpush3.bf16.msra.mxu0 %v8321_v61  ;;  %v11174_v61 = vld [vmem:[#allocation5_spill] sm:$0xff] }
 0x12b   : > { %v1621_v6 = vrot.slane %v11170_v42, 4  ;;  %v1594_v41 = vsel %vm9015_vm2, %v1589_v51, %v1593_v40  ;;  %v1627_v30 = vrot.slane %v1625_v16, 5  ;;  %v6969_v42 = vcombine.low %v9889_v10, %v9897_v39  ;;  %v8329_v40 = vld [vmem:[%s8936_s25 + $0x1f0] sm:$0xff]   ;;  %v9929_v57 = vld [vmem:[%s8953_s5 + $0x88] sm:$0xf]  ;;  %7809 = vmatprep.subr.bf16.mxu0 %v8325_v17 }
 0x12c   : > { %7552 = vmatmul.mubr.bf16.gmra.mrb[24].mxu1 %v6647_v32  ;;  %v1612_v35 = vor.u32 %v1611_v5, %v1608_v54  ;;  %v2038_v32 = vrot.slane %v11171_v2, 4  ;;  %v1604_v51 = vsel %vm9015_vm2, %v1599_v19, %v1603_v24  ;;  %v2039_v48 = vrot.slane %v9427_v34, 5  ;;  %v9926_v54 = vld [vmem:[%s8953_s5 + $0x84] sm:$0xf]  ;;  %v9936_v24 = vld [vmem:[%s8953_s5 + $0x90] sm:$0xf] }
 0x12d   : > { %v1622_v5 = vor.u32 %v1621_v6, %v1617_v18  ;;  %v6648_v16 = vcombine.low %v1594_v41, %v1604_v51  ;;  %v6970_v2 = vcombine.low %v9909_v58, %v9914_v43  ;;  %11172 = vst [vmem:[#allocation6_spill] sm:$0xff] %v9936_v24  ;;  %v9968_v41 = vld [vmem:[%s8953_s5 + $0xa0] sm:$0xf]  ;;  %v2060_v23 = vrot.slane %v9531_v11, 5 }
 0x12e   : > { %v1613_v49 = vrot.slane %v1612_v35, 4  ;;  %v2040_v19 = vsel %vm9180_vm5, %v2038_v32, %v2039_v48  ;;  %v9944_v35 = vld [vmem:[%s8953_s5 + $0x94] sm:$0xf]  ;;  %7810 = vmatpush3.bf16.msra.mxu0 %v8325_v17  ;;  %v8363_v17 = vld [vmem:[%s8953_s5 + $0x1c] sm:$0xf] }
 0x12f   : > { %v1623_v6 = vrot.slane %v1622_v5, 4  ;;  %11173 = vst [vmem:[#allocation7_spill] sm:$0xff] %v9944_v35  ;;  %7555 = vmatprep.mubr.bf16.mxu1 %v6648_v16  ;;  %v6690_v51 = vcombine.low %v9356_v45, %v2040_v19  ;;  %v8362_v16 = vld [vmem:[%s8953_s5 + $0x18] sm:$0xf]  ;;  %v9958_v19 = vld [vmem:[%s8953_s5 + $0x9c] sm:$0xf]  ;;  %7811 = vmatprep.subr.bf16.mxu0 %v8329_v40 }
 0x130   : > { %v1618_v34 = vsel %vm9015_vm2, %v1613_v49, %v1617_v18  ;;  %v2046_v18 = vrot.slane %v9456_v12, 5  ;;  %v8333_v49 = vld [vmem:[%s8936_s25 + $0x1f8] sm:$0xff]   ;;  %v6660_v45 = vrot.slane %v8362_v16, 9  ;;  %7780 = vmatmul.mubr.bf16.gmra.mrb[12].mxu0 %v6969_v42  ;;  %v10000_v42 = vld [vmem:[%s8953_s5 + $0xb4] sm:$0xf] }
 0x131   : > { %v1628_v32 = vsel %vm9015_vm2, %v1623_v6, %v1627_v30  ;;  %v2050_v30 = vrot.slane %v8363_v17, 5  ;;  %v2053_v6 = vrot.slane %v9503_v46, 5  ;;  %7783 = vmatprep.mubr.bf16.mxu0 %v6970_v2  ;;  %v9991_v17 = vld [vmem:[%s8936_s25 + $0x200] sm:$0xff]  }
 0x132   : > { %v6649_v28 = vcombine.low %v1618_v34, %v1628_v32  ;;  %v9963_v12 = vsel %vm9180_vm5, %v11174_v61, %v2046_v18  ;;  %v6972_v61 = vcombine.low %v9936_v24, %v9944_v35  ;;  %v9977_v18 = vld [vmem:[%s8953_s5 + $0xa8] sm:$0xf]  ;;  %v9983_v34 = vld [vmem:[%s8953_s5 + $0xac] sm:$0xf]  ;;  %7812 = vmatpush3.bf16.msra.mxu0 %v8329_v40  ;;  %v8369_v5 = vld [vmem:[%s8953_s5 + $0x40] sm:$0xf] }
 0x133   : > { %v6691_v16 = vcombine.low %v9447_v22, %v9963_v12  ;;  %v2052_v46 = vrot.slane %v2050_v30, 4  ;;  %v8364_v22 = vld [vmem:[%s8953_s5 + $0x24] sm:$0xf]  ;;  %11175 = vst [vmem:[#allocation8_spill] sm:$0xff] %v9983_v34  ;;  %v2051_v32 = vsel %vm9180_vm5, %v6660_v45, %v2050_v30  ;;  %v8366_v30 = vld [vmem:[%s8953_s5 + $0x30] sm:$0xf]  ;;  %7813 = vmatprep.subr.bf16.mxu0 %v8333_v49 }
 0x134   : > { %7556 = vmatmul.mubr.bf16.gmra.mrb[28].mxu1 %v6649_v28  ;;  %v6661_v12 = vrot.slane %v8364_v22, 9  ;;  %v8365_v28 = vld [vmem:[%s8953_s5 + $0x28] sm:$0xf]  ;;  %v6662_v48 = vrot.slane %v8366_v30, 9  ;;  %v2067_v30 = vrot.slane %v9566_v8, 5  ;;  %v2071_v63 = vrot.slane %v8369_v5, 5 }
 0x135   : > { %7575 = vmatprep.mubr.bf16.mxu1 %v6690_v51  ;;  %v2057_v2 = vrot.slane %v8365_v28, 5  ;;  %v2054_v22 = vsel %vm9180_vm5, %v2052_v46, %v2053_v6  ;;  %v2064_v6 = vrot.slane %v8367_v13, 5  ;;  %v8323_v45 = vld [vmem:[%s8936_s25 + $0xc8] sm:$0xff]   ;;  %v10044_v5 = vld [vmem:[%s8953_s5 + $0xc4] sm:$0xf]  ;;  %v2081_v8 = vrot.slane %v9641_v25, 5 }
 0x136   : > { %v6692_v46 = vcombine.low %v2051_v32, %v2054_v22  ;;  %7814 = vmatpush3.bf16.msra.mxu0 %v8333_v49  ;;  %v8368_v22 = vld [vmem:[%s8953_s5 + $0x3c] sm:$0xf] }
 0x137   : > { %v2059_v11 = vrot.slane %v2057_v2, 4  ;;  %v10007_v51 = vsel %vm9180_vm5, %v6661_v12, %v2057_v2  ;;  %v10022_v13 = vsel %vm9180_vm5, %v6662_v48, %v2064_v6  ;;  %v2066_v32 = vrot.slane %v2064_v6, 4  ;;  %v10026_v2 = vld [vmem:[%s8953_s5 + $0xc0] sm:$0xf]  ;;  %7847 = vmatprep.subr.bf16.mxu0 %v9991_v17  ;;  %v8372_v6 = vld [vmem:[%s8953_s5 + $0x54] sm:$0xf] }
 0x138   : > { %v6663_v40 = vrot.slane %v8368_v22, 9  ;;  %v11176_v48 = vcombine.low %v9926_v54, %v9929_v57  ;;  %v6665_v12 = vrot.slane %v8372_v6, 9 }
 0x139   : > { %v10018_v28 = vsel %vm9180_vm5, %v2059_v11, %v2060_v23  ;;  %v2074_v23 = vrot.slane %v9608_v26, 5  ;;  %v2068_v49 = vsel %vm9180_vm5, %v2066_v32, %v2067_v30 }
 0x13a   : > { %7784 = vmatmul.mubr.bf16.gmra.mrb[16].mxu0 %v11176_v48  ;;  %v6693_v11 = vcombine.low %v10007_v51, %v10018_v28  ;;  %v6694_v22 = vcombine.low %v10022_v13, %v2068_v49  ;;  %v2073_v48 = vrot.slane %v2071_v63, 4  ;;  %v10050_v28 = vld [vmem:[%s8953_s5 + $0xcc] sm:$0xf]  ;;  %v10055_v30 = vsel %vm9180_vm5, %v6663_v40, %v2071_v63  ;;  %v8373_v40 = vld [vmem:[%s8953_s5 + $0x58] sm:$0xf] }
 0x13b   : > { %7787 = vmatprep.mubr.bf16.mxu0 %v6972_v61  ;;  %v8370_v61 = vld [vmem:[%s8953_s5 + $0x48] sm:$0xf]  ;;  %v8371_v13 = vld [vmem:[%s8953_s5 + $0x4c] sm:$0xf]  ;;  %v2088_v63 = vrot.slane %v9665_v37, 5 }
 0x13c   : > { %7576 = vmatmul.mubr.bf16.vlgmr.msra.gmra.mrb[0].mxu1 %v6691_v16  ;;  %v8327_v16 = vld [vmem:[%s8936_s25 + $0xd0] sm:$0xff]   ;;  %v6664_v32 = vrot.slane %v8370_v61, 9  ;;  %v2078_v49 = vrot.slane %v8371_v13, 5  ;;  %v10063_v51 = vsel %vm9180_vm5, %v2073_v48, %v2074_v23  ;;  %v8374_v23 = vld [vmem:[%s8953_s5 + $0x60] sm:$0xf]  ;;  %v2095_v13 = vrot.slane %v9694_v38, 5 }
 0x13d   : > { %7608 = vmatpush3.bf16.msra.mxu1 %v9718_v7  ;;  %7579 = vmatprep.mubr.bf16.mxu1 %v6692_v46  ;;  %v10070_v46 = vld [vmem:[%s8953_s5 + $0xd0] sm:$0xf]  ;;  %v2085_v7 = vrot.slane %v8373_v40, 5  ;;  %v6666_v26 = vrot.slane %v8374_v23, 9  ;;  %v8331_v40 = vld [vmem:[%s8936_s25 + $0xd8] sm:$0xff]   ;;  %v11179_v23 = vshrl.u32 %v9697_v0, 16 }
 0x13e   : > { %7609 = vmatprep.subr.bf16.mxu1 %v8323_v45  ;;  %v2080_v61 = vrot.slane %v2078_v49, 4  ;;  %v10079_v48 = vsel %vm9180_vm5, %v6664_v32, %v2078_v49 }
 0x13f   : > { %v10093_v32 = vsel %vm9180_vm5, %v6665_v12, %v2085_v7  ;;  %v2087_v49 = vrot.slane %v2085_v7, 4  ;;  %v4759_v6 = vrot.slane %v11179_v23, 4  ;;  %v11180_v12 = vshll.u32 %v9697_v0, 16 }
 0x140   : > { %v10085_v25 = vsel %vm9180_vm5, %v2080_v61, %v2081_v8  ;;  %v10099_v8 = vld [vmem:[%s8953_s5 + $0x20] sm:$0x1]  ;;  %v11178_v61 = vcombine.low %v9958_v19, %v9968_v41  ;;  %v4766_v7 = vshll.u32 %v9702_v27, 16  ;;  %v11182_v0 = vshrl.u32 %v9702_v27, 16 }
 0x141   : > { %7610 = vmatpush3.bf16.msra.mxu1 %v8323_v45  ;;  %v8375_v45 = vld [vmem:[%s8953_s5 + $0x64] sm:$0xf]  ;;  %11177 = vst [vmem:[#allocation9_spill] sm:$0xff] %v10099_v8  ;;  %v4762_v24 = vrot.slane %v11180_v12, 5  ;;  %v10117_v38 = vsel %vm9180_vm5, %v2087_v49, %v2088_v63  ;;  %v11184_v63 = vshll.u32 %v9729_v4, 16 }
 0x142   : > { %7611 = vmatprep.subr.bf16.mxu1 %v8327_v16  ;;  %v2092_v35 = vrot.slane %v8375_v45, 5  ;;  %7788 = vmatmul.mubr.bf16.gmra.mrb[20].mxu0 %v11178_v61  ;;  %v11181_v45 = vcombine.low %v9977_v18, %v9983_v34  ;;  %v6696_v61 = vcombine.low %v10079_v48, %v10085_v25  ;;  %v4772_v12 = vrot.slane %v11182_v0, 4  ;;  %v8376_v48 = vld [vmem:[%s8953_s5 + $0x6c] sm:$0xf]  ;;  %v8377_v34 = vld [vmem:[%s8953_s5 + $0x70] sm:$0xf] }
 0x143   : > { %v4768_v37 = vrot.slane %v4766_v7, 5  ;;  %v4776_v25 = vshll.u32 %v10099_v8, 16  ;;  %v6667_v49 = vrot.slane %v8376_v48, 9  ;;  %v2099_v27 = vrot.slane %v8377_v34, 5  ;;  %v10137_v7 = vld [vmem:[%s8953_s5 + $0x2c] sm:$0x1] }
 0x144   : > { %7580 = vmatmul.mubr.bf16.gmra.mrb[4].mxu1 %v6693_v11  ;;  %7791 = vmatprep.mubr.bf16.mxu0 %v11181_v45  ;;  %v2094_v23 = vrot.slane %v2092_v35, 4  ;;  %v10123_v11 = vsel %vm9180_vm5, %v6666_v26, %v2092_v35  ;;  %v4763_v45 = vor.u32 %v4762_v24, %v4759_v6  ;;  %v11183_v34 = vshrl.u32 %v9729_v4, 16 }
 0x145   : > { %7583 = vmatprep.mubr.bf16.mxu1 %v6694_v22  ;;  %7612 = vmatpush3.bf16.msra.mxu1 %v8327_v16  ;;  %v2102_v22 = vrot.slane %v9726_v53, 5  ;;  %v8334_v16 = vld [vmem:[%s8936_s25 + $0xe0] sm:$0xff]   ;;  %v4773_v24 = vor.u32 %v4772_v12, %v4768_v37  ;;  %v4778_v6 = vrot.slane %v4776_v25, 5  ;;  %v10141_v0 = vsel %vm9180_vm5, %v6667_v49, %v2099_v27 }
 0x146   : > { %7613 = vmatprep.subr.bf16.mxu1 %v8331_v40  ;;  %v10134_v35 = vsel %vm9180_vm5, %v2094_v23, %v2095_v13  ;;  %v4764_v26 = vrot.slane %v4763_v45, 4  ;;  %v2101_v48 = vrot.slane %v2099_v27, 4  ;;  %v4783_v53 = vrot.slane %v11183_v34, 4  ;;  %v8336_v34 = vld [vmem:[%s8936_s25 + $0xe8] sm:$0xff]  }
 0x147   : > { %v4786_v8 = vrot.slane %v11184_v63, 5  ;;  %v4774_v23 = vrot.slane %v4773_v24, 4  ;;  %v4790_v12 = vshll.u32 %v9732_v31, 16  ;;  %v11185_v45 = vshrl.u32 %v9732_v31, 16  ;;  %v8379_v24 = vld [vmem:[%s8953_s5 + $0x7c] sm:$0xf] }
 0x148   : > { %v4769_v13 = vsel %vm9015_vm2, %v4764_v26, %v4768_v37  ;;  %v10154_v49 = vsel %vm9180_vm5, %v2101_v48, %v2102_v22  ;;  %v4800_v4 = vshll.u32 %v10137_v7, 16  ;;  %v11186_v37 = vcombine.low %v10000_v42, %v10014_v21 }
 0x149   : > { %7614 = vmatpush3.bf16.msra.mxu1 %v8331_v40  ;;  %v4796_v25 = vrot.slane %v11185_v45, 4  ;;  %v4787_v27 = vor.u32 %v4786_v8, %v4783_v53  ;;  %v8378_v40 = vld [vmem:[%s8953_s5 + $0x78] sm:$0xf]  ;;  %v6698_v31 = vcombine.low %v10123_v11, %v10134_v35  ;;  %v4779_v26 = vsel %vm9015_vm2, %v4774_v23, %v4778_v6 }
 0x14a   : > { %7615 = vmatprep.subr.bf16.mxu1 %v8334_v16  ;;  %v6668_v63 = vrot.slane %v8378_v40, 9  ;;  %7792 = vmatmul.mubr.bf16.gmra.mrb[24].mxu0 %v11186_v37  ;;  %v4792_v22 = vrot.slane %v4790_v12, 5  ;;  %v2106_v48 = vrot.slane %v8379_v24, 5  ;;  %v11187_v8 = vcombine.low %v10055_v30, %v10063_v51  ;;  %v10177_v6 = vld [vmem:[%s8953_s5 + $0x38] sm:$0x1] }
 0x14b   : > { %v11188_v53 = vcombine.low %v10026_v2, %v10044_v5  ;;  %v7002_v45 = vcombine.low %v4769_v13, %v4779_v26  ;;  %v4788_v11 = vrot.slane %v4787_v27, 4  ;;  %v2109_v35 = vrot.slane %v9741_v36, 5 }
 0x14c   : > { %7584 = vmatmul.mubr.bf16.gmra.mrb[8].mxu1 %v11187_v8  ;;  %v4797_v23 = vor.u32 %v4796_v25, %v4792_v22  ;;  %v4802_v12 = vrot.slane %v4800_v4, 5  ;;  %v2108_v51 = vrot.slane %v2106_v48, 4  ;;  %v11189_v30 = vshrl.u32 %v9757_v60, 16 }
 0x14d   : > { %7795 = vmatprep.mubr.bf16.mxu0 %v11188_v53  ;;  %7587 = vmatprep.mubr.bf16.mxu1 %v6696_v61  ;;  %v10183_v13 = vsel %vm9180_vm5, %v6668_v63, %v2106_v48  ;;  %v11190_v27 = vshll.u32 %v9757_v60, 16  ;;  %v4814_v36 = vshll.u32 %v9760_v44, 16  ;;  %v11191_v24 = vshrl.u32 %v9760_v44, 16  ;;  %v8380_v63 = vld [vmem:[%s8953_s5 + $0x84] sm:$0xf] }
 0x14e   : > { %7616 = vmatpush3.bf16.msra.mxu1 %v8334_v16  ;;  %v4807_v37 = vrot.slane %v11189_v30, 4  ;;  %v8338_v16 = vld [vmem:[%s8936_s25 + $0xf0] sm:$0xff]   ;;  %v4798_v25 = vrot.slane %v4797_v23, 4  ;;  %v10193_v4 = vsel %vm9180_vm5, %v2108_v51, %v2109_v35  ;;  %v4824_v8 = vshll.u32 %v10177_v6, 16  ;;  %v8381_v44 = vld [vmem:[%s8953_s5 + $0x88] sm:$0xf] }
 0x14f   : > { %v4810_v26 = vrot.slane %v11190_v27, 5  ;;  %v4820_v61 = vrot.slane %v11191_v24, 4  ;;  %7617 = vmatprep.subr.bf16.mxu1 %v8336_v34  ;;  %v6669_v48 = vrot.slane %v8380_v63, 9  ;;  %v4793_v60 = vsel %vm9015_vm2, %v4788_v11, %v4792_v22  ;;  %v10206_v51 = vld [vmem:[%s8953_s5 + $0x44] sm:$0x1] }
 0x150   : > { %v4816_v30 = vrot.slane %v4814_v36, 5  ;;  %v2113_v27 = vrot.slane %v8381_v44, 5  ;;  %v4803_v24 = vsel %vm9015_vm2, %v4798_v25, %v4802_v12  ;;  %v6700_v23 = vcombine.low %v10183_v13, %v10193_v4  ;;  %v8340_v12 = vld [vmem:[%s8936_s25 + $0xf8] sm:$0xff]  }
 0x151   : > { %v4811_v53 = vor.u32 %v4810_v26, %v4807_v37  ;;  %v2116_v35 = vrot.slane %v9778_v14, 5  ;;  %v11192_v63 = vshrl.u32 %v9781_v59, 16  ;;  %v4826_v37 = vrot.slane %v4824_v8, 5 }
 0x152   : > { %7618 = vmatpush3.bf16.msra.mxu1 %v8336_v34  ;;  %v4821_v11 = vor.u32 %v4820_v61, %v4816_v30  ;;  %v10212_v26 = vsel %vm9180_vm5, %v6669_v48, %v2113_v27  ;;  %v11193_v36 = vcombine.low %v10050_v28, %v10070_v46  ;;  %v2115_v14 = vrot.slane %v2113_v27, 4 }
 0x153   : > { %v4831_v40 = vrot.slane %v11192_v63, 4  ;;  %v4812_v22 = vrot.slane %v4811_v53, 4  ;;  %7619 = vmatprep.subr.bf16.mxu1 %v8338_v16  ;;  %v11194_v25 = vshll.u32 %v9781_v59, 16  ;;  %v4838_v34 = vshll.u32 %v9791_v55, 16 }
 0x154   : > { %7796 = vmatmul.mubr.bf16.gmra.mrb[28].mxu0 %v11193_v36  ;;  %v11195_v61 = vshrl.u32 %v9791_v55, 16  ;;  %v11196_v48 = vcombine.low %v10093_v32, %v10117_v38  ;;  %v7003_v53 = vcombine.low %v4793_v60, %v4803_v24  ;;  %v4822_v27 = vrot.slane %v4821_v11, 4 }
 0x155   : > { %v4834_v44 = vrot.slane %v11194_v25, 5  ;;  %7815 = vmatprep.mubr.bf16.mxu0 %v7002_v45  ;;  %v4817_v63 = vsel %vm9015_vm2, %v4812_v22, %v4816_v30  ;;  %v4848_v59 = vshll.u32 %v10206_v51, 16  ;;  %v10231_v36 = vsel %vm9180_vm5, %v2115_v14, %v2116_v35  ;;  %v8383_v30 = vld [vmem:[%s8953_s5 + $0x90] sm:$0xf] }
 0x156   : > { %v4844_v8 = vrot.slane %v11195_v61, 4  ;;  %7588 = vmatmul.mubr.bf16.gmra.mrb[12].mxu1 %v11196_v48  ;;  %v4840_v25 = vrot.slane %v4838_v34, 5  ;;  %v8382_v61 = vld [vmem:[%s8953_s5 + $0x94] sm:$0xf]  ;;  %v4827_v38 = vsel %vm9015_vm2, %v4822_v27, %v4826_v37  ;;  %v6701_v45 = vcombine.low %v10212_v26, %v10231_v36  ;;  %v8390_v26 = vld [vmem:[%s8953_s5 + $0xb8] sm:$0xf] }
 0x157   : > { %7591 = vmatprep.mubr.bf16.mxu1 %v6698_v31  ;;  %v4835_v55 = vor.u32 %v4834_v44, %v4831_v40  ;;  %v2120_v32 = vrot.slane %v8382_v61, 5  ;;  %7620 = vmatpush3.bf16.msra.mxu1 %v8338_v16  ;;  %v4850_v60 = vrot.slane %v4848_v59, 5  ;;  %v6670_v24 = vrot.slane %v8383_v30, 9  ;;  %v10240_v31 = vld [vmem:[%s8953_s5 + $0x50] sm:$0x1] }
 0x158   : > { %7621 = vmatprep.subr.bf16.mxu1 %v8340_v12  ;;  %v7004_v35 = vcombine.low %v4817_v63, %v4827_v38  ;;  %v4845_v40 = vor.u32 %v4844_v8, %v4840_v25  ;;  %v2123_v11 = vrot.slane %v9798_v56, 5  ;;  %v11197_v37 = vshrl.u32 %v9808_v33, 16  ;;  %v8384_v30 = vld [vmem:[%s8953_s5 + $0x9c] sm:$0xf] }
 0x159   : > { %v4836_v22 = vrot.slane %v4835_v55, 4  ;;  %v2122_v16 = vrot.slane %v2120_v32, 4  ;;  %v11198_v44 = vshll.u32 %v9808_v33, 16  ;;  %v4862_v48 = vshll.u32 %v9817_v1, 16  ;;  %v8337_v55 = vld [vmem:[%s8936_s25 + $0x208] sm:$0xff]  }
 0x15a   : > { %v4855_v14 = vrot.slane %v11197_v37, 4  ;;  %v4846_v59 = vrot.slane %v4845_v40, 4  ;;  %v11199_v63 = vshrl.u32 %v9817_v1, 16  ;;  %v4872_v56 = vshll.u32 %v10240_v31, 16 }
 0x15b   : > { %v4858_v34 = vrot.slane %v11198_v44, 5  ;;  %v4841_v27 = vsel %vm9015_vm2, %v4836_v22, %v4840_v25  ;;  %7622 = vmatpush3.bf16.msra.mxu1 %v8340_v12  ;;  %v10256_v61 = vsel %vm9180_vm5, %v6670_v24, %v2120_v32  ;;  %v4864_v38 = vrot.slane %v4862_v48, 5  ;;  %v10260_v44 = vld [vmem:[%s8936_s25 + $0x100] sm:$0xff]   ;;  %v10274_v48 = vld [vmem:[%s8953_s5 + $0x5c] sm:$0x1] }
 0x15c   : > { %v4868_v8 = vrot.slane %v11199_v63, 4  ;;  %v6671_v37 = vrot.slane %v8384_v30, 9  ;;  %7895 = vmatprep.subr.bf16.mxu1 %v10260_v44  ;;  %7816 = vmatmul.mubr.bf16.vlgmr.msra.gmra.mrb[0].mxu0 %v7003_v53  ;;  %v4851_v1 = vsel %vm9015_vm2, %v4846_v59, %v4850_v60  ;;  %v2124_v12 = vsel %vm9180_vm5, %v2122_v16, %v2123_v11  ;;  %v8386_v32 = vld [vmem:[%s8953_s5 + $0xa0] sm:$0xf] }
 0x15d   : > { %v4859_v33 = vor.u32 %v4858_v34, %v4855_v14  ;;  %v4874_v25 = vrot.slane %v4872_v56, 5  ;;  %v2127_v24 = vrot.slane %v8386_v32, 5  ;;  %v11200_v22 = vcombine.low %v10141_v0, %v10154_v49  ;;  %7848 = vmatpush3.bf16.msra.mxu0 %v9991_v17  ;;  %7819 = vmatprep.mubr.bf16.mxu0 %v7004_v35 }
 0x15e   : > { %v7005_v40 = vcombine.low %v4841_v27, %v4851_v1  ;;  %v4869_v34 = vor.u32 %v4868_v8, %v4864_v38  ;;  %v2130_v53 = vrot.slane %v9829_v9, 5  ;;  %v11201_v17 = vshrl.u32 %v9840_v50, 16  ;;  %v8339_v9 = vld [vmem:[%s8936_s25 + $0x210] sm:$0xff]   ;;  %7849 = vmatprep.subr.bf16.mxu0 %v8337_v55  ;;  %v8387_v8 = vld [vmem:[%s8953_s5 + $0xa8] sm:$0xf] }
 0x15f   : > { %7592 = vmatmul.mubr.bf16.gmra.mrb[16].mxu1 %v11200_v22  ;;  %v4860_v14 = vrot.slane %v4859_v33, 4  ;;  %v10281_v60 = vsel %vm9180_vm5, %v6671_v37, %v2127_v24  ;;  %v2129_v0 = vrot.slane %v2127_v24, 4  ;;  %v11202_v11 = vshll.u32 %v9840_v50, 16 }
 0x160   : > { %7595 = vmatprep.mubr.bf16.mxu1 %v6700_v23  ;;  %v4879_v49 = vrot.slane %v11201_v17, 4  ;;  %v4870_v4 = vrot.slane %v4869_v34, 4  ;;  %v4886_v23 = vshll.u32 %v9847_v15, 16  ;;  %v11203_v35 = vshrl.u32 %v9847_v15, 16  ;;  %v8388_v15 = vld [vmem:[%s8953_s5 + $0xac] sm:$0xf] }
 0x161   : > { %v4882_v16 = vrot.slane %v11202_v11, 5  ;;  %v4865_v13 = vsel %vm9015_vm2, %v4860_v14, %v4864_v38  ;;  %v10295_v59 = vsel %vm9180_vm5, %v2129_v0, %v2130_v53  ;;  %v4896_v50 = vshll.u32 %v10274_v48, 16  ;;  %7850 = vmatpush3.bf16.msra.mxu0 %v8337_v55  ;;  %v10307_v14 = vld [vmem:[%s8953_s5 + $0x68] sm:$0x1] }
 0x162   : > { %v4892_v27 = vrot.slane %v11203_v35, 4  ;;  %v6672_v56 = vrot.slane %v8387_v8, 9  ;;  %v6702_v33 = vcombine.low %v10256_v61, %v2124_v12  ;;  %v4875_v38 = vsel %vm9015_vm2, %v4870_v4, %v4874_v25  ;;  %7851 = vmatprep.subr.bf16.mxu0 %v8339_v9  ;;  %v8341_v25 = vld [vmem:[%s8936_s25 + $0x218] sm:$0xff]  }
 0x163   : > { %v4883_v63 = vor.u32 %v4882_v16, %v4879_v49  ;;  %v4888_v30 = vrot.slane %v4886_v23, 5  ;;  %v2134_v37 = vrot.slane %v8388_v15, 5  ;;  %v7006_v1 = vcombine.low %v4865_v13, %v4875_v38  ;;  %v8389_v23 = vld [vmem:[%s8953_s5 + $0xb4] sm:$0xf] }
 0x164   : > { %v6703_v32 = vcombine.low %v10281_v60, %v10295_v59  ;;  %v2137_v22 = vrot.slane %v9857_v62, 5  ;;  %v4898_v34 = vrot.slane %v4896_v50, 5  ;;  %v11204_v61 = vshrl.u32 %v9860_v52, 16  ;;  %7820 = vmatmul.mubr.bf16.gmra.mrb[4].mxu0 %v7005_v40 }
 0x165   : > { %v4884_v24 = vrot.slane %v4883_v63, 4  ;;  %v4893_v55 = vor.u32 %v4892_v27, %v4888_v30  ;;  %v2136_v53 = vrot.slane %v2134_v37, 4  ;;  %v2135_v0 = vsel %vm9180_vm5, %v6672_v56, %v2134_v37  ;;  %7823 = vmatprep.mubr.bf16.mxu0 %v7006_v1  ;;  %7852 = vmatpush3.bf16.msra.mxu0 %v8339_v9  ;;  %v10333_v63 = vld [vmem:[%s8953_s5 + $0x74] sm:$0x1]  ;;  %v8344_v56 = vld [vmem:[%s8936_s25 + $0x220] sm:$0xff]  }
 0x166   : > { %v4903_v12 = vrot.slane %v11204_v61, 4  ;;  %v11205_v60 = vshll.u32 %v9860_v52, 16  ;;  %v4910_v62 = vshll.u32 %v9872_v47, 16  ;;  %v11206_v49 = vshrl.u32 %v9872_v47, 16  ;;  %7853 = vmatprep.subr.bf16.mxu0 %v8341_v25 }
 0x167   : > { %7596 = vmatmul.mubr.bf16.gmra.mrb[20].mxu1 %v6701_v45  ;;  %v4889_v40 = vsel %vm9015_vm2, %v4884_v24, %v4888_v30  ;;  %v4894_v16 = vrot.slane %v4893_v55, 4  ;;  %v2138_v52 = vsel %vm9180_vm5, %v2136_v53, %v2137_v22  ;;  %v4920_v13 = vshll.u32 %v10307_v14, 16 }
 0x168   : > { %v4906_v17 = vrot.slane %v11205_v60, 5  ;;  %v4916_v11 = vrot.slane %v11206_v49, 4  ;;  %7599 = vmatprep.mubr.bf16.mxu1 %v6702_v33  ;;  %v4912_v4 = vrot.slane %v4910_v62, 5  ;;  %v6673_v35 = vrot.slane %v8389_v23, 9  ;;  %v10351_v60 = vld [vmem:[%s8953_s5 + $0x80] sm:$0x1] }
 0x169   : > { %v2141_v36 = vrot.slane %v8390_v26, 5  ;;  %v4899_v45 = vsel %vm9015_vm2, %v4894_v16, %v4898_v34  ;;  %v6704_v27 = vcombine.low %v2135_v0, %v2138_v52  ;;  %v2144_v59 = vrot.slane %v9879_v29, 5  ;;  %7854 = vmatpush3.bf16.msra.mxu0 %v8341_v25  ;;  %v8347_v62 = vld [vmem:[%s8936_s25 + $0x228] sm:$0xff]  }
 0x16a   : > { %v4907_v47 = vor.u32 %v4906_v17, %v4903_v12  ;;  %v11207_v50 = vshrl.u32 %v9889_v10, 16  ;;  %v7007_v9 = vcombine.low %v4889_v40, %v4899_v45  ;;  %v4917_v38 = vor.u32 %v4916_v11, %v4912_v4  ;;  %7855 = vmatprep.subr.bf16.mxu0 %v8344_v56 }
 0x16b   : > { %v4922_v30 = vrot.slane %v4920_v13, 5  ;;  %v2143_v15 = vrot.slane %v2141_v36, 4  ;;  %v11208_v37 = vshll.u32 %v9889_v10, 16  ;;  %v4934_v24 = vshll.u32 %v9897_v39, 16 }
 0x16c   : > { %v4927_v8 = vrot.slane %v11207_v50, 4  ;;  %v4908_v33 = vrot.slane %v4907_v47, 4  ;;  %v11209_v29 = vshrl.u32 %v9897_v39, 16  ;;  %v4918_v34 = vrot.slane %v4917_v38, 4  ;;  %7824 = vmatmul.mubr.bf16.gmra.mrb[8].mxu0 %v7007_v9 }
 0x16d   : > { %v4930_v1 = vrot.slane %v11208_v37, 5  ;;  %v2142_v53 = vsel %vm9180_vm5, %v6673_v35, %v2141_v36  ;;  %v4944_v61 = vshll.u32 %v10333_v63, 16  ;;  %v2145_v12 = vsel %vm9180_vm5, %v2143_v15, %v2144_v59  ;;  %v10366_v59 = vld [vmem:[%s8953_s5 + $0x8c] sm:$0x1]  ;;  %7856 = vmatpush3.bf16.msra.mxu0 %v8344_v56 }
 0x16e   : > { %v4940_v22 = vrot.slane %v11209_v29, 4  ;;  %v4913_v55 = vsel %vm9015_vm2, %v4908_v33, %v4912_v4  ;;  %v4936_v0 = vrot.slane %v4934_v24, 5  ;;  %v11210_v39 = vshrl.u32 %v9909_v58, 16  ;;  %7857 = vmatprep.subr.bf16.mxu0 %v8347_v62 }
 0x16f   : > { %v4931_v10 = vor.u32 %v4930_v1, %v4927_v8  ;;  %v5130_v49 = vshrl.u32 %v10070_v46, 16  ;;  %v4923_v11 = vsel %vm9015_vm2, %v4918_v34, %v4922_v30  ;;  %v4946_v25 = vrot.slane %v4944_v61, 5  ;;  %7600 = vmatmul.mubr.bf16.gmra.mrb[24].mxu1 %v6703_v32  ;;  %v8392_v34 = vld [vmem:[%s8953_s5 + $0x10] sm:$0xf] }
 0x170   : > { %v4951_v17 = vrot.slane %v11210_v39, 4  ;;  %v11211_v40 = vshll.u32 %v9909_v58, 16  ;;  %v7008_v52 = vcombine.low %v4913_v55, %v4923_v11  ;;  %v4941_v47 = vor.u32 %v4940_v22, %v4936_v0  ;;  %7603 = vmatprep.mubr.bf16.mxu1 %v6704_v27  ;;  %v8391_v55 = vld [vmem:[%s8953_s5 + $0xc] sm:$0xf] }
 0x171   : > { %v4932_v13 = vrot.slane %v4931_v10, 4  ;;  %v4958_v4 = vshll.u32 %v9914_v43, 16  ;;  %v6705_v23 = vcombine.low %v2142_v53, %v2145_v12  ;;  %v11212_v26 = vshrl.u32 %v9914_v43, 16  ;;  %v8350_v43 = vld [vmem:[%s8936_s25 + $0x230] sm:$0xff]   ;;  %7858 = vmatpush3.bf16.msra.mxu0 %v8347_v62  ;;  %v11216_v39 = vld [vmem:[#allocation6_spill] sm:$0xff] }
 0x172   : > { %v4954_v16 = vrot.slane %v11211_v40, 5  ;;  %v4968_v45 = vshll.u32 %v10351_v60, 16  ;;  %7827 = vmatprep.mubr.bf16.mxu0 %v7008_v52  ;;  %v4942_v32 = vrot.slane %v4941_v47, 4  ;;  %v11213_v27 = vshrl.u32 %v9926_v54, 16  ;;  %7859 = vmatprep.subr.bf16.mxu0 %v8350_v43  ;;  %v11219_v47 = vld [vmem:[#allocation7_spill] sm:$0xff] }
 0x173   : > { %v4964_v36 = vrot.slane %v11212_v26, 4  ;;  %v4937_v58 = vsel %vm9015_vm2, %v4932_v13, %v4936_v0  ;;  %v4960_v50 = vrot.slane %v4958_v4, 5  ;;  %v11214_v38 = vshll.u32 %v9926_v54, 16  ;;  %v10384_v54 = vld [vmem:[%s8953_s5 + $0x98] sm:$0x1] }
 0x174   : > { %v4955_v35 = vor.u32 %v4954_v16, %v4951_v17  ;;  %v4975_v8 = vrot.slane %v11213_v27, 4  ;;  %v4970_v33 = vrot.slane %v4968_v45, 5  ;;  %v4982_v56 = vshll.u32 %v9929_v57, 16  ;;  %v8394_v26 = vld [vmem:[%s8953_s5 + $0x1c] sm:$0xf] }
 0x175   : > { %v4978_v30 = vrot.slane %v11214_v38, 5  ;;  %v4947_v15 = vsel %vm9015_vm2, %v4942_v32, %v4946_v25  ;;  %v4965_v37 = vor.u32 %v4964_v36, %v4960_v50  ;;  %v11215_v1 = vshrl.u32 %v9929_v57, 16  ;;  %v8353_v25 = vld [vmem:[%s8936_s25 + $0x238] sm:$0xff]   ;;  %v10404_v38 = vld [vmem:[%s8953_s5 + $0xa4] sm:$0x1]  ;;  %7860 = vmatpush3.bf16.msra.mxu0 %v8350_v43 }
 0x176   : > { %v4956_v9 = vrot.slane %v4955_v35, 4  ;;  %v4992_v29 = vshll.u32 %v10366_v59, 16  ;;  %v7009_v22 = vcombine.low %v4937_v58, %v4947_v15  ;;  %v6778_v53 = vcombine.low %v8391_v55, %v8392_v34  ;;  %v8393_v35 = vld [vmem:[%s8953_s5 + $0x18] sm:$0xf]  ;;  %7861 = vmatprep.subr.bf16.mxu0 %v8353_v25 }
 0x177   : > { %v4988_v24 = vrot.slane %v11215_v1, 4  ;;  %v4979_v61 = vor.u32 %v4978_v30, %v4975_v8  ;;  %v4984_v12 = vrot.slane %v4982_v56, 5  ;;  %v4966_v0 = vrot.slane %v4965_v37, 4  ;;  %7604 = vmatmul.mubr.bf16.gmra.mrb[28].mxu1 %v6705_v23 }
 0x178   : > { %v4961_v10 = vsel %vm9015_vm2, %v4956_v9, %v4960_v50  ;;  %v4994_v57 = vrot.slane %v4992_v29, 5  ;;  %v11217_v17 = vshrl.u32 %v11216_v39, 16  ;;  %7828 = vmatmul.mubr.bf16.gmra.mrb[12].mxu0 %v7009_v22  ;;  %v11218_v52 = vshll.u32 %v11216_v39, 16  ;;  %7623 = vmatprep.mubr.bf16.mxu1 %v6778_v53 }
 0x179   : > { %v4980_v40 = vrot.slane %v4979_v61, 4  ;;  %v4989_v16 = vor.u32 %v4988_v24, %v4984_v12  ;;  %v5006_v4 = vshll.u32 %v11219_v47, 16  ;;  %v4971_v62 = vsel %vm9015_vm2, %v4966_v0, %v4970_v33  ;;  %7862 = vmatpush3.bf16.msra.mxu0 %v8353_v25 }
 0x17a   : > { %v4999_v11 = vrot.slane %v11217_v17, 4  ;;  %v5002_v13 = vrot.slane %v11218_v52, 5  ;;  %v6779_v36 = vcombine.low %v8393_v35, %v8394_v26  ;;  %v11220_v45 = vshrl.u32 %v11219_v47, 16 }
 0x17b   : > { %v5016_v32 = vshll.u32 %v10384_v54, 16  ;;  %v7010_v50 = vcombine.low %v4961_v10, %v4971_v62  ;;  %v4985_v27 = vsel %vm9015_vm2, %v4980_v40, %v4984_v12  ;;  %v4990_v8 = vrot.slane %v4989_v16, 4  ;;  %v10417_v12 = vld [vmem:[%s8953_s5 + $0xb0] sm:$0x1]  ;;  %v8396_v10 = vld [vmem:[%s8953_s5 + $0x28] sm:$0xf] }
 0x17c   : > { %v5012_v58 = vrot.slane %v11220_v45, 4  ;;  %v5003_v9 = vor.u32 %v5002_v13, %v4999_v11  ;;  %v5008_v23 = vrot.slane %v5006_v4, 5  ;;  %v11221_v30 = vshrl.u32 %v9958_v19, 16  ;;  %v11226_v4 = vld [vmem:[#allocation8_spill] sm:$0xff] }
 0x17d   : > { %v5018_v33 = vrot.slane %v5016_v32, 5  ;;  %v11222_v15 = vshll.u32 %v9958_v19, 16  ;;  %7831 = vmatprep.mubr.bf16.mxu0 %v7010_v50  ;;  %v4995_v1 = vsel %vm9015_vm2, %v4990_v8, %v4994_v57  ;;  %v5030_v29 = vshll.u32 %v9968_v41, 16  ;;  %v8395_v19 = vld [vmem:[%s8953_s5 + $0x24] sm:$0xf] }
 0x17e   : > { %v5023_v56 = vrot.slane %v11221_v30, 4  ;;  %v5004_v24 = vrot.slane %v5003_v9, 4  ;;  %v11223_v43 = vshrl.u32 %v9968_v41, 16  ;;  %v7011_v55 = vcombine.low %v4985_v27, %v4995_v1  ;;  %v8398_v32 = vld [vmem:[%s8953_s5 + $0x34] sm:$0xf] }
 0x17f   : > { %v5026_v37 = vrot.slane %v11222_v15, 5  ;;  %v5013_v34 = vor.u32 %v5012_v58, %v5008_v23  ;;  %v5040_v61 = vshll.u32 %v10404_v38, 16  ;;  %v6780_v0 = vcombine.low %v8395_v19, %v8396_v10  ;;  %7624 = vmatmul.mubr.bf16.vlgmr.msra.gmra.mrb[0].mxu1 %v6779_v36  ;;  %v8397_v58 = vld [vmem:[%s8953_s5 + $0x30] sm:$0xf]  ;;  %v10438_v8 = vld [vmem:[%s8953_s5 + $0xbc] sm:$0x1] }
 0x180   : > { %v5036_v22 = vrot.slane %v11223_v43, 4  ;;  %v5009_v57 = vsel %vm9015_vm2, %v5004_v24, %v5008_v23  ;;  %v5032_v39 = vrot.slane %v5030_v29, 5  ;;  %v11224_v17 = vshrl.u32 %v9977_v18, 16  ;;  %7832 = vmatmul.mubr.bf16.gmra.mrb[16].mxu0 %v7011_v55  ;;  %7903 = vmatpush3.bf16.msra.mxu1 %v10260_v44  ;;  %v8401_v19 = vld [vmem:[%s8953_s5 + $0x40] sm:$0xf] }
 0x181   : > { %v5027_v53 = vor.u32 %v5026_v37, %v5023_v56  ;;  %v5014_v11 = vrot.slane %v5013_v34, 4  ;;  %v5042_v16 = vrot.slane %v5040_v61, 5  ;;  %v11225_v52 = vshll.u32 %v9977_v18, 16  ;;  %7627 = vmatprep.mubr.bf16.mxu1 %v6780_v0  ;;  %v8399_v56 = vld [vmem:[%s8936_s25 + $0x108] sm:$0xff]   ;;  %v8400_v61 = vld [vmem:[%s8953_s5 + $0x3c] sm:$0xf] }
 0x182   : > { %v5047_v41 = vrot.slane %v11224_v17, 4  ;;  %v5037_v47 = vor.u32 %v5036_v22, %v5032_v39  ;;  %v5054_v62 = vshll.u32 %v11226_v4, 16  ;;  %v11227_v35 = vshrl.u32 %v11226_v4, 16  ;;  %7896 = vmatprep.subr.bf16.mxu1 %v8399_v56 }
 0x183   : > { %v5028_v40 = vrot.slane %v5027_v53, 4  ;;  %v5050_v13 = vrot.slane %v11225_v52, 5  ;;  %v5064_v45 = vshll.u32 %v10417_v12, 16  ;;  %v5019_v25 = vsel %vm9015_vm2, %v5014_v11, %v5018_v33 }
 0x184   : > { %v5060_v26 = vrot.slane %v11227_v35, 4  ;;  %v6781_v50 = vcombine.low %v8397_v58, %v8398_v32  ;;  %v7012_v9 = vcombine.low %v5009_v57, %v5019_v25  ;;  %v5038_v23 = vrot.slane %v5037_v47, 4  ;;  %v10455_v57 = vld [vmem:[%s8953_s5 + $0xc8] sm:$0x1]  ;;  %7904 = vmatpush3.bf16.msra.mxu1 %v8399_v56 }
 0x185   : > { %v5033_v18 = vsel %vm9015_vm2, %v5028_v40, %v5032_v39  ;;  %v5051_v27 = vor.u32 %v5050_v13, %v5047_v41  ;;  %v5056_v36 = vrot.slane %v5054_v62, 5  ;;  %v5066_v30 = vrot.slane %v5064_v45, 5  ;;  %v8402_v40 = vld [vmem:[%s8936_s25 + $0x110] sm:$0xff]  }
 0x186   : > { %v11228_v15 = vshrl.u32 %v10000_v42, 16  ;;  %v11229_v1 = vshll.u32 %v10000_v42, 16  ;;  %v5078_v29 = vshll.u32 %v10014_v21, 16  ;;  %7835 = vmatprep.mubr.bf16.mxu0 %v7012_v9  ;;  %v5043_v44 = vsel %vm9015_vm2, %v5038_v23, %v5042_v16  ;;  %7897 = vmatprep.subr.bf16.mxu1 %v8402_v40  ;;  %v11233_v62 = vld [vmem:[#allocation15_spill] sm:$0xff] }
 0x187   : > { %v5052_v33 = vrot.slane %v5051_v27, 4  ;;  %v5061_v43 = vor.u32 %v5060_v26, %v5056_v36  ;;  %v11230_v22 = vshrl.u32 %v10014_v21, 16  ;;  %v5088_v34 = vshll.u32 %v10438_v8, 16  ;;  %7628 = vmatmul.mubr.bf16.gmra.mrb[4].mxu1 %v6781_v50  ;;  %v10477_v23 = vld [vmem:[%s8953_s5 + $0xd4] sm:$0x1] }
 0x188   : > { %v5071_v37 = vrot.slane %v11228_v15, 4  ;;  %v5074_v24 = vrot.slane %v11229_v1, 5  ;;  %v7013_v53 = vcombine.low %v5033_v18, %v5043_v44  ;;  %v6782_v10 = vcombine.low %v8400_v61, %v8401_v19  ;;  %7905 = vmatpush3.bf16.msra.mxu1 %v8402_v40  ;;  %v8403_v1 = vld [vmem:[%s8936_s25 + $0x118] sm:$0xff]   ;;  %v8406_v61 = vld [vmem:[%s8953_s5 + $0x54] sm:$0xf] }
 0x189   : > { %v5084_v55 = vrot.slane %v11230_v22, 4  ;;  %v5080_v42 = vrot.slane %v5078_v29, 5  ;;  %v5057_v39 = vsel %vm9015_vm2, %v5052_v33, %v5056_v36  ;;  %v5062_v17 = vrot.slane %v5061_v43, 4  ;;  %7898 = vmatprep.subr.bf16.mxu1 %v8403_v1  ;;  %v8407_v19 = vld [vmem:[%s8953_s5 + $0x58] sm:$0xf] }
 0x18a   : > { %v5075_v0 = vor.u32 %v5074_v24, %v5071_v37  ;;  %v5090_v41 = vrot.slane %v5088_v34, 5  ;;  %v11231_v11 = vshrl.u32 %v10026_v2, 16  ;;  %v11232_v13 = vshll.u32 %v10026_v2, 16  ;;  %7836 = vmatmul.mubr.bf16.gmra.mrb[20].mxu0 %v7013_v53  ;;  %7631 = vmatprep.mubr.bf16.mxu1 %v6782_v10  ;;  %v8405_v34 = vld [vmem:[%s8953_s5 + $0x4c] sm:$0xf] }
 0x18b   : > { %v5085_v52 = vor.u32 %v5084_v55, %v5080_v42  ;;  %v5102_v4 = vshll.u32 %v10044_v5, 16  ;;  %v11234_v35 = vshrl.u32 %v11233_v62, 16  ;;  %v5067_v45 = vsel %vm9015_vm2, %v5062_v17, %v5066_v30  ;;  %v8404_v55 = vld [vmem:[%s8953_s5 + $0x48] sm:$0xf] }
 0x18c   : > { %v5095_v21 = vrot.slane %v11231_v11, 4  ;;  %v5076_v16 = vrot.slane %v5075_v0, 4  ;;  %v5098_v47 = vrot.slane %v11232_v13, 5  ;;  %v11235_v25 = vshrl.u32 %v10044_v5, 16  ;;  %7906 = vmatpush3.bf16.msra.mxu1 %v8403_v1  ;;  %v11239_v13 = vld [vmem:[#allocation9_spill] sm:$0xff] }
 0x18d   : > { %v10467_v26 = vrot.slane %v11234_v35, 4  ;;  %v5112_v32 = vshll.u32 %v10455_v57, 16  ;;  %v7014_v18 = vcombine.low %v5057_v39, %v5067_v45  ;;  %v5086_v27 = vrot.slane %v5085_v52, 4  ;;  %v8408_v39 = vld [vmem:[%s8953_s5 + $0x18] sm:$0xf] }
 0x18e   : > { %v5108_v58 = vrot.slane %v11235_v25, 4  ;;  %v5081_v2 = vsel %vm9015_vm2, %v5076_v16, %v5080_v42  ;;  %v5099_v9 = vor.u32 %v5098_v47, %v5095_v21  ;;  %v5104_v36 = vrot.slane %v5102_v4, 5  ;;  %v8410_v4 = vld [vmem:[%s8936_s25 + $0x120] sm:$0xff]   ;;  %v11240_v35 = vld [vmem:[#allocation16_spill] sm:$0xff] }
 0x18f   : > { %v5114_v30 = vrot.slane %v5112_v32, 5  ;;  %v11236_v5 = vshrl.u32 %v10050_v28, 16  ;;  %v11237_v33 = vshll.u32 %v10050_v28, 16  ;;  %7839 = vmatprep.mubr.bf16.mxu0 %v7014_v18  ;;  %v5091_v15 = vsel %vm9015_vm2, %v5086_v27, %v5090_v41  ;;  %v8409_v41 = vld [vmem:[%s8953_s5 + $0x1c] sm:$0xf]  ;;  %7899 = vmatprep.subr.bf16.mxu1 %v8410_v4 }
 0x190   : > { %v5100_v37 = vrot.slane %v5099_v9, 4  ;;  %v5126_v24 = vshll.u32 %v10070_v46, 16  ;;  %v5132_v29 = vrot.slane %v5130_v49, 4  ;;  %v7015_v44 = vcombine.low %v5081_v2, %v5091_v15  ;;  %7907 = vmatpush3.bf16.msra.mxu1 %v8410_v4  ;;  %v10562_v4 = vld [vmem:[%s8953_s5 + $0x88] sm:$0xf] }
 0x191   : > { %v5119_v56 = vrot.slane %v11236_v5, 4  ;;  %v5122_v50 = vrot.slane %v11237_v33, 5  ;;  %v5109_v43 = vor.u32 %v5108_v58, %v5104_v36  ;;  %v5136_v22 = vshll.u32 %v10477_v23, 16 }
 0x192   : > { %v6783_v53 = vcombine.low %v8404_v55, %v8405_v34  ;;  %v6784_v10 = vcombine.low %v8406_v61, %v8407_v19  ;;  %v5105_v0 = vsel %vm9015_vm2, %v5100_v37, %v5104_v36  ;;  %v5128_v42 = vrot.slane %v5126_v24, 5  ;;  %7840 = vmatmul.mubr.bf16.gmra.mrb[24].mxu0 %v7015_v44  ;;  %v8412_v36 = vld [vmem:[%s8953_s5 + $0x28] sm:$0xf]  ;;  %v11242_v37 = vld [vmem:[#allocation17_spill] sm:$0xff] }
 0x193   : > { %v5123_v28 = vor.u32 %v5122_v50, %v5119_v56  ;;  %v5110_v46 = vrot.slane %v5109_v43, 4  ;;  %v7026_v17 = vrot.slane %v8408_v39, 9  ;;  %v5544_v11 = vrot.slane %v8409_v41, 5  ;;  %v8413_v50 = vld [vmem:[%s8953_s5 + $0x34] sm:$0xf] }
 0x194   : > { %v11238_v21 = vshll.u32 %v11233_v62, 16  ;;  %v5133_v16 = vor.u32 %v5132_v29, %v5128_v42  ;;  %v5138_v52 = vrot.slane %v5136_v22, 5  ;;  %v5547_v47 = vrot.slane %v11239_v13, 5  ;;  %v8411_v62 = vld [vmem:[%s8953_s5 + $0x24] sm:$0xf]  ;;  %7632 = vmatmul.mubr.bf16.gmra.mrb[8].mxu1 %v6783_v53 }
 0x195   : > { %v5124_v49 = vrot.slane %v5123_v28, 4  ;;  %v11241_v45 = vshrl.u32 %v11240_v35, 16  ;;  %v5115_v58 = vsel %vm9015_vm2, %v5110_v46, %v5114_v30  ;;  %v5546_v32 = vrot.slane %v5544_v11, 4  ;;  %7635 = vmatprep.mubr.bf16.mxu1 %v6784_v10  ;;  %v8414_v43 = vld [vmem:[%s8953_s5 + $0x30] sm:$0xf] }
 0x196   : > { %v10500_v40 = vrot.slane %v11238_v21, 5  ;;  %v7027_v18 = vrot.slane %v8411_v62, 9  ;;  %v7016_v2 = vcombine.low %v5105_v0, %v5115_v58  ;;  %v5134_v9 = vrot.slane %v5133_v16, 4  ;;  %v8416_v22 = vld [vmem:[%s8953_s5 + $0x60] sm:$0xf] }
 0x197   : > { %v10506_v25 = vrot.slane %v11241_v45, 4  ;;  %v5129_v27 = vsel %vm9015_vm2, %v5124_v49, %v5128_v42  ;;  %v5551_v5 = vrot.slane %v8412_v36, 5  ;;  %v5545_v56 = vsel %vm9180_vm5, %v7026_v17, %v5544_v11  ;;  %v8417_v55 = vld [vmem:[%s8953_s5 + $0x64] sm:$0xf]  ;;  %v10532_v10 = vld [vmem:[%s8953_s5 + $0x6c] sm:$0xf] }
 0x198   : > { %v5548_v30 = vsel %vm9180_vm5, %v5546_v32, %v5547_v47  ;;  %v5554_v33 = vrot.slane %v10137_v7, 5  ;;  %v5558_v15 = vrot.slane %v8413_v50, 5  ;;  %v11243_v1 = vshll.u32 %v11242_v37, 16  ;;  %7843 = vmatprep.mubr.bf16.mxu0 %v7016_v2  ;;  %v8415_v7 = vld [vmem:[%s8936_s25 + $0x128] sm:$0xff]   ;;  %v10535_v0 = vld [vmem:[%s8953_s5 + $0x70] sm:$0xf] }
 0x199   : > { %v5139_v29 = vsel %vm9015_vm2, %v5134_v9, %v5138_v52  ;;  %v5553_v44 = vrot.slane %v5551_v5, 4  ;;  %v7028_v28 = vrot.slane %v8414_v43, 9  ;;  %7900 = vmatprep.subr.bf16.mxu1 %v8415_v7  ;;  %v6785_v34 = vcombine.low %v8416_v22, %v8417_v55  ;;  %v10540_v49 = vld [vmem:[%s8953_s5 + $0x78] sm:$0xf]  ;;  %v10543_v39 = vld [vmem:[%s8953_s5 + $0x7c] sm:$0xf] }
 0x19a   : > { %v10522_v24 = vrot.slane %v11243_v1, 5  ;;  %v7017_v53 = vcombine.low %v5129_v27, %v5139_v29  ;;  %v5560_v61 = vrot.slane %v5558_v15, 4  ;;  %v5561_v19 = vrot.slane %v10177_v6, 5  ;;  %v8422_v6 = vld [vmem:[%s8953_s5 + $0x40] sm:$0xf]  ;;  %7908 = vmatpush3.bf16.msra.mxu1 %v8415_v7  ;;  %v8427_v2 = vld [vmem:[%s8936_s25 + $0x130] sm:$0xff]  }
 0x19b   : > { %v6786_v42 = vcombine.low %v10532_v10, %v10535_v0  ;;  %v7058_v46 = vcombine.low %v5545_v56, %v5548_v30  ;;  %v6787_v17 = vcombine.low %v10540_v49, %v10543_v39  ;;  %v5565_v41 = vrot.slane %v8422_v6, 5  ;;  %v8423_v16 = vld [vmem:[%s8953_s5 + $0x3c] sm:$0xf]  ;;  %v10559_v47 = vld [vmem:[%s8953_s5 + $0x84] sm:$0xf]  ;;  %7901 = vmatprep.subr.bf16.mxu1 %v8427_v2 }
 0x19c   : > { %v10550_v11 = vsel %vm9180_vm5, %v7027_v18, %v5551_v5  ;;  %v10554_v21 = vsel %vm9180_vm5, %v5553_v44, %v5554_v33  ;;  %v7029_v52 = vrot.slane %v8423_v16, 9  ;;  %v5568_v13 = vrot.slane %v10206_v51, 5  ;;  %v8426_v62 = vld [vmem:[%s8953_s5 + $0x48] sm:$0xf]  ;;  %7844 = vmatmul.mubr.bf16.gmra.mrb[28].mxu0 %v7017_v53  ;;  %v10575_v27 = vld [vmem:[%s8953_s5 + $0x90] sm:$0xf]  ;;  %7636 = vmatmul.mubr.bf16.gmra.mrb[12].mxu1 %v6785_v34 }
 0x19d   : > { %v6788_v45 = vcombine.low %v10559_v47, %v10562_v4  ;;  %v10568_v58 = vsel %vm9180_vm5, %v7028_v28, %v5558_v15  ;;  %v5567_v32 = vrot.slane %v5565_v41, 4  ;;  %v7030_v18 = vrot.slane %v8426_v62, 9  ;;  %v10578_v9 = vld [vmem:[%s8953_s5 + $0x94] sm:$0xf]  ;;  %v8430_v5 = vld [vmem:[%s8953_s5 + $0x4c] sm:$0xf]  ;;  %7863 = vmatprep.mubr.bf16.mxu0 %v7058_v46  ;;  %7639 = vmatprep.mubr.bf16.mxu1 %v6786_v42 }
 0x19e   : > { %v5562_v51 = vsel %vm9180_vm5, %v5560_v61, %v5561_v19  ;;  %v6789_v36 = vcombine.low %v10575_v27, %v10578_v9  ;;  %v5572_v56 = vrot.slane %v8430_v5, 5  ;;  %v5575_v30 = vrot.slane %v10240_v31, 5  ;;  %v8431_v50 = vld [vmem:[%s8953_s5 + $0x54] sm:$0xf]  ;;  %v8432_v37 = vld [vmem:[%s8953_s5 + $0x58] sm:$0xf]  ;;  %7909 = vmatpush3.bf16.msra.mxu1 %v8427_v2 }
 0x19f   : > { %v7059_v33 = vcombine.low %v10550_v11, %v10554_v21  ;;  %v7031_v15 = vrot.slane %v8431_v50, 9  ;;  %v5579_v1 = vrot.slane %v8432_v37, 5  ;;  %v5582_v29 = vrot.slane %v10274_v48, 5  ;;  %v10598_v43 = vld [vmem:[%s8953_s5 + $0x9c] sm:$0xf] }
 0x1a0   : > { %v10591_v44 = vsel %vm9180_vm5, %v7029_v52, %v5565_v41  ;;  %v10595_v31 = vsel %vm9180_vm5, %v5567_v32, %v5568_v13  ;;  %v10601_v28 = vld [vmem:[%s8953_s5 + $0xa0] sm:$0xf]  ;;  %v5574_v48 = vrot.slane %v5572_v56, 4  ;;  %v7060_v22 = vcombine.low %v10568_v58, %v5562_v51  ;;  %v8436_v19 = vld [vmem:[%s8936_s25 + $0x138] sm:$0xff]   ;;  %v10617_v46 = vld [vmem:[%s8953_s5 + $0xa8] sm:$0xf] }
 0x1a1   : > { %v6790_v7 = vcombine.low %v10598_v43, %v10601_v28  ;;  %v10608_v55 = vsel %vm9180_vm5, %v7030_v18, %v5572_v56  ;;  %v5581_v34 = vrot.slane %v5579_v1, 4  ;;  %v8435_v53 = vld [vmem:[%s8953_s5 + $0x60] sm:$0xf]  ;;  %7902 = vmatprep.subr.bf16.mxu1 %v8436_v19  ;;  %v10620_v6 = vld [vmem:[%s8953_s5 + $0xac] sm:$0xf]  ;;  %v7061_v13 = vcombine.low %v10591_v44, %v10595_v31 }
 0x1a2   : > { %v7032_v61 = vrot.slane %v8435_v53, 9  ;;  %v10614_v42 = vsel %vm9180_vm5, %v5574_v48, %v5575_v30  ;;  %v6791_v41 = vcombine.low %v10617_v46, %v10620_v6  ;;  %v8439_v11 = vld [vmem:[%s8953_s5 + $0x64] sm:$0xf]  ;;  %v8440_v16 = vld [vmem:[%s8953_s5 + $0x70] sm:$0xf]  ;;  %v10630_v58 = vsel %vm9180_vm5, %v7031_v15, %v5579_v1  ;;  %7910 = vmatpush3.bf16.msra.mxu1 %v8436_v19 }
 0x1a3   : > { %v5586_v21 = vrot.slane %v8439_v11, 5  ;;  %v5593_v52 = vrot.slane %v8440_v16, 5  ;;  %v10634_v32 = vsel %vm9180_vm5, %v5581_v34, %v5582_v29  ;;  %v10637_v62 = vld [vmem:[%s8953_s5 + $0xb4] sm:$0xf]  ;;  %v10640_v18 = vld [vmem:[%s8953_s5 + $0xb8] sm:$0xf]  ;;  %v7062_v51 = vcombine.low %v10608_v55, %v10614_v42 }
 0x1a4   : > { %v6792_v2 = vcombine.low %v10637_v62, %v10640_v18  ;;  %v5589_v5 = vrot.slane %v10307_v14, 5  ;;  %v10648_v56 = vld [vmem:[%s8953_s5 + $0xc0] sm:$0xf]  ;;  %v10651_v30 = vld [vmem:[%s8953_s5 + $0xc4] sm:$0xf]  ;;  %v3195_v29 = vshrl.u32 %v10532_v10, 16  ;;  %7864 = vmatmul.mubr.bf16.vlgmr.msra.gmra.mrb[0].mxu0 %v7059_v33  ;;  %v7063_v31 = vcombine.low %v10630_v58, %v10634_v32  ;;  %7640 = vmatmul.mubr.bf16.gmra.mrb[16].mxu1 %v6787_v17 }
 0x1a5   : > { %v6793_v50 = vcombine.low %v10648_v56, %v10651_v30  ;;  %v8445_v15 = vld [vmem:[%s8953_s5 + $0x6c] sm:$0xf]  ;;  %v10658_v1 = vsel %vm9180_vm5, %v7032_v61, %v5586_v21  ;;  %v3198_v44 = vshll.u32 %v10532_v10, 16  ;;  %v3204_v14 = vshll.u32 %v10535_v0, 16  ;;  %7867 = vmatprep.mubr.bf16.mxu0 %v7060_v22  ;;  %7643 = vmatprep.mubr.bf16.mxu1 %v6788_v45  ;;  %v8446_v42 = vld [vmem:[%s8953_s5 + $0x74] sm:$0x1] }
 0x1a6   : > { %v7033_v37 = vrot.slane %v8445_v15, 9  ;;  %v5588_v48 = vrot.slane %v5586_v21, 4  ;;  %v5595_v55 = vrot.slane %v5593_v52, 4  ;;  %v3208_v34 = vshrl.u32 %v10535_v0, 16  ;;  %v8447_v0 = vld [vmem:[%s8953_s5 + $0x78] sm:$0xf] }
 0x1a7   : > { %v5596_v53 = vrot.slane %v10333_v63, 5  ;;  %v3197_v10 = vrot.slane %v3195_v29, 4  ;;  %v3200_v61 = vrot.slane %v3198_v44, 5  ;;  %v10670_v19 = vrot.slane %v3204_v14, 5  ;;  %v8448_v16 = vld [vmem:[%s8953_s5 + $0x7c] sm:$0xf] }
 0x1a8   : > { %v3210_v33 = vrot.slane %v3208_v34, 4  ;;  %v3214_v11 = vshll.u32 %v8446_v42, 16  ;;  %v7034_v21 = vrot.slane %v8447_v0, 9  ;;  %v5600_v49 = vrot.slane %v8448_v16, 5 }
 0x1a9   : > { %v3201_v39 = vor.u32 %v3200_v61, %v3197_v10  ;;  %v5603_v17 = vrot.slane %v10351_v60, 5  ;;  %v3225_v63 = vor.u32 %v10500_v40, %v10467_v26  ;;  %v11244_v22 = vshll.u32 %v11240_v35, 16  ;;  %v8449_v35 = vld [vmem:[%s8953_s5 + $0x88] sm:$0xf] }
 0x1aa   : > { %v10687_v45 = vsel %vm9180_vm5, %v5588_v48, %v5589_v5  ;;  %v10691_v29 = vsel %vm9180_vm5, %v7033_v37, %v5593_v52  ;;  %v3211_v44 = vor.u32 %v3210_v33, %v10670_v19  ;;  %v5602_v14 = vrot.slane %v5600_v49, 4 }
 0x1ab   : > { %v10683_v15 = vrot.slane %v11244_v22, 5  ;;  %v10696_v60 = vsel %vm9180_vm5, %v5595_v55, %v5596_v53  ;;  %v3202_v26 = vrot.slane %v3201_v39, 4  ;;  %v5607_v34 = vrot.slane %v8449_v35, 5  ;;  %v8450_v53 = vld [vmem:[%s8953_s5 + $0x84] sm:$0xf] }
 0x1ac   : > { %v3212_v5 = vrot.slane %v3211_v44, 4  ;;  %v3216_v48 = vrot.slane %v3214_v11, 5  ;;  %v3226_v10 = vrot.slane %v3225_v63, 4  ;;  %v3243_v61 = vshrl.u32 %v10559_v47, 16  ;;  %7868 = vmatmul.mubr.bf16.gmra.mrb[4].mxu0 %v7061_v13  ;;  %7644 = vmatmul.mubr.bf16.gmra.mrb[20].mxu1 %v6789_v36  ;;  %v8451_v22 = vld [vmem:[%s8953_s5 + $0x8c] sm:$0x1] }
 0x1ad   : > { %v3235_v40 = vor.u32 %v10506_v25, %v10683_v15  ;;  %v10704_v52 = vsel %vm9180_vm5, %v7034_v21, %v5600_v49  ;;  %v10708_v37 = vsel %vm9180_vm5, %v5602_v14, %v5603_v17  ;;  %v7035_v33 = vrot.slane %v8450_v53, 9  ;;  %7871 = vmatprep.mubr.bf16.mxu0 %v7062_v51  ;;  %7647 = vmatprep.mubr.bf16.mxu1 %v6790_v7  ;;  %v8453_v35 = vld [vmem:[%s8953_s5 + $0x90] sm:$0xf] }
 0x1ae   : > { %v7064_v25 = vcombine.low %v10658_v1, %v10687_v45  ;;  %v7065_v42 = vcombine.low %v10691_v29, %v10696_v60  ;;  %v5609_v11 = vrot.slane %v5607_v34, 4  ;;  %v5610_v0 = vrot.slane %v10366_v59, 5 }
 0x1af   : > { %v3236_v55 = vrot.slane %v3235_v40, 4  ;;  %v3207_v21 = vsel %vm9015_vm2, %v3202_v26, %v10670_v19  ;;  %v3245_v13 = vrot.slane %v3243_v61, 4  ;;  %v3246_v1 = vshll.u32 %v10559_v47, 16 }
 0x1b0   : > { %v3252_v16 = vshll.u32 %v10562_v4, 16  ;;  %v3217_v59 = vsel %vm9015_vm2, %v3212_v5, %v3216_v48  ;;  %v7066_v36 = vcombine.low %v10704_v52, %v10708_v37  ;;  %v3231_v51 = vsel %vm9015_vm2, %v3226_v10, %v10683_v15 }
 0x1b1   : > { %v3256_v19 = vshrl.u32 %v10562_v4, 16  ;;  %v3241_v47 = vsel %vm9015_vm2, %v3236_v55, %v10522_v24  ;;  %v10740_v7 = vsel %vm9180_vm5, %v7035_v33, %v5607_v34  ;;  %v3248_v49 = vrot.slane %v3246_v1, 5  ;;  %v8452_v4 = vld [vmem:[%s8953_s5 + $0x94] sm:$0xf] }
 0x1b2   : > { %v10742_v39 = vrot.slane %v3252_v16, 5  ;;  %v10746_v17 = vsel %vm9180_vm5, %v5609_v11, %v5610_v0  ;;  %v3262_v15 = vshll.u32 %v8451_v22, 16  ;;  %v5614_v45 = vrot.slane %v8452_v4, 5  ;;  %v8454_v0 = vld [vmem:[%s8953_s5 + $0x98] sm:$0x1] }
 0x1b3   : > { %v3258_v63 = vrot.slane %v3256_v19, 4  ;;  %v3249_v44 = vor.u32 %v3248_v49, %v3245_v13  ;;  %v3267_v14 = vshrl.u32 %v10575_v27, 16  ;;  %v3270_v24 = vshll.u32 %v10575_v27, 16  ;;  %v8455_v16 = vld [vmem:[%s8953_s5 + $0xa0] sm:$0xf] }
 0x1b4   : > { %v3276_v26 = vshll.u32 %v10578_v9, 16  ;;  %v7036_v34 = vrot.slane %v8453_v35, 9  ;;  %v5617_v5 = vrot.slane %v10384_v54, 5  ;;  %v3280_v48 = vshrl.u32 %v10578_v9, 16  ;;  %7872 = vmatmul.mubr.bf16.gmra.mrb[8].mxu0 %v7063_v31  ;;  %7648 = vmatmul.mubr.bf16.gmra.mrb[24].mxu1 %v6791_v41 }
 0x1b5   : > { %v3259_v40 = vor.u32 %v3258_v63, %v10742_v39  ;;  %v5616_v10 = vrot.slane %v5614_v45, 4  ;;  %v3269_v61 = vrot.slane %v3267_v14, 4  ;;  %v3272_v55 = vrot.slane %v3270_v24, 5  ;;  %7875 = vmatprep.mubr.bf16.mxu0 %v7064_v25  ;;  %7651 = vmatprep.mubr.bf16.mxu1 %v6792_v2  ;;  %v8456_v63 = vld [vmem:[%s8953_s5 + $0x9c] sm:$0xf] }
 0x1b6   : > { %v10757_v53 = vrot.slane %v3276_v26, 5  ;;  %v6826_v27 = vcombine.low %v3207_v21, %v3217_v59  ;;  %v10762_v33 = vrot.slane %v3249_v44, 4  ;;  %v3282_v11 = vrot.slane %v3280_v48, 4  ;;  %v8458_v48 = vld [vmem:[%s8953_s5 + $0xa8] sm:$0xf] }
 0x1b7   : > { %v3286_v13 = vshll.u32 %v8454_v0, 16  ;;  %v10768_v54 = vcombine.low %v3231_v51, %v3241_v47  ;;  %v7067_v9 = vcombine.low %v10740_v7, %v10746_v17  ;;  %v3273_v58 = vor.u32 %v3272_v55, %v3269_v61  ;;  %v8462_v7 = vld [vmem:[%s8953_s5 + $0xb4] sm:$0xf] }
 0x1b8   : > { %v3260_v32 = vrot.slane %v3259_v40, 4  ;;  %v3264_v31 = vrot.slane %v3262_v15, 5  ;;  %v10777_v21 = vsel %vm9180_vm5, %v7036_v34, %v5614_v45  ;;  %v3283_v41 = vor.u32 %v3282_v11, %v10757_v53 }
 0x1b9   : > { %v10782_v25 = vsel %vm9180_vm5, %v5616_v10, %v5617_v5  ;;  %v3274_v1 = vrot.slane %v3273_v58, 4  ;;  %v5621_v59 = vrot.slane %v8455_v16, 5  ;;  %v3291_v51 = vshrl.u32 %v10598_v43, 16  ;;  %v8459_v10 = vld [vmem:[%s8953_s5 + $0xac] sm:$0xf] }
 0x1ba   : > { %v3255_v2 = vsel %vm9015_vm2, %v10762_v33, %v10742_v39  ;;  %v3284_v19 = vrot.slane %v3283_v41, 4  ;;  %v3288_v47 = vrot.slane %v3286_v13, 5  ;;  %v3294_v49 = vshll.u32 %v10598_v43, 16  ;;  %v8457_v39 = vld [vmem:[%s8953_s5 + $0xa4] sm:$0x1] }
 0x1bb   : > { %v7037_v22 = vrot.slane %v8456_v63, 9  ;;  %v3293_v15 = vrot.slane %v3291_v51, 4  ;;  %v3300_v4 = vshll.u32 %v10601_v28, 16  ;;  %v3304_v45 = vshrl.u32 %v10601_v28, 16 }
 0x1bc   : > { %v3265_v44 = vsel %vm9015_vm2, %v3260_v32, %v3264_v31  ;;  %v5624_v14 = vrot.slane %v10404_v38, 5  ;;  %v3296_v24 = vrot.slane %v3294_v49, 5  ;;  %v3310_v26 = vshll.u32 %v8457_v39, 16  ;;  %7876 = vmatmul.mubr.bf16.gmra.mrb[12].mxu0 %v7065_v42  ;;  %7652 = vmatmul.mubr.bf16.gmra.mrb[28].mxu1 %v6793_v50  ;;  %v8463_v39 = vld [vmem:[%s8953_s5 + $0xbc] sm:$0x1] }
 0x1bd   : > { %v3279_v43 = vsel %vm9015_vm2, %v3274_v1, %v10757_v53  ;;  %v5623_v40 = vrot.slane %v5621_v59, 4  ;;  %v3302_v35 = vrot.slane %v3300_v4, 5  ;;  %v3306_v34 = vrot.slane %v3304_v45, 4  ;;  %7879 = vmatprep.mubr.bf16.mxu0 %v7066_v36  ;;  %7687 = vmatprep.mubr.bf16.mxu1 %v6826_v27 }
 0x1be   : > { %v3289_v28 = vsel %vm9015_vm2, %v3284_v19, %v3288_v47  ;;  %v3297_v5 = vor.u32 %v3296_v24, %v3293_v15  ;;  %v7038_v38 = vrot.slane %v8458_v48, 9  ;;  %v5628_v61 = vrot.slane %v8459_v10, 5  ;;  %v8461_v19 = vld [vmem:[%s8953_s5 + $0xb8] sm:$0xf]  ;;  %v8465_v48 = vld [vmem:[%s8953_s5 + $0xc4] sm:$0xf] }
 0x1bf   : > { %v3307_v55 = vor.u32 %v3306_v34, %v3302_v35  ;;  %v5631_v29 = vrot.slane %v10417_v12, 5  ;;  %v3315_v60 = vshrl.u32 %v10617_v46, 16  ;;  %v3318_v42 = vshll.u32 %v10617_v46, 16 }
 0x1c0   : > { %v3298_v53 = vrot.slane %v3297_v5, 4  ;;  %v3312_v33 = vrot.slane %v3310_v26, 5  ;;  %v5630_v11 = vrot.slane %v5628_v61, 4  ;;  %v3324_v0 = vshll.u32 %v10620_v6, 16 }
 0x1c1   : > { %v3308_v13 = vrot.slane %v3307_v55, 4  ;;  %v3317_v50 = vrot.slane %v3315_v60, 4  ;;  %v3320_v58 = vrot.slane %v3318_v42, 5  ;;  %v3328_v52 = vshrl.u32 %v10620_v6, 16  ;;  %v8460_v6 = vld [vmem:[%s8953_s5 + $0xb0] sm:$0x1] }
 0x1c2   : > { %v7068_v12 = vcombine.low %v10777_v21, %v10782_v25  ;;  %v5622_v37 = vsel %vm9180_vm5, %v7037_v22, %v5621_v59  ;;  %v5625_v46 = vsel %vm9180_vm5, %v5623_v40, %v5624_v14  ;;  %v10825_v36 = vrot.slane %v3324_v0, 5 }
 0x1c3   : > { %v5629_v27 = vsel %vm9180_vm5, %v7038_v38, %v5628_v61  ;;  %v5632_v32 = vsel %vm9180_vm5, %v5630_v11, %v5631_v29  ;;  %v3330_v31 = vrot.slane %v3328_v52, 4  ;;  %v3334_v41 = vshll.u32 %v8460_v6, 16 }
 0x1c4   : > { %v6828_v1 = vcombine.low %v3255_v2, %v3265_v44  ;;  %v6829_v16 = vcombine.low %v3279_v43, %v3289_v28  ;;  %v3303_v21 = vsel %vm9015_vm2, %v3298_v53, %v3302_v35  ;;  %v3313_v25 = vsel %vm9015_vm2, %v3308_v13, %v3312_v33  ;;  %7880 = vmatmul.mubr.bf16.gmra.mrb[16].mxu0 %v7067_v9  ;;  %v8464_v28 = vld [vmem:[%s8953_s5 + $0xc0] sm:$0xf] }
 0x1c5   : > { %v7069_v59 = vcombine.low %v5622_v37, %v5625_v46  ;;  %v3321_v51 = vor.u32 %v3320_v58, %v3317_v50  ;;  %v5635_v47 = vrot.slane %v8461_v19, 5  ;;  %v3339_v49 = vshrl.u32 %v10637_v62, 16  ;;  %7688 = vmatmul.mubr.bf16.vlgmr.msra.gmra.mrb[16].mxu1 %v10768_v54  ;;  %7883 = vmatprep.mubr.bf16.mxu0 %v7068_v12  ;;  %v8466_v46 = vld [vmem:[%s8953_s5 + $0xc8] sm:$0x1] }
 0x1c6   : > { %v7070_v2 = vcombine.low %v5629_v27, %v5632_v32  ;;  %v3331_v63 = vor.u32 %v3330_v31, %v10825_v36  ;;  %v3342_v22 = vshll.u32 %v10637_v62, 16  ;;  %v3348_v15 = vshll.u32 %v10640_v18, 16  ;;  %7691 = vmatprep.mubr.bf16.mxu1 %v6828_v1  ;;  %v8467_v27 = vld [vmem:[%s8953_s5 + $0xd0] sm:$0xf] }
 0x1c7   : > { %v6830_v4 = vcombine.low %v3303_v21, %v3313_v25  ;;  %v3336_v45 = vrot.slane %v3334_v41, 5  ;;  %v3341_v44 = vrot.slane %v3339_v49, 4  ;;  %v3352_v14 = vshrl.u32 %v10640_v18, 16  ;;  %v8468_v25 = vld [vmem:[%s8953_s5 + $0xcc] sm:$0xf] }
 0x1c8   : > { %v7039_v17 = vrot.slane %v8462_v7, 9  ;;  %v3344_v9 = vrot.slane %v3342_v22, 5  ;;  %v3350_v24 = vrot.slane %v3348_v15, 5  ;;  %v3358_v26 = vshll.u32 %v8463_v39, 16 }
 0x1c9   : > { %v3322_v62 = vrot.slane %v3321_v51, 4  ;;  %v5637_v43 = vrot.slane %v5635_v47, 4  ;;  %v5638_v40 = vrot.slane %v10438_v8, 5  ;;  %v3354_v54 = vrot.slane %v3352_v14, 4 }
 0x1ca   : > { %v3332_v35 = vrot.slane %v3331_v63, 4  ;;  %v3345_v34 = vor.u32 %v3344_v9, %v3341_v44  ;;  %v7040_v5 = vrot.slane %v8464_v28, 9  ;;  %v5642_v38 = vrot.slane %v8465_v48, 5  ;;  %v10898_v48 = vld [vmem:[%s834_s9] ss:$0 sm:$0xff] }
 0x1cb   : > { %v3355_v18 = vor.u32 %v3354_v54, %v3350_v24  ;;  %v3360_v10 = vrot.slane %v3358_v26, 5  ;;  %v3363_v61 = vshrl.u32 %v10648_v56, 16  ;;  %v3366_v55 = vshll.u32 %v10648_v56, 16 }
 0x1cc   : > { %v3346_v29 = vrot.slane %v3345_v34, 4  ;;  %v5644_v60 = vrot.slane %v5642_v38, 4  ;;  %v5645_v42 = vrot.slane %v10455_v57, 5  ;;  %v3372_v53 = vshll.u32 %v10651_v30, 16  ;;  %7884 = vmatmul.mubr.bf16.gmra.mrb[20].mxu0 %v7069_v59 }
 0x1cd   : > { %v3356_v8 = vrot.slane %v3355_v18, 4  ;;  %v3365_v33 = vrot.slane %v3363_v61, 4  ;;  %v3368_v11 = vrot.slane %v3366_v55, 5  ;;  %v3376_v0 = vshrl.u32 %v10651_v30, 16  ;;  %7692 = vmatmul.mubr.bf16.gmra.mrb[20].mxu1 %v6829_v16  ;;  %7887 = vmatprep.mubr.bf16.mxu0 %v7070_v2 }
 0x1ce   : > { %v3327_v13 = vsel %vm9015_vm2, %v3322_v62, %v10825_v36  ;;  %v5636_v56 = vsel %vm9180_vm5, %v7039_v17, %v5635_v47  ;;  %v3374_v50 = vrot.slane %v3372_v53, 5  ;;  %v3337_v57 = vsel %vm9015_vm2, %v3332_v35, %v3336_v45  ;;  %7695 = vmatprep.mubr.bf16.mxu1 %v6830_v4 }
 0x1cf   : > { %v5639_v58 = vsel %vm9180_vm5, %v5637_v43, %v5638_v40  ;;  %v5643_v30 = vsel %vm9180_vm5, %v7040_v5, %v5642_v38  ;;  %v3378_v52 = vrot.slane %v3376_v0, 4  ;;  %v5646_v12 = vsel %vm9180_vm5, %v5644_v60, %v5645_v42 }
 0x1d0   : > { %v3369_v37 = vor.u32 %v3368_v11, %v3365_v33  ;;  %v3382_v36 = vshll.u32 %v8466_v46, 16  ;;  %v5649_v32 = vrot.slane %v8467_v27, 5  ;;  %v3351_v31 = vsel %vm9015_vm2, %v3346_v29, %v3350_v24 }
 0x1d1   : > { %v3361_v6 = vsel %vm9015_vm2, %v3356_v8, %v3360_v10  ;;  %v3379_v41 = vor.u32 %v3378_v52, %v3374_v50  ;;  %v6831_v1 = vcombine.low %v3327_v13, %v3337_v57  ;;  %v7071_v16 = vcombine.low %v5636_v56, %v5639_v58 }
 0x1d2   : > { %v7072_v21 = vcombine.low %v5643_v30, %v5646_v12  ;;  %v7041_v59 = vrot.slane %v8468_v25, 9  ;;  %v5651_v51 = vrot.slane %v5649_v32, 4  ;;  %v5652_v19 = vrot.slane %v10477_v23, 5 }
 0x1d3   : > { %v6832_v47 = vcombine.low %v3351_v31, %v3361_v6  ;;  %v3370_v49 = vrot.slane %v3369_v37, 4  ;;  %v3380_v2 = vrot.slane %v3379_v41, 4  ;;  %v3384_v63 = vrot.slane %v3382_v36, 5 }
 0x1d4   : > { %7888 = vmatmul.mubr.bf16.gmra.mrb[24].mxu0 %v7071_v16  ;;  %v5650_v22 = vsel %vm9180_vm5, %v7041_v59, %v5649_v32  ;;  %v5653_v15 = vsel %vm9180_vm5, %v5651_v51, %v5652_v19 }
 0x1d5   : > { %7696 = vmatmul.mubr.bf16.gmra.mrb[24].mxu1 %v6831_v1  ;;  %7891 = vmatprep.mubr.bf16.mxu0 %v7072_v21  ;;  %v3375_v4 = vsel %vm9015_vm2, %v3370_v49, %v3374_v50  ;;  %v3385_v23 = vsel %vm9015_vm2, %v3380_v2, %v3384_v63  ;;  %v7073_v45 = vcombine.low %v5650_v22, %v5653_v15 }
 0x1d6   : > { %7699 = vmatprep.mubr.bf16.mxu1 %v6832_v47  ;;  %v6833_v44 = vcombine.low %v3375_v4, %v3385_v23 }
 0x1dc   : > { %7892 = vmatmul.mubr.bf16.gmra.mrb[28].mxu0 %v7073_v45 }
 0x1dd   : > { %7700 = vmatmul.mubr.bf16.gmra.mrb[28].mxu1 %v6833_v44 }
 0x252   : > { %v7625_v14 = vpop.f32.mrb[0].mxu1 }
 0x253   : > { %v2779_v7 = vpop.f32.mrb[1].mxu1 }
 0x254   : > { %v7626_v17 = vpop.f32.mrb[2].mxu1 }
 0x255   : > { %v2782_v9 = vpop.f32.mrb[3].mxu1 }
 0x25a   : > { %v7629_v24 = vpop.f32.mrb[4].mxu1 }
 0x25b   : > { %v2795_v20 = vpop.f32.mrb[5].mxu1 }
 0x25c   : > { %v7630_v39 = vpop.f32.mrb[6].mxu1 }
 0x25d   : > { %v2798_v26 = vpop.f32.mrb[7].mxu1 }
 0x267   : > { %v7633_v62 = vpop.f32.mrb[8].mxu1 }
 0x268   : > { %v2811_v43 = vpop.f32.mrb[9].mxu1 }
 0x269   : > { %v7634_v40 = vpop.f32.mrb[10].mxu1 }
 0x26a   : > { %v2814_v3 = vpop.f32.mrb[11].mxu1 }
 0x26f   : > { %v10886_v54 = vpop.f32.mrb[12].mxu1 }
 0x270   : > { %v10889_v35 = vpop.f32.mrb[13].mxu1 }
 0x271   : > { %v10891_v34 = vpop.f32.mrb[14].mxu1 }
 0x272   : > { %v10893_v28 = vpop.f32.mrb[15].mxu1 }
 0x277   : > { %v7865_v5 = vpop.f32.mrb[0].mxu0 }
 0x278   : > { %v7911_v38 = vadd.f32 %v7865_v5, %v7625_v14  ;;  %v5817_v18 = vpop.f32.mrb[1].mxu0 }
 0x279   : > { %v7912_v10 = vadd.f32 %v5817_v18, %v2779_v7  ;;  %v7866_v61 = vpop.f32.mrb[2].mxu0 }
 0x27a   : > { %v6081_v55 = vadd.f32 %v7911_v38, %v10898_v48  ;;  %v7913_v29 = vadd.f32 %v7866_v61, %v7626_v17  ;;  %v5820_v60 = vpop.f32.mrb[3].mxu0 }
 0x27b   : > { %v6079_v42 = vadd.f32 %v7912_v10, %v10898_v48  ;;  %v7914_v53 = vadd.f32 %v5820_v60, %v2782_v9 }
 0x27c   : > { %v6082_v8 = vadd.f32 %v7913_v29, %v10898_v48  ;;  %v6113_v11 = vmax.f32 %v6081_v55, 0.0 }
 0x27d   : > { %v6080_v33 = vadd.f32 %v7914_v53, %v10898_v48  ;;  %v6111_v13 = vmax.f32 %v6079_v42, 0.0 }
 0x27e   : > { %v6114_v0 = vmax.f32 %v6082_v8, 0.0 }
 0x27f   : > { %v6112_v56 = vmax.f32 %v6080_v33, 0.0  ;;  %v7869_v50 = vpop.f32.mrb[4].mxu0 }
 0x280   : > { %v7160_v57 = vpack.c.bf16 %v6114_v0, %v6113_v11  ;;  %v7915_v58 = vadd.f32 %v7869_v50, %v7629_v24  ;;  %v5833_v30 = vpop.f32.mrb[5].mxu0 }
 0x281   : > { %v7155_v52 = vpack.c.bf16 %v6112_v56, %v6111_v13  ;;  %v7916_v12 = vadd.f32 %v5833_v30, %v2795_v20  ;;  %v7870_v37 = vpop.f32.mrb[6].mxu0 }
 0x282   : > { %7232 = vst [vmem:[%s10905_s12 + $0x8] sm:$0xff] %v7160_v57   ;;  %v6085_v46 = vadd.f32 %v7915_v58, %v10898_v48  ;;  %v7917_v36 = vadd.f32 %v7870_v37, %v7630_v39  ;;  %v5836_v27 = vpop.f32.mrb[7].mxu0 }
 0x283   : > { %7156 = vst [vmem:[%s10905_s12] sm:$0xff] %v7155_v52   ;;  %v6083_v32 = vadd.f32 %v7916_v12, %v10898_v48  ;;  %v7918_v31 = vadd.f32 %v5836_v27, %v2798_v26 }
 0x284   : > { %v6086_v6 = vadd.f32 %v7917_v36, %v10898_v48  ;;  %v6117_v1 = vmax.f32 %v6085_v46, 0.0 }
 0x285   : > { %v6084_v41 = vadd.f32 %v7918_v31, %v10898_v48  ;;  %v6115_v21 = vmax.f32 %v6083_v32, 0.0 }
 0x286   : > { %v6118_v16 = vmax.f32 %v6086_v6, 0.0 }
 0x287   : > { %v6116_v25 = vmax.f32 %v6084_v41, 0.0  ;;  %v7873_v59 = vpop.f32.mrb[8].mxu0 }
 0x288   : > { %v7170_v51 = vpack.c.bf16 %v6118_v16, %v6117_v1  ;;  %v7919_v19 = vadd.f32 %v7873_v59, %v7633_v62  ;;  %v5849_v47 = vpop.f32.mrb[9].mxu0 }
 0x289   : > { %v7165_v49 = vpack.c.bf16 %v6116_v25, %v6115_v21  ;;  %v7920_v2 = vadd.f32 %v5849_v47, %v2811_v43  ;;  %v7874_v63 = vpop.f32.mrb[10].mxu0 }
 0x28a   : > { %7234 = vst [vmem:[%s10905_s12 + $0x18] sm:$0xff] %v7170_v51   ;;  %v6089_v22 = vadd.f32 %v7919_v19, %v10898_v48  ;;  %v7921_v15 = vadd.f32 %v7874_v63, %v7634_v40  ;;  %v5852_v4 = vpop.f32.mrb[11].mxu0 }
 0x28b   : > { %7233 = vst [vmem:[%s10905_s12 + $0x10] sm:$0xff] %v7165_v49   ;;  %v6087_v23 = vadd.f32 %v7920_v2, %v10898_v48  ;;  %v7922_v45 = vadd.f32 %v5852_v4, %v2814_v3 }
 0x28c   : > { %v6090_v44 = vadd.f32 %v7921_v15, %v10898_v48  ;;  %v6121_v7 = vmax.f32 %v6089_v22, 0.0 }
 0x28d   : > { %v6088_v14 = vadd.f32 %v7922_v45, %v10898_v48  ;;  %v6119_v9 = vmax.f32 %v6087_v23, 0.0 }
 0x28e   : > { %v6122_v17 = vmax.f32 %v6090_v44, 0.0 }
 0x28f   : > { %v6120_v24 = vmax.f32 %v6088_v14, 0.0  ;;  %v7877_v20 = vpop.f32.mrb[12].mxu0 }
 0x290   : > { %v7180_v39 = vpack.c.bf16 %v6122_v17, %v6121_v7  ;;  %v7923_v26 = vadd.f32 %v7877_v20, %v10886_v54  ;;  %v5865_v62 = vpop.f32.mrb[13].mxu0 }
 0x291   : > { %v7175_v43 = vpack.c.bf16 %v6120_v24, %v6119_v9  ;;  %v7924_v40 = vadd.f32 %v5865_v62, %v10889_v35  ;;  %v7878_v5 = vpop.f32.mrb[14].mxu0 }
 0x292   : > { %7236 = vst [vmem:[%s10905_s12 + $0x28] sm:$0xff] %v7180_v39   ;;  %v6093_v3 = vadd.f32 %v7923_v26, %v10898_v48  ;;  %v7925_v38 = vadd.f32 %v7878_v5, %v10891_v34  ;;  %v5868_v18 = vpop.f32.mrb[15].mxu0 }
 0x293   : > { %7235 = vst [vmem:[%s10905_s12 + $0x20] sm:$0xff] %v7175_v43   ;;  %v6091_v10 = vadd.f32 %v7924_v40, %v10898_v48  ;;  %v7926_v61 = vadd.f32 %v5868_v18, %v10893_v28 }
 0x294   : > { %v6094_v55 = vadd.f32 %v7925_v38, %v10898_v48  ;;  %v6125_v29 = vmax.f32 %v6093_v3, 0.0 }
 0x295   : > { %v6092_v54 = vadd.f32 %v7926_v61, %v10898_v48  ;;  %v6123_v60 = vmax.f32 %v6091_v10, 0.0 }
 0x296   : > { %v6126_v35 = vmax.f32 %v6094_v55, 0.0 }
 0x297   : > { %v6124_v42 = vmax.f32 %v6092_v54, 0.0  ;;  %v7881_v53 = vpop.f32.mrb[16].mxu0 }
 0x298   : > { %v7190_v8 = vpack.c.bf16 %v6126_v35, %v6125_v29  ;;  %v7689_v33 = vpop.f32.mrb[16].mxu1  ;;  %v5881_v34 = vpop.f32.mrb[17].mxu0 }
 0x299   : > { %v7185_v11 = vpack.c.bf16 %v6124_v42, %v6123_v60  ;;  %v7927_v0 = vadd.f32 %v7881_v53, %v7689_v33  ;;  %v3613_v13 = vpop.f32.mrb[17].mxu1  ;;  %v7882_v56 = vpop.f32.mrb[18].mxu0 }
 0x29a   : > { %7238 = vst [vmem:[%s10905_s12 + $0x38] sm:$0xff] %v7190_v8   ;;  %v7928_v50 = vadd.f32 %v5881_v34, %v3613_v13  ;;  %v7690_v28 = vpop.f32.mrb[18].mxu1  ;;  %v5884_v57 = vpop.f32.mrb[19].mxu0 }
 0x29b   : > { %7237 = vst [vmem:[%s10905_s12 + $0x30] sm:$0xff] %v7185_v11   ;;  %v6097_v58 = vadd.f32 %v7927_v0, %v10898_v48  ;;  %v7929_v30 = vadd.f32 %v7882_v56, %v7690_v28  ;;  %v3616_v52 = vpop.f32.mrb[19].mxu1 }
 0x29c   : > { %v6095_v12 = vadd.f32 %v7928_v50, %v10898_v48  ;;  %v7930_v37 = vadd.f32 %v5884_v57, %v3616_v52 }
 0x29d   : > { %v6098_v46 = vadd.f32 %v7929_v30, %v10898_v48  ;;  %v6129_v27 = vmax.f32 %v6097_v58, 0.0 }
 0x29e   : > { %v6096_v36 = vadd.f32 %v7930_v37, %v10898_v48  ;;  %v6127_v6 = vmax.f32 %v6095_v12, 0.0 }
 0x29f   : > { %v6130_v32 = vmax.f32 %v6098_v46, 0.0  ;;  %v7885_v31 = vpop.f32.mrb[20].mxu0 }
 0x2a0   : > { %v6128_v41 = vmax.f32 %v6096_v36, 0.0  ;;  %v7693_v1 = vpop.f32.mrb[20].mxu1  ;;  %v5897_v16 = vpop.f32.mrb[21].mxu0 }
 0x2a1   : > { %v7200_v21 = vpack.c.bf16 %v6130_v32, %v6129_v27  ;;  %v7931_v25 = vadd.f32 %v7885_v31, %v7693_v1  ;;  %v3629_v59 = vpop.f32.mrb[21].mxu1  ;;  %v7886_v51 = vpop.f32.mrb[22].mxu0 }
 0x2a2   : > { %v7195_v19 = vpack.c.bf16 %v6128_v41, %v6127_v6  ;;  %v7932_v47 = vadd.f32 %v5897_v16, %v3629_v59  ;;  %v7694_v49 = vpop.f32.mrb[22].mxu1  ;;  %v5900_v2 = vpop.f32.mrb[23].mxu0  ;;  %v6334_v59 = vld [vmem:[%s10905_s12 + $0x4] sm:$0xf] (%p8628_p9) }
 0x2a3   : > { %7240 = vst [vmem:[%s10905_s12 + $0x48] sm:$0xff] %v7200_v21   ;;  %v6101_v63 = vadd.f32 %v7931_v25, %v10898_v48  ;;  %v7933_v22 = vadd.f32 %v7886_v51, %v7694_v49  ;;  %v3632_v15 = vpop.f32.mrb[23].mxu1  ;;  %v6336_v51 = vld [vmem:[%s10905_s12 + $0x8] sm:$0xf] (%p8628_p9)  ;;  %v6342_v49 = vld [vmem:[%s10905_s12 + $0x14] sm:$0xf] (%p8628_p9) }
 0x2a4   : > { %7239 = vst [vmem:[%s10905_s12 + $0x40] sm:$0xff] %v7195_v19   ;;  %v6099_v4 = vadd.f32 %v7932_v47, %v10898_v48  ;;  %v7934_v23 = vadd.f32 %v5900_v2, %v3632_v15  ;;  %v6338_v19 = vld [vmem:[%s10905_s12 + $0xc] sm:$0xf] (%p8628_p9)  ;;  %v6340_v47 = vld [vmem:[%s10905_s12 + $0x10] sm:$0xf] (%p8628_p9) }
 0x2a5   : > { %v6102_v45 = vadd.f32 %v7933_v22, %v10898_v48  ;;  %v6133_v14 = vmax.f32 %v6101_v63, 0.0  ;;  %v6344_v2 = vld [vmem:[%s10905_s12 + $0x18] sm:$0xf] (%p8628_p9)  ;;  %v6346_v63 = vld [vmem:[%s10905_s12 + $0x1c] sm:$0xf] (%p8628_p9) }
 0x2a6   : > { %v6100_v44 = vadd.f32 %v7934_v23, %v10898_v48  ;;  %v6131_v9 = vmax.f32 %v6099_v4, 0.0  ;;  %v6348_v22 = vld [vmem:[%s10905_s12 + $0x20] sm:$0xf] (%p8628_p9)  ;;  %v6350_v15 = vld [vmem:[%s10905_s12 + $0x24] sm:$0xf] (%p8628_p9) }
 0x2a7   : > { %v6134_v7 = vmax.f32 %v6102_v45, 0.0  ;;  %v7889_v17 = vpop.f32.mrb[24].mxu0  ;;  %6335 = vst [vmem:[%s10969_s26 + $0x8] sm:$0xf] (%p8628_p9), %v6334_v59  ;;  %6337 = vst [vmem:[%s10969_s26 + $0x10] sm:$0xf] (%p8628_p9), %v6336_v51 }
 0x2a8   : > { %v6132_v24 = vmax.f32 %v6100_v44, 0.0  ;;  %v7697_v20 = vpop.f32.mrb[24].mxu1  ;;  %v5913_v39 = vpop.f32.mrb[25].mxu0  ;;  %6339 = vst [vmem:[%s10969_s26 + $0x18] sm:$0xf] (%p8628_p9), %v6338_v19 }
 0x2a9   : > { %v7210_v26 = vpack.c.bf16 %v6134_v7, %v6133_v14  ;;  %v7935_v62 = vadd.f32 %v7889_v17, %v7697_v20  ;;  %v3645_v43 = vpop.f32.mrb[25].mxu1  ;;  %v7890_v40 = vpop.f32.mrb[26].mxu0  ;;  %6341 = vst [vmem:[%s10969_s26 + $0x20] sm:$0xf] (%p8628_p9), %v6340_v47  ;;  %6343 = vst [vmem:[%s10969_s26 + $0x28] sm:$0xf] (%p8628_p9), %v6342_v49 }
 0x2aa   : > { %v7205_v5 = vpack.c.bf16 %v6132_v24, %v6131_v9  ;;  %v7936_v3 = vadd.f32 %v5913_v39, %v3645_v43  ;;  %v7698_v38 = vpop.f32.mrb[26].mxu1  ;;  %v5916_v18 = vpop.f32.mrb[27].mxu0  ;;  %6345 = vst [vmem:[%s10969_s26 + $0x30] sm:$0xf] (%p8628_p9), %v6344_v2  ;;  %6347 = vst [vmem:[%s10969_s26 + $0x38] sm:$0xf] (%p8628_p9), %v6346_v63 }
 0x2ab   : > { %7242 = vst [vmem:[%s10905_s12 + $0x58] sm:$0xff] %v7210_v26   ;;  %v6105_v10 = vadd.f32 %v7935_v62, %v10898_v48  ;;  %v7937_v61 = vadd.f32 %v7890_v40, %v7698_v38  ;;  %v3648_v55 = vpop.f32.mrb[27].mxu1  ;;  %6349 = vst [vmem:[%s10969_s26 + $0x40] sm:$0xf] (%p8628_p9), %v6348_v22  ;;  %v6352_v4 = vld [vmem:[%s10905_s12 + $0x28] sm:$0xf] (%p8628_p9) }
 0x2ac   : > { %7241 = vst [vmem:[%s10905_s12 + $0x50] sm:$0xff] %v7205_v5   ;;  %v6103_v54 = vadd.f32 %v7936_v3, %v10898_v48  ;;  %v7938_v29 = vadd.f32 %v5916_v18, %v3648_v55  ;;  %6351 = vst [vmem:[%s10969_s26 + $0x48] sm:$0xf] (%p8628_p9), %v6350_v15  ;;  %v6354_v23 = vld [vmem:[%s10905_s12 + $0x2c] sm:$0xf] (%p8628_p9) }
 0x2ad   : > { %v6106_v35 = vadd.f32 %v7937_v61, %v10898_v48  ;;  %v6137_v42 = vmax.f32 %v6105_v10, 0.0  ;;  %v6356_v45 = vld [vmem:[%s10905_s12 + $0x30] sm:$0xf] (%p8628_p9)  ;;  %6353 = vst [vmem:[%s10969_s26 + $0x50] sm:$0xf] (%p8628_p9), %v6352_v4 }
 0x2ae   : > { %v6104_v60 = vadd.f32 %v7938_v29, %v10898_v48  ;;  %v6135_v33 = vmax.f32 %v6103_v54, 0.0  ;;  %6355 = vst [vmem:[%s10969_s26 + $0x58] sm:$0xf] (%p8628_p9), %v6354_v23  ;;  %6357 = vst [vmem:[%s10969_s26 + $0x60] sm:$0xf] (%p8628_p9), %v6356_v45 }
 0x2af   : > { %v6138_v53 = vmax.f32 %v6106_v35, 0.0  ;;  %v7893_v8 = vpop.f32.mrb[28].mxu0  ;;  %v6358_v44 = vld [vmem:[%s10905_s12 + $0x34] sm:$0xf] (%p8628_p9)  ;;  %v6360_v14 = vld [vmem:[%s10905_s12 + $0x38] sm:$0xf] (%p8628_p9) }
 0x2b0   : > { %v6136_v34 = vmax.f32 %v6104_v60, 0.0  ;;  %v7701_v11 = vpop.f32.mrb[28].mxu1  ;;  %v5929_v0 = vpop.f32.mrb[29].mxu0  ;;  %v6362_v7 = vld [vmem:[%s10905_s12 + $0x3c] sm:$0xf] (%p8628_p9) }
 0x2b1   : > { %v7220_v13 = vpack.c.bf16 %v6138_v53, %v6137_v42  ;;  %v7939_v56 = vadd.f32 %v7893_v8, %v7701_v11  ;;  %v3661_v50 = vpop.f32.mrb[29].mxu1  ;;  %v7894_v28 = vpop.f32.mrb[30].mxu0  ;;  %6359 = vst [vmem:[%s10969_s26 + $0x68] sm:$0xf] (%p8628_p9), %v6358_v44  ;;  %6361 = vst [vmem:[%s10969_s26 + $0x70] sm:$0xf] (%p8628_p9), %v6360_v14 }
 0x2b2   : > { %v7215_v57 = vpack.c.bf16 %v6136_v34, %v6135_v33  ;;  %v7940_v58 = vadd.f32 %v5929_v0, %v3661_v50  ;;  %v7702_v30 = vpop.f32.mrb[30].mxu1  ;;  %v5932_v52 = vpop.f32.mrb[31].mxu0  ;;  %6363 = vst [vmem:[%s10969_s26 + $0x78] sm:$0xf] (%p8628_p9), %v6362_v7  ;;  %v6364_v17 = vld [vmem:[%s10905_s12 + $0x40] sm:$0xf] (%p8628_p9) }
 0x2b3   : > { %7244 = vst [vmem:[%s10905_s12 + $0x68] sm:$0xff] %v7220_v13   ;;  %v6109_v12 = vadd.f32 %v7939_v56, %v10898_v48  ;;  %v7941_v37 = vadd.f32 %v7894_v28, %v7702_v30  ;;  %v3664_v46 = vpop.f32.mrb[31].mxu1  ;;  %v6366_v9 = vld [vmem:[%s10905_s12 + $0x44] sm:$0xf] (%p8628_p9)  ;;  %v6368_v24 = vld [vmem:[%s10905_s12 + $0x48] sm:$0xf] (%p8628_p9) }
 0x2b4   : > { %7243 = vst [vmem:[%s10905_s12 + $0x60] sm:$0xff] %v7215_v57   ;;  %v6107_v36 = vadd.f32 %v7940_v58, %v10898_v48  ;;  %v7942_v27 = vadd.f32 %v5932_v52, %v3664_v46  ;;  %6365 = vst [vmem:[%s10969_s26 + $0x80] sm:$0xf] (%p8628_p9), %v6364_v17  ;;  %v6370_v20 = vld [vmem:[%s10905_s12 + $0x4c] sm:$0xf] (%p8628_p9) }
 0x2b5   : > { %v6110_v32 = vadd.f32 %v7941_v37, %v10898_v48  ;;  %v6141_v6 = vmax.f32 %v6109_v12, 0.0  ;;  %6367 = vst [vmem:[%s10969_s26 + $0x88] sm:$0xf] (%p8628_p9), %v6366_v9  ;;  %6369 = vst [vmem:[%s10969_s26 + $0x90] sm:$0xf] (%p8628_p9), %v6368_v24 }
 0x2b6   : > { %v6108_v31 = vadd.f32 %v7942_v27, %v10898_v48  ;;  %v6139_v1 = vmax.f32 %v6107_v36, 0.0  ;;  %6309 = sbr.rel (!%p8628_p9) target bundleno = 710 (0x2c6), region = 77  ;;  %v6332_v48 = vld [vmem:[%s10905_s12] sm:$0xf] (%p8628_p9)  ;;  %v6372_v39 = vld [vmem:[%s10905_s12 + $0x50] sm:$0xf] (%p8628_p9) }
 0x2b7   : > { %v6142_v41 = vmax.f32 %v6110_v32, 0.0  ;;  %6333 = vst [vmem:[%s10969_s26] sm:$0xf] (%p8628_p9), %v6332_v48  ;;  %v6374_v26 = vld [vmem:[%s10905_s12 + $0x54] sm:$0xf] (%p8628_p9)  ;;  %6371 = vst [vmem:[%s10969_s26 + $0x98] sm:$0xf] (%p8628_p9), %v6370_v20 }
 0x2b8   : > { %v6140_v16 = vmax.f32 %v6108_v31, 0.0  ;;  %6373 = vst [vmem:[%s10969_s26 + $0xa0] sm:$0xf] (%p8628_p9), %v6372_v39  ;;  %6375 = vst [vmem:[%s10969_s26 + $0xa8] sm:$0xf] (%p8628_p9), %v6374_v26 }
 0x2b9   : > { %v7230_v21 = vpack.c.bf16 %v6142_v41, %v6141_v6  ;;  %v6376_v62 = vld [vmem:[%s10905_s12 + $0x58] sm:$0xf] (%p8628_p9)  ;;  %v6378_v43 = vld [vmem:[%s10905_s12 + $0x5c] sm:$0xf] (%p8628_p9) }
 0x2ba   : > { %v7225_v25 = vpack.c.bf16 %v6140_v16, %v6139_v1  ;;  %6377 = vst [vmem:[%s10969_s26 + $0xb0] sm:$0xf] (%p8628_p9), %v6376_v62  ;;  %6379 = vst [vmem:[%s10969_s26 + $0xb8] sm:$0xf] (%p8628_p9), %v6378_v43  ;;  %v6384_v3 = vld [vmem:[%s10905_s12 + $0x68] sm:$0xf] (%p8628_p9) }
 0x2bb   : > { %7246 = vst [vmem:[%s10905_s12 + $0x78] sm:$0xff] %v7230_v21   ;;  %v6380_v40 = vld [vmem:[%s10905_s12 + $0x60] sm:$0xf] (%p8628_p9)  ;;  %v6382_v5 = vld [vmem:[%s10905_s12 + $0x64] sm:$0xf] (%p8628_p9) }
 0x2bc   : > { %7245 = vst [vmem:[%s10905_s12 + $0x70] sm:$0xff] %v7225_v25   ;;  %6381 = vst [vmem:[%s10969_s26 + $0xc0] sm:$0xf] (%p8628_p9), %v6380_v40  ;;  %v6386_v38 = vld [vmem:[%s10905_s12 + $0x6c] sm:$0xf] (%p8628_p9) }
 0x2bd   : > { %6383 = vst [vmem:[%s10969_s26 + $0xc8] sm:$0xf] %v6382_v5  ;;  %6385 = vst [vmem:[%s10969_s26 + $0xd0] sm:$0xf] %v6384_v3 }
 0x2be   : > { %6387 = vst [vmem:[%s10969_s26 + $0xd8] sm:$0xf] %v6386_v38 }
 0x2c2   : > { %v6392_v61 = vld [vmem:[%s10905_s12 + $0x78] sm:$0xf]  ;;  %v6394_v55 = vld [vmem:[%s10905_s12 + $0x7c] sm:$0xf] }
 0x2c3   : > { %v6388_v18 = vld [vmem:[%s10905_s12 + $0x70] sm:$0xf]  ;;  %v6390_v10 = vld [vmem:[%s10905_s12 + $0x74] sm:$0xf]  ;;  %6393 = vst [vmem:[%s10969_s26 + $0xf0] sm:$0xf] %v6392_v61 }
 0x2c4   : > { %6389 = vst [vmem:[%s10969_s26 + $0xe0] sm:$0xf] %v6388_v18  ;;  %6391 = vst [vmem:[%s10969_s26 + $0xe8] sm:$0xf] %v6390_v10 }
 0x2c5   : > { %6395 = vst [vmem:[%s10969_s26 + $0xf8] sm:$0xf] %v6394_v55 }
 0x2c6 PF: > { %s13_s20 = sadd.s32 1, %s8539_s20   ;;  %s11245_s12 = smov %s8511_s13 }
 0x2c7   : > { %p10_p2 = scmp.ge.s32.totalorder %s13_s20, 6   ;;  %s11246_s13 = smov %s8633_s4 }
 0x2c8   : > { %s11247_s14 = smov %s8519_s15  ;;  %s11248_s15 = smov %s8622_s27 }
 0x2c9   : > { %s11249_s16 = smov %s8531_s18  ;;  %s11250_s17 = smov %s8535_s19 }
 0x2ca   : > { %s11251_s18 = smov %s11254_s22  ;;  %s11252_s19 = smov %s11258_s23 }
 0x2cb   :  { %12 = sbr.rel (!%p10_p2) target bundleno = 5 (0x5), region = 166 }

// kernel: decoder_forward.5
= control target key start
LH: loop header
LB: loop body
LE: loop exit
PB: predicated region body
PF: predicated region fallthrough
CT: control target
= control target key end

     0   :  { %s11398_s18 = smov 0   ;;  %s11400_s19 = smov 0   ;;  %s14273_s0 = inlined_call_operand.vmem [shape: bf16[2,18,18,256], index: 0, kind: input, shape index: {}]   ;;  %s14274_s1 = inlined_call_operand.vmem [shape: bf16[3,3,256,256], index: 1, kind: input, shape index: {}]   ;;  %s14275_s2 = inlined_call_operand.vmem [shape: f32[1,256], index: 2, kind: input, shape index: {}]   ;;  %s14276_s3 = inlined_call_operand.vmem [shape: bf16[256,128], index: 3, kind: input, shape index: {}]   ;;  %s14277_s4 = inlined_call_operand.vmem [shape: f32[1,128], index: 4, kind: input, shape index: {}]   ;;  %s14278_s5 = inlined_call_operand.vmem [shape: f32[2,256,128], index: 5, kind: output, shape index: {}]  }
   0x1   :  { %s11402_s20 = smov 0  }
   0x2 LB: > { %s34_s21 = sadd.s32 1, %s11362_s19  ;;  %p9025_p0 = scmp.ge.s32.totalorder %s11366_s20, 1  ;;  %s11366_s20 = sphi %s11402_s20, %s15_s20   ;;  %s11362_s19 = sphi %s11400_s19, %s14371_s19   ;;  %s11358_s18 = sphi %s11398_s18, %s14370_s18  }
   0x3   : > { %p36_p1 = scmp.ge.s32.totalorder %s34_s21, 2  ;;  %p231_p2 = scmp.lt.s32.totalorder %s11366_s20, 3 }
   0x5   : > { %s14373_s21 = smov (%p36_p1, %s34_s21), 0  ;;  %p232_p3 = pnand %p9025_p0, %p231_p2 }
   0x7   : > { %235 = sbr.rel (%p232_p3) target bundleno = 1156 (0x484), region = 40 }
   0xe   : > { %v10674_v0 = vld [vmem:[%s14274_s1 + $0x4] ss:$8 sps:$4 sm:$0xff]   ;;  %v10678_v2 = vld [vmem:[%s14274_s1] ss:$8 sps:$4 sm:$0xff]   ;;  %v10680_v4 = vld [vmem:[%s14274_s1 + $0x14] ss:$8 sps:$4 sm:$0xff]  }
   0xf   : > { %v10676_v1 = vld [vmem:[%s14274_s1 + $0x404] ss:$8 sps:$4 sm:$0xff]   ;;  %709 = vmatprep.subr.bf16.mxu1 %v10674_v0  ;;  %v10679_v3 = vld [vmem:[%s14274_s1 + $0x400] ss:$8 sps:$4 sm:$0xff]   ;;  %v10682_v5 = vld [vmem:[%s14274_s1 + $0x414] ss:$8 sps:$4 sm:$0xff]  }
  0x10   : > { %4391 = vmatprep.subr.bf16.mxu0 %v10676_v1  ;;  %710 = vmatpush1.bf16.msra.mxu1 %v10678_v2  ;;  %v10684_v6 = vld [vmem:[%s14274_s1 + $0x10] ss:$8 sps:$4 sm:$0xff]   ;;  %v10686_v8 = vld [vmem:[%s14274_s1 + $0x24] ss:$8 sps:$4 sm:$0xff]   ;;  %v10690_v10 = vld [vmem:[%s14274_s1 + $0x20] ss:$8 sps:$4 sm:$0xff]  }
  0x11   : > { %4392 = vmatpush1.bf16.msra.mxu0 %v10679_v3  ;;  %711 = vmatprep.subr.bf16.mxu1 %v10680_v4  ;;  %v10685_v7 = vld [vmem:[%s14274_s1 + $0x410] ss:$8 sps:$4 sm:$0xff]   ;;  %v10688_v9 = vld [vmem:[%s14274_s1 + $0x424] ss:$8 sps:$4 sm:$0xff]   ;;  %v10691_v11 = vld [vmem:[%s14274_s1 + $0x420] ss:$8 sps:$4 sm:$0xff]  }
  0x12   : > { %4393 = vmatprep.subr.bf16.mxu0 %v10682_v5  ;;  %v10692_v12 = vld [vmem:[%s14274_s1 + $0x34] ss:$8 sps:$4 sm:$0xff]   ;;  %v10696_v14 = vld [vmem:[%s14274_s1 + $0x30] ss:$8 sps:$4 sm:$0xff]   ;;  %v10698_v16 = vld [vmem:[%s14274_s1 + $0x44] ss:$8 sps:$4 sm:$0xff]  }
  0x13   : > { %v10694_v13 = vld [vmem:[%s14274_s1 + $0x434] ss:$8 sps:$4 sm:$0xff]   ;;  %v10697_v15 = vld [vmem:[%s14274_s1 + $0x430] ss:$8 sps:$4 sm:$0xff]   ;;  %v10700_v17 = vld [vmem:[%s14274_s1 + $0x444] ss:$8 sps:$4 sm:$0xff]  }
  0x14   : > { %712 = vmatpush1.bf16.msra.mxu1 %v10684_v6  ;;  %v10702_v18 = vld [vmem:[%s14274_s1 + $0x40] ss:$8 sps:$4 sm:$0xff]   ;;  %v10704_v20 = vld [vmem:[%s14274_s1 + $0x54] ss:$8 sps:$4 sm:$0xff]   ;;  %v10708_v22 = vld [vmem:[%s14274_s1 + $0x50] ss:$8 sps:$4 sm:$0xff]  }
  0x15   : > { %4394 = vmatpush1.bf16.msra.mxu0 %v10685_v7  ;;  %713 = vmatprep.subr.bf16.mxu1 %v10686_v8  ;;  %v10703_v19 = vld [vmem:[%s14274_s1 + $0x440] ss:$8 sps:$4 sm:$0xff]   ;;  %v10706_v21 = vld [vmem:[%s14274_s1 + $0x454] ss:$8 sps:$4 sm:$0xff]   ;;  %v10709_v23 = vld [vmem:[%s14274_s1 + $0x450] ss:$8 sps:$4 sm:$0xff]  }
  0x16   : > { %4395 = vmatprep.subr.bf16.mxu0 %v10688_v9  ;;  %v10710_v24 = vld [vmem:[%s14274_s1 + $0x64] ss:$8 sps:$4 sm:$0xff]   ;;  %v10714_v26 = vld [vmem:[%s14274_s1 + $0x60] ss:$8 sps:$4 sm:$0xff]   ;;  %v10716_v28 = vld [vmem:[%s14274_s1 + $0x74] ss:$8 sps:$4 sm:$0xff]  }
  0x17   : > { %v10712_v25 = vld [vmem:[%s14274_s1 + $0x464] ss:$8 sps:$4 sm:$0xff]   ;;  %v10715_v27 = vld [vmem:[%s14274_s1 + $0x460] ss:$8 sps:$4 sm:$0xff]   ;;  %v10718_v29 = vld [vmem:[%s14274_s1 + $0x474] ss:$8 sps:$4 sm:$0xff]  }
  0x18   : > { %714 = vmatpush1.bf16.msra.mxu1 %v10690_v10  ;;  %v10720_v30 = vld [vmem:[%s14274_s1 + $0x70] ss:$8 sps:$4 sm:$0xff]   ;;  %v10722_v32 = vld [vmem:[%s14274_s1 + $0x84] ss:$8 sps:$4 sm:$0xff]   ;;  %p275_p4 = scmp.lt.s32.totalorder %s11358_s18, 1  ;;  %vm2075_vm3 = vcmask 1042432  }
  0x19   : > { %4396 = vmatpush1.bf16.msra.mxu0 %v10691_v11  ;;  %715 = vmatprep.subr.bf16.mxu1 %v10692_v12  ;;  %v10721_v31 = vld [vmem:[%s14274_s1 + $0x470] ss:$8 sps:$4 sm:$0xff]   ;;  %v10724_v33 = vld [vmem:[%s14274_s1 + $0x484] ss:$8 sps:$4 sm:$0xff]   ;;  %v10726_v34 = vld [vmem:[%s14274_s1 + $0x80] ss:$8 sps:$4 sm:$0xff]  }
  0x1a   : > { %4397 = vmatprep.subr.bf16.mxu0 %v10694_v13  ;;  %v10727_v35 = vld [vmem:[%s14274_s1 + $0x480] ss:$8 sps:$4 sm:$0xff]   ;;  %v10728_v36 = vld [vmem:[%s14274_s1 + $0x94] ss:$8 sps:$4 sm:$0xff]   ;;  %s14375_s18 = smov (!%p275_p4, %s11358_s18), 1  ;;  %vm2076_vm4 = vcmask 1046532  }
  0x1b   : > { %v10730_v37 = vld [vmem:[%s14274_s1 + $0x494] ss:$8 sps:$4 sm:$0xff]   ;;  %v10732_v38 = vld [vmem:[%s14274_s1 + $0x90] ss:$8 sps:$4 sm:$0xff]   ;;  %v10734_v40 = vld [vmem:[%s14274_s1 + $0xa4] ss:$8 sps:$4 sm:$0xff]  }
  0x1c   : > { %716 = vmatpush1.bf16.msra.mxu1 %v10696_v14  ;;  %v10733_v39 = vld [vmem:[%s14274_s1 + $0x490] ss:$8 sps:$4 sm:$0xff]   ;;  %s10649_s16 = smul.u32 432, %s14375_s18  ;;  %v10736_v41 = vld [vmem:[%s14274_s1 + $0x4a4] ss:$8 sps:$4 sm:$0xff]   ;;  %vm12207_vm5 = vmor %vm2075_vm3, %vm2076_vm4  ;;  %s10024_s30 = sshll.u32 %s14375_s18, 8 }
  0x1d   : > { %4398 = vmatpush1.bf16.msra.mxu0 %v10697_v15  ;;  %717 = vmatprep.subr.bf16.mxu1 %v10698_v16  ;;  %v10738_v42 = vld [vmem:[%s14274_s1 + $0xa0] ss:$8 sps:$4 sm:$0xff]   ;;  %v10740_v44 = vld [vmem:[%s14274_s1 + $0xb4] ss:$8 sps:$4 sm:$0xff]   ;;  %vm966_vm0 = vsmask.f32 3328  ;;  %s14198_s11 = scalar_lea.vmem %s14278_s5, %s10024_s30 }
  0x1e   : > { %4399 = vmatprep.subr.bf16.mxu0 %v10700_v17  ;;  %v10739_v43 = vld [vmem:[%s14274_s1 + $0x4a0] ss:$8 sps:$4 sm:$0xff]   ;;  %s11561_s6 = scalar_lea.vmem %s14273_s0, %s10649_s16  ;;  %v10742_v45 = vld [vmem:[%s14274_s1 + $0x4b4] ss:$8 sps:$4 sm:$0xff]   ;;  %v10744_v46 = vld [vmem:[%s14274_s1 + $0xb0] ss:$8 sps:$4 sm:$0xff]  }
  0x1f   : > { %v10745_v47 = vld [vmem:[%s14274_s1 + $0x4b0] ss:$8 sps:$4 sm:$0xff]   ;;  %v11573_v48 = vld [vmem:[%s11561_s6] sm:$0xff]  ;;  %v11582_v51 = vld [vmem:[%s11561_s6 + $0x8] sm:$0xff]  ;;  %vm967_vm1 = vsmask.f32 7440 }
  0x20   : > { %718 = vmatpush1.bf16.msra.mxu1 %v10702_v18  ;;  %v10746_v49 = vld [vmem:[%s14274_s1 + $0xc4] ss:$8 sps:$4 sm:$0xff]   ;;  %v11585_v52 = vld [vmem:[%s11561_s6 + $0x18] sm:$0xff]  ;;  %v9030_v53 = vcombine.high %v11573_v48, %v11582_v51  ;;  %v11598_v61 = vld [vmem:[%s11561_s6 + $0x30] sm:$0xff] }
  0x21   : > { %4400 = vmatpush1.bf16.msra.mxu0 %v10703_v19  ;;  %719 = vmatprep.subr.bf16.mxu1 %v10704_v20  ;;  %v10748_v50 = vld [vmem:[%s14274_s1 + $0x4c4] ss:$8 sps:$4 sm:$0xff]   ;;  %v3687_v56 = vshrl.u32 %v11585_v52, 16  ;;  %v3690_v57 = vshll.u32 %v11585_v52, 16  ;;  %v10750_v62 = vld [vmem:[%s14274_s1 + $0xc0] ss:$8 sps:$4 sm:$0xff]   ;;  %vm11623_vm2 = vmor %vm966_vm0, %vm967_vm1 }
  0x22   : > { %4401 = vmatprep.subr.bf16.mxu0 %v10706_v21  ;;  %v11590_v54 = vld [vmem:[%s11561_s6 + $0x20] sm:$0xff]  ;;  %v9303_v55 = vld [vmem:[%s11561_s6 + $0x28] sm:$0x11]  ;;  %741 = vmatprep.mubr.bf16.mxu1 %v9030_v53  ;;  %v10752_v2 = vld [vmem:[%s14274_s1 + $0xd4] ss:$8 sps:$4 sm:$0xff]   ;;  %v3711_v7 = vshrl.u32 %v11598_v61, 16 }
  0x23   : > { %v3696_v58 = vshll.u32 %v11590_v54, 16  ;;  %v3700_v59 = vshrl.u32 %v11590_v54, 16  ;;  %v3706_v60 = vshll.u32 %v9303_v55, 16  ;;  %v10751_v63 = vld [vmem:[%s14274_s1 + $0x4c0] ss:$8 sps:$4 sm:$0xff]   ;;  %v3689_v0 = vrot.slane %v3687_v56, 4 }
  0x24   : > { %720 = vmatpush1.bf16.msra.mxu1 %v10708_v22  ;;  %v3692_v1 = vrot.slane %v3690_v57, 5  ;;  %v11610_v5 = vld [vmem:[%s11561_s6 + $0x38] sm:$0xff]  ;;  %v3714_v8 = vshll.u32 %v11598_v61, 16  ;;  %v11616_v10 = vld [vmem:[%s11561_s6 + $0x48] sm:$0xff]  ;;  %v9306_v15 = vld [vmem:[%s11561_s6 + $0x40] sm:$0x11] }
  0x25   : > { %4402 = vmatpush1.bf16.msra.mxu0 %v10709_v23  ;;  %721 = vmatprep.subr.bf16.mxu1 %v10710_v24  ;;  %v3698_v3 = vrot.slane %v3696_v58, 5  ;;  %v3702_v4 = vrot.slane %v3700_v59, 4  ;;  %v3720_v9 = vshll.u32 %v11610_v5, 16  ;;  %v10754_v11 = vld [vmem:[%s14274_s1 + $0x4d4] ss:$8 sps:$4 sm:$0xff]   ;;  %v3708_v14 = vrot.slane %v3706_v60, 5 }
  0x26   : > { %4403 = vmatprep.subr.bf16.mxu0 %v10712_v25  ;;  %v3693_v6 = vor.u32 %v3692_v1, %v3689_v0  ;;  %v3724_v16 = vshrl.u32 %v11610_v5, 16  ;;  %v10756_v17 = vld [vmem:[%s14274_s1 + $0xd0] ss:$8 sps:$4 sm:$0xff]   ;;  %v3713_v19 = vrot.slane %v3711_v7, 4  ;;  %v3716_v20 = vrot.slane %v3714_v8, 5  ;;  %v11669_v53 = vld [vmem:[%s11561_s6 + $0x60] sm:$0xff] }
  0x27   : > { %v3703_v13 = vor.u32 %v3702_v4, %v3698_v3  ;;  %v3722_v21 = vrot.slane %v3720_v9, 5  ;;  %v11633_v22 = vld [vmem:[%s11561_s6 + $0x50] sm:$0xff]  ;;  %v11672_v55 = vld [vmem:[%s11561_s6 + $0x68] sm:$0xff] }
  0x28   : > { %722 = vmatpush1.bf16.msra.mxu1 %v10714_v26  ;;  %v3694_v18 = vrot.slane %v3693_v6, 4  ;;  %v10757_v23 = vld [vmem:[%s14274_s1 + $0x4d0] ss:$8 sps:$4 sm:$0xff]   ;;  %v3726_v25 = vrot.slane %v3724_v16, 4  ;;  %v3735_v26 = vshrl.u32 %v11616_v10, 16  ;;  %v3772_v4 = vshrl.u32 %v11672_v55, 16 }
  0x29   : > { %4404 = vmatpush1.bf16.msra.mxu0 %v10715_v27  ;;  %723 = vmatprep.subr.bf16.mxu1 %v10716_v28  ;;  %v3704_v24 = vrot.slane %v3703_v13, 4  ;;  %v10758_v27 = vld [vmem:[%s14274_s1 + $0xe4] ss:$8 sps:$4 sm:$0xff]   ;;  %v10768_v56 = vld [vmem:[%s14274_s1 + $0xf0] ss:$8 sps:$4 sm:$0xff]   ;;  %v9029_v6 = vcombine.low %v11573_v48, %v11582_v51 }
  0x2a   : > { %4405 = vmatprep.subr.bf16.mxu0 %v10718_v29  ;;  %v11644_v28 = vsel %vm11623_vm2, %v3694_v18, %v3698_v3  ;;  %v3717_v29 = vor.u32 %v3716_v20, %v3713_v19  ;;  %v10769_v60 = vld [vmem:[%s14274_s1 + $0x4f0] ss:$8 sps:$4 sm:$0xff]   ;;  %v10774_v0 = vld [vmem:[%s14274_s1 + $0x504] ss:$8 sps:$4 sm:$0xff]   ;;  %v3768_v3 = vshll.u32 %v11672_v55, 16  ;;  %v3774_v18 = vrot.slane %v3772_v4, 4 }
  0x2b   : > { %v10772_v13 = vld [vmem:[%s14274_s1 + $0x500] ss:$8 sps:$4 sm:$0xff]   ;;  %v10779_v51 = vld [vmem:[%s14274_s1 + $0x514] ss:$8 sps:$4 sm:$0xff]  }
  0x2c   : > { %724 = vmatpush1.bf16.msra.mxu1 %v10720_v30  ;;  %v3738_v30 = vshll.u32 %v11616_v10, 16  ;;  %v11709_v19 = vld [vmem:[%s11561_s6 + $0x78] sm:$0xff]  ;;  %v11712_v20 = vld [vmem:[%s11561_s6 + $0x80] sm:$0xff]  ;;  %v11204_v12 = vld [vmem:[%s14276_s3 + $0x48] sm:$0xff]  }
  0x2d   : > { %4406 = vmatpush1.bf16.msra.mxu0 %v10721_v31  ;;  %725 = vmatprep.subr.bf16.mxu1 %v10722_v32  ;;  %v3744_v31 = vshll.u32 %v11633_v22, 16  ;;  %v10760_v32 = vld [vmem:[%s14274_s1 + $0x4e4] ss:$8 sps:$4 sm:$0xff]  }
  0x2e   : > { %4407 = vmatprep.subr.bf16.mxu0 %v10724_v33  ;;  %v3709_v33 = vsel %vm11623_vm2, %v3704_v24, %v3708_v14  ;;  %v9032_v14 = vcombine.high %v11585_v52, %v11590_v54 }
  0x2f   : > { %v9477_v7 = vcombine.low %v11644_v28, %v3709_v33 }
  0x30   : > { %726 = vmatpush1.bf16.msra.mxu1 %v10726_v34  ;;  %v3727_v34 = vor.u32 %v3726_v25, %v3722_v21 }
  0x31   : > { %4408 = vmatpush1.bf16.msra.mxu0 %v10727_v35  ;;  %727 = vmatprep.subr.bf16.mxu1 %v10728_v36  ;;  %v3730_v35 = vshll.u32 %v9306_v15, 16  ;;  %v3748_v36 = vshrl.u32 %v11633_v22, 16 }
  0x32   : > { %4409 = vmatprep.subr.bf16.mxu0 %v10730_v37  ;;  %v10762_v37 = vld [vmem:[%s14274_s1 + $0xe0] ss:$8 sps:$4 sm:$0xff]  }
  0x34   : > { %728 = vmatpush1.bf16.msra.mxu1 %v10732_v38  ;;  %v10763_v38 = vld [vmem:[%s14274_s1 + $0x4e0] ss:$8 sps:$4 sm:$0xff]  }
  0x35   : > { %4410 = vmatpush1.bf16.msra.mxu0 %v10733_v39  ;;  %729 = vmatprep.subr.bf16.mxu1 %v10734_v40  ;;  %v9478_v39 = vcombine.high %v11644_v28, %v3709_v33  ;;  %v10764_v40 = vld [vmem:[%s14274_s1 + $0xf4] ss:$8 sps:$4 sm:$0xff]   ;;  %v3792_v28 = vshll.u32 %v11712_v20, 16 }
  0x36   : > { %4411 = vmatprep.subr.bf16.mxu0 %v10736_v41  ;;  %v3737_v41 = vrot.slane %v3735_v26, 4  ;;  %v3783_v26 = vshrl.u32 %v11709_v19, 16 }
  0x37   : > { %4423 = vmatprep.mubr.bf16.mxu0 %v9478_v39 }
  0x38   : > { %730 = vmatpush1.bf16.msra.mxu1 %v10738_v42  ;;  %v3740_v42 = vrot.slane %v3738_v30, 5  ;;  %v10784_v30 = vld [vmem:[%s14274_s1 + $0x524] ss:$8 sps:$4 sm:$0xff]  }
  0x39   : > { %4412 = vmatpush1.bf16.msra.mxu0 %v10739_v43  ;;  %731 = vmatprep.subr.bf16.mxu1 %v10740_v44  ;;  %v3746_v43 = vrot.slane %v3744_v31, 5  ;;  %v3750_v44 = vrot.slane %v3748_v36, 4  ;;  %v9031_v36 = vcombine.low %v11585_v52, %v11590_v54  ;;  %v3794_v54 = vrot.slane %v3792_v28, 5 }
  0x3a   : > { %4413 = vmatprep.subr.bf16.mxu0 %v10742_v45  ;;  %v10766_v45 = vld [vmem:[%s14274_s1 + $0x4f4] ss:$8 sps:$4 sm:$0xff]   ;;  %v3741_v57 = vor.u32 %v3740_v42, %v3737_v41  ;;  %v9315_v41 = vld [vmem:[%s11561_s6 + $0x88] sm:$0x11] }
  0x3b   : > { %v3751_v58 = vor.u32 %v3750_v44, %v3746_v43  ;;  %v11752_v42 = vld [vmem:[%s11561_s6 + $0x90] sm:$0xff] }
  0x3c   : > { %732 = vmatpush1.bf16.msra.mxu1 %v10744_v46  ;;  %v3718_v46 = vrot.slane %v3717_v29, 4  ;;  %v3742_v8 = vrot.slane %v3741_v57, 4  ;;  %v3796_v29 = vshrl.u32 %v11712_v20, 16  ;;  %v10818_v57 = vld [vmem:[%s14274_s1 + $0x110] ss:$8 sps:$4 sm:$0xff]  }
  0x3d   : > { %4414 = vmatpush1.bf16.msra.mxu0 %v10745_v47  ;;  %733 = vmatprep.subr.bf16.mxu1 %v10746_v49  ;;  %v9309_v47 = vld [vmem:[%s11561_s6 + $0x58] sm:$0x11]  ;;  %v3728_v49 = vrot.slane %v3727_v34, 4  ;;  %v3752_v9 = vrot.slane %v3751_v58, 4  ;;  %v10812_v34 = vld [vmem:[%s14274_s1 + $0x100] ss:$8 sps:$4 sm:$0xff]  }
  0x3e   : > { %4415 = vmatprep.subr.bf16.mxu0 %v10748_v50  ;;  %v3732_v50 = vrot.slane %v3730_v35, 5  ;;  %v3754_v59 = vshll.u32 %v9309_v47, 16  ;;  %v11720_v24 = vsel %vm11623_vm2, %v3742_v8, %v3746_v43  ;;  %v10814_v35 = vld [vmem:[%s14274_s1 + $0x104] ss:$8 sps:$4 sm:$0xff]   ;;  %v3785_v43 = vrot.slane %v3783_v26, 4  ;;  %v11812_v26 = vld [vmem:[%s11561_s6 + $0xb0] sm:$0xff] }
  0x3f   : > { %v3798_v44 = vrot.slane %v3796_v29, 4  ;;  %v3807_v58 = vshrl.u32 %v11752_v42, 16  ;;  %v10794_v8 = vld [vmem:[%s14274_s1 + $0x544] ss:$8 sps:$4 sm:$0xff]  }
  0x40   : > { %734 = vmatpush1.bf16.msra.mxu1 %v10750_v62  ;;  %v11682_v62 = vsel %vm11623_vm2, %v3718_v46, %v3722_v21  ;;  %v11690_v1 = vsel %vm11623_vm2, %v3728_v49, %v3732_v50  ;;  %v9312_v21 = vld [vmem:[%s11561_s6 + $0x70] sm:$0x11]  ;;  %v10836_v29 = vld [vmem:[%s14274_s1 + $0x144] ss:$8 sps:$4 sm:$0xff]  }
  0x41   : > { %4416 = vmatpush1.bf16.msra.mxu0 %v10751_v63  ;;  %735 = vmatprep.subr.bf16.mxu1 %v10752_v2  ;;  %v3759_v63 = vshrl.u32 %v11669_v53, 16  ;;  %v3762_v2 = vshll.u32 %v11669_v53, 16  ;;  %v9480_v48 = vcombine.high %v11682_v62, %v11690_v1  ;;  %v3778_v33 = vshll.u32 %v9312_v21, 16  ;;  %v10820_v49 = vld [vmem:[%s14274_s1 + $0x114] ss:$8 sps:$4 sm:$0xff]   ;;  %v11806_v21 = vld [vmem:[%s11561_s6 + $0xa8] sm:$0xff] }
  0x42   : > { %4417 = vmatprep.subr.bf16.mxu0 %v10754_v11  ;;  %v3756_v11 = vrot.slane %v3754_v59, 5  ;;  %v10789_v50 = vld [vmem:[%s14274_s1 + $0x534] ss:$8 sps:$4 sm:$0xff]   ;;  %v3810_v59 = vshll.u32 %v11752_v42, 16 }
  0x43   : > { %v3761_v15 = vrot.slane %v3759_v63, 4  ;;  %v3764_v16 = vrot.slane %v3762_v2, 5  ;;  %v3780_v47 = vrot.slane %v3778_v33, 5  ;;  %v3802_v63 = vshll.u32 %v9315_v41, 16 }
  0x44   : > { %736 = vmatpush1.bf16.msra.mxu1 %v10756_v17  ;;  %v3770_v17 = vrot.slane %v3768_v3, 5  ;;  %v11724_v25 = vsel %vm11623_vm2, %v3752_v9, %v3756_v11  ;;  %v10787_v3 = vld [vmem:[%s14274_s1 + $0x530] ss:$8 sps:$4 sm:$0xff]   ;;  %v10823_v9 = vld [vmem:[%s14274_s1 + $0x120] ss:$8 sps:$4 sm:$0xff]   ;;  %v3834_v33 = vshll.u32 %v11806_v21, 16  ;;  %v9035_v41 = vcombine.low %v11616_v10, %v11633_v22 }
  0x45   : > { %4418 = vmatpush1.bf16.msra.mxu0 %v10757_v23  ;;  %737 = vmatprep.subr.bf16.mxu1 %v10758_v27  ;;  %v10777_v23 = vld [vmem:[%s14274_s1 + $0x510] ss:$8 sps:$4 sm:$0xff]   ;;  %v3786_v27 = vshll.u32 %v11709_v19, 16  ;;  %v3765_v31 = vor.u32 %v3764_v16, %v3761_v15  ;;  %v9482_v39 = vcombine.high %v11720_v24, %v11724_v25  ;;  %v9481_v11 = vcombine.low %v11720_v24, %v11724_v25  ;;  %v10831_v25 = vld [vmem:[%s14274_s1 + $0x134] ss:$8 sps:$4 sm:$0xff]  }
  0x46   : > { %4419 = vmatprep.subr.bf16.mxu0 %v10760_v32  ;;  %v3775_v32 = vor.u32 %v3774_v18, %v3770_v17  ;;  %v10799_v18 = vld [vmem:[%s14274_s1 + $0x554] ss:$8 sps:$4 sm:$0xff]  }
  0x47   : > { %v3788_v52 = vrot.slane %v3786_v27, 5  ;;  %v10829_v27 = vld [vmem:[%s14274_s1 + $0x130] ss:$8 sps:$4 sm:$0xff]  }
  0x48   : > { %738 = vmatpush1.bf16.msra.mxu1 %v10762_v37  ;;  %v9479_v37 = vcombine.low %v11682_v62, %v11690_v1  ;;  %v3776_v46 = vrot.slane %v3775_v32, 4  ;;  %v3799_v62 = vor.u32 %v3798_v44, %v3794_v54  ;;  %v3831_v32 = vshrl.u32 %v11806_v21, 16  ;;  %v10802_v44 = vld [vmem:[%s14274_s1 + $0x560] ss:$8 sps:$4 sm:$0xff]  }
  0x49   : > { %4420 = vmatpush1.bf16.msra.mxu0 %v10763_v38  ;;  %739 = vmatprep.subr.bf16.mxu1 %v10764_v40  ;;  %v9034_v38 = vcombine.high %v11598_v61, %v11610_v5  ;;  %v10782_v40 = vld [vmem:[%s14274_s1 + $0x520] ss:$8 sps:$4 sm:$0xff]  }
  0x4a   : > { %4421 = vmatprep.subr.bf16.mxu0 %v10766_v45  ;;  %v3766_v45 = vrot.slane %v3765_v31, 4  ;;  %v11777_v2 = vsel %vm11623_vm2, %v3776_v46, %v3780_v47  ;;  %v3800_v16 = vrot.slane %v3799_v62, 4  ;;  %v9038_v46 = vcombine.high %v11669_v53, %v11672_v55  ;;  %v10842_v62 = vld [vmem:[%s14274_s1 + $0x154] ss:$8 sps:$4 sm:$0xff]  }
  0x4c   : > { %740 = vmatpush1.bf16.msra.mxu1 %v10768_v56  ;;  %v11761_v56 = vld [vmem:[%s11561_s6 + $0x98] sm:$0xff]  ;;  %v11773_v1 = vsel %vm11623_vm2, %v3766_v45, %v3770_v17  ;;  %v3804_v17 = vrot.slane %v3802_v63, 5  ;;  %v11850_v45 = vld [vmem:[%s11561_s6 + $0xc0] sm:$0xff] }
  0x4d   : > { %4422 = vmatpush1.bf16.msra.mxu0 %v10769_v60  ;;  %1674 = vmatprep.subr.bf16.mxu1 %v10814_v35  ;;  %v3789_v60 = vor.u32 %v3788_v52, %v3785_v43  ;;  %v3816_v4 = vshll.u32 %v11761_v56, 16  ;;  %v9483_v43 = vcombine.low %v11773_v1, %v11777_v2  ;;  %v10840_v63 = vld [vmem:[%s14274_s1 + $0x150] ss:$8 sps:$4 sm:$0xff]  }
  0x4e   : > { %5225 = vmatprep.subr.bf16.mxu0 %v10774_v0  ;;  %v10825_v0 = vld [vmem:[%s14274_s1 + $0x124] ss:$8 sps:$4 sm:$0xff]  }
  0x4f   : > { %742 = vmatmul.mubr.bf16.vlgmr.msra.gmra.mrb[0].mxu1 %v9029_v6  ;;  %v3820_v6 = vshrl.u32 %v11761_v56, 16  ;;  %v3790_v15 = vrot.slane %v3789_v60, 4 }
  0x50   : > { %4424 = vmatmul.mubr.bf16.vlgmr.msra.gmra.mrb[0].mxu0 %v9477_v7  ;;  %751 = vmatprep.mubr.bf16.mxu1 %v9032_v14  ;;  %v9033_v7 = vcombine.low %v11598_v61, %v11610_v5  ;;  %v10792_v61 = vld [vmem:[%s14274_s1 + $0x540] ss:$8 sps:$4 sm:$0xff]   ;;  %v3809_v14 = vrot.slane %v3807_v58, 4 }
  0x51   : > { %5226 = vmatpush1.bf16.msra.mxu0 %v10772_v13  ;;  %4433 = vmatprep.mubr.bf16.mxu0 %v9480_v48  ;;  %v9036_v13 = vcombine.high %v11616_v10, %v11633_v22  ;;  %v9318_v5 = vld [vmem:[%s11561_s6 + $0xa0] sm:$0x11]  ;;  %v3812_v48 = vrot.slane %v3810_v59, 5  ;;  %v3822_v24 = vrot.slane %v3820_v6, 4  ;;  %v3836_v10 = vrot.slane %v3834_v33, 5  ;;  %v11857_v22 = vld [vmem:[%s11561_s6 + $0xc8] sm:$0xff] }
  0x52   : > { %5227 = vmatprep.subr.bf16.mxu0 %v10779_v51  ;;  %1675 = vmatpush1.bf16.msra.mxu1 %v10812_v34  ;;  %v9484_v51 = vcombine.high %v11773_v1, %v11777_v2  ;;  %v3826_v31 = vshll.u32 %v9318_v5, 16  ;;  %v11828_v34 = vsel %vm11623_vm2, %v3800_v16, %v3804_v17  ;;  %v10847_v1 = vld [vmem:[%s14274_s1 + $0x164] ss:$8 sps:$4 sm:$0xff]   ;;  %v3858_v6 = vshll.u32 %v11850_v45, 16  ;;  %v9324_v16 = vld [vmem:[%s11561_s6 + $0xd0] sm:$0x11] }
  0x53   : > { %1676 = vmatprep.subr.bf16.mxu1 %v10820_v49  ;;  %v3813_v28 = vor.u32 %v3812_v48, %v3809_v14  ;;  %v3833_v49 = vrot.slane %v3831_v32, 4  ;;  %v10817_v5 = vld [vmem:[%s14274_s1 + $0x584] ss:$8 sps:$4 sm:$0xff]   ;;  %v10845_v14 = vld [vmem:[%s14274_s1 + $0x160] ss:$8 sps:$4 sm:$0xff]   ;;  %v9037_v48 = vcombine.low %v11669_v53, %v11672_v55 }
  0x54   : > { %v3828_v58 = vrot.slane %v3826_v31, 5  ;;  %v10815_v17 = vld [vmem:[%s14274_s1 + $0x580] ss:$8 sps:$4 sm:$0xff]   ;;  %v10828_v33 = vld [vmem:[%s14274_s1 + $0x594] ss:$8 sps:$4 sm:$0xff]  }
  0x55   : > { %5228 = vmatpush1.bf16.msra.mxu0 %v10777_v23  ;;  %v3818_v23 = vrot.slane %v3816_v4, 5  ;;  %v3814_v52 = vrot.slane %v3813_v28, 4  ;;  %v3837_v2 = vor.u32 %v3836_v10, %v3833_v49  ;;  %v3855_v4 = vshrl.u32 %v11850_v45, 16  ;;  %v10856_v49 = vld [vmem:[%s14274_s1 + $0x180] ss:$8 sps:$4 sm:$0xff]  }
  0x56   : > { %5229 = vmatprep.subr.bf16.mxu0 %v10784_v30  ;;  %1677 = vmatpush1.bf16.msra.mxu1 %v10818_v57  ;;  %v11822_v30 = vsel %vm11623_vm2, %v3790_v15, %v3794_v54  ;;  %v9321_v54 = vld [vmem:[%s11561_s6 + $0xb8] sm:$0x11]  ;;  %v9040_v15 = vcombine.high %v11709_v19, %v11712_v20 }
  0x57   : > { %752 = vmatmul.mubr.bf16.gmra.mrb[4].mxu1 %v9031_v36  ;;  %1678 = vmatprep.subr.bf16.mxu1 %v10825_v0  ;;  %v3823_v35 = vor.u32 %v3822_v24, %v3818_v23  ;;  %v10797_v36 = vld [vmem:[%s14274_s1 + $0x550] ss:$8 sps:$4 sm:$0xff]   ;;  %v9486_v47 = vcombine.high %v11822_v30, %v11828_v34  ;;  %v11870_v0 = vsel %vm11623_vm2, %v3814_v52, %v3818_v23  ;;  %v3857_v24 = vrot.slane %v3855_v4, 4  ;;  %v10850_v4 = vld [vmem:[%s14274_s1 + $0x5b4] ss:$8 sps:$4 sm:$0xff]  }
  0x58   : > { %4434 = vmatmul.mubr.bf16.gmra.mrb[4].mxu0 %v9479_v37  ;;  %761 = vmatprep.mubr.bf16.mxu1 %v9034_v38  ;;  %v3840_v37 = vshll.u32 %v11812_v26, 16  ;;  %v3844_v38 = vshrl.u32 %v11812_v26, 16  ;;  %v3838_v53 = vrot.slane %v3837_v2, 4 }
  0x59   : > { %4443 = vmatprep.mubr.bf16.mxu0 %v9482_v39  ;;  %5230 = vmatpush1.bf16.msra.mxu0 %v10782_v40  ;;  %v10804_v39 = vld [vmem:[%s14274_s1 + $0x564] ss:$8 sps:$4 sm:$0xff]   ;;  %v10834_v40 = vld [vmem:[%s14274_s1 + $0x140] ss:$8 sps:$4 sm:$0xff]   ;;  %v3824_v57 = vrot.slane %v3823_v35, 4 }
  0x5a   : > { %5231 = vmatprep.subr.bf16.mxu0 %v10789_v50  ;;  %1679 = vmatpush1.bf16.msra.mxu1 %v10823_v9  ;;  %v10809_v50 = vld [vmem:[%s14274_s1 + $0x574] ss:$8 sps:$4 sm:$0xff]   ;;  %v3842_v59 = vrot.slane %v3840_v37, 5  ;;  %v3846_v60 = vrot.slane %v3844_v38, 4  ;;  %v3864_v9 = vshll.u32 %v11857_v22, 16 }
  0x5b   : > { %1680 = vmatprep.subr.bf16.mxu1 %v10831_v25  ;;  %v3860_v25 = vrot.slane %v3858_v6, 5  ;;  %v10858_v37 = vld [vmem:[%s14274_s1 + $0x184] ss:$8 sps:$4 sm:$0xff]   ;;  %v10862_v6 = vld [vmem:[%s14274_s1 + $0x190] ss:$8 sps:$4 sm:$0xff]  }
  0x5c   : > { %v11910_v28 = vrot.slane %v3864_v9, 5 }
  0x5d   : > { %5232 = vmatpush1.bf16.msra.mxu0 %v10787_v3  ;;  %v3850_v3 = vshll.u32 %v9321_v54, 16  ;;  %v3861_v38 = vor.u32 %v3860_v25, %v3857_v24  ;;  %v10826_v54 = vld [vmem:[%s14274_s1 + $0x590] ss:$8 sps:$4 sm:$0xff]   ;;  %v10861_v24 = vld [vmem:[%s14274_s1 + $0x5c4] ss:$8 sps:$4 sm:$0xff]  }
  0x5e   : > { %5233 = vmatprep.subr.bf16.mxu0 %v10794_v8  ;;  %1681 = vmatpush1.bf16.msra.mxu1 %v10829_v27  ;;  %v3847_v8 = vor.u32 %v3846_v60, %v3842_v59  ;;  %v11908_v27 = vld [vmem:[%s11561_s6 + $0xe0] sm:$0xff] }
  0x5f   : > { %762 = vmatmul.mubr.bf16.gmra.mrb[8].mxu1 %v9033_v7  ;;  %1682 = vmatprep.subr.bf16.mxu1 %v10836_v29  ;;  %v11879_v7 = vsel %vm11623_vm2, %v3824_v57, %v3828_v58  ;;  %v3852_v23 = vrot.slane %v3850_v3, 5  ;;  %v3888_v35 = vshll.u32 %v11908_v27, 16  ;;  %v10864_v3 = vld [vmem:[%s14274_s1 + $0x194] ss:$8 sps:$4 sm:$0xff]   ;;  %v10867_v25 = vld [vmem:[%s14274_s1 + $0x1a0] ss:$8 sps:$4 sm:$0xff]  }
  0x60   : > { %4444 = vmatmul.mubr.bf16.gmra.mrb[8].mxu0 %v9481_v11  ;;  %771 = vmatprep.mubr.bf16.mxu1 %v9036_v13  ;;  %v3868_v11 = vshrl.u32 %v11857_v22, 16  ;;  %v10807_v13 = vld [vmem:[%s14274_s1 + $0x570] ss:$8 sps:$4 sm:$0xff]   ;;  %v3848_v55 = vrot.slane %v3847_v8, 4 }
  0x61   : > { %4453 = vmatprep.mubr.bf16.mxu0 %v9484_v51  ;;  %5234 = vmatpush1.bf16.msra.mxu0 %v10792_v61  ;;  %v11887_v61 = vld [vmem:[%s11561_s6 + $0xd8] sm:$0xff]  ;;  %v9485_v51 = vcombine.low %v11822_v30, %v11828_v34  ;;  %v11951_v57 = vrot.slane %v3888_v35, 5 }
  0x62   : > { %5235 = vmatprep.subr.bf16.mxu0 %v10799_v18  ;;  %1683 = vmatpush1.bf16.msra.mxu1 %v10834_v40  ;;  %v9488_v18 = vcombine.high %v11870_v0, %v11879_v7  ;;  %v3870_v29 = vrot.slane %v3868_v11, 4  ;;  %v10853_v30 = vld [vmem:[%s14274_s1 + $0x174] ss:$8 sps:$4 sm:$0xff]   ;;  %v3879_v31 = vshrl.u32 %v11887_v61, 16  ;;  %v3882_v32 = vshll.u32 %v11887_v61, 16 }
  0x63   : > { %1684 = vmatprep.subr.bf16.mxu1 %v10842_v62  ;;  %v10851_v34 = vld [vmem:[%s14274_s1 + $0x170] ss:$8 sps:$4 sm:$0xff]   ;;  %v9327_v40 = vld [vmem:[%s11561_s6 + $0xe8] sm:$0x11]  ;;  %v10875_v35 = vld [vmem:[%s14274_s1 + $0x1b4] ss:$8 sps:$4 sm:$0xff]  }
  0x64   : > { %v3871_v52 = vor.u32 %v3870_v29, %v11910_v28  ;;  %v3881_v10 = vrot.slane %v3879_v31, 4  ;;  %v11958_v62 = vld [vmem:[%s11561_s6 + $0xf0] sm:$0xff]  ;;  %v3898_v2 = vshll.u32 %v9327_v40, 16 }
  0x65   : > { %5236 = vmatpush1.bf16.msra.mxu0 %v10797_v36  ;;  %v3892_v36 = vshrl.u32 %v11908_v27, 16  ;;  %v3903_v11 = vshrl.u32 %v11958_v62, 16 }
  0x66   : > { %5237 = vmatprep.subr.bf16.mxu0 %v10804_v39  ;;  %1685 = vmatpush1.bf16.msra.mxu1 %v10840_v63  ;;  %v3874_v39 = vshll.u32 %v9324_v16, 16  ;;  %v11961_v63 = vld [vmem:[%s11561_s6 + $0xf8] sm:$0xff]  ;;  %v9041_v16 = vcombine.low %v11752_v42, %v11761_v56 }
  0x67   : > { %772 = vmatmul.mubr.bf16.gmra.mrb[12].mxu1 %v9035_v41  ;;  %1686 = vmatprep.subr.bf16.mxu1 %v10847_v1  ;;  %v11931_v41 = vsel %vm11623_vm2, %v3838_v53, %v3842_v59  ;;  %v3894_v58 = vrot.slane %v3892_v36, 4  ;;  %v3862_v59 = vrot.slane %v3861_v38, 4  ;;  %v3872_v1 = vrot.slane %v3871_v52, 4  ;;  %v10872_v36 = vld [vmem:[%s14274_s1 + $0x5d4] ss:$8 sps:$4 sm:$0xff]  }
  0x68   : > { %4454 = vmatmul.mubr.bf16.gmra.mrb[12].mxu0 %v9483_v43  ;;  %781 = vmatprep.mubr.bf16.mxu1 %v9038_v46  ;;  %v11935_v43 = vsel %vm11623_vm2, %v3848_v55, %v3852_v23  ;;  %v9487_v46 = vcombine.low %v11870_v0, %v11879_v7  ;;  %v3876_v60 = vrot.slane %v3874_v39, 5  ;;  %v10837_v0 = vld [vmem:[%s14274_s1 + $0x5a0] ss:$8 sps:$4 sm:$0xff]   ;;  %v10869_v7 = vld [vmem:[%s14274_s1 + $0x1a4] ss:$8 sps:$4 sm:$0xff]  }
  0x69   : > { %4463 = vmatprep.mubr.bf16.mxu0 %v9486_v47  ;;  %5238 = vmatpush1.bf16.msra.mxu0 %v10802_v44  ;;  %v9039_v44 = vcombine.low %v11709_v19, %v11712_v20  ;;  %v10839_v47 = vld [vmem:[%s14274_s1 + $0x5a4] ss:$8 sps:$4 sm:$0xff]   ;;  %v9042_v19 = vcombine.high %v11752_v42, %v11761_v56  ;;  %v9490_v20 = vcombine.high %v11931_v41, %v11935_v43  ;;  %v3905_v42 = vrot.slane %v3903_v11, 4  ;;  %v10894_v11 = vld [vmem:[%s14274_s1 + $0x5f4] ss:$8 sps:$4 sm:$0xff]  }
  0x6a   : > { %5239 = vmatprep.subr.bf16.mxu0 %v10809_v50  ;;  %1687 = vmatpush1.bf16.msra.mxu1 %v10845_v14  ;;  %v3884_v50 = vrot.slane %v3882_v32, 5  ;;  %v3895_v9 = vor.u32 %v3894_v58, %v11951_v57  ;;  %v3916_v14 = vshrl.u32 %v11961_v63, 16  ;;  %v9330_v23 = vld [vmem:[%s11561_s6 + $0x100] sm:$0x11]  ;;  %v12011_v32 = vld [vmem:[%s11561_s6 + $0x108] sm:$0xff] }
  0x6b   : > { %1688 = vmatprep.subr.bf16.mxu1 %v10853_v30  ;;  %v10883_v58 = vld [vmem:[%s14274_s1 + $0x5e4] ss:$8 sps:$4 sm:$0xff]  }
  0x6c   : > { %v3885_v8 = vor.u32 %v3884_v50, %v3881_v10  ;;  %v3896_v55 = vrot.slane %v3895_v9, 4  ;;  %v3918_v31 = vrot.slane %v3916_v14, 4  ;;  %v9043_v10 = vcombine.low %v11806_v21, %v11812_v26  ;;  %v10884_v9 = vld [vmem:[%s14274_s1 + $0x1d0] ss:$8 sps:$4 sm:$0xff]   ;;  %v10891_v14 = vld [vmem:[%s14274_s1 + $0x1e4] ss:$8 sps:$4 sm:$0xff]  }
  0x6d   : > { %5240 = vmatpush1.bf16.msra.mxu0 %v10807_v13  ;;  %v3906_v13 = vshll.u32 %v11958_v62, 16  ;;  %v9046_v50 = vcombine.high %v11850_v45, %v11857_v22 }
  0x6e   : > { %5241 = vmatprep.subr.bf16.mxu0 %v10817_v5  ;;  %1689 = vmatpush1.bf16.msra.mxu1 %v10851_v34  ;;  %v3912_v5 = vshll.u32 %v11961_v63, 16  ;;  %v3886_v53 = vrot.slane %v3885_v8, 4  ;;  %v10859_v34 = vld [vmem:[%s14274_s1 + $0x5c0] ss:$8 sps:$4 sm:$0xff]   ;;  %v10886_v8 = vld [vmem:[%s14274_s1 + $0x1d4] ss:$8 sps:$4 sm:$0xff]  }
  0x6f   : > { %782 = vmatmul.mubr.bf16.gmra.mrb[16].mxu1 %v9037_v48  ;;  %1690 = vmatprep.subr.bf16.mxu1 %v10858_v37  ;;  %v11986_v48 = vsel %vm11623_vm2, %v3862_v59, %v11910_v28  ;;  %v3908_v56 = vrot.slane %v3906_v13, 5  ;;  %v9044_v28 = vcombine.high %v11806_v21, %v11812_v26  ;;  %v10873_v37 = vld [vmem:[%s14274_s1 + $0x1b0] ss:$8 sps:$4 sm:$0xff]  }
  0x70   : > { %4464 = vmatmul.mubr.bf16.gmra.mrb[16].mxu0 %v9485_v51  ;;  %791 = vmatprep.mubr.bf16.mxu1 %v9040_v15  ;;  %v11990_v51 = vsel %vm11623_vm2, %v3872_v1, %v3876_v60  ;;  %v10848_v15 = vld [vmem:[%s14274_s1 + $0x5b0] ss:$8 sps:$4 sm:$0xff]   ;;  %v3914_v30 = vrot.slane %v3912_v5, 5  ;;  %v12031_v38 = vsel %vm11623_vm2, %v3886_v53, %v11951_v57  ;;  %v10878_v57 = vld [vmem:[%s14274_s1 + $0x1c0] ss:$8 sps:$4 sm:$0xff]  }
  0x71   : > { %4473 = vmatprep.mubr.bf16.mxu0 %v9488_v18  ;;  %5242 = vmatpush1.bf16.msra.mxu0 %v10815_v17  ;;  %v9489_v17 = vcombine.low %v11931_v41, %v11935_v43  ;;  %v3900_v18 = vrot.slane %v3898_v2, 5  ;;  %v9492_v29 = vcombine.high %v11986_v48, %v11990_v51  ;;  %v3909_v40 = vor.u32 %v3908_v56, %v3905_v42  ;;  %v10880_v43 = vld [vmem:[%s14274_s1 + $0x1c4] ss:$8 sps:$4 sm:$0xff]   ;;  %v9333_v60 = vld [vmem:[%s11561_s6 + $0x118] sm:$0x11] }
  0x72   : > { %5243 = vmatprep.subr.bf16.mxu0 %v10828_v33  ;;  %1691 = vmatpush1.bf16.msra.mxu1 %v10856_v49  ;;  %v12014_v33 = vld [vmem:[%s11561_s6 + $0x110] sm:$0xff]  ;;  %v3922_v41 = vshll.u32 %v9330_v23, 16  ;;  %v3919_v52 = vor.u32 %v3918_v31, %v3914_v30  ;;  %v3946_v23 = vshll.u32 %v9333_v60, 16  ;;  %v10900_v53 = vld [vmem:[%s14274_s1 + $0x604] ss:$8 sps:$4 sm:$0xff]  }
  0x73   : > { %1692 = vmatprep.subr.bf16.mxu1 %v10864_v3  ;;  %v12035_v39 = vsel %vm11623_vm2, %v3896_v55, %v3900_v18  ;;  %v3940_v49 = vshrl.u32 %v12014_v33, 16  ;;  %v3910_v26 = vrot.slane %v3909_v40, 4  ;;  %v12063_v3 = vld [vmem:[%s11561_s6 + $0x120] sm:$0xff]  ;;  %v9045_v55 = vcombine.low %v11850_v45, %v11857_v22  ;;  %v9336_v31 = vld [vmem:[%s11561_s6 + $0x130] sm:$0x11] }
  0x74   : > { %v9494_v21 = vcombine.high %v12031_v38, %v12035_v39  ;;  %v3920_v59 = vrot.slane %v3919_v52, 4  ;;  %v3951_v13 = vshrl.u32 %v12063_v3, 16  ;;  %v3954_v5 = vshll.u32 %v12063_v3, 16  ;;  %v10897_v22 = vld [vmem:[%s14274_s1 + $0x1f4] ss:$8 sps:$4 sm:$0xff]  }
  0x75   : > { %5244 = vmatpush1.bf16.msra.mxu0 %v10826_v54  ;;  %v3927_v54 = vshrl.u32 %v12011_v32, 16  ;;  %v9493_v42 = vcombine.low %v12031_v38, %v12035_v39  ;;  %v3948_v45 = vrot.slane %v3946_v23, 5  ;;  %v12117_v38 = vld [vmem:[%s11561_s6 + $0x140] sm:$0xff]  ;;  %v10895_v39 = vld [vmem:[%s14274_s1 + $0x1f0] ss:$8 sps:$4 sm:$0xff]  }
  0x76   : > { %5245 = vmatprep.subr.bf16.mxu0 %v10839_v47  ;;  %1693 = vmatpush1.bf16.msra.mxu1 %v10862_v6  ;;  %v10870_v47 = vld [vmem:[%s14274_s1 + $0x5d0] ss:$8 sps:$4 sm:$0xff]   ;;  %v3942_v6 = vrot.slane %v3940_v49, 4  ;;  %v3953_v56 = vrot.slane %v3951_v13, 4  ;;  %v3984_v49 = vshll.u32 %v12117_v38, 16 }
  0x77   : > { %792 = vmatmul.mubr.bf16.gmra.mrb[20].mxu1 %v9039_v44  ;;  %1694 = vmatprep.subr.bf16.mxu1 %v10869_v7  ;;  %v3930_v44 = vshll.u32 %v12011_v32, 16  ;;  %v10881_v7 = vld [vmem:[%s14274_s1 + $0x5e0] ss:$8 sps:$4 sm:$0xff]  }
  0x78   : > { %4474 = vmatmul.mubr.bf16.gmra.mrb[20].mxu0 %v9487_v46  ;;  %801 = vmatprep.mubr.bf16.mxu1 %v9042_v19  ;;  %v3936_v46 = vshll.u32 %v12014_v33, 16  ;;  %v9491_v19 = vcombine.low %v11986_v48, %v11990_v51  ;;  %v12087_v48 = vsel %vm11623_vm2, %v3910_v26, %v3914_v30 }
  0x79   : > { %4483 = vmatprep.mubr.bf16.mxu0 %v9490_v20  ;;  %5246 = vmatpush1.bf16.msra.mxu0 %v10837_v0  ;;  %v3924_v20 = vrot.slane %v3922_v41, 5  ;;  %v3929_v0 = vrot.slane %v3927_v54, 4  ;;  %v3932_v1 = vrot.slane %v3930_v44, 5 }
  0x7a   : > { %5247 = vmatprep.subr.bf16.mxu0 %v10850_v4  ;;  %1695 = vmatpush1.bf16.msra.mxu1 %v10867_v25  ;;  %v3938_v2 = vrot.slane %v3936_v46, 5  ;;  %v12066_v4 = vld [vmem:[%s11561_s6 + $0x128] sm:$0xff] }
  0x7b   : > { %1696 = vmatprep.subr.bf16.mxu1 %v10875_v35  ;;  %v3960_v51 = vshll.u32 %v12066_v4, 16  ;;  %v10889_v25 = vld [vmem:[%s14274_s1 + $0x1e0] ss:$8 sps:$4 sm:$0xff]  }
  0x7c   : > { %v3943_v18 = vor.u32 %v3942_v6, %v3938_v2  ;;  %v12137_v6 = vld [vmem:[%s11561_s6 + $0x150] sm:$0xff] }
  0x7d   : > { %5248 = vmatpush1.bf16.msra.mxu0 %v10848_v15  ;;  %v3964_v15 = vshrl.u32 %v12066_v4, 16  ;;  %v3999_v13 = vshrl.u32 %v12137_v6, 16 }
  0x7e   : > { %5249 = vmatprep.subr.bf16.mxu0 %v10861_v24  ;;  %1697 = vmatpush1.bf16.msra.mxu1 %v10873_v37  ;;  %v10892_v24 = vld [vmem:[%s14274_s1 + $0x5f0] ss:$8 sps:$4 sm:$0xff]   ;;  %v3944_v40 = vrot.slane %v3943_v18, 4 }
  0x7f   : > { %802 = vmatmul.mubr.bf16.gmra.mrb[24].mxu1 %v9041_v16  ;;  %1698 = vmatprep.subr.bf16.mxu1 %v10880_v43  ;;  %v3925_v16 = vsel %vm11623_vm2, %v3920_v59, %v3924_v20  ;;  %v3966_v35 = vrot.slane %v3964_v15, 4  ;;  %v3970_v43 = vshll.u32 %v9336_v31, 16  ;;  %v9049_v15 = vcombine.low %v11958_v62, %v11961_v63 }
  0x80   : > { %4484 = vmatmul.mubr.bf16.gmra.mrb[24].mxu0 %v9489_v17  ;;  %811 = vmatprep.mubr.bf16.mxu1 %v9044_v28  ;;  %v3933_v17 = vor.u32 %v3932_v1, %v3929_v0  ;;  %v3956_v28 = vrot.slane %v3954_v5, 5  ;;  %v9496_v30 = vcombine.high %v12087_v48, %v3925_v16  ;;  %v9339_v0 = vld [vmem:[%s11561_s6 + $0x148] sm:$0x11]  ;;  %v3986_v1 = vrot.slane %v3984_v49, 5 }
  0x81   : > { %4493 = vmatprep.mubr.bf16.mxu0 %v9492_v29  ;;  %5250 = vmatpush1.bf16.msra.mxu0 %v10859_v34  ;;  %v9048_v29 = vcombine.high %v11887_v61, %v11908_v27  ;;  %v3962_v34 = vrot.slane %v3960_v51, 5 }
  0x82   : > { %5251 = vmatprep.subr.bf16.mxu0 %v10872_v36  ;;  %1699 = vmatpush1.bf16.msra.mxu1 %v10878_v57  ;;  %v12111_v36 = vld [vmem:[%s11561_s6 + $0x138] sm:$0xff]  ;;  %v3934_v37 = vrot.slane %v3933_v17, 4  ;;  %v3957_v41 = vor.u32 %v3956_v28, %v3953_v56  ;;  %v9495_v57 = vcombine.low %v12087_v48, %v3925_v16  ;;  %v9052_v17 = vcombine.high %v12011_v32, %v12014_v33 }
  0x83   : > { %1700 = vmatprep.subr.bf16.mxu1 %v10886_v8  ;;  %v3967_v52 = vor.u32 %v3966_v35, %v3962_v34  ;;  %v3975_v54 = vshrl.u32 %v12111_v36, 16  ;;  %v3978_v44 = vshll.u32 %v12111_v36, 16 }
  0x84   : > { %v3939_v46 = vsel %vm11623_vm2, %v3934_v37, %v3938_v2 }
  0x85   : > { %5252 = vmatpush1.bf16.msra.mxu0 %v10870_v47  ;;  %v3949_v47 = vsel %vm11623_vm2, %v3944_v40, %v3948_v45  ;;  %v3968_v20 = vrot.slane %v3967_v52, 4  ;;  %v3977_v59 = vrot.slane %v3975_v54, 4  ;;  %v3980_v60 = vrot.slane %v3978_v44, 5 }
  0x86   : > { %5253 = vmatprep.subr.bf16.mxu0 %v10883_v58  ;;  %1701 = vmatpush1.bf16.msra.mxu1 %v10884_v9  ;;  %v9050_v58 = vcombine.high %v11958_v62, %v11961_v63  ;;  %v9498_v26 = vcombine.high %v3939_v46, %v3949_v47  ;;  %v9497_v16 = vcombine.low %v3939_v46, %v3949_v47  ;;  %v9345_v46 = vld [vmem:[%s11561_s6 + $0x178] sm:$0x11] }
  0x87   : > { %812 = vmatmul.mubr.bf16.gmra.mrb[28].mxu1 %v9043_v10  ;;  %1702 = vmatprep.subr.bf16.mxu1 %v10891_v14  ;;  %v3988_v10 = vshrl.u32 %v12117_v38, 16  ;;  %v3981_v9 = vor.u32 %v3980_v60, %v3977_v59  ;;  %v4002_v14 = vshll.u32 %v12137_v6, 16  ;;  %v9054_v54 = vcombine.high %v12063_v3, %v12066_v4 }
  0x88   : > { %4494 = vmatmul.mubr.bf16.gmra.mrb[28].mxu0 %v9491_v19  ;;  %821 = vmatprep.mubr.bf16.mxu1 %v9046_v50  ;;  %v9047_v50 = vcombine.low %v11887_v61, %v11908_v27  ;;  %v3958_v19 = vrot.slane %v3957_v41, 4  ;;  %v10924_v61 = vld [vmem:[%s14274_s1 + $0x204] ss:$8 sps:$4 sm:$0xff]  }
  0x89   : > { %4503 = vmatprep.mubr.bf16.mxu0 %v9494_v21  ;;  %5254 = vmatpush1.bf16.msra.mxu0 %v10881_v7  ;;  %v3972_v21 = vrot.slane %v3970_v43, 5  ;;  %v3990_v2 = vrot.slane %v3988_v10, 4  ;;  %v12140_v7 = vld [vmem:[%s11561_s6 + $0x158] sm:$0xff]  ;;  %v3982_v23 = vrot.slane %v3981_v9, 4 }
  0x8a   : > { %5255 = vmatprep.subr.bf16.mxu0 %v10894_v11  ;;  %1703 = vmatpush1.bf16.msra.mxu1 %v10889_v25  ;;  %v3963_v27 = vsel %vm11623_vm2, %v3958_v19, %v3962_v34  ;;  %v3994_v11 = vshll.u32 %v9339_v0, 16  ;;  %v4008_v48 = vshll.u32 %v12140_v7, 16  ;;  %v4012_v51 = vshrl.u32 %v12140_v7, 16  ;;  %v9347_v19 = vld [vmem:[%s11561_s6 + $0x188] sm:$0xff] }
  0x8b   : > { %1704 = vmatprep.subr.bf16.mxu1 %v10897_v22  ;;  %v3973_v8 = vsel %vm11623_vm2, %v3968_v20, %v3972_v21  ;;  %v3991_v5 = vor.u32 %v3990_v2, %v3986_v1  ;;  %v4001_v25 = vrot.slane %v3999_v13, 4  ;;  %v3987_v31 = vsel %vm11623_vm2, %v3982_v23, %v3986_v1 }
  0x8c   : > { %v9500_v18 = vcombine.high %v3963_v27, %v3973_v8  ;;  %v4010_v56 = vrot.slane %v4008_v48, 5  ;;  %v4014_v28 = vrot.slane %v4012_v51, 4  ;;  %v9499_v41 = vcombine.low %v3963_v27, %v3973_v8  ;;  %v9348_v48 = vld [vmem:[%s11561_s6 + $0x190] sm:$0x11] }
  0x8d   : > { %5256 = vmatpush1.bf16.msra.mxu0 %v10892_v24  ;;  %v3996_v24 = vrot.slane %v3994_v11, 5  ;;  %v4056_v0 = vshll.u32 %v9347_v19, 16  ;;  %v4060_v1 = vshrl.u32 %v9347_v19, 16  ;;  %v9053_v2 = vcombine.low %v12063_v3, %v12066_v4 }
  0x8e   : > { %6015 = vmatprep.subr.bf16.mxu0 %v10900_v53  ;;  %1705 = vmatpush1.bf16.msra.mxu1 %v10895_v39  ;;  %v12158_v53 = vld [vmem:[%s11561_s6 + $0x168] sm:$0xff]  ;;  %v4015_v45 = vor.u32 %v4014_v28, %v4010_v56  ;;  %v9051_v39 = vcombine.low %v12011_v32, %v12014_v33  ;;  %v9056_v27 = vcombine.high %v12111_v36, %v12117_v38 }
  0x8f   : > { %822 = vmatmul.mubr.bf16.gmra.mrb[32].mxu1 %v9045_v55  ;;  %2511 = vmatprep.subr.bf16.mxu1 %v10924_v61  ;;  %v3992_v55 = vrot.slane %v3991_v5, 4  ;;  %v4023_v62 = vshrl.u32 %v12158_v53, 16  ;;  %v4026_v63 = vshll.u32 %v12158_v53, 16  ;;  %v4058_v51 = vrot.slane %v4056_v0, 5 }
  0x90   : > { %4504 = vmatmul.mubr.bf16.gmra.mrb[32].mxu0 %v9493_v42  ;;  %831 = vmatprep.mubr.bf16.mxu1 %v9048_v29  ;;  %v4004_v42 = vrot.slane %v4002_v14, 5  ;;  %v12161_v29 = vld [vmem:[%s11561_s6 + $0x170] sm:$0xff]  ;;  %v9055_v28 = vcombine.low %v12111_v36, %v12117_v38  ;;  %v11221_v38 = vld [vmem:[%s11561_s6 + $0x20] sm:$0xff]  ;;  %v9057_v19 = vcombine.low %v12137_v6, %v12140_v7 }
  0x91   : > { %4513 = vmatprep.mubr.bf16.mxu0 %v9496_v30  ;;  %v9342_v30 = vld [vmem:[%s11561_s6 + $0x160] sm:$0x11]  ;;  %v4032_v34 = vshll.u32 %v12161_v29, 16  ;;  %v4036_v35 = vshrl.u32 %v12161_v29, 16  ;;  %v3997_v37 = vsel %vm11623_vm2, %v3992_v55, %v3996_v24  ;;  %v4025_v43 = vrot.slane %v4023_v62, 4  ;;  %v11219_v55 = vld [vmem:[%s11561_s6 + $0x8] sm:$0xff] }
  0x92   : > { %v4005_v40 = vor.u32 %v4004_v42, %v4001_v25  ;;  %v4018_v22 = vshll.u32 %v9342_v30, 16  ;;  %v4028_v52 = vrot.slane %v4026_v63, 5  ;;  %v9502_v44 = vcombine.high %v3987_v31, %v3997_v37 }
  0x93   : > { %v4034_v47 = vrot.slane %v4032_v34, 5  ;;  %v4038_v49 = vrot.slane %v4036_v35, 4  ;;  %v9501_v61 = vcombine.low %v3987_v31, %v3997_v37  ;;  %v979_v42 = vshll.u32 %v11219_v55, 16 }
  0x94   : > { %v4006_v10 = vrot.slane %v4005_v40, 4  ;;  %v4029_v21 = vor.u32 %v4028_v52, %v4025_v43  ;;  %v9058_v62 = vcombine.high %v12137_v6, %v12140_v7  ;;  %v1003_v52 = vshll.u32 %v11221_v38, 16 }
  0x95   : > { %v4039_v32 = vor.u32 %v4038_v49, %v4034_v47 }
  0x96   : > { %v4011_v59 = vsel %vm11623_vm2, %v4006_v10, %v4010_v56  ;;  %v4030_v8 = vrot.slane %v4029_v21, 4  ;;  %v983_v56 = vshrl.u32 %v11219_v55, 16  ;;  %v317_v55 = vld [vmem:[%s11561_s6 + $0x40] sm:$0x11] }
  0x97   : > { %832 = vmatmul.mubr.bf16.gmra.mrb[36].mxu1 %v9047_v50  ;;  %v4016_v50 = vrot.slane %v4015_v45, 4  ;;  %v4040_v13 = vrot.slane %v4039_v32, 4  ;;  %v981_v45 = vrot.slane %v979_v42, 5 }
  0x98   : > { %4514 = vmatmul.mubr.bf16.gmra.mrb[36].mxu0 %v9495_v57  ;;  %841 = vmatprep.mubr.bf16.mxu1 %v9050_v58  ;;  %v4020_v57 = vrot.slane %v4018_v22, 5  ;;  %v9346_v58 = vld [vmem:[%s11561_s6 + $0x180] sm:$0xff]  ;;  %v4035_v3 = vsel %vm11623_vm2, %v4030_v8, %v4034_v47  ;;  %v985_v22 = vrot.slane %v983_v56, 4 }
  0x99   : > { %4523 = vmatprep.mubr.bf16.mxu0 %v9498_v26  ;;  %v4042_v26 = vshll.u32 %v9345_v46, 16  ;;  %v4047_v33 = vshrl.u32 %v9346_v58, 16  ;;  %v4050_v20 = vshll.u32 %v9346_v58, 16  ;;  %v4794_v46 = vrot.slane %v11221_v38, 5  ;;  %v314_v58 = vld [vmem:[%s11561_s6 + $0x28] sm:$0x11] }
  0x9a   : > { %v4021_v60 = vsel %vm11623_vm2, %v4016_v50, %v4020_v57  ;;  %v986_v10 = vor.u32 %v985_v22, %v981_v45  ;;  %v14306_v57 = vmov 0 }
  0x9b   : > { %v4044_v9 = vrot.slane %v4042_v26, 5  ;;  %v9504_v11 = vcombine.high %v4011_v59, %v4021_v60  ;;  %v4049_v5 = vrot.slane %v4047_v33, 4  ;;  %v4052_v14 = vrot.slane %v4050_v20, 5 }
  0x9c   : > { %v9503_v30 = vcombine.low %v4011_v59, %v4021_v60  ;;  %v14307_v57 = vsel %vm12207_vm5, 4294967295, %v14306_v57  ;;  %v1005_v20 = vrot.slane %v1003_v52, 5  ;;  %v11222_v60 = vld [vmem:[%s11561_s6 + $0x28] sm:$0x11]  ;;  %v987_v8 = vrot.slane %v986_v10, 4 }
  0x9d   : > { %v4045_v4 = vsel %vm11623_vm2, %v4040_v13, %v4044_v9  ;;  %14308 = vst [vmem:[#allocation3_spill] sm:$0xff] %v14307_v57  ;;  %v4797_v0 = vrot.slane %v11222_v60, 5 }
  0x9e   : > { %v9506_v63 = vcombine.high %v4035_v3, %v4045_v4  ;;  %v9505_v32 = vcombine.low %v4035_v3, %v4045_v4 }
  0x9f   : > { %842 = vmatmul.mubr.bf16.gmra.mrb[40].mxu1 %v9049_v15  ;;  %v4062_v15 = vrot.slane %v4060_v1, 4  ;;  %v9060_v1 = vcombine.high %v12158_v53, %v12161_v29 }
  0xa0   : > { %4524 = vmatmul.mubr.bf16.gmra.mrb[40].mxu0 %v9497_v16  ;;  %851 = vmatprep.mubr.bf16.mxu1 %v9052_v17  ;;  %v4053_v16 = vor.u32 %v4052_v14, %v4049_v5  ;;  %v4066_v17 = vshll.u32 %v9348_v48, 16  ;;  %v11223_v5 = vld [vmem:[%s11561_s6 + $0x30] sm:$0xff] }
  0xa1   : > { %4533 = vmatprep.mubr.bf16.mxu0 %v9500_v18  ;;  %v11218_v18 = vld [vmem:[%s11561_s6] sm:$0xff]  ;;  %v4063_v24 = vor.u32 %v4062_v15, %v4058_v51  ;;  %v1018_v14 = vshrl.u32 %v11223_v5, 16  ;;  %v11224_v15 = vld [vmem:[%s11561_s6 + $0x38] sm:$0xff] }
  0xa2   : > { %v970_v23 = vshrl.u32 %v11218_v18, 16  ;;  %v973_v25 = vshll.u32 %v11218_v18, 16  ;;  %v4054_v31 = vrot.slane %v4053_v16, 4  ;;  %v4068_v34 = vrot.slane %v4066_v17, 5 }
  0xa3   : > { %v4064_v37 = vrot.slane %v4063_v24, 4  ;;  %v1027_v3 = vshll.u32 %v11224_v15, 16  ;;  %v1031_v4 = vshrl.u32 %v11224_v15, 16  ;;  %v9059_v18 = vcombine.low %v12158_v53, %v12161_v29  ;;  %v11226_v29 = vld [vmem:[%s11561_s6 + $0x50] sm:$0xff] }
  0xa4   : > { %v972_v35 = vrot.slane %v970_v23, 4  ;;  %v975_v40 = vrot.slane %v973_v25, 5  ;;  %v4801_v25 = vrot.slane %v11224_v15, 5 }
  0xa5   : > { %v4069_v47 = vsel %vm11623_vm2, %v4064_v37, %v4068_v34  ;;  %v1033_v34 = vrot.slane %v1031_v4, 4  ;;  %v10901_v4 = vld [vmem:[%s14274_s1 + $0x610] ss:$8 sps:$4 sm:$0xff]  }
  0xa6   : > { %v976_v49 = vor.u32 %v975_v40, %v972_v35  ;;  %v9542_v35 = vrot.slane %v11223_v5, 9  ;;  %v4803_v37 = vrot.slane %v4801_v25, 4  ;;  %v11225_v40 = vld [vmem:[%s11561_s6 + $0x40] sm:$0x11] }
  0xa7   : > { %852 = vmatmul.mubr.bf16.gmra.mrb[44].mxu1 %v9051_v39  ;;  %v311_v39 = vld [vmem:[%s11561_s6 + $0x10] sm:$0x11]  ;;  %v4804_v53 = vrot.slane %v11225_v40, 5  ;;  %v10933_v40 = vld [vmem:[%s14274_s1 + $0x224] ss:$8 sps:$4 sm:$0xff]  }
  0xa8   : > { %4534 = vmatmul.mubr.bf16.gmra.mrb[44].mxu0 %v9499_v41  ;;  %861 = vmatprep.mubr.bf16.mxu1 %v9054_v54  ;;  %v11220_v41 = vld [vmem:[%s11561_s6 + $0x18] sm:$0xff]  ;;  %v1007_v54 = vshrl.u32 %v11221_v38, 16  ;;  %v989_v50 = vshll.u32 %v311_v39, 16  ;;  %v1037_v39 = vshll.u32 %v317_v55, 16  ;;  %v11227_v38 = vld [vmem:[%s11561_s6 + $0x48] sm:$0xff] }
  0xa9   : > { %4543 = vmatprep.mubr.bf16.mxu0 %v9502_v44  ;;  %v994_v43 = vshrl.u32 %v11220_v41, 16  ;;  %v997_v36 = vshll.u32 %v11220_v41, 16  ;;  %v4059_v44 = vsel %vm11623_vm2, %v4054_v31, %v4058_v51  ;;  %v9541_v21 = vrot.slane %v11220_v41, 9 }
  0xaa   : > { %v1009_v59 = vrot.slane %v1007_v54, 4  ;;  %v991_v9 = vrot.slane %v989_v50, 5  ;;  %v1021_v51 = vshll.u32 %v11223_v5, 16  ;;  %v9507_v23 = vcombine.low %v4059_v44, %v4069_v47  ;;  %v11229_v5 = vld [vmem:[%s11561_s6 + $0x60] sm:$0xff] }
  0xab   : > { %v996_v26 = vrot.slane %v994_v43, 4  ;;  %v999_v33 = vrot.slane %v997_v36, 5  ;;  %v12219_v6 = vsel %vm12207_vm5, %v9541_v21, %v4794_v46  ;;  %v1029_v31 = vrot.slane %v1027_v3, 5 }
  0xac   : > { %v1010_v13 = vor.u32 %v1009_v59, %v1005_v20  ;;  %v992_v17 = vsel %vm11623_vm2, %v987_v8, %v991_v9  ;;  %v1042_v52 = vshrl.u32 %v11227_v38, 16  ;;  %v12249_v54 = vsel %vm12207_vm5, %v9542_v35, %v4801_v25  ;;  %v320_v59 = vld [vmem:[%s11561_s6 + $0x58] sm:$0x11] }
  0xad   : > { %v1000_v7 = vor.u32 %v999_v33, %v996_v26  ;;  %v1034_v36 = vor.u32 %v1033_v34, %v1029_v31  ;;  %v12256_v10 = vsel %vm12207_vm5, %v4803_v37, %v4804_v53  ;;  %v9543_v50 = vrot.slane %v11227_v38, 9 }
  0xaf   : > { %862 = vmatmul.mubr.bf16.gmra.mrb[48].mxu1 %v9053_v2  ;;  %v9508_v2 = vcombine.high %v4059_v44, %v4069_v47  ;;  %v1001_v56 = vrot.slane %v1000_v7, 4  ;;  %v1045_v44 = vshll.u32 %v11227_v38, 16  ;;  %v1055_v47 = vshrl.u32 %v11226_v29, 16 }
  0xb0   : > { %4544 = vmatmul.mubr.bf16.gmra.mrb[48].mxu0 %v9501_v61  ;;  %871 = vmatprep.mubr.bf16.mxu1 %v9056_v27  ;;  %v4796_v61 = vrot.slane %v4794_v46, 4  ;;  %v977_v27 = vrot.slane %v976_v49, 4  ;;  %v1051_v46 = vshll.u32 %v11226_v29, 16  ;;  %v10898_v49 = vld [vmem:[%s14274_s1 + $0x600] ss:$8 sps:$4 sm:$0xff]  }
  0xb1   : > { %4553 = vmatprep.mubr.bf16.mxu0 %v9504_v11  ;;  %v1013_v11 = vshll.u32 %v314_v58, 16  ;;  %v12240_v22 = vsel %vm11623_vm2, %v1001_v56, %v1005_v20  ;;  %v10903_v20 = vld [vmem:[%s14274_s1 + $0x614] ss:$8 sps:$4 sm:$0xff]   ;;  %v1047_v8 = vrot.slane %v1045_v44, 5 }
  0xb2   : > { %v12224_v48 = vsel %vm12207_vm5, %v4796_v61, %v4797_v0  ;;  %v982_v16 = vsel %vm11623_vm2, %v977_v27, %v981_v45  ;;  %v4808_v45 = vrot.slane %v11226_v29, 5  ;;  %v1035_v0 = vrot.slane %v1034_v36, 4  ;;  %v10922_v61 = vld [vmem:[%s14274_s1 + $0x200] ss:$8 sps:$4 sm:$0xff]  }
  0xb3   : > { %v1015_v24 = vrot.slane %v1013_v11, 5  ;;  %v9590_v42 = vcombine.high %v12219_v6, %v12224_v48  ;;  %v9125_v26 = vcombine.low %v982_v16, %v992_v17  ;;  %v9592_v27 = vcombine.high %v12249_v54, %v12256_v10 }
  0xb4   : > { %v4810_v58 = vrot.slane %v4808_v45, 4  ;;  %v12272_v9 = vrot.slane %v1051_v46, 5  ;;  %v1057_v11 = vrot.slane %v1055_v47, 4  ;;  %v12279_v7 = vsel %vm12207_vm5, %v9543_v50, %v4808_v45  ;;  %v10907_v47 = vld [vmem:[%s14274_s1 + $0x630] ss:$8 sps:$4 sm:$0xff]  }
  0xb5   : > { %v9544_v45 = vrot.slane %v11229_v5, 9 }
  0xb6   : > { %v1058_v25 = vor.u32 %v1057_v11, %v12272_v9 }
  0xb7   : > { %872 = vmatmul.mubr.bf16.gmra.mrb[52].mxu1 %v9055_v28  ;;  %v1011_v28 = vrot.slane %v1010_v13, 4 }
  0xb8   : > { %4554 = vmatmul.mubr.bf16.gmra.mrb[52].mxu0 %v9503_v30  ;;  %881 = vmatprep.mubr.bf16.mxu1 %v9058_v62  ;;  %v1020_v30 = vrot.slane %v1018_v14, 4  ;;  %v9126_v62 = vcombine.high %v982_v16, %v992_v17  ;;  %v1066_v14 = vshrl.u32 %v11229_v5, 16  ;;  %v10906_v17 = vld [vmem:[%s14274_s1 + $0x624] ss:$8 sps:$4 sm:$0xff]   ;;  %v1059_v38 = vrot.slane %v1058_v25, 4 }
  0xb9   : > { %4563 = vmatprep.mubr.bf16.mxu0 %v9506_v63  ;;  %v1023_v63 = vrot.slane %v1021_v51, 5  ;;  %v12244_v41 = vsel %vm11623_vm2, %v1011_v28, %v1015_v24  ;;  %v11230_v51 = vld [vmem:[%s11561_s6 + $0x68] sm:$0xff]  ;;  %v9591_v28 = vcombine.low %v12249_v54, %v12256_v10  ;;  %v12330_v54 = vld [vmem:[%s11561_s6 + $0x78] sm:$0xff] }
  0xba   : > { %v9128_v33 = vcombine.high %v12240_v22, %v12244_v41  ;;  %v1075_v15 = vshll.u32 %v11230_v51, 16  ;;  %v1079_v3 = vshrl.u32 %v11230_v51, 16  ;;  %v4815_v55 = vrot.slane %v11230_v51, 5 }
  0xbb   : > { %v1024_v43 = vor.u32 %v1023_v63, %v1020_v30  ;;  %v9127_v56 = vcombine.low %v12240_v22, %v12244_v41  ;;  %v10904_v63 = vld [vmem:[%s14274_s1 + $0x620] ss:$8 sps:$4 sm:$0xff]   ;;  %v11231_v22 = vld [vmem:[%s11561_s6 + $0x70] sm:$0x11]  ;;  %v1090_v44 = vshrl.u32 %v12330_v54, 16  ;;  %v1093_v46 = vshll.u32 %v12330_v54, 16 }
  0xbc   : > { %v12315_v35 = vrot.slane %v1075_v15, 5  ;;  %v1081_v37 = vrot.slane %v1079_v3, 4  ;;  %v10909_v41 = vld [vmem:[%s14274_s1 + $0x634] ss:$8 sps:$4 sm:$0xff]  }
  0xbd   : > { %v1025_v60 = vrot.slane %v1024_v43, 4  ;;  %v10931_v43 = vld [vmem:[%s14274_s1 + $0x220] ss:$8 sps:$4 sm:$0xff]   ;;  %v10915_v3 = vld [vmem:[%s14274_s1 + $0x654] ss:$8 sps:$4 sm:$0xff]  }
  0xbe   : > { %v1082_v10 = vor.u32 %v1081_v37, %v12315_v35  ;;  %v10918_v37 = vld [vmem:[%s14274_s1 + $0x664] ss:$8 sps:$4 sm:$0xff]  }
  0xbf   : > { %882 = vmatmul.mubr.bf16.gmra.mrb[56].mxu1 %v9057_v19  ;;  %v11228_v19 = vld [vmem:[%s11561_s6 + $0x58] sm:$0x11]  ;;  %v12292_v16 = vsel %vm11623_vm2, %v1025_v60, %v1029_v31  ;;  %v1068_v31 = vrot.slane %v1066_v14, 4  ;;  %v326_v14 = vld [vmem:[%s11561_s6 + $0x88] sm:$0x11] }
  0xc0   : > { %4564 = vmatmul.mubr.bf16.gmra.mrb[56].mxu0 %v9505_v32  ;;  %891 = vmatprep.mubr.bf16.mxu1 %v9060_v1  ;;  %v4811_v21 = vrot.slane %v11228_v19, 5  ;;  %v9589_v32 = vcombine.low %v12219_v6, %v12224_v48  ;;  %v1039_v1 = vrot.slane %v1037_v39, 5  ;;  %v10930_v6 = vld [vmem:[%s14274_s1 + $0x214] ss:$8 sps:$4 sm:$0xff]   ;;  %v1069_v48 = vshll.u32 %v11229_v5, 16 }
  0xc1   : > { %4573 = vmatprep.mubr.bf16.mxu0 %v9508_v2  ;;  %v1044_v2 = vrot.slane %v1042_v52, 4  ;;  %v4818_v39 = vrot.slane %v11231_v22, 5  ;;  %v4817_v52 = vrot.slane %v4815_v55, 4  ;;  %v12343_v19 = vsel %vm12207_vm5, %v9544_v45, %v4815_v55  ;;  %v10910_v5 = vld [vmem:[%s14274_s1 + $0x640] ss:$8 sps:$4 sm:$0xff]  }
  0xc2   : > { %v12283_v13 = vsel %vm12207_vm5, %v4810_v58, %v4811_v21  ;;  %v1071_v34 = vrot.slane %v1069_v48, 5  ;;  %v10939_v58 = vld [vmem:[%s14274_s1 + $0x234] ss:$8 sps:$4 sm:$0xff]   ;;  %v10912_v21 = vld [vmem:[%s14274_s1 + $0x644] ss:$8 sps:$4 sm:$0xff]   ;;  %v1083_v11 = vrot.slane %v1082_v10, 4 }
  0xc3   : > { %v1048_v24 = vor.u32 %v1047_v8, %v1044_v2  ;;  %v9594_v30 = vcombine.high %v12279_v7, %v12283_v13  ;;  %v9593_v2 = vcombine.low %v12279_v7, %v12283_v13  ;;  %v10942_v7 = vld [vmem:[%s14274_s1 + $0x244] ss:$8 sps:$4 sm:$0xff]   ;;  %v10946_v22 = vld [vmem:[%s14274_s1 + $0x250] ss:$8 sps:$4 sm:$0xff]  }
  0xc5   : > { %v1049_v36 = vrot.slane %v1048_v24, 4 }
  0xc7   : > { %892 = vmatmul.mubr.bf16.gmra.mrb[60].mxu1 %v9059_v18  ;;  %v1061_v18 = vshll.u32 %v320_v59, 16  ;;  %v12355_v59 = vsel %vm11623_vm2, %v1049_v36, %v12272_v9 }
  0xc8   : > { %4574 = vmatmul.mubr.bf16.gmra.mrb[60].mxu0 %v9507_v23  ;;  %1706 = vmatprep.mubr.bf16.mxu1 %v9126_v62  ;;  %v12299_v23 = vsel %vm11623_vm2, %v1035_v0, %v1039_v1  ;;  %v323_v62 = vld [vmem:[%s11561_s6 + $0x70] sm:$0x11]  ;;  %v12363_v0 = vsel %vm12207_vm5, %v4817_v52, %v4818_v39  ;;  %v11237_v52 = vld [vmem:[%s11561_s6 + $0xa0] sm:$0x11] }
  0xc9   : > { %5257 = vmatprep.mubr.bf16.mxu0 %v9590_v42  ;;  %v10928_v42 = vld [vmem:[%s14274_s1 + $0x210] ss:$8 sps:$4 sm:$0xff]   ;;  %v9130_v53 = vcombine.high %v12292_v16, %v12299_v23  ;;  %v1063_v29 = vrot.slane %v1061_v18, 5  ;;  %v1085_v50 = vshll.u32 %v323_v62, 16  ;;  %v9129_v8 = vcombine.low %v12292_v16, %v12299_v23  ;;  %v11234_v18 = vld [vmem:[%s11561_s6 + $0x88] sm:$0x11] }
  0xca   : > { %v9596_v48 = vcombine.high %v12343_v19, %v12363_v0  ;;  %v9545_v16 = vrot.slane %v12330_v54, 9  ;;  %v4825_v23 = vrot.slane %v11234_v18, 5  ;;  %v10948_v62 = vld [vmem:[%s14274_s1 + $0x254] ss:$8 sps:$4 sm:$0xff]   ;;  %v4832_v54 = vrot.slane %v11237_v52, 5  ;;  %v11242_v52 = vld [vmem:[%s11561_s6 + $0xc0] sm:$0xff] }
  0xcb   : > { %v12359_v60 = vsel %vm11623_vm2, %v1059_v38, %v1063_v29 }
  0xcc   : > { %v9132_v13 = vcombine.high %v12355_v59, %v12359_v60  ;;  %v9131_v39 = vcombine.low %v12355_v59, %v12359_v60 }
  0xcf   : > { %1707 = vmatmul.mubr.bf16.vlgmr.msra.gmra.mrb[0].mxu1 %v9125_v26  ;;  %v11233_v26 = vld [vmem:[%s11561_s6 + $0x80] sm:$0xff] }
  0xd0   : > { %5258 = vmatmul.mubr.bf16.vlgmr.msra.gmra.mrb[0].mxu0 %v9589_v32  ;;  %1716 = vmatprep.mubr.bf16.mxu1 %v9128_v33  ;;  %v1099_v32 = vshll.u32 %v11233_v26, 16  ;;  %v1103_v33 = vshrl.u32 %v11233_v26, 16  ;;  %v4822_v1 = vrot.slane %v11233_v26, 5  ;;  %v10921_v26 = vld [vmem:[%s14274_s1 + $0x674] ss:$8 sps:$4 sm:$0xff]  }
  0xd1   : > { %6016 = vmatpush1.bf16.msra.mxu0 %v10898_v49  ;;  %5267 = vmatprep.mubr.bf16.mxu0 %v9592_v27  ;;  %v1072_v49 = vor.u32 %v1071_v34, %v1068_v31  ;;  %v1095_v27 = vrot.slane %v1093_v46, 5  ;;  %v1109_v31 = vshll.u32 %v326_v14, 16  ;;  %v11236_v34 = vld [vmem:[%s11561_s6 + $0x98] sm:$0xff]  ;;  %v10927_v14 = vld [vmem:[%s14274_s1 + $0x684] ss:$8 sps:$4 sm:$0xff]  }
  0xd2   : > { %6017 = vmatprep.subr.bf16.mxu0 %v10903_v20  ;;  %2512 = vmatpush1.bf16.msra.mxu1 %v10922_v61  ;;  %v10937_v20 = vld [vmem:[%s14274_s1 + $0x230] ss:$8 sps:$4 sm:$0xff]   ;;  %v1092_v61 = vrot.slane %v1090_v44, 4  ;;  %v12380_v51 = vrot.slane %v1099_v32, 5  ;;  %v1105_v15 = vrot.slane %v1103_v33, 4  ;;  %v1123_v29 = vshll.u32 %v11236_v34, 16 }
  0xd3   : > { %2513 = vmatprep.subr.bf16.mxu1 %v10930_v6  ;;  %v1073_v9 = vrot.slane %v1072_v49, 4  ;;  %v1087_v6 = vrot.slane %v1085_v50, 5  ;;  %v1127_v45 = vshrl.u32 %v11236_v34, 16  ;;  %v10951_v49 = vld [vmem:[%s14274_s1 + $0x264] ss:$8 sps:$4 sm:$0xff]  }
  0xd4   : > { %v1096_v24 = vor.u32 %v1095_v27, %v1092_v61  ;;  %v10949_v32 = vld [vmem:[%s14274_s1 + $0x260] ss:$8 sps:$4 sm:$0xff]   ;;  %v1125_v33 = vrot.slane %v1123_v29, 5  ;;  %v10957_v61 = vld [vmem:[%s14274_s1 + $0x274] ss:$8 sps:$4 sm:$0xff]  }
  0xd5   : > { %6018 = vmatpush1.bf16.msra.mxu0 %v10901_v4  ;;  %v10940_v4 = vld [vmem:[%s14274_s1 + $0x240] ss:$8 sps:$4 sm:$0xff]   ;;  %v12393_v25 = vsel %vm11623_vm2, %v1073_v9, %v12315_v35  ;;  %v12397_v55 = vsel %vm11623_vm2, %v1083_v11, %v1087_v6  ;;  %v4829_v35 = vrot.slane %v11236_v34, 5  ;;  %v11239_v11 = vld [vmem:[%s11561_s6 + $0xb0] sm:$0xff] }
  0xd6   : > { %6019 = vmatprep.subr.bf16.mxu0 %v10906_v17  ;;  %2514 = vmatpush1.bf16.msra.mxu1 %v10928_v42  ;;  %v4824_v17 = vrot.slane %v4822_v1, 4  ;;  %v10913_v42 = vld [vmem:[%s14274_s1 + $0x650] ss:$8 sps:$4 sm:$0xff]   ;;  %v1097_v36 = vrot.slane %v1096_v24, 4  ;;  %v4836_v6 = vrot.slane %v11239_v11, 5 }
  0xd7   : > { %1717 = vmatmul.mubr.bf16.gmra.mrb[4].mxu1 %v9127_v56  ;;  %2515 = vmatprep.subr.bf16.mxu1 %v10933_v40  ;;  %v11235_v56 = vld [vmem:[%s11561_s6 + $0x90] sm:$0xff]  ;;  %v12413_v40 = vsel %vm12207_vm5, %v9545_v16, %v4822_v1 }
  0xd8   : > { %5268 = vmatmul.mubr.bf16.gmra.mrb[4].mxu0 %v9591_v28  ;;  %1726 = vmatprep.mubr.bf16.mxu1 %v9130_v53  ;;  %v1114_v28 = vshrl.u32 %v11235_v56, 16  ;;  %v12417_v53 = vsel %vm12207_vm5, %v4824_v17, %v4825_v23  ;;  %v9546_v38 = vrot.slane %v11235_v56, 9  ;;  %v12447_v59 = vsel %vm11623_vm2, %v1097_v36, %v12380_v51  ;;  %v10966_v36 = vld [vmem:[%s14274_s1 + $0x294] ss:$8 sps:$4 sm:$0xff]  }
  0xd9   : > { %5277 = vmatprep.mubr.bf16.mxu0 %v9594_v30  ;;  %6020 = vmatpush1.bf16.msra.mxu0 %v10904_v63  ;;  %v1117_v30 = vshll.u32 %v11235_v56, 16  ;;  %v1106_v63 = vor.u32 %v1105_v15, %v12380_v51  ;;  %v9598_v10 = vcombine.high %v12413_v40, %v12417_v53  ;;  %v1147_v51 = vshll.u32 %v11239_v11, 16  ;;  %v10960_v56 = vld [vmem:[%s14274_s1 + $0x284] ss:$8 sps:$4 sm:$0xff]  }
  0xda   : > { %6021 = vmatprep.subr.bf16.mxu0 %v10909_v41  ;;  %2516 = vmatpush1.bf16.msra.mxu1 %v10931_v43  ;;  %v9595_v41 = vcombine.low %v12343_v19, %v12363_v0  ;;  %v9134_v43 = vcombine.high %v12393_v25, %v12397_v55  ;;  %v1116_v44 = vrot.slane %v1114_v28, 4  ;;  %v4831_v19 = vrot.slane %v4829_v35, 4  ;;  %v11238_v0 = vld [vmem:[%s11561_s6 + $0xa8] sm:$0xff] }
  0xdb   : > { %2517 = vmatprep.subr.bf16.mxu1 %v10939_v58  ;;  %v1119_v46 = vrot.slane %v1117_v30, 5  ;;  %v1107_v50 = vrot.slane %v1106_v63, 4  ;;  %v1111_v58 = vrot.slane %v1109_v31, 5  ;;  %v1138_v1 = vshrl.u32 %v11238_v0, 16  ;;  %v11240_v30 = vld [vmem:[%s11561_s6 + $0xb8] sm:$0x11] }
  0xdc   : > { %v12463_v9 = vsel %vm12207_vm5, %v4831_v19, %v4832_v54  ;;  %v1151_v15 = vshrl.u32 %v11239_v11, 16  ;;  %v9547_v16 = vrot.slane %v11238_v0, 9  ;;  %v9597_v17 = vcombine.low %v12413_v40, %v12417_v53  ;;  %v10936_v63 = vld [vmem:[%s14274_s1 + $0x694] ss:$8 sps:$4 sm:$0xff]   ;;  %v10958_v53 = vld [vmem:[%s14274_s1 + $0x280] ss:$8 sps:$4 sm:$0xff]  }
  0xdd   : > { %6022 = vmatpush1.bf16.msra.mxu0 %v10907_v47  ;;  %v10916_v47 = vld [vmem:[%s14274_s1 + $0x660] ss:$8 sps:$4 sm:$0xff]   ;;  %v1120_v60 = vor.u32 %v1119_v46, %v1116_v44  ;;  %v12455_v27 = vsel %vm11623_vm2, %v1107_v50, %v1111_v58  ;;  %v1140_v23 = vrot.slane %v1138_v1, 4  ;;  %v4838_v28 = vrot.slane %v4836_v6, 4  ;;  %v335_v44 = vld [vmem:[%s11561_s6 + $0xd0] sm:$0x11] }
  0xde   : > { %6023 = vmatprep.subr.bf16.mxu0 %v10912_v21  ;;  %2518 = vmatpush1.bf16.msra.mxu1 %v10937_v20  ;;  %v329_v21 = vld [vmem:[%s11561_s6 + $0xa0] sm:$0x11]  ;;  %v1129_v20 = vrot.slane %v1127_v45, 4  ;;  %v12505_v45 = vsel %vm12207_vm5, %v9547_v16, %v4836_v6  ;;  %v9548_v54 = vrot.slane %v11242_v52, 9  ;;  %v1162_v46 = vshrl.u32 %v11242_v52, 16 }
  0xdf   : > { %1727 = vmatmul.mubr.bf16.gmra.mrb[8].mxu1 %v9129_v8  ;;  %2519 = vmatprep.subr.bf16.mxu1 %v10942_v7  ;;  %v12459_v8 = vsel %vm12207_vm5, %v9546_v38, %v4829_v35  ;;  %v1121_v18 = vrot.slane %v1120_v60, 4  ;;  %v12494_v35 = vrot.slane %v1147_v51, 5  ;;  %v10967_v6 = vld [vmem:[%s14274_s1 + $0x2a0] ss:$8 sps:$4 sm:$0xff]  }
  0xe0   : > { %5278 = vmatmul.mubr.bf16.gmra.mrb[8].mxu0 %v9593_v2  ;;  %1736 = vmatprep.mubr.bf16.mxu1 %v9132_v13  ;;  %v1141_v2 = vshll.u32 %v11238_v0, 16  ;;  %v1130_v7 = vor.u32 %v1129_v20, %v1125_v33  ;;  %v1133_v13 = vshll.u32 %v329_v21, 16  ;;  %v9135_v20 = vcombine.low %v12447_v59, %v12455_v27 }
  0xe1   : > { %5287 = vmatprep.mubr.bf16.mxu0 %v9596_v48  ;;  %6024 = vmatpush1.bf16.msra.mxu0 %v10910_v5  ;;  %v10919_v5 = vld [vmem:[%s14274_s1 + $0x670] ss:$8 sps:$4 sm:$0xff]   ;;  %v12501_v29 = vsel %vm11623_vm2, %v1121_v18, %v1125_v33  ;;  %v9599_v60 = vcombine.low %v12459_v8, %v12463_v9 }
  0xe2   : > { %6025 = vmatprep.subr.bf16.mxu0 %v10915_v3  ;;  %2520 = vmatpush1.bf16.msra.mxu1 %v10940_v4  ;;  %v332_v48 = vld [vmem:[%s11561_s6 + $0xb8] sm:$0x11]  ;;  %v9133_v4 = vcombine.low %v12393_v25, %v12397_v55  ;;  %v1143_v24 = vrot.slane %v1141_v2, 5  ;;  %v9136_v25 = vcombine.high %v12447_v59, %v12455_v27  ;;  %v9600_v55 = vcombine.high %v12459_v8, %v12463_v9  ;;  %v10943_v2 = vld [vmem:[%s14274_s1 + $0x6a0] ss:$8 sps:$4 sm:$0xff]  }
  0xe3   : > { %2521 = vmatprep.subr.bf16.mxu1 %v10948_v62  ;;  %v10955_v3 = vld [vmem:[%s14274_s1 + $0x270] ss:$8 sps:$4 sm:$0xff]   ;;  %v4839_v62 = vrot.slane %v11240_v30, 5  ;;  %v1131_v31 = vrot.slane %v1130_v7, 4  ;;  %v1135_v34 = vrot.slane %v1133_v13, 5  ;;  %v1157_v40 = vshll.u32 %v332_v48, 16 }
  0xe4   : > { %v1164_v27 = vrot.slane %v1162_v46, 4  ;;  %v10954_v9 = vld [vmem:[%s14274_s1 + $0x6b4] ss:$8 sps:$4 sm:$0xff]   ;;  %v1181_v13 = vshll.u32 %v335_v44, 16  ;;  %v10952_v18 = vld [vmem:[%s14274_s1 + $0x6b0] ss:$8 sps:$4 sm:$0xff]  }
  0xe5   : > { %6026 = vmatpush1.bf16.msra.mxu0 %v10913_v42  ;;  %v10925_v42 = vld [vmem:[%s14274_s1 + $0x680] ss:$8 sps:$4 sm:$0xff]   ;;  %v12516_v38 = vsel %vm12207_vm5, %v4838_v28, %v4839_v62  ;;  %v12528_v50 = vsel %vm11623_vm2, %v1131_v31, %v1135_v34  ;;  %v12555_v48 = vld [vmem:[%s11561_s6 + $0xd8] sm:$0xff] }
  0xe6   : > { %6027 = vmatprep.subr.bf16.mxu0 %v10918_v37  ;;  %2522 = vmatpush1.bf16.msra.mxu1 %v10946_v22  ;;  %v1153_v37 = vrot.slane %v1151_v15, 4  ;;  %v1144_v22 = vor.u32 %v1143_v24, %v1140_v23  ;;  %v9138_v11 = vcombine.high %v12501_v29, %v12528_v50  ;;  %v9602_v59 = vcombine.high %v12505_v45, %v12516_v38  ;;  %v10975_v23 = vld [vmem:[%s14274_s1 + $0x2b4] ss:$8 sps:$4 sm:$0xff]   ;;  %v10973_v28 = vld [vmem:[%s14274_s1 + $0x2b0] ss:$8 sps:$4 sm:$0xff]  }
  0xe7   : > { %1737 = vmatmul.mubr.bf16.gmra.mrb[12].mxu1 %v9131_v39  ;;  %2523 = vmatprep.subr.bf16.mxu1 %v10951_v49  ;;  %v11241_v39 = vld [vmem:[%s11561_s6 + $0xc8] sm:$0xff]  ;;  %v1186_v51 = vshrl.u32 %v12555_v48, 16  ;;  %v1189_v15 = vshll.u32 %v12555_v48, 16 }
  0xe8   : > { %5288 = vmatmul.mubr.bf16.gmra.mrb[12].mxu0 %v9595_v41  ;;  %1746 = vmatprep.mubr.bf16.mxu1 %v9134_v43  ;;  %v4843_v41 = vrot.slane %v11241_v39, 5  ;;  %v10934_v43 = vld [vmem:[%s14274_s1 + $0x690] ss:$8 sps:$4 sm:$0xff]   ;;  %v10945_v49 = vld [vmem:[%s14274_s1 + $0x6a4] ss:$8 sps:$4 sm:$0xff]   ;;  %v1154_v58 = vor.u32 %v1153_v37, %v12494_v35  ;;  %v1171_v19 = vshll.u32 %v11241_v39, 16 }
  0xe9   : > { %5297 = vmatprep.mubr.bf16.mxu0 %v9598_v10  ;;  %6028 = vmatpush1.bf16.msra.mxu0 %v10916_v47  ;;  %v1165_v47 = vshll.u32 %v11242_v52, 16  ;;  %v10964_v10 = vld [vmem:[%s14274_s1 + $0x290] ss:$8 sps:$4 sm:$0xff]   ;;  %v1175_v21 = vshrl.u32 %v11241_v39, 16  ;;  %v1145_v0 = vrot.slane %v1144_v22, 4  ;;  %v1191_v37 = vrot.slane %v1189_v15, 5 }
  0xea   : > { %6029 = vmatprep.subr.bf16.mxu0 %v10921_v26  ;;  %2524 = vmatpush1.bf16.msra.mxu1 %v10949_v32  ;;  %v1159_v26 = vrot.slane %v1157_v40, 5  ;;  %v11243_v32 = vld [vmem:[%s11561_s6 + $0xd0] sm:$0x11]  ;;  %v4845_v1 = vrot.slane %v4843_v41, 4  ;;  %v338_v34 = vld [vmem:[%s11561_s6 + $0xe8] sm:$0x11]  ;;  %v9137_v40 = vcombine.low %v12501_v29, %v12528_v50 }
  0xeb   : > { %2525 = vmatprep.subr.bf16.mxu1 %v10957_v61  ;;  %v4846_v33 = vrot.slane %v11243_v32, 5  ;;  %v10969_v61 = vld [vmem:[%s14274_s1 + $0x2a4] ss:$8 sps:$4 sm:$0xff]   ;;  %v1167_v8 = vrot.slane %v1165_v47, 5  ;;  %v1177_v7 = vrot.slane %v1175_v21, 4  ;;  %v12573_v24 = vsel %vm11623_vm2, %v1145_v0, %v12494_v35 }
  0xec   : > { %v1188_v35 = vrot.slane %v1186_v51, 4  ;;  %v10976_v44 = vld [vmem:[%s14274_s1 + $0x2c0] ss:$8 sps:$4 sm:$0xff]   ;;  %v10970_v21 = vld [vmem:[%s14274_s1 + $0x6d0] ss:$8 sps:$4 sm:$0xff]  }
  0xed   : > { %6030 = vmatpush1.bf16.msra.mxu0 %v10919_v5  ;;  %v1155_v5 = vrot.slane %v1154_v58, 4  ;;  %v11247_v58 = vld [vmem:[%s11561_s6 + $0xf8] sm:$0xff] }
  0xee   : > { %6031 = vmatprep.subr.bf16.mxu0 %v10927_v14  ;;  %2526 = vmatpush1.bf16.msra.mxu1 %v10955_v3  ;;  %v12552_v14 = vrot.slane %v1171_v19, 5  ;;  %v12561_v3 = vsel %vm12207_vm5, %v9548_v54, %v4843_v41  ;;  %v10961_v41 = vld [vmem:[%s14274_s1 + $0x6c0] ss:$8 sps:$4 sm:$0xff]   ;;  %v10972_v54 = vld [vmem:[%s14274_s1 + $0x6d4] ss:$8 sps:$4 sm:$0xff]   ;;  %v4857_v19 = vrot.slane %v11247_v58, 5 }
  0xef   : > { %1747 = vmatmul.mubr.bf16.gmra.mrb[16].mxu1 %v9133_v4  ;;  %2527 = vmatprep.subr.bf16.mxu1 %v10960_v56  ;;  %v11245_v4 = vld [vmem:[%s11561_s6 + $0xe0] sm:$0xff]  ;;  %v1168_v56 = vor.u32 %v1167_v8, %v1164_v27  ;;  %v12588_v30 = vsel %vm11623_vm2, %v1155_v5, %v1159_v26  ;;  %v10984_v26 = vld [vmem:[%s14274_s1 + $0x2d4] ss:$8 sps:$4 sm:$0xff]   ;;  %v1223_v27 = vshrl.u32 %v11247_v58, 16 }
  0xf0   : > { %5298 = vmatmul.mubr.bf16.gmra.mrb[16].mxu0 %v9597_v17  ;;  %1756 = vmatprep.mubr.bf16.mxu1 %v9136_v25  ;;  %v1195_v16 = vshll.u32 %v11245_v4, 16  ;;  %v1199_v17 = vshrl.u32 %v11245_v4, 16  ;;  %v9549_v25 = vrot.slane %v12555_v48, 9  ;;  %v1178_v62 = vor.u32 %v1177_v7, %v12552_v14  ;;  %v11249_v48 = vld [vmem:[%s11561_s6 + $0x100] sm:$0x11] }
  0xf1   : > { %5307 = vmatprep.mubr.bf16.mxu0 %v9600_v55  ;;  %6032 = vmatpush1.bf16.msra.mxu0 %v10925_v42  ;;  %v12577_v42 = vsel %vm12207_vm5, %v4845_v1, %v4846_v33  ;;  %v10963_v55 = vld [vmem:[%s14274_s1 + $0x6c4] ss:$8 sps:$4 sm:$0xff]   ;;  %v4850_v31 = vrot.slane %v11245_v4, 5  ;;  %v9139_v8 = vcombine.low %v12573_v24, %v12588_v30  ;;  %v4860_v51 = vrot.slane %v11249_v48, 5  ;;  %v12741_v48 = vld [vmem:[%s11561_s6 + $0x130] sm:$0x11] }
  0xf2   : > { %6033 = vmatprep.subr.bf16.mxu0 %v10936_v63  ;;  %2528 = vmatpush1.bf16.msra.mxu1 %v10958_v53  ;;  %v1183_v63 = vrot.slane %v1181_v13, 5  ;;  %v9601_v53 = vcombine.low %v12505_v45, %v12516_v38  ;;  %v12596_v22 = vrot.slane %v1195_v16, 5  ;;  %v1201_v39 = vrot.slane %v1199_v17, 4  ;;  %v11246_v38 = vld [vmem:[%s11561_s6 + $0xe8] sm:$0x11] }
  0xf3   : > { %2529 = vmatprep.subr.bf16.mxu1 %v10966_v36  ;;  %v9140_v36 = vcombine.high %v12573_v24, %v12588_v30  ;;  %v9604_v29 = vcombine.high %v12561_v3, %v12577_v42  ;;  %v1169_v45 = vrot.slane %v1168_v56, 4  ;;  %v4853_v52 = vrot.slane %v11246_v38, 5  ;;  %v10981_v1 = vld [vmem:[%s14274_s1 + $0x6e4] ss:$8 sps:$4 sm:$0xff]   ;;  %v10991_v38 = vld [vmem:[%s14274_s1 + $0x2f0] ss:$8 sps:$4 sm:$0xff]  }
  0xf4   : > { %v1179_v46 = vrot.slane %v1178_v62, 4  ;;  %v4852_v47 = vrot.slane %v4850_v31, 4  ;;  %v1202_v50 = vor.u32 %v1201_v39, %v12596_v22  ;;  %v12630_v33 = vsel %vm12207_vm5, %v9549_v25, %v4850_v31  ;;  %v10987_v24 = vld [vmem:[%s14274_s1 + $0x2e4] ss:$8 sps:$4 sm:$0xff]   ;;  %v10985_v25 = vld [vmem:[%s14274_s1 + $0x2e0] ss:$8 sps:$4 sm:$0xff]  }
  0xf5   : > { %6034 = vmatpush1.bf16.msra.mxu0 %v10934_v43  ;;  %v10978_v43 = vld [vmem:[%s14274_s1 + $0x2c4] ss:$8 sps:$4 sm:$0xff]   ;;  %v12626_v32 = vsel %vm11623_vm2, %v1169_v45, %v12552_v14  ;;  %v4859_v13 = vrot.slane %v4857_v19, 4 }
  0xf6   : > { %6035 = vmatprep.subr.bf16.mxu0 %v10945_v49  ;;  %2530 = vmatpush1.bf16.msra.mxu1 %v10964_v10  ;;  %v1205_v49 = vshll.u32 %v338_v34, 16  ;;  %v1192_v10 = vor.u32 %v1191_v37, %v1188_v35  ;;  %v1203_v7 = vrot.slane %v1202_v50, 4  ;;  %v12669_v56 = vld [vmem:[%s11561_s6 + $0x100] sm:$0x11]  ;;  %v11250_v34 = vld [vmem:[%s11561_s6 + $0x110] sm:$0xff]  ;;  %v11251_v37 = vld [vmem:[%s11561_s6 + $0x108] sm:$0xff] }
  0xf7   : > { %1757 = vmatmul.mubr.bf16.gmra.mrb[20].mxu1 %v9135_v20  ;;  %2531 = vmatprep.subr.bf16.mxu1 %v10969_v61  ;;  %v11248_v20 = vld [vmem:[%s11561_s6 + $0xf0] sm:$0xff]  ;;  %v12641_v61 = vsel %vm11623_vm2, %v1179_v46, %v1183_v63  ;;  %v12688_v62 = vsel %vm12207_vm5, %v4859_v13, %v4860_v51  ;;  %v4864_v35 = vrot.slane %v11250_v34, 5  ;;  %v1229_v39 = vshll.u32 %v12669_v56, 16 }
  0xf8   : > { %5308 = vmatmul.mubr.bf16.gmra.mrb[20].mxu0 %v9599_v60  ;;  %1766 = vmatprep.mubr.bf16.mxu1 %v9138_v11  ;;  %v1210_v60 = vshrl.u32 %v11248_v20, 16  ;;  %v1213_v0 = vshll.u32 %v11248_v20, 16  ;;  %v12645_v11 = vsel %vm12207_vm5, %v4852_v47, %v4853_v52  ;;  %v9550_v5 = vrot.slane %v11248_v20, 9  ;;  %v10993_v63 = vld [vmem:[%s14274_s1 + $0x2f4] ss:$8 sps:$4 sm:$0xff]  }
  0xf9   : > { %5317 = vmatprep.mubr.bf16.mxu0 %v9602_v59  ;;  %6036 = vmatpush1.bf16.msra.mxu0 %v10943_v2  ;;  %v10982_v2 = vld [vmem:[%s14274_s1 + $0x2d0] ss:$8 sps:$4 sm:$0xff]   ;;  %v1219_v59 = vshll.u32 %v11247_v58, 16  ;;  %v1193_v14 = vrot.slane %v1192_v10, 4  ;;  %v9142_v15 = vcombine.high %v12626_v32, %v12641_v61  ;;  %v9606_v4 = vcombine.high %v12630_v33, %v12645_v11  ;;  %v10998_v52 = vld [vmem:[%s14274_s1 + $0x704] ss:$8 sps:$4 sm:$0xff]  }
  0xfa   : > { %6037 = vmatprep.subr.bf16.mxu0 %v10954_v9  ;;  %2532 = vmatpush1.bf16.msra.mxu1 %v10967_v6  ;;  %v9603_v9 = vcombine.low %v12561_v3, %v12577_v42  ;;  %v1207_v6 = vrot.slane %v1205_v49, 5  ;;  %v1212_v16 = vrot.slane %v1210_v60, 4  ;;  %v1215_v17 = vrot.slane %v1213_v0, 5  ;;  %v11252_v47 = vld [vmem:[%s11561_s6 + $0x118] sm:$0x11]  ;;  %v11253_v0 = vld [vmem:[%s11561_s6 + $0x120] sm:$0xff] }
  0xfb   : > { %2533 = vmatprep.subr.bf16.mxu1 %v10975_v23  ;;  %v12656_v3 = vrot.slane %v1219_v59, 5  ;;  %v10979_v23 = vld [vmem:[%s14274_s1 + $0x6e0] ss:$8 sps:$4 sm:$0xff]   ;;  %v12666_v42 = vsel %vm12207_vm5, %v9550_v5, %v4857_v19  ;;  %v9605_v45 = vcombine.low %v12630_v33, %v12645_v11  ;;  %v9551_v46 = vrot.slane %v11251_v37, 9  ;;  %v12718_v58 = vld [vmem:[%s11561_s6 + $0x118] sm:$0x11] }
  0xfc   : > { %v12684_v30 = vsel %vm11623_vm2, %v1203_v7, %v1207_v6  ;;  %v1216_v31 = vor.u32 %v1215_v17, %v1212_v16  ;;  %v4867_v49 = vrot.slane %v11252_v47, 5  ;;  %v12715_v50 = vrot.slane %v4864_v35, 4  ;;  %v11037_v60 = vld [vmem:[%s14274_s1 + $0x304] ss:$8 sps:$4 sm:$0xff]  }
  0xfd   : > { %6038 = vmatpush1.bf16.msra.mxu0 %v10952_v18  ;;  %v1225_v18 = vrot.slane %v1223_v27, 4  ;;  %v12727_v27 = vsel %vm12207_vm5, %v9551_v46, %v4864_v35  ;;  %v1253_v6 = vshll.u32 %v12718_v58, 16 }
  0xfe   : > { %6039 = vmatprep.subr.bf16.mxu0 %v10963_v55  ;;  %2534 = vmatpush1.bf16.msra.mxu1 %v10973_v28  ;;  %v10990_v55 = vld [vmem:[%s14274_s1 + $0x6f4] ss:$8 sps:$4 sm:$0xff]   ;;  %v12680_v28 = vsel %vm11623_vm2, %v1193_v14, %v12596_v22  ;;  %v1217_v10 = vrot.slane %v1216_v31, 4 }
  0xff   : > { %1767 = vmatmul.mubr.bf16.gmra.mrb[24].mxu1 %v9137_v40  ;;  %2535 = vmatprep.subr.bf16.mxu1 %v10978_v43  ;;  %v1234_v40 = vshrl.u32 %v11251_v37, 16  ;;  %v1226_v22 = vor.u32 %v1225_v18, %v12656_v3  ;;  %v1247_v43 = vshrl.u32 %v11250_v34, 16  ;;  %v9143_v17 = vcombine.low %v12680_v28, %v12684_v30 }
 0x100   : > { %5318 = vmatmul.mubr.bf16.gmra.mrb[24].mxu0 %v9601_v53  ;;  %1776 = vmatprep.mubr.bf16.mxu1 %v9140_v36  ;;  %v1237_v53 = vshll.u32 %v11251_v37, 16  ;;  %v10988_v36 = vld [vmem:[%s14274_s1 + $0x6f0] ss:$8 sps:$4 sm:$0xff]   ;;  %v1222_v5 = vsel %vm11623_vm2, %v1217_v10, %v12656_v3  ;;  %v9607_v3 = vcombine.low %v12666_v42, %v12688_v62  ;;  %v1277_v37 = vshll.u32 %v12741_v48, 16  ;;  %v11258_v10 = vld [vmem:[%s11561_s6 + $0x148] sm:$0x11] }
 0x101   : > { %5327 = vmatprep.mubr.bf16.mxu0 %v9604_v29  ;;  %6040 = vmatpush1.bf16.msra.mxu0 %v10961_v41  ;;  %v1243_v41 = vshll.u32 %v11250_v34, 16  ;;  %v9141_v29 = vcombine.low %v12626_v32, %v12641_v61  ;;  %v1236_v19 = vrot.slane %v1234_v40, 4  ;;  %v1231_v32 = vrot.slane %v1229_v39, 5  ;;  %v11254_v61 = vld [vmem:[%s11561_s6 + $0x128] sm:$0xff]  ;;  %v11255_v34 = vld [vmem:[%s11561_s6 + $0x130] sm:$0x11] }
 0x102   : > { %6041 = vmatprep.subr.bf16.mxu0 %v10972_v54  ;;  %2536 = vmatpush1.bf16.msra.mxu1 %v10976_v44  ;;  %v9144_v54 = vcombine.high %v12680_v28, %v12684_v30  ;;  %v9608_v44 = vcombine.high %v12666_v42, %v12688_v62  ;;  %v1249_v20 = vrot.slane %v1247_v43, 4  ;;  %v1267_v11 = vshll.u32 %v11254_v61, 16  ;;  %v11256_v62 = vld [vmem:[%s11561_s6 + $0x140] sm:$0xff] }
 0x103   : > { %2537 = vmatprep.subr.bf16.mxu1 %v10984_v26  ;;  %v1227_v26 = vrot.slane %v1226_v22, 4  ;;  %v1245_v33 = vrot.slane %v1243_v41, 5  ;;  %v1271_v59 = vshrl.u32 %v11254_v61, 16  ;;  %v4871_v13 = vrot.slane %v11254_v61, 5 }
 0x104   : > { %v4874_v35 = vrot.slane %v11255_v34, 5  ;;  %v4878_v40 = vrot.slane %v11256_v62, 5  ;;  %v1291_v41 = vshll.u32 %v11256_v62, 16  ;;  %v1295_v43 = vshrl.u32 %v11256_v62, 16 }
 0x105   : > { %6042 = vmatpush1.bf16.msra.mxu0 %v10970_v21  ;;  %v1239_v21 = vrot.slane %v1237_v53, 5  ;;  %v1232_v14 = vsel %vm11623_vm2, %v1227_v26, %v1231_v32  ;;  %v1250_v7 = vor.u32 %v1249_v20, %v1245_v33  ;;  %v1273_v16 = vrot.slane %v1271_v59, 4  ;;  %v11257_v53 = vld [vmem:[%s11561_s6 + $0x138] sm:$0xff] }
 0x106   : > { %6043 = vmatprep.subr.bf16.mxu0 %v10981_v1  ;;  %2538 = vmatpush1.bf16.msra.mxu1 %v10982_v2  ;;  %v1258_v1 = vshrl.u32 %v11253_v0, 16  ;;  %v1261_v2 = vshll.u32 %v11253_v0, 16  ;;  %v12749_v31 = vrot.slane %v4871_v13, 4  ;;  %v1282_v22 = vshrl.u32 %v11257_v53, 16 }
 0x107   : > { %1777 = vmatmul.mubr.bf16.gmra.mrb[28].mxu1 %v9139_v8  ;;  %2539 = vmatprep.subr.bf16.mxu1 %v10987_v24  ;;  %v12732_v8 = vsel %vm12207_vm5, %v12715_v50, %v4867_v49  ;;  %v1285_v39 = vshll.u32 %v11257_v53, 16  ;;  %v12768_v49 = vrot.slane %v4878_v40, 4  ;;  %v1297_v20 = vrot.slane %v1295_v43, 4 }
 0x108   : > { %5328 = vmatmul.mubr.bf16.gmra.mrb[28].mxu0 %v9603_v9  ;;  %1786 = vmatprep.mubr.bf16.mxu1 %v9142_v15  ;;  %v1240_v9 = vor.u32 %v1239_v21, %v1236_v19  ;;  %v1260_v51 = vrot.slane %v1258_v1, 4  ;;  %v1263_v15 = vrot.slane %v1261_v2, 5  ;;  %v9610_v18 = vcombine.high %v12727_v27, %v12732_v8  ;;  %v12772_v21 = vld [vmem:[%s11561_s6 + $0x148] sm:$0x11] }
 0x109   : > { %5337 = vmatprep.mubr.bf16.mxu0 %v9606_v4  ;;  %6044 = vmatpush1.bf16.msra.mxu0 %v10979_v23  ;;  %v1269_v4 = vrot.slane %v1267_v11, 5  ;;  %v9146_v23 = vcombine.high %v1222_v5, %v1232_v14  ;;  %v9609_v28 = vcombine.low %v12727_v27, %v12732_v8  ;;  %v4881_v19 = vrot.slane %v11258_v10, 5 }
 0x10a   : > { %6045 = vmatprep.subr.bf16.mxu0 %v10990_v55  ;;  %2540 = vmatpush1.bf16.msra.mxu1 %v10985_v25  ;;  %v1241_v24 = vrot.slane %v1240_v9, 4  ;;  %v1255_v25 = vrot.slane %v1253_v6, 5  ;;  %v9552_v55 = vrot.slane %v11253_v0, 9  ;;  %v1264_v30 = vor.u32 %v1263_v15, %v1260_v51  ;;  %v11259_v6 = vld [vmem:[%s11561_s6 + $0x158] sm:$0xff] }
 0x10b   : > { %2541 = vmatprep.subr.bf16.mxu1 %v10993_v63  ;;  %v1251_v63 = vrot.slane %v1250_v7, 4  ;;  %v1274_v42 = vor.u32 %v1273_v16, %v1269_v4  ;;  %v1284_v26 = vrot.slane %v1282_v22, 4  ;;  %v1287_v32 = vrot.slane %v1285_v39, 5 }
 0x10c   : > { %v1265_v46 = vrot.slane %v1264_v30, 4  ;;  %v12786_v61 = vsel %vm12207_vm5, %v12768_v49, %v4881_v19  ;;  %v1301_v11 = vshll.u32 %v12772_v21, 16  ;;  %v1315_v51 = vshll.u32 %v11259_v6, 16 }
 0x10d   : > { %6046 = vmatpush1.bf16.msra.mxu0 %v10988_v36  ;;  %v9145_v36 = vcombine.low %v1222_v5, %v1232_v14  ;;  %v1275_v47 = vrot.slane %v1274_v42, 4  ;;  %v1288_v8 = vor.u32 %v1287_v32, %v1284_v26  ;;  %v4885_v5 = vrot.slane %v11259_v6, 5  ;;  %v11260_v14 = vld [vmem:[%s11561_s6 + $0x150] sm:$0xff] }
 0x10e   : > { %2542 = vmatpush1.bf16.msra.mxu1 %v10991_v38  ;;  %7105 = vmatprep.subr.bf16.mxu0 %v10998_v52  ;;  %v1256_v38 = vsel %vm11623_vm2, %v1251_v63, %v1255_v25  ;;  %v4875_v52 = vsel %vm12207_vm5, %v12749_v31, %v4874_v35  ;;  %v12777_v1 = vsel %vm11623_vm2, %v1265_v46, %v1269_v4  ;;  %v1306_v7 = vshrl.u32 %v11260_v14, 16  ;;  %v11261_v63 = vld [vmem:[%s11561_s6 + $0x160] sm:$0x11] }
 0x10f   : > { %1787 = vmatmul.mubr.bf16.gmra.mrb[32].mxu1 %v9141_v29  ;;  %3301 = vmatprep.subr.bf16.mxu1 %v11037_v60  ;;  %v1246_v29 = vsel %vm11623_vm2, %v1241_v24, %v1245_v33  ;;  %v1293_v33 = vrot.slane %v1291_v41, 5  ;;  %v1319_v15 = vshrl.u32 %v11259_v6, 16  ;;  %v1289_v24 = vrot.slane %v1288_v8, 4  ;;  %v12801_v35 = vld [vmem:[%s11561_s6 + $0x160] sm:$0x11] }
 0x110   : > { %5338 = vmatmul.mubr.bf16.gmra.mrb[32].mxu0 %v9605_v45  ;;  %1796 = vmatprep.mubr.bf16.mxu1 %v9144_v54  ;;  %v12761_v45 = vsel %vm12207_vm5, %v9552_v55, %v4871_v13  ;;  %v1279_v54 = vrot.slane %v1277_v37, 5  ;;  %v9148_v60 = vcombine.high %v1246_v29, %v1256_v38  ;;  %v1309_v13 = vshll.u32 %v11260_v14, 16 }
 0x111   : > { %5347 = vmatprep.mubr.bf16.mxu0 %v9608_v44  ;;  %v9553_v44 = vrot.slane %v11257_v53, 9  ;;  %v9612_v0 = vcombine.high %v12761_v45, %v4875_v52  ;;  %v1298_v9 = vor.u32 %v1297_v20, %v1293_v33  ;;  %v9147_v4 = vcombine.low %v1246_v29, %v1256_v38 }
 0x112   : > { %v1280_v59 = vsel %vm11623_vm2, %v1275_v47, %v1279_v54  ;;  %v9611_v16 = vcombine.low %v12761_v45, %v4875_v52  ;;  %v12797_v55 = vrot.slane %v4885_v5, 4  ;;  %v4888_v34 = vrot.slane %v11261_v63, 5  ;;  %v11263_v52 = vld [vmem:[%s11561_s6 + $0x170] sm:$0xff]  ;;  %v11266_v63 = vld [vmem:[%s11561_s6 + $0x180] sm:$0xff] }
 0x113   : > { %v12781_v2 = vsel %vm12207_vm5, %v9553_v44, %v4878_v40  ;;  %v1299_v25 = vrot.slane %v1298_v9, 4  ;;  %v1308_v37 = vrot.slane %v1306_v7, 4  ;;  %v1317_v30 = vrot.slane %v1315_v51, 5  ;;  %v11264_v9 = vld [vmem:[%s11561_s6 + $0x178] sm:$0x11] }
 0x114   : > { %v1321_v42 = vrot.slane %v1319_v15, 4  ;;  %v1294_v40 = vsel %vm11623_vm2, %v1289_v24, %v1293_v33  ;;  %v4889_v22 = vsel %vm12207_vm5, %v12797_v55, %v4888_v34  ;;  %v1325_v39 = vshll.u32 %v12801_v35, 16 }
 0x115   : > { %v4892_v54 = vrot.slane %v11263_v52, 5  ;;  %v1339_v44 = vshll.u32 %v11263_v52, 16  ;;  %v1343_v46 = vshrl.u32 %v11263_v52, 16  ;;  %v9149_v47 = vcombine.low %v12777_v1, %v1280_v59 }
 0x116   : > { %v1322_v43 = vor.u32 %v1321_v42, %v1317_v30  ;;  %v9613_v10 = vcombine.low %v12781_v2, %v12786_v61  ;;  %v1327_v32 = vrot.slane %v1325_v39, 5  ;;  %v4895_v6 = vrot.slane %v11264_v9, 5  ;;  %v11267_v42 = vld [vmem:[%s11561_s6 + $0x190] sm:$0x11] }
 0x117   : > { %1797 = vmatmul.mubr.bf16.gmra.mrb[36].mxu1 %v9143_v17  ;;  %v9150_v17 = vcombine.high %v12777_v1, %v1280_v59  ;;  %v12821_v8 = vrot.slane %v4892_v54, 4  ;;  %v12825_v1 = vld [vmem:[%s11561_s6 + $0x178] sm:$0x11]  ;;  %v9556_v34 = vrot.slane %v11266_v63, 9  ;;  %v4902_v39 = vrot.slane %v11267_v42, 5 }
 0x118   : > { %5348 = vmatmul.mubr.bf16.gmra.mrb[36].mxu0 %v9607_v3  ;;  %1806 = vmatprep.mubr.bf16.mxu1 %v9146_v23  ;;  %v9614_v3 = vcombine.high %v12781_v2, %v12786_v61  ;;  %v9554_v23 = vrot.slane %v11260_v14, 9  ;;  %v1345_v14 = vrot.slane %v1343_v46, 4 }
 0x119   : > { %5357 = vmatprep.mubr.bf16.mxu0 %v9610_v18  ;;  %v1303_v18 = vrot.slane %v1301_v11, 5  ;;  %v4896_v51 = vsel %vm12207_vm5, %v12821_v8, %v4895_v6 }
 0x11a   : > { %v12805_v62 = vsel %vm12207_vm5, %v9554_v23, %v4885_v5  ;;  %v1341_v5 = vrot.slane %v1339_v44, 5  ;;  %v11269_v44 = vld [vmem:[%s11561_s6] sm:$0xff] }
 0x11b   : > { %v1304_v53 = vsel %vm11623_vm2, %v1299_v25, %v1303_v18  ;;  %v9616_v26 = vcombine.high %v12805_v62, %v4889_v22  ;;  %v9615_v18 = vcombine.low %v12805_v62, %v4889_v22  ;;  %v9189_v46 = vrot.slane %v11269_v44, 9 }
 0x11c   : > { %v9152_v19 = vcombine.high %v1294_v40, %v1304_v53  ;;  %v1346_v15 = vor.u32 %v1345_v14, %v1341_v5  ;;  %v12873_v14 = vld [vmem:[%s11561_s6 + $0x18] sm:$0xff] }
 0x11f   : > { %1807 = vmatmul.mubr.bf16.gmra.mrb[40].mxu1 %v9145_v36  ;;  %v11262_v36 = vld [vmem:[%s11561_s6 + $0x168] sm:$0xff] }
 0x120   : > { %5358 = vmatmul.mubr.bf16.gmra.mrb[40].mxu0 %v9609_v28  ;;  %1816 = vmatprep.mubr.bf16.mxu1 %v9148_v60  ;;  %v1311_v28 = vrot.slane %v1309_v13, 5  ;;  %v1330_v29 = vshrl.u32 %v11262_v36, 16  ;;  %v1333_v38 = vshll.u32 %v11262_v36, 16  ;;  %v9555_v33 = vrot.slane %v11262_v36, 9 }
 0x121   : > { %5367 = vmatprep.mubr.bf16.mxu0 %v9612_v0  ;;  %v1323_v60 = vrot.slane %v1322_v43, 4 }
 0x122   : > { %v1312_v41 = vor.u32 %v1311_v28, %v1308_v37  ;;  %v1332_v0 = vrot.slane %v1330_v29, 4  ;;  %v1335_v11 = vrot.slane %v1333_v38, 5  ;;  %v12829_v61 = vsel %vm12207_vm5, %v9555_v33, %v4892_v54  ;;  %v12861_v33 = vld [vmem:[%s11561_s6 + $0x30] sm:$0xff] }
 0x123   : > { %v1328_v7 = vsel %vm11623_vm2, %v1323_v60, %v1327_v32  ;;  %v9618_v24 = vcombine.high %v12829_v61, %v4896_v51  ;;  %v1347_v37 = vrot.slane %v1346_v15, 4  ;;  %v9617_v38 = vcombine.low %v12829_v61, %v4896_v51  ;;  %v12867_v60 = vld [vmem:[%s11561_s6 + $0x20] sm:$0xff] }
 0x124   : > { %v1313_v20 = vrot.slane %v1312_v41, 4  ;;  %v1336_v13 = vor.u32 %v1335_v11, %v1332_v0  ;;  %v2087_v0 = vrot.slane %v12867_v60, 5 }
 0x126   : > { %v1318_v59 = vsel %vm11623_vm2, %v1313_v20, %v1317_v30  ;;  %v1337_v25 = vrot.slane %v1336_v13, 4  ;;  %v12864_v20 = vld [vmem:[%s11561_s6 + $0x38] sm:$0xff]  ;;  %v11273_v13 = vld [vmem:[%s11561_s6 + $0x28] sm:$0x11] }
 0x127   : > { %1817 = vmatmul.mubr.bf16.gmra.mrb[44].mxu1 %v9147_v4  ;;  %v1349_v4 = vshll.u32 %v12825_v1, 16  ;;  %v9154_v23 = vcombine.high %v1318_v59, %v1328_v7  ;;  %v9153_v29 = vcombine.low %v1318_v59, %v1328_v7  ;;  %v9190_v59 = vrot.slane %v12873_v14, 9 }
 0x128   : > { %5368 = vmatmul.mubr.bf16.gmra.mrb[44].mxu0 %v9611_v16  ;;  %1826 = vmatprep.mubr.bf16.mxu1 %v9150_v17  ;;  %v11265_v16 = vld [vmem:[%s11561_s6 + $0x188] sm:$0xff]  ;;  %v1342_v22 = vsel %vm11623_vm2, %v1337_v25, %v1341_v5  ;;  %v9734_v5 = vcombine.high %v12861_v33, %v12864_v20  ;;  %v2089_v7 = vrot.slane %v2087_v0, 4  ;;  %v2090_v51 = vrot.slane %v11273_v13, 5 }
 0x129   : > { %5377 = vmatprep.mubr.bf16.mxu0 %v9614_v3  ;;  %v4899_v17 = vrot.slane %v11265_v16, 5  ;;  %v9151_v3 = vcombine.low %v1294_v40, %v1304_v53  ;;  %v1351_v28 = vrot.slane %v1349_v4, 5  ;;  %v11268_v40 = vld [vmem:[%s11561_s6 + $0x8] sm:$0xff]  ;;  %v2088_v15 = vsel %vm12207_vm5, %v9190_v59, %v2087_v0  ;;  %v12882_v16 = vld [vmem:[%s11561_s6 + $0x38] sm:$0xff] }
 0x12a   : > { %v2080_v53 = vrot.slane %v11268_v40, 5  ;;  %v2091_v4 = vsel %vm12207_vm5, %v2089_v7, %v2090_v51  ;;  %v10996_v25 = vld [vmem:[%s14274_s1 + $0x700] ss:$8 sps:$4 sm:$0xff]   ;;  %v11048_v59 = vld [vmem:[%s14274_s1 + $0x324] ss:$8 sps:$4 sm:$0xff]  }
 0x12b   : > { %v4901_v30 = vrot.slane %v4899_v17, 4  ;;  %v1352_v41 = vsel %vm11623_vm2, %v1347_v37, %v1351_v28  ;;  %v4900_v43 = vsel %vm12207_vm5, %v9556_v34, %v4899_v17  ;;  %v2094_v17 = vrot.slane %v12882_v16, 5  ;;  %v11003_v37 = vld [vmem:[%s14274_s1 + $0x714] ss:$8 sps:$4 sm:$0xff]   ;;  %v12943_v0 = vld [vmem:[%s11561_s6 + $0x48] sm:$0xff] }
 0x12c   : > { %v9156_v52 = vcombine.high %v1342_v22, %v1352_v41  ;;  %v9155_v11 = vcombine.low %v1342_v22, %v1352_v41  ;;  %v9240_v63 = vcombine.high %v2088_v15, %v2091_v4  ;;  %v12902_v28 = vld [vmem:[%s11561_s6 + $0x30] sm:$0xff]  ;;  %v11046_v13 = vld [vmem:[%s14274_s1 + $0x320] ss:$8 sps:$4 sm:$0xff]  }
 0x12d   : > { %v4903_v36 = vsel %vm12207_vm5, %v4901_v30, %v4902_v39  ;;  %v9191_v30 = vrot.slane %v12902_v28, 9  ;;  %v2096_v42 = vrot.slane %v2094_v17, 4  ;;  %v11276_v39 = vld [vmem:[%s11561_s6 + $0x40] sm:$0x11]  ;;  %v11044_v22 = vld [vmem:[%s14274_s1 + $0x314] ss:$8 sps:$4 sm:$0xff]  }
 0x12e   : > { %v9620_v54 = vcombine.high %v4900_v43, %v4903_v36  ;;  %v9619_v9 = vcombine.low %v4900_v43, %v4903_v36  ;;  %v2097_v40 = vrot.slane %v11276_v39, 5  ;;  %v11001_v41 = vld [vmem:[%s14274_s1 + $0x710] ss:$8 sps:$4 sm:$0xff]   ;;  %v11013_v7 = vld [vmem:[%s14274_s1 + $0x734] ss:$8 sps:$4 sm:$0xff]  }
 0x12f   : > { %1827 = vmatmul.mubr.bf16.gmra.mrb[48].mxu1 %v9149_v47  ;;  %v2082_v47 = vrot.slane %v2080_v53, 4  ;;  %v2095_v43 = vsel %vm12207_vm5, %v9191_v30, %v2094_v17  ;;  %v11055_v51 = vld [vmem:[%s14274_s1 + $0x334] ss:$8 sps:$4 sm:$0xff]  }
 0x130   : > { %5378 = vmatmul.mubr.bf16.gmra.mrb[48].mxu0 %v9613_v10  ;;  %1836 = vmatprep.mubr.bf16.mxu1 %v9152_v19  ;;  %v11270_v10 = vld [vmem:[%s11561_s6 + $0x10] sm:$0x11]  ;;  %v2098_v36 = vsel %vm12207_vm5, %v2096_v42, %v2097_v40  ;;  %v12968_v17 = vld [vmem:[%s11561_s6 + $0x78] sm:$0xff] }
 0x131   : > { %5387 = vmatprep.mubr.bf16.mxu0 %v9616_v26  ;;  %v2083_v19 = vrot.slane %v11270_v10, 5  ;;  %v2081_v26 = vsel %vm12207_vm5, %v9189_v46, %v2080_v53  ;;  %v11035_v53 = vld [vmem:[%s14274_s1 + $0x300] ss:$8 sps:$4 sm:$0xff]   ;;  %v11042_v46 = vld [vmem:[%s14274_s1 + $0x310] ss:$8 sps:$4 sm:$0xff]   ;;  %v9241_v30 = vcombine.low %v2095_v43, %v2098_v36 }
 0x133   : > { %v2084_v32 = vsel %vm12207_vm5, %v2082_v47, %v2083_v19  ;;  %v9239_v47 = vcombine.low %v2088_v15, %v2091_v4  ;;  %v9242_v19 = vcombine.high %v2095_v43, %v2098_v36  ;;  %v11282_v36 = vld [vmem:[%s11561_s6 + $0x70] sm:$0x11] }
 0x134   : > { %v9238_v6 = vcombine.high %v2081_v26, %v2084_v32 }
 0x137   : > { %1837 = vmatmul.mubr.bf16.gmra.mrb[52].mxu1 %v9151_v3  ;;  %v12886_v3 = vld [vmem:[%s11561_s6 + $0x48] sm:$0xff] }
 0x138   : > { %5388 = vmatmul.mubr.bf16.gmra.mrb[52].mxu0 %v9615_v18  ;;  %1846 = vmatprep.mubr.bf16.mxu1 %v9154_v23  ;;  %v12889_v18 = vld [vmem:[%s11561_s6 + $0x50] sm:$0xff]  ;;  %v9237_v23 = vcombine.low %v2081_v26, %v2084_v32  ;;  %v11006_v32 = vld [vmem:[%s14274_s1 + $0x720] ss:$8 sps:$4 sm:$0xff]  }
 0x139   : > { %5397 = vmatprep.mubr.bf16.mxu0 %v9618_v24  ;;  %v9733_v24 = vcombine.low %v12861_v33, %v12864_v20  ;;  %v9736_v34 = vcombine.high %v12886_v3, %v12889_v18  ;;  %v9735_v10 = vcombine.low %v12886_v3, %v12889_v18 }
 0x13f   : > { %1847 = vmatmul.mubr.bf16.gmra.mrb[56].mxu1 %v9153_v29  ;;  %v12920_v29 = vld [vmem:[%s11561_s6 + $0x60] sm:$0xff] }
 0x140   : > { %5398 = vmatmul.mubr.bf16.gmra.mrb[56].mxu0 %v9617_v38  ;;  %1856 = vmatprep.mubr.bf16.mxu1 %v9156_v52  ;;  %v12923_v38 = vld [vmem:[%s11561_s6 + $0x68] sm:$0xff] }
 0x141   : > { %5407 = vmatprep.mubr.bf16.mxu0 %v9620_v54  ;;  %v11008_v52 = vld [vmem:[%s14274_s1 + $0x724] ss:$8 sps:$4 sm:$0xff]   ;;  %v12929_v54 = vld [vmem:[%s11561_s6 + $0x50] sm:$0xff]  ;;  %v9738_v26 = vcombine.high %v12920_v29, %v12923_v38  ;;  %v9737_v42 = vcombine.low %v12920_v29, %v12923_v38  ;;  %v6458_v57 = vshll.u32 %v12923_v38, 16 }
 0x142   : > { %v2101_v44 = vrot.slane %v12929_v54, 5 }
 0x147   : > { %1857 = vmatmul.mubr.bf16.gmra.mrb[60].mxu1 %v9155_v11  ;;  %v9192_v11 = vrot.slane %v12943_v0, 9 }
 0x148   : > { %5408 = vmatmul.mubr.bf16.gmra.mrb[60].mxu0 %v9619_v9  ;;  %2543 = vmatprep.mubr.bf16.mxu1 %v9238_v6  ;;  %v2103_v9 = vrot.slane %v2101_v44, 4  ;;  %v11279_v6 = vld [vmem:[%s11561_s6 + $0x58] sm:$0x11] }
 0x149   : > { %6047 = vmatprep.mubr.bf16.mxu0 %v9734_v5  ;;  %v2104_v5 = vrot.slane %v11279_v6, 5  ;;  %v12961_v15 = vsel %vm12207_vm5, %v9192_v11, %v2101_v44  ;;  %v11059_v44 = vld [vmem:[%s14274_s1 + $0x344] ss:$8 sps:$4 sm:$0xff]   ;;  %v13024_v11 = vld [vmem:[%s11561_s6 + $0x98] sm:$0xff] }
 0x14b   : > { %v12965_v4 = vsel %vm12207_vm5, %v2103_v9, %v2104_v5  ;;  %v13027_v9 = vld [vmem:[%s11561_s6 + $0x80] sm:$0xff]  ;;  %v11021_v5 = vld [vmem:[%s14274_s1 + $0x750] ss:$8 sps:$4 sm:$0xff]  }
 0x14c   : > { %v9244_v39 = vcombine.high %v12961_v15, %v12965_v4  ;;  %v2115_v6 = vrot.slane %v13027_v9, 5 }
 0x14f   : > { %2544 = vmatmul.mubr.bf16.vlgmr.msra.gmra.mrb[0].mxu1 %v9237_v23  ;;  %v12971_v23 = vld [vmem:[%s11561_s6 + $0x80] sm:$0xff] }
 0x150   : > { %6048 = vmatmul.mubr.bf16.vlgmr.msra.gmra.mrb[0].mxu0 %v9733_v24  ;;  %2553 = vmatprep.mubr.bf16.mxu1 %v9240_v63  ;;  %v11011_v24 = vld [vmem:[%s14274_s1 + $0x730] ss:$8 sps:$4 sm:$0xff]   ;;  %v9740_v40 = vcombine.high %v12968_v17, %v12971_v23 }
 0x151   : > { %7106 = vmatpush1.bf16.msra.mxu0 %v10996_v25  ;;  %6057 = vmatprep.mubr.bf16.mxu0 %v9736_v34  ;;  %v12977_v25 = vld [vmem:[%s11561_s6 + $0x68] sm:$0xff] }
 0x152   : > { %7107 = vmatprep.subr.bf16.mxu0 %v11003_v37  ;;  %3302 = vmatpush1.bf16.msra.mxu1 %v11035_v53  ;;  %v2108_v63 = vrot.slane %v12977_v25, 5  ;;  %v11018_v34 = vld [vmem:[%s14274_s1 + $0x744] ss:$8 sps:$4 sm:$0xff]   ;;  %v11053_v37 = vld [vmem:[%s14274_s1 + $0x330] ss:$8 sps:$4 sm:$0xff]  }
 0x153   : > { %3303 = vmatprep.subr.bf16.mxu1 %v11044_v22  ;;  %v11016_v53 = vld [vmem:[%s14274_s1 + $0x740] ss:$8 sps:$4 sm:$0xff]  }
 0x154   : > { %v12996_v22 = vld [vmem:[%s11561_s6 + $0x60] sm:$0xff]  ;;  %v2110_v43 = vrot.slane %v2108_v63, 4 }
 0x155   : > { %7108 = vmatpush1.bf16.msra.mxu0 %v11001_v41  ;;  %v9193_v41 = vrot.slane %v12996_v22, 9 }
 0x156   : > { %7109 = vmatprep.subr.bf16.mxu0 %v11008_v52  ;;  %3304 = vmatpush1.bf16.msra.mxu1 %v11042_v46  ;;  %v2111_v52 = vrot.slane %v11282_v36, 5  ;;  %v11023_v46 = vld [vmem:[%s14274_s1 + $0x754] ss:$8 sps:$4 sm:$0xff]  }
 0x157   : > { %2554 = vmatmul.mubr.bf16.gmra.mrb[4].mxu1 %v9239_v47  ;;  %3305 = vmatprep.subr.bf16.mxu1 %v11048_v59  ;;  %v11057_v47 = vld [vmem:[%s14274_s1 + $0x340] ss:$8 sps:$4 sm:$0xff]   ;;  %v11028_v59 = vld [vmem:[%s14274_s1 + $0x764] ss:$8 sps:$4 sm:$0xff]  }
 0x158   : > { %6058 = vmatmul.mubr.bf16.gmra.mrb[4].mxu0 %v9735_v10  ;;  %2563 = vmatprep.mubr.bf16.mxu1 %v9242_v19  ;;  %v11066_v10 = vld [vmem:[%s14274_s1 + $0x354] ss:$8 sps:$4 sm:$0xff]   ;;  %v13014_v19 = vsel %vm12207_vm5, %v9193_v41, %v2108_v63 }
 0x159   : > { %6067 = vmatprep.mubr.bf16.mxu0 %v9738_v26  ;;  %7110 = vmatpush1.bf16.msra.mxu0 %v11006_v32  ;;  %v13018_v26 = vsel %vm12207_vm5, %v2110_v43, %v2111_v52  ;;  %v13021_v32 = vld [vmem:[%s11561_s6 + $0x90] sm:$0xff]  ;;  %v13076_v52 = vld [vmem:[%s11561_s6 + $0xa8] sm:$0xff] }
 0x15a   : > { %7111 = vmatprep.subr.bf16.mxu0 %v11013_v7  ;;  %3306 = vmatpush1.bf16.msra.mxu1 %v11046_v13  ;;  %v11064_v7 = vld [vmem:[%s14274_s1 + $0x350] ss:$8 sps:$4 sm:$0xff]   ;;  %v9243_v13 = vcombine.low %v12961_v15, %v12965_v4  ;;  %v9742_v63 = vcombine.high %v13021_v32, %v13024_v11  ;;  %v11026_v15 = vld [vmem:[%s14274_s1 + $0x760] ss:$8 sps:$4 sm:$0xff]   ;;  %v11070_v4 = vld [vmem:[%s14274_s1 + $0x364] ss:$8 sps:$4 sm:$0xff]  }
 0x15b   : > { %3307 = vmatprep.subr.bf16.mxu1 %v11055_v51  ;;  %v9739_v51 = vcombine.low %v12968_v17, %v12971_v23  ;;  %v11077_v41 = vld [vmem:[%s14274_s1 + $0x374] ss:$8 sps:$4 sm:$0xff]  }
 0x15d   : > { %7112 = vmatpush1.bf16.msra.mxu0 %v11011_v24  ;;  %v9246_v24 = vcombine.high %v13014_v19, %v13018_v26 }
 0x15e   : > { %7113 = vmatprep.subr.bf16.mxu0 %v11018_v34  ;;  %3308 = vmatpush1.bf16.msra.mxu1 %v11053_v37  ;;  %v13048_v34 = vld [vmem:[%s11561_s6 + $0x78] sm:$0xff] }
 0x15f   : > { %2564 = vmatmul.mubr.bf16.gmra.mrb[8].mxu1 %v9241_v30  ;;  %3309 = vmatprep.subr.bf16.mxu1 %v11059_v44  ;;  %v9194_v37 = vrot.slane %v13048_v34, 9  ;;  %v2117_v30 = vrot.slane %v2115_v6, 4  ;;  %v13079_v44 = vld [vmem:[%s11561_s6 + $0xb0] sm:$0xff] }
 0x160   : > { %6068 = vmatmul.mubr.bf16.gmra.mrb[8].mxu0 %v9737_v42  ;;  %2573 = vmatprep.mubr.bf16.mxu1 %v9244_v39  ;;  %v11285_v42 = vld [vmem:[%s11561_s6 + $0x88] sm:$0x11] }
 0x161   : > { %6077 = vmatprep.mubr.bf16.mxu0 %v9740_v40  ;;  %7114 = vmatpush1.bf16.msra.mxu0 %v11016_v53  ;;  %v2118_v39 = vrot.slane %v11285_v42, 5  ;;  %v11033_v40 = vld [vmem:[%s14274_s1 + $0x774] ss:$8 sps:$4 sm:$0xff]   ;;  %v11068_v53 = vld [vmem:[%s14274_s1 + $0x360] ss:$8 sps:$4 sm:$0xff]   ;;  %v13069_v43 = vsel %vm12207_vm5, %v9194_v37, %v2115_v6 }
 0x162   : > { %7115 = vmatprep.subr.bf16.mxu0 %v11023_v46  ;;  %3310 = vmatpush1.bf16.msra.mxu1 %v11057_v47  ;;  %v13082_v46 = vld [vmem:[%s11561_s6 + $0x98] sm:$0xff]  ;;  %v11041_v6 = vld [vmem:[%s14274_s1 + $0x784] ss:$8 sps:$4 sm:$0xff]  }
 0x163   : > { %3311 = vmatprep.subr.bf16.mxu1 %v11066_v10  ;;  %v13073_v36 = vsel %vm12207_vm5, %v2117_v30, %v2118_v39  ;;  %14309 = vst [vmem:[#allocation4_spill] sm:$0xff] %v13082_v46  ;;  %v2122_v47 = vrot.slane %v13082_v46, 5  ;;  %v11031_v10 = vld [vmem:[%s14274_s1 + $0x770] ss:$8 sps:$4 sm:$0xff]   ;;  %v11288_v30 = vld [vmem:[%s11561_s6 + $0xa0] sm:$0x11] }
 0x164   : > { %v2125_v42 = vrot.slane %v11288_v30, 5  ;;  %v11052_v39 = vld [vmem:[%s14274_s1 + $0x794] ss:$8 sps:$4 sm:$0xff]   ;;  %v13158_v30 = vld [vmem:[%s11561_s6 + $0xa8] sm:$0xff]  ;;  %v13243_v46 = vld [vmem:[%s11561_s6 + $0xe0] sm:$0xff] }
 0x165   : > { %7116 = vmatpush1.bf16.msra.mxu0 %v11021_v5  ;;  %v11075_v5 = vld [vmem:[%s14274_s1 + $0x370] ss:$8 sps:$4 sm:$0xff]   ;;  %v2124_v37 = vrot.slane %v2122_v47, 4  ;;  %14312 = vst [vmem:[#allocation7_spill] sm:$0xff] %v13158_v30  ;;  %14317 = vst [vmem:[#allocation12_spill] sm:$0xff] %v13243_v46 }
 0x166   : > { %7117 = vmatprep.subr.bf16.mxu0 %v11028_v59  ;;  %3312 = vmatpush1.bf16.msra.mxu1 %v11064_v7  ;;  %v9245_v59 = vcombine.low %v13014_v19, %v13018_v26  ;;  %v9741_v7 = vcombine.low %v13021_v32, %v13024_v11  ;;  %v11039_v19 = vld [vmem:[%s14274_s1 + $0x780] ss:$8 sps:$4 sm:$0xff]   ;;  %v11081_v26 = vld [vmem:[%s14274_s1 + $0x384] ss:$8 sps:$4 sm:$0xff]  }
 0x167   : > { %2574 = vmatmul.mubr.bf16.gmra.mrb[12].mxu1 %v9243_v13  ;;  %3313 = vmatprep.subr.bf16.mxu1 %v11070_v4  ;;  %v9248_v13 = vcombine.high %v13069_v43, %v13073_v36  ;;  %v11088_v4 = vld [vmem:[%s14274_s1 + $0x394] ss:$8 sps:$4 sm:$0xff]  }
 0x168   : > { %6078 = vmatmul.mubr.bf16.gmra.mrb[12].mxu0 %v9739_v51  ;;  %2583 = vmatprep.mubr.bf16.mxu1 %v9246_v24  ;;  %v9744_v51 = vcombine.high %v13076_v52, %v13079_v44  ;;  %v13103_v24 = vld [vmem:[%s11561_s6 + $0x90] sm:$0xff] }
 0x169   : > { %6087 = vmatprep.mubr.bf16.mxu0 %v9742_v63  ;;  %7118 = vmatpush1.bf16.msra.mxu0 %v11026_v15  ;;  %14310 = vst [vmem:[#allocation5_spill] sm:$0xff] %v13103_v24  ;;  %v9195_v63 = vrot.slane %v13103_v24, 9  ;;  %v11079_v15 = vld [vmem:[%s14274_s1 + $0x380] ss:$8 sps:$4 sm:$0xff]   ;;  %v13237_v24 = vld [vmem:[%s11561_s6 + $0xf0] sm:$0xff] }
 0x16a   : > { %7119 = vmatprep.subr.bf16.mxu0 %v11033_v40  ;;  %3314 = vmatpush1.bf16.msra.mxu1 %v11068_v53  ;;  %v13128_v53 = vsel %vm12207_vm5, %v2124_v37, %v2125_v42  ;;  %v9196_v42 = vrot.slane %v13158_v30, 9  ;;  %v13189_v30 = vld [vmem:[%s11561_s6 + $0xe0] sm:$0xff] }
 0x16b   : > { %3315 = vmatprep.subr.bf16.mxu1 %v11077_v41  ;;  %v13124_v40 = vsel %vm12207_vm5, %v9195_v63, %v2122_v47  ;;  %v13131_v41 = vld [vmem:[%s11561_s6 + $0xc0] sm:$0xff]  ;;  %v11050_v47 = vld [vmem:[%s14274_s1 + $0x790] ss:$8 sps:$4 sm:$0xff]   ;;  %14314 = vst [vmem:[#allocation9_spill] sm:$0xff] %v13189_v30 }
 0x16c   : > { %v9250_v63 = vcombine.high %v13124_v40, %v13128_v53 }
 0x16d   : > { %7120 = vmatpush1.bf16.msra.mxu0 %v11031_v10  ;;  %v13134_v10 = vld [vmem:[%s11561_s6 + $0xc8] sm:$0xff] }
 0x16e   : > { %7121 = vmatprep.subr.bf16.mxu0 %v11041_v6  ;;  %3316 = vmatpush1.bf16.msra.mxu1 %v11075_v5  ;;  %v13137_v6 = vld [vmem:[%s11561_s6 + $0xb0] sm:$0xff]  ;;  %v9746_v37 = vcombine.high %v13131_v41, %v13134_v10 }
 0x16f   : > { %2584 = vmatmul.mubr.bf16.gmra.mrb[16].mxu1 %v9245_v59  ;;  %14311 = vst [vmem:[#allocation6_spill] sm:$0xff] %v13137_v6  ;;  %v2129_v5 = vrot.slane %v13137_v6, 5  ;;  %3317 = vmatprep.subr.bf16.mxu1 %v11081_v26  ;;  %v11063_v59 = vld [vmem:[%s14274_s1 + $0x7a4] ss:$8 sps:$4 sm:$0xff]   ;;  %v11291_v26 = vld [vmem:[%s11561_s6 + $0xb8] sm:$0x11] }
 0x170   : > { %6088 = vmatmul.mubr.bf16.gmra.mrb[16].mxu0 %v9741_v7  ;;  %2593 = vmatprep.mubr.bf16.mxu1 %v9248_v13  ;;  %v11086_v7 = vld [vmem:[%s14274_s1 + $0x390] ss:$8 sps:$4 sm:$0xff]   ;;  %v9247_v13 = vcombine.low %v13069_v43, %v13073_v36  ;;  %v11061_v43 = vld [vmem:[%s14274_s1 + $0x7a0] ss:$8 sps:$4 sm:$0xff]   ;;  %v11092_v36 = vld [vmem:[%s14274_s1 + $0x3a4] ss:$8 sps:$4 sm:$0xff]  }
 0x171   : > { %6097 = vmatprep.mubr.bf16.mxu0 %v9744_v51  ;;  %7122 = vmatpush1.bf16.msra.mxu0 %v11039_v19  ;;  %v9743_v51 = vcombine.low %v13076_v52, %v13079_v44  ;;  %v2131_v19 = vrot.slane %v2129_v5, 4 }
 0x172   : > { %7123 = vmatprep.subr.bf16.mxu0 %v11052_v39  ;;  %3318 = vmatpush1.bf16.msra.mxu1 %v11079_v15  ;;  %v2132_v39 = vrot.slane %v11291_v26, 5  ;;  %v11074_v15 = vld [vmem:[%s14274_s1 + $0x7b4] ss:$8 sps:$4 sm:$0xff]  }
 0x173   : > { %3319 = vmatprep.subr.bf16.mxu1 %v11088_v4  ;;  %v11090_v4 = vld [vmem:[%s14274_s1 + $0x3a0] ss:$8 sps:$4 sm:$0xff]  }
 0x174   : > { %v13183_v26 = vsel %vm12207_vm5, %v2131_v19, %v2132_v39  ;;  %v9745_v19 = vcombine.low %v13131_v41, %v13134_v10 }
 0x175   : > { %7124 = vmatpush1.bf16.msra.mxu0 %v11050_v47  ;;  %v11099_v47 = vld [vmem:[%s14274_s1 + $0x3b4] ss:$8 sps:$4 sm:$0xff]  }
 0x176   : > { %7125 = vmatprep.subr.bf16.mxu0 %v11063_v59  ;;  %3320 = vmatpush1.bf16.msra.mxu1 %v11086_v7  ;;  %v13179_v59 = vsel %vm12207_vm5, %v9196_v42, %v2129_v5  ;;  %v13186_v7 = vld [vmem:[%s11561_s6 + $0xd8] sm:$0xff]  ;;  %v9249_v42 = vcombine.low %v13124_v40, %v13128_v53  ;;  %v11083_v40 = vld [vmem:[%s14274_s1 + $0x7c0] ss:$8 sps:$4 sm:$0xff]   ;;  %v11103_v53 = vld [vmem:[%s14274_s1 + $0x3c4] ss:$8 sps:$4 sm:$0xff]  }
 0x177   : > { %2594 = vmatmul.mubr.bf16.gmra.mrb[20].mxu1 %v9247_v13  ;;  %14313 = vst [vmem:[#allocation8_spill] sm:$0xff] %v13186_v7  ;;  %v13192_v13 = vld [vmem:[%s11561_s6 + $0xc8] sm:$0xff]  ;;  %v11072_v5 = vld [vmem:[%s14274_s1 + $0x7b0] ss:$8 sps:$4 sm:$0xff]   ;;  %3321 = vmatprep.subr.bf16.mxu1 %v11092_v36  ;;  %v9252_v39 = vcombine.high %v13179_v59, %v13183_v26  ;;  %v13213_v36 = vld [vmem:[%s11561_s6 + $0xc0] sm:$0xff] }
 0x178   : > { %6098 = vmatmul.mubr.bf16.gmra.mrb[20].mxu0 %v9743_v51  ;;  %2603 = vmatprep.mubr.bf16.mxu1 %v9250_v63  ;;  %14315 = vst [vmem:[#allocation10_spill] sm:$0xff] %v13192_v13  ;;  %v2136_v51 = vrot.slane %v13192_v13, 5  ;;  %v11085_v63 = vld [vmem:[%s14274_s1 + $0x7c4] ss:$8 sps:$4 sm:$0xff]   ;;  %14316 = vst [vmem:[#allocation11_spill] sm:$0xff] %v13213_v36 }
 0x179   : > { %6107 = vmatprep.mubr.bf16.mxu0 %v9746_v37  ;;  %7126 = vmatpush1.bf16.msra.mxu0 %v11061_v43  ;;  %v11097_v37 = vld [vmem:[%s14274_s1 + $0x3b0] ss:$8 sps:$4 sm:$0xff]   ;;  %v9748_v43 = vcombine.high %v13186_v7, %v13189_v30 }
 0x17a   : > { %7127 = vmatprep.subr.bf16.mxu0 %v11074_v15  ;;  %3322 = vmatpush1.bf16.msra.mxu1 %v11090_v4  ;;  %v9197_v15 = vrot.slane %v13213_v36, 9  ;;  %v2138_v4 = vrot.slane %v2136_v51, 4  ;;  %v11294_v13 = vld [vmem:[%s11561_s6 + $0xd0] sm:$0x11] }
 0x17b   : > { %3323 = vmatprep.subr.bf16.mxu1 %v11099_v47  ;;  %v2139_v6 = vrot.slane %v11294_v13, 5  ;;  %v11096_v47 = vld [vmem:[%s14274_s1 + $0x7d4] ss:$8 sps:$4 sm:$0xff]   ;;  %v11101_v13 = vld [vmem:[%s14274_s1 + $0x3c0] ss:$8 sps:$4 sm:$0xff]  }
 0x17d   : > { %7128 = vmatpush1.bf16.msra.mxu0 %v11072_v5  ;;  %v11110_v5 = vld [vmem:[%s14274_s1 + $0x3d4] ss:$8 sps:$4 sm:$0xff]   ;;  %v2140_v36 = vsel %vm12207_vm5, %v2138_v4, %v2139_v6  ;;  %v11107_v6 = vld [vmem:[%s14274_s1 + $0x7e4] ss:$8 sps:$4 sm:$0xff]  }
 0x17e   : > { %7129 = vmatprep.subr.bf16.mxu0 %v11085_v63  ;;  %3324 = vmatpush1.bf16.msra.mxu1 %v11097_v37  ;;  %v2137_v63 = vsel %vm12207_vm5, %v9197_v15, %v2136_v51  ;;  %v13240_v37 = vld [vmem:[%s11561_s6 + $0xf8] sm:$0xff] }
 0x17f   : > { %2604 = vmatmul.mubr.bf16.gmra.mrb[24].mxu1 %v9249_v42  ;;  %v2143_v42 = vrot.slane %v13243_v46, 5  ;;  %3325 = vmatprep.subr.bf16.mxu1 %v11103_v53  ;;  %v11108_v51 = vld [vmem:[%s14274_s1 + $0x3d0] ss:$8 sps:$4 sm:$0xff]   ;;  %v9254_v15 = vcombine.high %v2137_v63, %v2140_v36  ;;  %v9750_v4 = vcombine.high %v13237_v24, %v13240_v37 }
 0x180   : > { %6108 = vmatmul.mubr.bf16.gmra.mrb[24].mxu0 %v9745_v19  ;;  %2613 = vmatprep.mubr.bf16.mxu1 %v9252_v39  ;;  %v11094_v19 = vld [vmem:[%s14274_s1 + $0x7d0] ss:$8 sps:$4 sm:$0xff]   ;;  %v9251_v39 = vcombine.low %v13179_v59, %v13183_v26  ;;  %v11105_v59 = vld [vmem:[%s14274_s1 + $0x7e0] ss:$8 sps:$4 sm:$0xff]   ;;  %v11114_v26 = vld [vmem:[%s14274_s1 + $0x3e4] ss:$8 sps:$4 sm:$0xff]  }
 0x181   : > { %6117 = vmatprep.mubr.bf16.mxu0 %v9748_v43  ;;  %7130 = vmatpush1.bf16.msra.mxu0 %v11083_v40  ;;  %v9747_v43 = vcombine.low %v13186_v7, %v13189_v30  ;;  %v13262_v40 = vld [vmem:[%s11561_s6 + $0xd8] sm:$0xff]  ;;  %v13289_v30 = vld [vmem:[%s11561_s6 + $0x110] sm:$0xff] }
 0x182   : > { %7131 = vmatprep.subr.bf16.mxu0 %v11096_v47  ;;  %3326 = vmatpush1.bf16.msra.mxu1 %v11101_v13  ;;  %14318 = vst [vmem:[#allocation13_spill] sm:$0xff] %v13262_v40  ;;  %v9198_v53 = vrot.slane %v13262_v40, 9  ;;  %v2145_v47 = vrot.slane %v2143_v42, 4  ;;  %v11297_v13 = vld [vmem:[%s11561_s6 + $0xe8] sm:$0x11]  ;;  %v13292_v7 = vld [vmem:[%s11561_s6 + $0xf8] sm:$0xff] }
 0x183   : > { %3327 = vmatprep.subr.bf16.mxu1 %v11110_v5  ;;  %v2146_v46 = vrot.slane %v11297_v13, 5  ;;  %v11112_v5 = vld [vmem:[%s14274_s1 + $0x3e0] ss:$8 sps:$4 sm:$0xff]   ;;  %v11118_v13 = vld [vmem:[%s14274_s1 + $0x7f4] ss:$8 sps:$4 sm:$0xff]  }
 0x184   : > { %v13286_v40 = vld [vmem:[%s11561_s6 + $0x108] sm:$0xff] }
 0x185   : > { %7132 = vmatpush1.bf16.msra.mxu0 %v11094_v19  ;;  %v11121_v19 = vld [vmem:[%s14274_s1 + $0x3f4] ss:$8 sps:$4 sm:$0xff]  }
 0x186   : > { %7133 = vmatprep.subr.bf16.mxu0 %v11107_v6  ;;  %3328 = vmatpush1.bf16.msra.mxu1 %v11108_v51  ;;  %v2144_v6 = vsel %vm12207_vm5, %v9198_v53, %v2143_v42  ;;  %v2147_v51 = vsel %vm12207_vm5, %v2145_v47, %v2146_v46  ;;  %v11119_v46 = vld [vmem:[%s14274_s1 + $0x3f0] ss:$8 sps:$4 sm:$0xff]   ;;  %v11126_v42 = vld [vmem:[%s14274_s1 + $0x804] ss:$8 sps:$4 sm:$0xff]   ;;  %v9752_v47 = vcombine.high %v13286_v40, %v13289_v30 }
 0x187   : > { %2614 = vmatmul.mubr.bf16.gmra.mrb[28].mxu1 %v9251_v39  ;;  %v2150_v39 = vrot.slane %v13292_v7, 5  ;;  %3329 = vmatprep.subr.bf16.mxu1 %v11114_v26  ;;  %v9256_v53 = vcombine.high %v2144_v6, %v2147_v51 }
 0x188   : > { %6118 = vmatmul.mubr.bf16.gmra.mrb[28].mxu0 %v9747_v43  ;;  %2623 = vmatprep.mubr.bf16.mxu1 %v9254_v15  ;;  %v11116_v43 = vld [vmem:[%s14274_s1 + $0x7f0] ss:$8 sps:$4 sm:$0xff]   ;;  %v9253_v15 = vcombine.low %v2137_v63, %v2140_v36 }
 0x189   : > { %6127 = vmatprep.mubr.bf16.mxu0 %v9750_v4  ;;  %7134 = vmatpush1.bf16.msra.mxu0 %v11105_v59  ;;  %v9749_v4 = vcombine.low %v13237_v24, %v13240_v37  ;;  %v13309_v59 = vld [vmem:[%s11561_s6 + $0xf0] sm:$0xff] }
 0x18a   : > { %7135 = vmatprep.subr.bf16.mxu0 %v11118_v13  ;;  %3330 = vmatpush1.bf16.msra.mxu1 %v11112_v5  ;;  %14319 = vst [vmem:[#allocation14_spill] sm:$0xff] %v13309_v59  ;;  %v9199_v26 = vrot.slane %v13309_v59, 9  ;;  %v2152_v5 = vrot.slane %v2150_v39, 4  ;;  %v2153_v13 = vrot.slane %v12669_v56, 5  ;;  %v13321_v59 = vld [vmem:[%s11561_s6 + $0x128] sm:$0xff]  ;;  %v9255_v56 = vcombine.low %v2144_v6, %v2147_v51  ;;  %v13332_v6 = vld [vmem:[%s11561_s6 + $0x138] sm:$0xff] }
 0x18b   : > { %3331 = vmatprep.subr.bf16.mxu1 %v11121_v19  ;;  %v13318_v19 = vld [vmem:[%s11561_s6 + $0x120] sm:$0xff] }
 0x18c   : > { %v2151_v36 = vsel %vm12207_vm5, %v9199_v26, %v2150_v39  ;;  %v2154_v63 = vsel %vm12207_vm5, %v2152_v5, %v2153_v13  ;;  %v13335_v51 = vld [vmem:[%s11561_s6 + $0x140] sm:$0xff]  ;;  %v2167_v26 = vrot.slane %v12741_v48, 5  ;;  %v13347_v5 = vld [vmem:[%s11561_s6 + $0x150] sm:$0xff]  ;;  %v13350_v13 = vld [vmem:[%s11561_s6 + $0x158] sm:$0xff] }
 0x18d   : > { %7136 = vmatpush1.bf16.msra.mxu0 %v11116_v43  ;;  %v9751_v43 = vcombine.low %v13286_v40, %v13289_v30 }
 0x18e   : > { %3332 = vmatpush1.bf16.msra.mxu1 %v11119_v46  ;;  %7939 = vmatprep.subr.bf16.mxu0 %v11126_v42  ;;  %v9258_v46 = vcombine.high %v2151_v36, %v2154_v63  ;;  %v9754_v42 = vcombine.high %v13318_v19, %v13321_v59 }
 0x18f   : > { %2624 = vmatmul.mubr.bf16.gmra.mrb[32].mxu1 %v9253_v15  ;;  %v2160_v15 = vrot.slane %v12718_v58, 5 }
 0x190   : > { %6128 = vmatmul.mubr.bf16.gmra.mrb[32].mxu0 %v9749_v4  ;;  %2633 = vmatprep.mubr.bf16.mxu1 %v9256_v53  ;;  %v9257_v4 = vcombine.low %v2151_v36, %v2154_v63  ;;  %v9753_v53 = vcombine.low %v13318_v19, %v13321_v59  ;;  %v9755_v63 = vcombine.low %v13332_v6, %v13335_v51 }
 0x191   : > { %6137 = vmatprep.mubr.bf16.mxu0 %v9752_v47  ;;  %v2161_v39 = vsel %vm12207_vm5, %v12715_v50, %v2160_v15  ;;  %v9756_v47 = vcombine.high %v13332_v6, %v13335_v51  ;;  %v2168_v50 = vsel %vm12207_vm5, %v12749_v31, %v2167_v26  ;;  %v13363_v31 = vld [vmem:[%s11561_s6 + $0x168] sm:$0xff]  ;;  %v9757_v15 = vcombine.low %v13347_v5, %v13350_v13 }
 0x192   : > { %v9260_v58 = vcombine.high %v12727_v27, %v2161_v39  ;;  %v9259_v36 = vcombine.low %v12727_v27, %v2161_v39  ;;  %v9262_v48 = vcombine.high %v12761_v45, %v2168_v50  ;;  %v6410_v26 = vshll.u32 %v12864_v20, 16 }
 0x197   : > { %2634 = vmatmul.mubr.bf16.gmra.mrb[36].mxu1 %v9255_v56  ;;  %v9758_v56 = vcombine.high %v13347_v5, %v13350_v13 }
 0x198   : > { %6138 = vmatmul.mubr.bf16.gmra.mrb[36].mxu0 %v9751_v43  ;;  %2643 = vmatprep.mubr.bf16.mxu1 %v9258_v46  ;;  %v2174_v43 = vrot.slane %v12772_v21, 5  ;;  %v13366_v46 = vld [vmem:[%s11561_s6 + $0x170] sm:$0xff] }
 0x199   : > { %6147 = vmatprep.mubr.bf16.mxu0 %v9754_v42  ;;  %v9261_v42 = vcombine.low %v12761_v45, %v2168_v50  ;;  %v9760_v39 = vcombine.high %v13363_v31, %v13366_v46  ;;  %v13379_v45 = vld [vmem:[%s11561_s6 + $0x180] sm:$0xff] }
 0x19a   : > { %v2175_v27 = vsel %vm12207_vm5, %v12768_v49, %v2174_v43  ;;  %v6412_v43 = vrot.slane %v6410_v26, 5  ;;  %v6438_v26 = vshrl.u32 %v12889_v18, 16 }
 0x19b   : > { %v9264_v21 = vcombine.high %v12781_v2, %v2175_v27  ;;  %v9263_v50 = vcombine.low %v12781_v2, %v2175_v27  ;;  %v13405_v27 = vld [vmem:[%s11561_s6 + $0x1a0] sm:$0xff] }
 0x19f   : > { %2644 = vmatmul.mubr.bf16.gmra.mrb[40].mxu1 %v9257_v4  ;;  %v2181_v4 = vrot.slane %v12801_v35, 5  ;;  %v6414_v35 = vshrl.u32 %v12864_v20, 16  ;;  %v13402_v20 = vld [vmem:[%s11561_s6 + $0x198] sm:$0xff] }
 0x1a0   : > { %6148 = vmatmul.mubr.bf16.gmra.mrb[40].mxu0 %v9753_v53  ;;  %2653 = vmatprep.mubr.bf16.mxu1 %v9260_v58  ;;  %v13382_v53 = vld [vmem:[%s11561_s6 + $0x188] sm:$0xff]  ;;  %v6401_v58 = vshrl.u32 %v12861_v33, 16 }
 0x1a1   : > { %6157 = vmatprep.mubr.bf16.mxu0 %v9756_v47  ;;  %v2182_v49 = vsel %vm12207_vm5, %v12797_v55, %v2181_v4  ;;  %v6404_v47 = vshll.u32 %v12861_v33, 16  ;;  %v9759_v55 = vcombine.low %v13363_v31, %v13366_v46  ;;  %v6425_v4 = vshrl.u32 %v12886_v3, 16 }
 0x1a3   : > { %v6406_v33 = vrot.slane %v6404_v47, 5  ;;  %v6434_v47 = vshll.u32 %v12889_v18, 16  ;;  %v13419_v18 = vld [vmem:[%s11561_s6 + $0x58] sm:$0x11] }
 0x1a7   : > { %2654 = vmatmul.mubr.bf16.gmra.mrb[44].mxu1 %v9259_v36  ;;  %v9266_v36 = vcombine.high %v12805_v62, %v2182_v49 }
 0x1a8   : > { %6158 = vmatmul.mubr.bf16.gmra.mrb[44].mxu0 %v9755_v63  ;;  %2663 = vmatprep.mubr.bf16.mxu1 %v9262_v48  ;;  %v9762_v63 = vcombine.high %v13379_v45, %v13382_v53  ;;  %v2188_v48 = vrot.slane %v12825_v1, 5 }
 0x1a9   : > { %6167 = vmatprep.mubr.bf16.mxu0 %v9758_v56  ;;  %v6403_v56 = vrot.slane %v6401_v58, 4  ;;  %v6428_v58 = vshll.u32 %v12886_v3, 16 }
 0x1aa   : > { %v2189_v2 = vsel %vm12207_vm5, %v12821_v8, %v2188_v48  ;;  %v9761_v8 = vcombine.low %v13379_v45, %v13382_v53 }
 0x1ab   : > { %v6430_v3 = vrot.slane %v6428_v58, 5 }
 0x1af   : > { %2664 = vmatmul.mubr.bf16.gmra.mrb[48].mxu1 %v9261_v42  ;;  %v6416_v42 = vrot.slane %v6414_v35, 4  ;;  %v9265_v35 = vcombine.low %v12805_v62, %v2182_v49  ;;  %v6449_v62 = vshrl.u32 %v12920_v29, 16  ;;  %v6452_v49 = vshll.u32 %v12920_v29, 16 }
 0x1b0   : > { %6168 = vmatmul.mubr.bf16.gmra.mrb[48].mxu0 %v9757_v15  ;;  %2673 = vmatprep.mubr.bf16.mxu1 %v9264_v21  ;;  %v13396_v15 = vld [vmem:[%s11561_s6 + $0x40] sm:$0x11]  ;;  %v6407_v21 = vor.u32 %v6406_v33, %v6403_v56  ;;  %v6427_v56 = vrot.slane %v6425_v4, 4  ;;  %v6436_v33 = vrot.slane %v6434_v47, 5  ;;  %v9763_v4 = vcombine.low %v13402_v20, %v13405_v27 }
 0x1b1   : > { %6177 = vmatprep.mubr.bf16.mxu0 %v9760_v39  ;;  %14320 = vst [vmem:[#allocation15_spill] sm:$0xff] %v13396_v15  ;;  %v6417_v1 = vor.u32 %v6416_v42, %v6412_v43  ;;  %v6420_v39 = vshll.u32 %v13396_v15, 16  ;;  %v6440_v42 = vrot.slane %v6438_v26, 4  ;;  %v6462_v15 = vshrl.u32 %v12923_v38, 16 }
 0x1b2   : > { %v6431_v58 = vor.u32 %v6430_v3, %v6427_v56  ;;  %v6444_v47 = vshll.u32 %v13419_v18, 16  ;;  %v6451_v26 = vrot.slane %v6449_v62, 4  ;;  %v6454_v38 = vrot.slane %v6452_v49, 5 }
 0x1b3   : > { %v6422_v48 = vrot.slane %v6420_v39, 5  ;;  %v6441_v29 = vor.u32 %v6440_v42, %v6436_v33  ;;  %v6482_v3 = vshll.u32 %v12971_v23, 16  ;;  %v6486_v42 = vshrl.u32 %v12971_v23, 16  ;;  %v11124_v23 = vld [vmem:[%s14274_s1 + $0x800] ss:$8 sps:$4 sm:$0xff]  }
 0x1b4   : > { %v9381_v49 = vcombine.low %v12873_v14, %v12867_v60 }
 0x1b7   : > { %2674 = vmatmul.mubr.bf16.gmra.mrb[52].mxu1 %v9263_v50  ;;  %v9268_v50 = vcombine.high %v12829_v61, %v2189_v2 }
 0x1b8   : > { %6178 = vmatmul.mubr.bf16.gmra.mrb[52].mxu0 %v9759_v55  ;;  %2683 = vmatprep.mubr.bf16.mxu1 %v9266_v36  ;;  %v9764_v55 = vcombine.high %v13402_v20, %v13405_v27  ;;  %v6408_v36 = vrot.slane %v6407_v21, 4  ;;  %v9267_v21 = vcombine.low %v12829_v61, %v2189_v2  ;;  %v9382_v61 = vcombine.high %v12873_v14, %v12867_v60 }
 0x1b9   : > { %6187 = vmatprep.mubr.bf16.mxu0 %v9762_v63  ;;  %v6418_v63 = vrot.slane %v6417_v1, 4  ;;  %v6488_v60 = vrot.slane %v6486_v42, 4  ;;  %v9386_v42 = vcombine.high %v12943_v0, %v12929_v54 }
 0x1ba   : > { %v6413_v1 = vsel %vm11623_vm2, %v6408_v36, %v6412_v43  ;;  %v6432_v43 = vrot.slane %v6431_v58, 4  ;;  %v6446_v36 = vrot.slane %v6444_v47, 5  ;;  %v9384_v58 = vcombine.high %v12902_v28, %v12882_v16 }
 0x1bb   : > { %v6423_v39 = vsel %vm11623_vm2, %v6418_v63, %v6422_v48  ;;  %v6455_v63 = vor.u32 %v6454_v38, %v6451_v26  ;;  %v6484_v26 = vrot.slane %v6482_v3, 5  ;;  %v13458_v38 = vld [vmem:[%s11561_s6 + $0x88] sm:$0x11] }
 0x1bc   : > { %v9830_v2 = vcombine.high %v6413_v1, %v6423_v39  ;;  %v9829_v62 = vcombine.low %v6413_v1, %v6423_v39 }
 0x1bf   : > { %2684 = vmatmul.mubr.bf16.gmra.mrb[56].mxu1 %v9265_v35  ;;  %v6460_v35 = vrot.slane %v6458_v57, 5  ;;  %v6473_v57 = vshrl.u32 %v12968_v17, 16 }
 0x1c0   : > { %6188 = vmatmul.mubr.bf16.gmra.mrb[56].mxu0 %v9761_v8  ;;  %2693 = vmatprep.mubr.bf16.mxu1 %v9268_v50  ;;  %v6464_v8 = vrot.slane %v6462_v15, 4  ;;  %v13436_v50 = vld [vmem:[%s11561_s6 + $0x70] sm:$0x11]  ;;  %v6476_v15 = vshll.u32 %v12968_v17, 16 }
 0x1c1   : > { %6197 = vmatprep.mubr.bf16.mxu0 %v9764_v55  ;;  %v6442_v55 = vrot.slane %v6441_v29, 4  ;;  %v6468_v56 = vshll.u32 %v13436_v50, 16  ;;  %v6456_v29 = vrot.slane %v6455_v63, 4  ;;  %v6475_v1 = vrot.slane %v6473_v57, 4 }
 0x1c2   : > { %v6465_v48 = vor.u32 %v6464_v8, %v6460_v35  ;;  %v6478_v39 = vrot.slane %v6476_v15, 5  ;;  %v6497_v63 = vshrl.u32 %v13021_v32, 16  ;;  %v6510_v57 = vshrl.u32 %v13024_v11, 16 }
 0x1c3   : > { %v6470_v47 = vrot.slane %v6468_v56, 5  ;;  %v13462_v8 = vsel %vm11623_vm2, %v6456_v29, %v6460_v35  ;;  %v11136_v35 = vld [vmem:[%s14274_s1 + $0x824] ss:$8 sps:$4 sm:$0xff]   ;;  %v6506_v56 = vshll.u32 %v13024_v11, 16  ;;  %v9383_v15 = vcombine.low %v12902_v28, %v12882_v16  ;;  %v11141_v16 = vld [vmem:[%s14274_s1 + $0x834] ss:$8 sps:$4 sm:$0xff]  }
 0x1c4   : > { %v6466_v17 = vrot.slane %v6465_v48, 4  ;;  %v6500_v48 = vshll.u32 %v13021_v32, 16  ;;  %v11134_v32 = vld [vmem:[%s14274_s1 + $0x820] ss:$8 sps:$4 sm:$0xff]   ;;  %v6499_v11 = vrot.slane %v6497_v63, 4 }
 0x1c5   : > { %v13489_v28 = vld [vmem:[%s11561_s6 + $0xa0] sm:$0x11] }
 0x1c7   : > { %2694 = vmatmul.mubr.bf16.gmra.mrb[60].mxu1 %v9267_v21  ;;  %v6437_v21 = vsel %vm11623_vm2, %v6432_v43, %v6436_v33  ;;  %v11131_v33 = vld [vmem:[%s14274_s1 + $0x814] ss:$8 sps:$4 sm:$0xff]   ;;  %v6479_v43 = vor.u32 %v6478_v39, %v6475_v1  ;;  %v6530_v1 = vshll.u32 %v13079_v44, 16  ;;  %v6534_v39 = vshrl.u32 %v13079_v44, 16  ;;  %v11146_v44 = vld [vmem:[%s14274_s1 + $0x844] ss:$8 sps:$4 sm:$0xff]  }
 0x1c8   : > { %6198 = vmatmul.mubr.bf16.gmra.mrb[60].mxu0 %v9763_v4  ;;  %3333 = vmatprep.mubr.bf16.mxu1 %v9382_v61  ;;  %v6447_v4 = vsel %vm11623_vm2, %v6442_v55, %v6446_v36  ;;  %v11129_v61 = vld [vmem:[%s14274_s1 + $0x810] ss:$8 sps:$4 sm:$0xff]   ;;  %v6489_v55 = vor.u32 %v6488_v60, %v6484_v26  ;;  %v6492_v36 = vshll.u32 %v13458_v38, 16 }
 0x1c9   : > { %7137 = vmatprep.mubr.bf16.mxu0 %v9830_v2  ;;  %v9832_v14 = vcombine.high %v6437_v21, %v6447_v4  ;;  %v6471_v2 = vsel %vm11623_vm2, %v6466_v17, %v6470_v47  ;;  %v9831_v3 = vcombine.low %v6437_v21, %v6447_v4  ;;  %v6502_v17 = vrot.slane %v6500_v48, 5 }
 0x1ca   : > { %v6494_v29 = vrot.slane %v6492_v36, 5  ;;  %v6508_v47 = vrot.slane %v6506_v56, 5  ;;  %v6521_v21 = vshrl.u32 %v13076_v52, 16  ;;  %v6524_v4 = vshll.u32 %v13076_v52, 16  ;;  %v11139_v52 = vld [vmem:[%s14274_s1 + $0x830] ss:$8 sps:$4 sm:$0xff]  }
 0x1cb   : > { %v9385_v36 = vcombine.low %v12943_v0, %v12929_v54  ;;  %v6532_v63 = vrot.slane %v6530_v1, 5  ;;  %v6536_v48 = vrot.slane %v6534_v39, 4  ;;  %v9388_v56 = vcombine.high %v12996_v22, %v12977_v25  ;;  %v11151_v0 = vld [vmem:[%s14274_s1 + $0x854] ss:$8 sps:$4 sm:$0xff]  }
 0x1cf   : > { %3334 = vmatmul.mubr.bf16.vlgmr.msra.gmra.mrb[0].mxu1 %v9381_v49  ;;  %v6480_v49 = vrot.slane %v6479_v43, 4  ;;  %v6516_v43 = vshll.u32 %v13489_v28, 16 }
 0x1d0   : > { %7138 = vmatmul.mubr.bf16.vlgmr.msra.gmra.mrb[0].mxu0 %v9829_v62  ;;  %3343 = vmatprep.mubr.bf16.mxu1 %v9384_v58  ;;  %v9834_v62 = vcombine.high %v13462_v8, %v6471_v2  ;;  %v6490_v58 = vrot.slane %v6489_v55, 4  ;;  %v6523_v55 = vrot.slane %v6521_v21, 4 }
 0x1d1   : > { %7940 = vmatpush1.bf16.msra.mxu0 %v11124_v23  ;;  %7147 = vmatprep.mubr.bf16.mxu0 %v9832_v14  ;;  %v6512_v23 = vrot.slane %v6510_v57, 4  ;;  %v6485_v60 = vsel %vm11623_vm2, %v6480_v49, %v6484_v26  ;;  %v6526_v26 = vrot.slane %v6524_v4, 5  ;;  %v11144_v49 = vld [vmem:[%s14274_s1 + $0x840] ss:$8 sps:$4 sm:$0xff]  }
 0x1d2   : > { %7941 = vmatprep.subr.bf16.mxu0 %v11131_v33  ;;  %v6495_v14 = vsel %vm11623_vm2, %v6490_v58, %v6494_v29  ;;  %v6503_v33 = vor.u32 %v6502_v17, %v6499_v11  ;;  %v6545_v58 = vshrl.u32 %v13131_v41, 16  ;;  %v6548_v29 = vshll.u32 %v13131_v41, 16 }
 0x1d3   : > { %v9836_v57 = vcombine.high %v6485_v60, %v6495_v14  ;;  %v6527_v54 = vor.u32 %v6526_v26, %v6523_v55  ;;  %v6558_v11 = vshrl.u32 %v13134_v10, 16  ;;  %v9387_v41 = vcombine.low %v12996_v22, %v12977_v25  ;;  %v13540_v55 = vld [vmem:[%s11561_s6 + $0xd0] sm:$0x11]  ;;  %v11154_v25 = vld [vmem:[%s14274_s1 + $0x860] ss:$8 sps:$4 sm:$0xff]  }
 0x1d4   : > { %v9835_v21 = vcombine.low %v6485_v60, %v6495_v14  ;;  %v6547_v39 = vrot.slane %v6545_v58, 4  ;;  %v11161_v22 = vld [vmem:[%s14274_s1 + $0x874] ss:$8 sps:$4 sm:$0xff]  }
 0x1d5   : > { %7942 = vmatpush1.bf16.msra.mxu0 %v11129_v61  ;;  %v6513_v61 = vor.u32 %v6512_v23, %v6508_v47  ;;  %v6528_v4 = vrot.slane %v6527_v54, 4  ;;  %v11166_v54 = vld [vmem:[%s14274_s1 + $0x884] ss:$8 sps:$4 sm:$0xff]  }
 0x1d6   : > { %7943 = vmatprep.subr.bf16.mxu0 %v11136_v35  ;;  %v9833_v35 = vcombine.low %v13462_v8, %v6471_v2  ;;  %v6537_v8 = vor.u32 %v6536_v48, %v6532_v63  ;;  %v14321_v48 = vld [vmem:[#allocation8_spill] sm:$0xff] }
 0x1d7   : > { %3344 = vmatmul.mubr.bf16.gmra.mrb[4].mxu1 %v9383_v15  ;;  %v13512_v15 = vld [vmem:[%s11561_s6 + $0xb8] sm:$0x11]  ;;  %v13550_v60 = vsel %vm11623_vm2, %v6528_v4, %v6532_v63  ;;  %v13574_v4 = vld [vmem:[%s11561_s6 + $0xe8] sm:$0x11] }
 0x1d8   : > { %7148 = vmatmul.mubr.bf16.gmra.mrb[4].mxu0 %v9831_v3  ;;  %3353 = vmatprep.mubr.bf16.mxu1 %v9386_v42  ;;  %v6504_v3 = vrot.slane %v6503_v33, 4  ;;  %v6514_v42 = vrot.slane %v6513_v61, 4  ;;  %v6540_v2 = vshll.u32 %v13512_v15, 16  ;;  %v9390_v33 = vcombine.high %v13048_v34, %v13027_v9 }
 0x1d9   : > { %7157 = vmatprep.mubr.bf16.mxu0 %v9834_v62  ;;  %7944 = vmatpush1.bf16.msra.mxu0 %v11134_v32  ;;  %v6518_v62 = vrot.slane %v6516_v43, 5  ;;  %v6554_v32 = vshll.u32 %v13134_v10, 16  ;;  %v11156_v10 = vld [vmem:[%s14274_s1 + $0x864] ss:$8 sps:$4 sm:$0xff]  }
 0x1da   : > { %7945 = vmatprep.subr.bf16.mxu0 %v11141_v16  ;;  %v6509_v17 = vsel %vm11623_vm2, %v6504_v3, %v6508_v47  ;;  %v11149_v16 = vld [vmem:[%s14274_s1 + $0x850] ss:$8 sps:$4 sm:$0xff]   ;;  %v6538_v47 = vrot.slane %v6537_v8, 4  ;;  %v6542_v1 = vrot.slane %v6540_v2, 5  ;;  %v14323_v8 = vld [vmem:[#allocation4_spill] sm:$0xff] }
 0x1db   : > { %v6519_v23 = vsel %vm11623_vm2, %v6514_v42, %v6518_v62  ;;  %v6556_v43 = vrot.slane %v6554_v32, 5  ;;  %v14322_v3 = vld [vmem:[#allocation9_spill] sm:$0xff] }
 0x1dc   : > { %v9838_v61 = vcombine.high %v6509_v17, %v6519_v23  ;;  %v13554_v14 = vsel %vm11623_vm2, %v6538_v47, %v6542_v1  ;;  %v6578_v42 = vshll.u32 %v14322_v3, 16  ;;  %v6582_v63 = vshrl.u32 %v14322_v3, 16  ;;  %v11159_v62 = vld [vmem:[%s14274_s1 + $0x870] ss:$8 sps:$4 sm:$0xff]   ;;  %v14326_v3 = vld [vmem:[#allocation7_spill] sm:$0xff] }
 0x1dd   : > { %7946 = vmatpush1.bf16.msra.mxu0 %v11139_v52  ;;  %v6550_v52 = vrot.slane %v6548_v29, 5  ;;  %v14324_v2 = vld [vmem:[#allocation5_spill] sm:$0xff]  ;;  %v9840_v29 = vcombine.high %v13550_v60, %v13554_v14  ;;  %v6602_v47 = vshll.u32 %v13240_v37, 16  ;;  %v6606_v1 = vshrl.u32 %v13240_v37, 16 }
 0x1de   : > { %7947 = vmatprep.subr.bf16.mxu0 %v11146_v44  ;;  %v6560_v44 = vrot.slane %v6558_v11, 4  ;;  %v9392_v58 = vcombine.high %v14324_v2, %v14323_v8  ;;  %v6588_v37 = vshll.u32 %v13574_v4, 16 }
 0x1df   : > { %3354 = vmatmul.mubr.bf16.gmra.mrb[8].mxu1 %v9385_v36  ;;  %v6551_v26 = vor.u32 %v6550_v52, %v6547_v39  ;;  %v11171_v39 = vld [vmem:[%s14274_s1 + $0x894] ss:$8 sps:$4 sm:$0xff]  }
 0x1e0   : > { %7158 = vmatmul.mubr.bf16.gmra.mrb[8].mxu0 %v9833_v35  ;;  %3363 = vmatprep.mubr.bf16.mxu1 %v9388_v56  ;;  %v6561_v36 = vor.u32 %v6560_v44, %v6556_v43  ;;  %v6564_v35 = vshll.u32 %v13540_v55, 16  ;;  %v6569_v56 = vshrl.u32 %v14321_v48, 16  ;;  %v11169_v44 = vld [vmem:[%s14274_s1 + $0x890] ss:$8 sps:$4 sm:$0xff]  }
 0x1e1   : > { %7167 = vmatprep.mubr.bf16.mxu0 %v9836_v57  ;;  %7948 = vmatpush1.bf16.msra.mxu0 %v11144_v49  ;;  %v6572_v57 = vshll.u32 %v14321_v48, 16  ;;  %v9389_v49 = vcombine.low %v13048_v34, %v13027_v9  ;;  %v6552_v32 = vrot.slane %v6551_v26, 4  ;;  %v6580_v9 = vrot.slane %v6578_v42, 5 }
 0x1e2   : > { %7949 = vmatprep.subr.bf16.mxu0 %v11151_v0  ;;  %v9837_v0 = vcombine.low %v6509_v17, %v6519_v23  ;;  %v6562_v11 = vrot.slane %v6561_v36, 4  ;;  %v6584_v34 = vrot.slane %v6582_v63, 4  ;;  %v11164_v17 = vld [vmem:[%s14274_s1 + $0x880] ss:$8 sps:$4 sm:$0xff]   ;;  %v6593_v23 = vshrl.u32 %v13237_v24, 16 }
 0x1e3   : > { %v6557_v52 = vsel %vm11623_vm2, %v6552_v32, %v6556_v43  ;;  %v6604_v26 = vrot.slane %v6602_v47, 5  ;;  %v6608_v36 = vrot.slane %v6606_v1, 4  ;;  %v11176_v43 = vld [vmem:[%s14274_s1 + $0x8a4] ss:$8 sps:$4 sm:$0xff]   ;;  %v9839_v48 = vcombine.low %v13550_v60, %v13554_v14  ;;  %v11181_v60 = vld [vmem:[%s14274_s1 + $0x8b4] ss:$8 sps:$4 sm:$0xff]  }
 0x1e4   : > { %v6617_v14 = vshrl.u32 %v13286_v40, 16  ;;  %v6626_v32 = vshll.u32 %v13289_v30, 16 }
 0x1e5   : > { %7950 = vmatpush1.bf16.msra.mxu0 %v11149_v16  ;;  %v6566_v16 = vrot.slane %v6564_v35, 5  ;;  %v9391_v35 = vcombine.low %v14324_v2, %v14323_v8  ;;  %v6620_v2 = vshll.u32 %v13286_v40, 16  ;;  %v11179_v40 = vld [vmem:[%s14274_s1 + $0x8b0] ss:$8 sps:$4 sm:$0xff]  }
 0x1e6   : > { %7951 = vmatprep.subr.bf16.mxu0 %v11156_v10  ;;  %v6596_v10 = vshll.u32 %v13237_v24, 16  ;;  %v6619_v47 = vrot.slane %v6617_v14, 4  ;;  %v6628_v1 = vrot.slane %v6626_v32, 5 }
 0x1e7   : > { %3364 = vmatmul.mubr.bf16.gmra.mrb[12].mxu1 %v9387_v41  ;;  %v6571_v41 = vrot.slane %v6569_v56, 4  ;;  %v6567_v24 = vsel %vm11623_vm2, %v6562_v11, %v6566_v16  ;;  %v13602_v56 = vld [vmem:[%s11561_s6 + $0x100] sm:$0x11]  ;;  %v6630_v11 = vshrl.u32 %v13289_v30, 16 }
 0x1e8   : > { %7168 = vmatmul.mubr.bf16.gmra.mrb[12].mxu0 %v9835_v21  ;;  %3373 = vmatprep.mubr.bf16.mxu1 %v9390_v33  ;;  %v6574_v21 = vrot.slane %v6572_v57, 5  ;;  %v14325_v57 = vld [vmem:[#allocation6_spill] sm:$0xff]  ;;  %v9842_v63 = vcombine.high %v6557_v52, %v6567_v24  ;;  %v6612_v8 = vshll.u32 %v13602_v56, 16 }
 0x1e9   : > { %7177 = vmatprep.mubr.bf16.mxu0 %v9838_v61  ;;  %7952 = vmatpush1.bf16.msra.mxu0 %v11154_v25  ;;  %v6585_v61 = vor.u32 %v6584_v34, %v6580_v9  ;;  %v6595_v25 = vrot.slane %v6593_v23, 4  ;;  %v9394_v42 = vcombine.high %v14326_v3, %v14325_v57  ;;  %v9393_v16 = vcombine.low %v14326_v3, %v14325_v57 }
 0x1ea   : > { %7953 = vmatprep.subr.bf16.mxu0 %v11161_v22  ;;  %v6575_v33 = vor.u32 %v6574_v21, %v6571_v41  ;;  %v6598_v22 = vrot.slane %v6596_v10, 5  ;;  %v9841_v34 = vcombine.low %v6557_v52, %v6567_v24  ;;  %v6614_v23 = vrot.slane %v6612_v8, 5  ;;  %v11186_v10 = vld [vmem:[%s14274_s1 + $0x8c4] ss:$8 sps:$4 sm:$0xff]   ;;  %v11184_v52 = vld [vmem:[%s14274_s1 + $0x8c0] ss:$8 sps:$4 sm:$0xff]  }
 0x1eb   : > { %v6644_v57 = vshll.u32 %v13318_v19, 16  ;;  %v6650_v3 = vshll.u32 %v13321_v59, 16 }
 0x1ed   : > { %7954 = vmatpush1.bf16.msra.mxu0 %v11159_v62  ;;  %v6576_v62 = vrot.slane %v6575_v33, 4  ;;  %v14327_v33 = vld [vmem:[#allocation10_spill] sm:$0xff]  ;;  %v6652_v32 = vrot.slane %v6650_v3, 5  ;;  %v6689_v3 = vshrl.u32 %v13347_v5, 16 }
 0x1ee   : > { %7955 = vmatprep.subr.bf16.mxu0 %v11166_v54  ;;  %v6590_v54 = vrot.slane %v6588_v37, 5 }
 0x1ef   : > { %3374 = vmatmul.mubr.bf16.gmra.mrb[16].mxu1 %v9389_v49  ;;  %v6586_v49 = vrot.slane %v6585_v61, 4  ;;  %v6581_v41 = vsel %vm11623_vm2, %v6576_v62, %v6580_v9  ;;  %v6622_v9 = vrot.slane %v6620_v2, 5  ;;  %v14328_v61 = vld [vmem:[#allocation11_spill] sm:$0xff]  ;;  %v6646_v2 = vrot.slane %v6644_v57, 5  ;;  %v13693_v57 = vld [vmem:[%s11561_s6 + $0x148] sm:$0x11] }
 0x1f0   : > { %7178 = vmatmul.mubr.bf16.gmra.mrb[16].mxu0 %v9837_v0  ;;  %3383 = vmatprep.mubr.bf16.mxu1 %v9392_v58  ;;  %v11174_v0 = vld [vmem:[%s14274_s1 + $0x8a0] ss:$8 sps:$4 sm:$0xff]   ;;  %v6599_v58 = vor.u32 %v6598_v22, %v6595_v25  ;;  %v9396_v37 = vcombine.high %v14328_v61, %v14327_v33  ;;  %v13632_v25 = vld [vmem:[%s11561_s6 + $0x118] sm:$0x11]  ;;  %v9395_v62 = vcombine.low %v14328_v61, %v14327_v33 }
 0x1f1   : > { %7187 = vmatprep.mubr.bf16.mxu0 %v9840_v29  ;;  %7956 = vmatpush1.bf16.msra.mxu0 %v11164_v17  ;;  %v6609_v29 = vor.u32 %v6608_v36, %v6604_v26  ;;  %v6591_v21 = vsel %vm11623_vm2, %v6586_v49, %v6590_v54  ;;  %v11191_v22 = vld [vmem:[%s14274_s1 + $0x8d4] ss:$8 sps:$4 sm:$0xff]   ;;  %v14329_v54 = vld [vmem:[#allocation12_spill] sm:$0xff] }
 0x1f2   : > { %7957 = vmatprep.subr.bf16.mxu0 %v11171_v39  ;;  %v6600_v17 = vrot.slane %v6599_v58, 4  ;;  %v6632_v39 = vrot.slane %v6630_v11, 4  ;;  %v9843_v49 = vcombine.low %v6581_v41, %v6591_v21 }
 0x1f3   : > { %v6610_v30 = vrot.slane %v6609_v29, 4 }
 0x1f4   : > { %v13639_v24 = vsel %vm11623_vm2, %v6600_v17, %v6604_v26  ;;  %v6641_v26 = vshrl.u32 %v13318_v19, 16  ;;  %v11196_v19 = vld [vmem:[%s14274_s1 + $0x8e4] ss:$8 sps:$4 sm:$0xff]  }
 0x1f5   : > { %7958 = vmatpush1.bf16.msra.mxu0 %v11169_v44  ;;  %v9844_v44 = vcombine.high %v6581_v41, %v6591_v21  ;;  %v13646_v36 = vsel %vm11623_vm2, %v6610_v30, %v6614_v23  ;;  %v11194_v41 = vld [vmem:[%s14274_s1 + $0x8e0] ss:$8 sps:$4 sm:$0xff]   ;;  %v11201_v21 = vld [vmem:[%s14274_s1 + $0x8f4] ss:$8 sps:$4 sm:$0xff]  }
 0x1f6   : > { %7959 = vmatprep.subr.bf16.mxu0 %v11176_v43  ;;  %v6623_v43 = vor.u32 %v6622_v9, %v6619_v47  ;;  %v6643_v14 = vrot.slane %v6641_v26, 4  ;;  %v6668_v47 = vshll.u32 %v13332_v6, 16  ;;  %v6674_v9 = vshll.u32 %v13335_v51, 16 }
 0x1f7   : > { %3384 = vmatmul.mubr.bf16.gmra.mrb[20].mxu1 %v9391_v35  ;;  %v6633_v35 = vor.u32 %v6632_v39, %v6628_v1  ;;  %v6678_v39 = vshrl.u32 %v13335_v51, 16  ;;  %v9845_v61 = vcombine.low %v13639_v24, %v13646_v36 }
 0x1f8   : > { %7188 = vmatmul.mubr.bf16.gmra.mrb[20].mxu0 %v9839_v48  ;;  %3393 = vmatprep.mubr.bf16.mxu1 %v9394_v42  ;;  %v6636_v48 = vshll.u32 %v13632_v25, 16  ;;  %v6654_v42 = vshrl.u32 %v13321_v59, 16  ;;  %v9846_v59 = vcombine.high %v13639_v24, %v13646_v36  ;;  %v6624_v29 = vrot.slane %v6623_v43, 4 }
 0x1f9   : > { %7197 = vmatprep.mubr.bf16.mxu0 %v9842_v63  ;;  %7960 = vmatpush1.bf16.msra.mxu0 %v11174_v0  ;;  %v11189_v63 = vld [vmem:[%s14274_s1 + $0x8d0] ss:$8 sps:$4 sm:$0xff]   ;;  %v6634_v8 = vrot.slane %v6633_v35, 4  ;;  %v6647_v17 = vor.u32 %v6646_v2, %v6643_v14  ;;  %v6670_v35 = vrot.slane %v6668_v47, 5  ;;  %v6680_v26 = vrot.slane %v6678_v39, 4 }
 0x1fa   : > { %7961 = vmatprep.subr.bf16.mxu0 %v11181_v60  ;;  %v14330_v0 = vld [vmem:[#allocation13_spill] sm:$0xff]  ;;  %v6638_v60 = vrot.slane %v6636_v48, 5  ;;  %v6656_v11 = vrot.slane %v6654_v42, 4  ;;  %v6676_v48 = vrot.slane %v6674_v9, 5  ;;  %v6692_v42 = vshll.u32 %v13347_v5, 16 }
 0x1fb   : > { %v9398_v58 = vcombine.high %v14330_v0, %v14329_v54  ;;  %v9397_v33 = vcombine.low %v14330_v0, %v14329_v54  ;;  %v6698_v24 = vshll.u32 %v13350_v13, 16  ;;  %v6702_v36 = vshrl.u32 %v13350_v13, 16  ;;  %v11301_v14 = vld [vmem:[%s11561_s6 + $0x110] sm:$0xff] }
 0x1fc   : > { %v6657_v30 = vor.u32 %v6656_v11, %v6652_v32  ;;  %v6681_v54 = vor.u32 %v6680_v26, %v6676_v48  ;;  %v6684_v5 = vshll.u32 %v13693_v57, 16  ;;  %v6691_v0 = vrot.slane %v6689_v3, 4 }
 0x1fd   : > { %7962 = vmatpush1.bf16.msra.mxu0 %v11179_v40  ;;  %v6629_v40 = vsel %vm11623_vm2, %v6624_v29, %v6628_v1  ;;  %v11199_v1 = vld [vmem:[%s14274_s1 + $0x8f0] ss:$8 sps:$4 sm:$0xff]   ;;  %v6700_v13 = vrot.slane %v6698_v24, 5 }
 0x1fe   : > { %7963 = vmatprep.subr.bf16.mxu0 %v11186_v10  ;;  %v6665_v10 = vshrl.u32 %v13332_v6, 16 }
 0x1ff   : > { %3394 = vmatmul.mubr.bf16.gmra.mrb[24].mxu1 %v9393_v16  ;;  %v13666_v16 = vld [vmem:[%s11561_s6 + $0x130] sm:$0x11] }
 0x200   : > { %7198 = vmatmul.mubr.bf16.gmra.mrb[24].mxu0 %v9841_v34  ;;  %3403 = vmatprep.mubr.bf16.mxu1 %v9396_v37  ;;  %v6639_v34 = vsel %vm11623_vm2, %v6634_v8, %v6638_v60  ;;  %v6660_v23 = vshll.u32 %v13666_v16, 16  ;;  %v14331_v37 = vld [vmem:[#allocation14_spill] sm:$0xff]  ;;  %v6667_v43 = vrot.slane %v6665_v10, 4  ;;  %v13707_v8 = vld [vmem:[%s11561_s6 + $0x160] sm:$0x11]  ;;  %v11300_v60 = vld [vmem:[%s11561_s6 + $0x108] sm:$0xff] }
 0x201   : > { %7207 = vmatprep.mubr.bf16.mxu0 %v9844_v44  ;;  %7964 = vmatpush1.bf16.msra.mxu0 %v11184_v52  ;;  %v9400_v6 = vcombine.high %v14331_v37, %v13292_v7  ;;  %v9848_v44 = vcombine.high %v6629_v40, %v6639_v34  ;;  %v6648_v52 = vrot.slane %v6647_v17, 4  ;;  %v9847_v29 = vcombine.low %v6629_v40, %v6639_v34 }
 0x202   : > { %7965 = vmatprep.subr.bf16.mxu0 %v11191_v22  ;;  %v6658_v22 = vrot.slane %v6657_v30, 4  ;;  %v6662_v51 = vrot.slane %v6660_v23, 5  ;;  %v9402_v2 = vcombine.high %v11300_v60, %v11301_v14  ;;  %v6708_v23 = vshll.u32 %v13707_v8, 16 }
 0x203   : > { %v6713_v10 = vshrl.u32 %v13363_v31, 16  ;;  %v6722_v40 = vshll.u32 %v13366_v46, 16  ;;  %v6726_v34 = vshrl.u32 %v13366_v46, 16  ;;  %v9401_v47 = vcombine.low %v11300_v60, %v11301_v14  ;;  %v11303_v46 = vld [vmem:[%s11561_s6 + $0x128] sm:$0xff] }
 0x205   : > { %7966 = vmatpush1.bf16.msra.mxu0 %v11189_v63  ;;  %v6653_v63 = vsel %vm11623_vm2, %v6648_v52, %v6652_v32  ;;  %v6728_v52 = vrot.slane %v6726_v34, 4 }
 0x206   : > { %7967 = vmatprep.subr.bf16.mxu0 %v11196_v19  ;;  %v6704_v19 = vrot.slane %v6702_v36, 4  ;;  %v6737_v36 = vshrl.u32 %v13379_v45, 16 }
 0x207   : > { %3404 = vmatmul.mubr.bf16.gmra.mrb[28].mxu1 %v9395_v62  ;;  %v6663_v62 = vsel %vm11623_vm2, %v6658_v22, %v6662_v51  ;;  %v11302_v22 = vld [vmem:[%s11561_s6 + $0x120] sm:$0xff] }
 0x208   : > { %7208 = vmatmul.mubr.bf16.gmra.mrb[28].mxu0 %v9843_v49  ;;  %3413 = vmatprep.mubr.bf16.mxu1 %v9398_v58  ;;  %v6671_v49 = vor.u32 %v6670_v35, %v6667_v43  ;;  %v6694_v58 = vrot.slane %v6692_v42, 5  ;;  %v9850_v32 = vcombine.high %v6653_v63, %v6663_v62  ;;  %v6705_v30 = vor.u32 %v6704_v19, %v6700_v13  ;;  %v13723_v35 = vld [vmem:[%s11561_s6 + $0x178] sm:$0x11] }
 0x209   : > { %7217 = vmatprep.mubr.bf16.mxu0 %v9846_v59  ;;  %7968 = vmatpush1.bf16.msra.mxu0 %v11194_v41  ;;  %v9399_v59 = vcombine.low %v14331_v37, %v13292_v7  ;;  %v6682_v41 = vrot.slane %v6681_v54, 4  ;;  %v6716_v7 = vshll.u32 %v13363_v31, 16  ;;  %v6710_v31 = vrot.slane %v6708_v23, 5 }
 0x20a   : > { %7969 = vmatprep.subr.bf16.mxu0 %v11201_v21  ;;  %v6672_v11 = vrot.slane %v6671_v49, 4  ;;  %v6686_v21 = vrot.slane %v6684_v5, 5  ;;  %v6695_v17 = vor.u32 %v6694_v58, %v6691_v0  ;;  %v6715_v37 = vrot.slane %v6713_v10, 4  ;;  %v11304_v0 = vld [vmem:[%s11561_s6 + $0x138] sm:$0xff]  ;;  %v11305_v58 = vld [vmem:[%s11561_s6 + $0x140] sm:$0xff] }
 0x20b   : > { %v9404_v51 = vcombine.high %v11302_v22, %v11303_v46  ;;  %v6732_v24 = vshll.u32 %v13723_v35, 16  ;;  %v6750_v49 = vshrl.u32 %v13382_v53, 16  ;;  %v9403_v54 = vcombine.low %v11302_v22, %v11303_v46  ;;  %v13751_v46 = vld [vmem:[%s11561_s6 + $0x1a8] sm:$0x11] }
 0x20c   : > { %v6677_v9 = vsel %vm11623_vm2, %v6672_v11, %v6676_v48  ;;  %v6687_v39 = vsel %vm11623_vm2, %v6682_v41, %v6686_v21  ;;  %v6739_v14 = vrot.slane %v6737_v36, 4  ;;  %v13737_v41 = vld [vmem:[%s11561_s6 + $0x190] sm:$0x11]  ;;  %v6761_v23 = vshrl.u32 %v13402_v20, 16  ;;  %v11308_v36 = vld [vmem:[%s11561_s6 + $0x168] sm:$0xff] }
 0x20d   : > { %7970 = vmatpush1.bf16.msra.mxu0 %v11199_v1  ;;  %v9849_v1 = vcombine.low %v6653_v63, %v6663_v62  ;;  %v9852_v43 = vcombine.high %v6677_v9, %v6687_v39  ;;  %v6740_v63 = vshll.u32 %v13379_v45, 16  ;;  %v6746_v62 = vshll.u32 %v13382_v53, 16 }
 0x20e   : > { %v9851_v5 = vcombine.low %v6677_v9, %v6687_v39  ;;  %v6734_v60 = vrot.slane %v6732_v24, 5  ;;  %v6752_v11 = vrot.slane %v6750_v49, 4  ;;  %v6764_v10 = vshll.u32 %v13402_v20, 16  ;;  %v11306_v9 = vld [vmem:[%s11561_s6 + $0x150] sm:$0xff]  ;;  %v11307_v39 = vld [vmem:[%s11561_s6 + $0x158] sm:$0xff]  ;;  %v11202_v20 = vld [vmem:[%s14276_s3 + $0x40] sm:$0xff]  }
 0x20f   : > { %3414 = vmatmul.mubr.bf16.gmra.mrb[32].mxu1 %v9397_v33  ;;  %v6696_v33 = vrot.slane %v6695_v17, 4  ;;  %v9405_v34 = vcombine.low %v11304_v0, %v11305_v58  ;;  %10025 = vmatprep.subr.bf16.mxu1 %v11202_v20 }
 0x210   : > { %7218 = vmatmul.mubr.bf16.gmra.mrb[32].mxu0 %v9845_v61  ;;  %3423 = vmatprep.mubr.bf16.mxu1 %v9400_v6  ;;  %v6706_v61 = vrot.slane %v6705_v30, 4  ;;  %v6718_v6 = vrot.slane %v6716_v7, 5  ;;  %v6756_v30 = vshll.u32 %v13737_v41, 16  ;;  %v6770_v7 = vshll.u32 %v13405_v27, 16 }
 0x211   : > { %7227 = vmatprep.mubr.bf16.mxu0 %v9848_v44  ;;  %v6724_v44 = vrot.slane %v6722_v40, 5  ;;  %v6701_v48 = vsel %vm11623_vm2, %v6696_v33, %v6700_v13  ;;  %v9406_v13 = vcombine.high %v11304_v0, %v11305_v58  ;;  %v6774_v40 = vshrl.u32 %v13405_v27, 16  ;;  %v11203_v27 = vld [vmem:[%s14276_s3] sm:$0xff]  }
 0x212   : > { %v6711_v26 = vsel %vm11623_vm2, %v6706_v61, %v6710_v31  ;;  %v6719_v3 = vor.u32 %v6718_v6, %v6715_v37  ;;  %v6758_v37 = vrot.slane %v6756_v30, 5  ;;  %v6763_v6 = vrot.slane %v6761_v23, 4  ;;  %10026 = vmatpush3.bf16.msra.mxu1 %v11203_v27  ;;  %v11205_v23 = vld [vmem:[%s14276_s3 + $0x8] sm:$0xff]  }
 0x213   : > { %v6729_v42 = vor.u32 %v6728_v52, %v6724_v44  ;;  %v9854_v19 = vcombine.high %v6701_v48, %v6711_v26  ;;  %v6772_v52 = vrot.slane %v6770_v7, 5  ;;  %v6776_v22 = vrot.slane %v6774_v40, 4  ;;  %10027 = vmatprep.subr.bf16.mxu1 %v11204_v12 }
 0x216   : > { %10028 = vmatpush3.bf16.msra.mxu1 %v11205_v23  ;;  %v11323_v23 = vld [vmem:[%s11561_s6 + $0xa8] sm:$0xff] }
 0x217   : > { %3424 = vmatmul.mubr.bf16.gmra.mrb[36].mxu1 %v9399_v59  ;;  %v6720_v59 = vrot.slane %v6719_v3, 4  ;;  %v6780_v3 = vshll.u32 %v13751_v46, 16 }
 0x218   : > { %7228 = vmatmul.mubr.bf16.gmra.mrb[36].mxu0 %v9847_v29  ;;  %3433 = vmatprep.mubr.bf16.mxu1 %v9402_v2  ;;  %v6730_v29 = vrot.slane %v6729_v42, 4  ;;  %v6742_v2 = vrot.slane %v6740_v63, 5  ;;  %v9407_v42 = vcombine.low %v11306_v9, %v11307_v39  ;;  %v11309_v63 = vld [vmem:[%s11561_s6 + $0x170] sm:$0xff] }
 0x219   : > { %7237 = vmatprep.mubr.bf16.mxu0 %v9850_v32  ;;  %v6748_v32 = vrot.slane %v6746_v62, 5  ;;  %v6725_v45 = vsel %vm11623_vm2, %v6720_v59, %v6724_v44  ;;  %v6766_v44 = vrot.slane %v6764_v10, 5  ;;  %v9410_v62 = vcombine.high %v11308_v36, %v11309_v63 }
 0x21a   : > { %v6735_v53 = vsel %vm11623_vm2, %v6730_v29, %v6734_v60  ;;  %v6743_v21 = vor.u32 %v6742_v2, %v6739_v14  ;;  %v6782_v0 = vrot.slane %v6780_v3, 5  ;;  %v9409_v29 = vcombine.low %v11308_v36, %v11309_v63  ;;  %v11311_v14 = vld [vmem:[%s11561_s6 + $0x180] sm:$0xff]  ;;  %v11312_v2 = vld [vmem:[%s11561_s6 + $0x188] sm:$0xff]  ;;  %v11207_v3 = vld [vmem:[%s14276_s3 + $0x10] sm:$0xff]  }
 0x21b   : > { %v6753_v17 = vor.u32 %v6752_v11, %v6748_v32  ;;  %v9856_v33 = vcombine.high %v6725_v45, %v6735_v53  ;;  %v9855_v24 = vcombine.low %v6725_v45, %v6735_v53  ;;  %v11313_v45 = vld [vmem:[%s11561_s6 + $0x30] sm:$0xff] }
 0x21c   : > { %v6744_v61 = vrot.slane %v6743_v21, 4  ;;  %v9893_v53 = vrot.slane %v11313_v45, 9  ;;  %v11209_v45 = vld [vmem:[%s14276_s3 + $0x18] sm:$0xff]  }
 0x21d   : > { %v6754_v31 = vrot.slane %v6753_v17, 4  ;;  %v14332_v17 = vld [vmem:[#allocation15_spill] sm:$0xff] }
 0x21e   : > { %v7511_v30 = vrot.slane %v14332_v17, 5 }
 0x21f   : > { %3434 = vmatmul.mubr.bf16.gmra.mrb[40].mxu1 %v9401_v47  ;;  %v9853_v47 = vcombine.low %v6701_v48, %v6711_v26  ;;  %v6767_v48 = vor.u32 %v6766_v44, %v6763_v6  ;;  %v6777_v26 = vor.u32 %v6776_v22, %v6772_v52 }
 0x220   : > { %7238 = vmatmul.mubr.bf16.gmra.mrb[40].mxu0 %v9849_v1  ;;  %3443 = vmatprep.mubr.bf16.mxu1 %v9404_v51  ;;  %v9408_v1 = vcombine.high %v11306_v9, %v11307_v39  ;;  %v6749_v51 = vsel %vm11623_vm2, %v6744_v61, %v6748_v32  ;;  %v9412_v32 = vcombine.high %v11311_v14, %v11312_v2 }
 0x221   : > { %7247 = vmatprep.mubr.bf16.mxu0 %v9852_v43  ;;  %v6759_v43 = vsel %vm11623_vm2, %v6754_v31, %v6758_v37  ;;  %v9411_v9 = vcombine.low %v11311_v14, %v11312_v2  ;;  %v7518_v37 = vrot.slane %v13419_v18, 5  ;;  %v7525_v18 = vrot.slane %v13436_v50, 5  ;;  %v11318_v50 = vld [vmem:[%s11561_s6 + $0x80] sm:$0xff]  ;;  %v11321_v14 = vld [vmem:[%s11561_s6 + $0x90] sm:$0xff] }
 0x222   : > { %v9858_v49 = vcombine.high %v6749_v51, %v6759_v43  ;;  %v9857_v60 = vcombine.low %v6749_v51, %v6759_v43  ;;  %v11317_v51 = vld [vmem:[%s11561_s6 + $0x60] sm:$0xff]  ;;  %v7529_v36 = vrot.slane %v11318_v50, 5  ;;  %v9897_v2 = vrot.slane %v11321_v14, 9  ;;  %v11328_v50 = vld [vmem:[%s11561_s6 + $0xf8] sm:$0xff]  ;;  %v11331_v14 = vld [vmem:[%s11561_s6 + $0x108] sm:$0xff] }
 0x223   : > { %v9895_v43 = vrot.slane %v11317_v51, 9 }
 0x227   : > { %3444 = vmatmul.mubr.bf16.gmra.mrb[44].mxu1 %v9403_v54  ;;  %v6768_v54 = vrot.slane %v6767_v48, 4 }
 0x228   : > { %7248 = vmatmul.mubr.bf16.gmra.mrb[44].mxu0 %v9851_v5  ;;  %3453 = vmatprep.mubr.bf16.mxu1 %v9406_v13  ;;  %v6778_v5 = vrot.slane %v6777_v26, 4  ;;  %v11206_v26 = vld [vmem:[%s14276_s3 + $0x50] sm:$0xff]  }
 0x229   : > { %7257 = vmatprep.mubr.bf16.mxu0 %v9854_v19  ;;  %v6773_v58 = vsel %vm11623_vm2, %v6768_v54, %v6772_v52  ;;  %v11310_v19 = vld [vmem:[%s11561_s6 + $0x38] sm:$0xff]  ;;  %v11316_v52 = vld [vmem:[%s11561_s6 + $0x68] sm:$0xff]  ;;  %10029 = vmatprep.subr.bf16.mxu1 %v11206_v26 }
 0x22a   : > { %v6783_v13 = vsel %vm11623_vm2, %v6778_v5, %v6782_v0  ;;  %v7508_v59 = vrot.slane %v11310_v19, 5  ;;  %v7522_v22 = vrot.slane %v11316_v52, 5  ;;  %10030 = vmatpush3.bf16.msra.mxu1 %v11207_v3  ;;  %v7531_v5 = vrot.slane %v7529_v36, 4  ;;  %v11320_v19 = vld [vmem:[%s11561_s6 + $0x98] sm:$0xff]  ;;  %v11211_v52 = vld [vmem:[%s14276_s3 + $0x20] sm:$0xff]  }
 0x22b   : > { %v9860_v11 = vcombine.high %v6773_v58, %v6783_v13  ;;  %v9859_v39 = vcombine.low %v6773_v58, %v6783_v13  ;;  %v7532_v0 = vrot.slane %v13458_v38, 5  ;;  %v11208_v38 = vld [vmem:[%s14276_s3 + $0x58] sm:$0xff]   ;;  %v7560_v3 = vrot.slane %v13574_v4, 5  ;;  %v11212_v4 = vld [vmem:[%s14276_s3 + $0x68] sm:$0xff]  }
 0x22c   : > { %v7510_v21 = vrot.slane %v7508_v59, 4  ;;  %v7509_v7 = vsel %vm12207_vm5, %v9893_v53, %v7508_v59  ;;  %v7524_v48 = vrot.slane %v7522_v22, 4  ;;  %v7536_v59 = vrot.slane %v11320_v19, 5  ;;  %10031 = vmatprep.subr.bf16.mxu1 %v11208_v38 }
 0x22d   : > { %v7533_v13 = vsel %vm12207_vm5, %v7531_v5, %v7532_v0  ;;  %v7567_v0 = vrot.slane %v13602_v56, 5  ;;  %v11330_v56 = vld [vmem:[%s11561_s6 + $0x110] sm:$0xff] }
 0x22e   : > { %v7512_v40 = vsel %vm12207_vm5, %v7510_v21, %v7511_v30  ;;  %10032 = vmatpush3.bf16.msra.mxu1 %v11209_v45  ;;  %v7537_v53 = vsel %vm12207_vm5, %v9897_v2, %v7536_v59  ;;  %v9902_v2 = vrot.slane %v11331_v14, 9 }
 0x22f   : > { %3454 = vmatmul.mubr.bf16.gmra.mrb[48].mxu1 %v9405_v34  ;;  %v11314_v34 = vld [vmem:[%s11561_s6 + $0x50] sm:$0xff]  ;;  %v9941_v20 = vcombine.low %v7509_v7, %v7512_v40 }
 0x230   : > { %7258 = vmatmul.mubr.bf16.gmra.mrb[48].mxu0 %v9853_v47  ;;  %3463 = vmatprep.mubr.bf16.mxu1 %v9408_v1  ;;  %v7515_v47 = vrot.slane %v11314_v34, 5  ;;  %v9942_v1 = vcombine.high %v7509_v7, %v7512_v40  ;;  %v9898_v7 = vrot.slane %v11323_v23, 9  ;;  %v7546_v34 = vrot.slane %v13512_v15, 5  ;;  %v11210_v15 = vld [vmem:[%s14276_s3 + $0x60] sm:$0xff]  }
 0x231   : > { %7267 = vmatprep.mubr.bf16.mxu0 %v9856_v33  ;;  %v11315_v33 = vld [vmem:[%s11561_s6 + $0x48] sm:$0xff]  ;;  %10033 = vmatprep.subr.bf16.mxu1 %v11210_v15  ;;  %v11336_v15 = vld [vmem:[%s11561_s6 + $0x158] sm:$0xff] }
 0x232   : > { %v9894_v61 = vrot.slane %v11315_v33, 9  ;;  %v7517_v31 = vrot.slane %v7515_v47, 4  ;;  %10034 = vmatpush3.bf16.msra.mxu1 %v11211_v52  ;;  %v7592_v52 = vrot.slane %v11336_v15, 5 }
 0x233   : > { %10035 = vmatprep.subr.bf16.mxu1 %v11212_v4 }
 0x234   : > { %v7516_v6 = vsel %vm12207_vm5, %v9894_v61, %v7515_v47  ;;  %v7519_v44 = vsel %vm12207_vm5, %v7517_v31, %v7518_v37  ;;  %v11325_v31 = vld [vmem:[%s11561_s6 + $0xc0] sm:$0xff] }
 0x235   : > { %v9944_v27 = vcombine.high %v7516_v6, %v7519_v44  ;;  %v9943_v63 = vcombine.low %v7516_v6, %v7519_v44  ;;  %v9899_v37 = vrot.slane %v11325_v31, 9  ;;  %v7553_v44 = vrot.slane %v13540_v55, 5  ;;  %v11326_v55 = vld [vmem:[%s11561_s6 + $0xe0] sm:$0xff] }
 0x237   : > { %3464 = vmatmul.mubr.bf16.gmra.mrb[52].mxu1 %v9407_v42  ;;  %v7523_v42 = vsel %vm12207_vm5, %v9895_v43, %v7522_v22 }
 0x238   : > { %7268 = vmatmul.mubr.bf16.gmra.mrb[52].mxu0 %v9855_v24  ;;  %3473 = vmatprep.mubr.bf16.mxu1 %v9410_v62  ;;  %v7526_v24 = vsel %vm12207_vm5, %v7524_v48, %v7525_v18  ;;  %v11327_v48 = vld [vmem:[%s11561_s6 + $0xd8] sm:$0xff] }
 0x239   : > { %7277 = vmatprep.mubr.bf16.mxu0 %v9858_v49  ;;  %v9946_v62 = vcombine.high %v7523_v42, %v7526_v24  ;;  %v11319_v49 = vld [vmem:[%s11561_s6 + $0x78] sm:$0xff]  ;;  %v9900_v18 = vrot.slane %v11327_v48, 9 }
 0x23a   : > { %v9896_v54 = vrot.slane %v11319_v49, 9  ;;  %v11329_v49 = vld [vmem:[%s11561_s6 + $0xf0] sm:$0xff]  ;;  %v11217_v48 = vld [vmem:[%s14276_s3 + $0x38] sm:$0xff]  }
 0x23c   : > { %v7530_v58 = vsel %vm12207_vm5, %v9896_v54, %v7529_v36  ;;  %v7564_v36 = vrot.slane %v11328_v50, 5  ;;  %v9901_v54 = vrot.slane %v11329_v49, 9  ;;  %v11339_v49 = vld [vmem:[%s11561_s6 + $0x168] sm:$0xff] }
 0x23d   : > { %v9947_v30 = vcombine.low %v7530_v58, %v7533_v13 }
 0x23e   : > { %v7566_v5 = vrot.slane %v7564_v36, 4 }
 0x23f   : > { %3474 = vmatmul.mubr.bf16.gmra.mrb[56].mxu1 %v9409_v29  ;;  %v9945_v29 = vcombine.low %v7523_v42, %v7526_v24 }
 0x240   : > { %7278 = vmatmul.mubr.bf16.gmra.mrb[56].mxu0 %v9857_v60  ;;  %3483 = vmatprep.mubr.bf16.mxu1 %v9412_v32  ;;  %v9948_v60 = vcombine.high %v7530_v58, %v7533_v13  ;;  %v7538_v32 = vrot.slane %v7536_v59, 4  ;;  %v11213_v58 = vld [vmem:[%s14276_s3 + $0x28] sm:$0xff]   ;;  %v7565_v13 = vsel %vm12207_vm5, %v9901_v54, %v7564_v36  ;;  %v7568_v19 = vsel %vm12207_vm5, %v7566_v5, %v7567_v0 }
 0x241   : > { %7287 = vmatprep.mubr.bf16.mxu0 %v9860_v11  ;;  %v7539_v11 = vrot.slane %v13489_v28, 5  ;;  %v11322_v28 = vld [vmem:[%s11561_s6 + $0xb0] sm:$0xff]  ;;  %10036 = vmatpush3.bf16.msra.mxu1 %v11213_v58  ;;  %v7571_v59 = vrot.slane %v11330_v56, 5  ;;  %v9906_v54 = vrot.slane %v11339_v49, 9  ;;  %v7602_v0 = vrot.slane %v13723_v35, 5 }
 0x242   : > { %v7543_v17 = vrot.slane %v11322_v28, 5  ;;  %v9957_v28 = vcombine.low %v7565_v13, %v7568_v19 }
 0x243   : > { %v7540_v21 = vsel %vm12207_vm5, %v7538_v32, %v7539_v11  ;;  %v7573_v32 = vrot.slane %v7571_v59, 4  ;;  %v7574_v11 = vrot.slane %v13632_v25, 5  ;;  %v7572_v38 = vsel %vm12207_vm5, %v9902_v2, %v7571_v59  ;;  %v11214_v25 = vld [vmem:[%s14276_s3 + $0x70] sm:$0xff]   ;;  %v11341_v2 = vld [vmem:[%s11561_s6 + $0x180] sm:$0xff] }
 0x244   : > { %v9950_v12 = vcombine.high %v7537_v53, %v7540_v21  ;;  %v7545_v40 = vrot.slane %v7543_v17, 4  ;;  %v7544_v47 = vsel %vm12207_vm5, %v9898_v7, %v7543_v17  ;;  %v9949_v33 = vcombine.low %v7537_v53, %v7540_v21  ;;  %v11332_v53 = vld [vmem:[%s11561_s6 + $0x128] sm:$0xff]  ;;  %10037 = vmatprep.subr.bf16.mxu1 %v11214_v25 }
 0x245   : > { %v7575_v45 = vsel %vm12207_vm5, %v7573_v32, %v7574_v11  ;;  %v7578_v21 = vrot.slane %v11332_v53, 5  ;;  %v7581_v7 = vrot.slane %v13666_v16, 5  ;;  %v11334_v16 = vld [vmem:[%s11561_s6 + $0x140] sm:$0xff]  ;;  %v9907_v32 = vrot.slane %v11341_v2, 9 }
 0x246   : > { %v9960_v17 = vcombine.high %v7572_v38, %v7575_v45 }
 0x247   : > { %3484 = vmatmul.mubr.bf16.gmra.mrb[60].mxu1 %v9411_v9  ;;  %v7547_v9 = vsel %vm12207_vm5, %v7545_v40, %v7546_v34  ;;  %v7580_v23 = vrot.slane %v7578_v21, 4  ;;  %v11215_v40 = vld [vmem:[%s14276_s3 + $0x30] sm:$0xff]  }
 0x248   : > { %7288 = vmatmul.mubr.bf16.gmra.mrb[60].mxu0 %v9859_v39  ;;  %v11324_v39 = vld [vmem:[%s11561_s6 + $0xc8] sm:$0xff]  ;;  %v9952_v61 = vcombine.high %v7544_v47, %v7547_v9  ;;  %v9951_v51 = vcombine.low %v7544_v47, %v7547_v9  ;;  %10038 = vmatpush3.bf16.msra.mxu1 %v11215_v40  ;;  %v7585_v9 = vrot.slane %v11334_v16, 5 }
 0x249   : > { %7971 = vmatprep.mubr.bf16.mxu0 %v9942_v1  ;;  %v7550_v1 = vrot.slane %v11324_v39, 5  ;;  %v7582_v47 = vsel %vm12207_vm5, %v7580_v23, %v7581_v7  ;;  %v9959_v39 = vcombine.low %v7572_v38, %v7575_v45  ;;  %v7609_v38 = vrot.slane %v13737_v41, 5  ;;  %v11343_v41 = vld [vmem:[%s11561_s6 + $0x198] sm:$0xff] }
 0x24a   : > { %v7587_v31 = vrot.slane %v7585_v9, 4  ;;  %v9908_v40 = vrot.slane %v11343_v41, 9 }
 0x24b   : > { %v7552_v6 = vrot.slane %v7550_v1, 4  ;;  %v7551_v22 = vsel %vm12207_vm5, %v9899_v37, %v7550_v1  ;;  %v7588_v37 = vrot.slane %v13693_v57, 5  ;;  %v11216_v57 = vld [vmem:[%s14276_s3 + $0x78] sm:$0xff]  }
 0x24c   : > { %10039 = vmatprep.subr.bf16.mxu1 %v11216_v57 }
 0x24d   : > { %10040 = vmatpush3.bf16.msra.mxu1 %v11217_v48 }
 0x250   : > { %7972 = vmatmul.mubr.bf16.vlgmr.msra.gmra.mrb[0].mxu0 %v9941_v20  ;;  %v7554_v20 = vsel %vm12207_vm5, %v7552_v6, %v7553_v44  ;;  %v7589_v44 = vsel %vm12207_vm5, %v7587_v31, %v7588_v37 }
 0x251   : > { %7981 = vmatprep.mubr.bf16.mxu0 %v9944_v27  ;;  %v7557_v27 = vrot.slane %v11326_v55, 5  ;;  %v9954_v43 = vcombine.high %v7551_v22, %v7554_v20  ;;  %v11337_v55 = vld [vmem:[%s11561_s6 + $0x150] sm:$0xff] }
 0x253   : > { %v7559_v26 = vrot.slane %v7557_v27, 4  ;;  %v7558_v42 = vsel %vm12207_vm5, %v9900_v18, %v7557_v27  ;;  %v9905_v27 = vrot.slane %v11337_v55, 9 }
 0x255   : > { %v7561_v24 = vsel %vm12207_vm5, %v7559_v26, %v7560_v3  ;;  %v7593_v18 = vsel %vm12207_vm5, %v9905_v27, %v7592_v52 }
 0x258   : > { %7982 = vmatmul.mubr.bf16.gmra.mrb[4].mxu0 %v9943_v63  ;;  %v9953_v63 = vcombine.low %v7551_v22, %v7554_v20 }
 0x259   : > { %7991 = vmatprep.mubr.bf16.mxu0 %v9946_v62  ;;  %v9956_v62 = vcombine.high %v7558_v42, %v7561_v24 }
 0x260   : > { %7992 = vmatmul.mubr.bf16.gmra.mrb[8].mxu0 %v9945_v29  ;;  %v9955_v29 = vcombine.low %v7558_v42, %v7561_v24 }
 0x261   : > { %8001 = vmatprep.mubr.bf16.mxu0 %v9948_v60  ;;  %v9958_v60 = vcombine.high %v7565_v13, %v7568_v19  ;;  %v11340_v13 = vld [vmem:[%s11561_s6 + $0x188] sm:$0xff] }
 0x262   : > { %v7606_v19 = vrot.slane %v11340_v13, 5 }
 0x264   : > { %v7608_v11 = vrot.slane %v7606_v19, 4  ;;  %v7607_v45 = vsel %vm12207_vm5, %v9907_v32, %v7606_v19 }
 0x266   : > { %v7610_v53 = vsel %vm12207_vm5, %v7608_v11, %v7609_v38 }
 0x267   : > { %v9970_v7 = vcombine.high %v7607_v45, %v7610_v53 }
 0x268   : > { %8002 = vmatmul.mubr.bf16.gmra.mrb[12].mxu0 %v9947_v30  ;;  %v11333_v30 = vld [vmem:[%s11561_s6 + $0x120] sm:$0xff] }
 0x269   : > { %8011 = vmatprep.mubr.bf16.mxu0 %v9950_v12  ;;  %v9903_v12 = vrot.slane %v11333_v30, 9 }
 0x26b   : > { %v7579_v34 = vsel %vm12207_vm5, %v9903_v12, %v7578_v21  ;;  %v11342_v21 = vld [vmem:[%s11561_s6 + $0x1a0] sm:$0xff] }
 0x26c   : > { %v9962_v1 = vcombine.high %v7579_v34, %v7582_v47  ;;  %v9961_v22 = vcombine.low %v7579_v34, %v7582_v47  ;;  %v7616_v47 = vrot.slane %v13751_v46, 5 }
 0x270   : > { %8012 = vmatmul.mubr.bf16.gmra.mrb[16].mxu0 %v9949_v33  ;;  %v11335_v33 = vld [vmem:[%s11561_s6 + $0x138] sm:$0xff] }
 0x271   : > { %8021 = vmatprep.mubr.bf16.mxu0 %v9952_v61  ;;  %v9904_v61 = vrot.slane %v11335_v33, 9  ;;  %v9969_v33 = vcombine.low %v7607_v45, %v7610_v53 }
 0x273   : > { %v7586_v6 = vsel %vm12207_vm5, %v9904_v61, %v7585_v9 }
 0x274   : > { %v9964_v20 = vcombine.high %v7586_v6, %v7589_v44  ;;  %v9963_v50 = vcombine.low %v7586_v6, %v7589_v44 }
 0x278   : > { %8022 = vmatmul.mubr.bf16.gmra.mrb[20].mxu0 %v9951_v51  ;;  %v7594_v51 = vrot.slane %v7592_v52, 4 }
 0x279   : > { %8031 = vmatprep.mubr.bf16.mxu0 %v9954_v43  ;;  %v7595_v43 = vrot.slane %v13707_v8, 5  ;;  %v11338_v8 = vld [vmem:[%s11561_s6 + $0x170] sm:$0xff] }
 0x27a   : > { %v7599_v3 = vrot.slane %v11338_v8, 5 }
 0x27b   : > { %v7596_v26 = vsel %vm12207_vm5, %v7594_v51, %v7595_v43 }
 0x27c   : > { %v7601_v5 = vrot.slane %v7599_v3, 4  ;;  %v7600_v4 = vsel %vm12207_vm5, %v9906_v54, %v7599_v3 }
 0x27e   : > { %v7603_v58 = vsel %vm12207_vm5, %v7601_v5, %v7602_v0 }
 0x27f   : > { %v9968_v14 = vcombine.high %v7600_v4, %v7603_v58  ;;  %v9967_v12 = vcombine.low %v7600_v4, %v7603_v58 }
 0x280   : > { %8032 = vmatmul.mubr.bf16.gmra.mrb[24].mxu0 %v9953_v63  ;;  %v9966_v63 = vcombine.high %v7593_v18, %v7596_v26 }
 0x281   : > { %8041 = vmatprep.mubr.bf16.mxu0 %v9956_v62 }
 0x288   : > { %8042 = vmatmul.mubr.bf16.gmra.mrb[28].mxu0 %v9955_v29  ;;  %v9965_v29 = vcombine.low %v7593_v18, %v7596_v26 }
 0x289   : > { %8051 = vmatprep.mubr.bf16.mxu0 %v9958_v60 }
 0x290   : > { %8052 = vmatmul.mubr.bf16.gmra.mrb[32].mxu0 %v9957_v28  ;;  %v7613_v28 = vrot.slane %v11342_v21, 5 }
 0x291   : > { %8061 = vmatprep.mubr.bf16.mxu0 %v9960_v17 }
 0x292   : > { %v7615_v34 = vrot.slane %v7613_v28, 4  ;;  %v7614_v16 = vsel %vm12207_vm5, %v9908_v40, %v7613_v28 }
 0x294   : > { %v7617_v9 = vsel %vm12207_vm5, %v7615_v34, %v7616_v47 }
 0x295   : > { %v9972_v31 = vcombine.high %v7614_v16, %v7617_v9  ;;  %v9971_v44 = vcombine.low %v7614_v16, %v7617_v9  ;;  %v8390_v9 = vlaneseq }
 0x298   : > { %8062 = vmatmul.mubr.bf16.gmra.mrb[36].mxu0 %v9959_v39 }
 0x299   : > { %8071 = vmatprep.mubr.bf16.mxu0 %v9962_v1 }
 0x2a0   : > { %8072 = vmatmul.mubr.bf16.gmra.mrb[40].mxu0 %v9961_v22 }
 0x2a1   : > { %8081 = vmatprep.mubr.bf16.mxu0 %v9964_v20 }
 0x2a2   : > { %v13906_v42 = vpop.f32.mrb[0].mxu1 }
 0x2a3   : > { %v13908_v24 = vpop.f32.mrb[1].mxu1 }
 0x2a4   : > { %v13910_v36 = vpop.f32.mrb[2].mxu1 }
 0x2a5   : > { %v13912_v62 = vpop.f32.mrb[3].mxu1 }
 0x2a8   : > { %8082 = vmatmul.mubr.bf16.gmra.mrb[44].mxu0 %v9963_v50 }
 0x2a9   : > { %8091 = vmatprep.mubr.bf16.mxu0 %v9966_v63 }
 0x2aa   : > { %v13921_v56 = vpop.f32.mrb[4].mxu1 }
 0x2ab   : > { %v13923_v59 = vpop.f32.mrb[5].mxu1 }
 0x2ac   : > { %v13925_v60 = vpop.f32.mrb[6].mxu1 }
 0x2ad   : > { %v13927_v35 = vpop.f32.mrb[7].mxu1 }
 0x2b0   : > { %8092 = vmatmul.mubr.bf16.gmra.mrb[48].mxu0 %v9965_v29 }
 0x2b1   : > { %8101 = vmatprep.mubr.bf16.mxu0 %v9968_v14 }
 0x2b2   : > { %v13936_v17 = vpop.f32.mrb[8].mxu1 }
 0x2b3   : > { %v13938_v30 = vpop.f32.mrb[9].mxu1 }
 0x2b4   : > { %v13940_v23 = vpop.f32.mrb[10].mxu1 }
 0x2b5   : > { %v13942_v25 = vpop.f32.mrb[11].mxu1 }
 0x2b8   : > { %8102 = vmatmul.mubr.bf16.gmra.mrb[52].mxu0 %v9967_v12 }
 0x2b9   : > { %8111 = vmatprep.mubr.bf16.mxu0 %v9970_v7 }
 0x2ba   : > { %v13950_v39 = vpop.f32.mrb[12].mxu1 }
 0x2bb   : > { %v13952_v1 = vpop.f32.mrb[13].mxu1 }
 0x2bc   : > { %v13954_v61 = vpop.f32.mrb[14].mxu1 }
 0x2bd   : > { %v13956_v37 = vpop.f32.mrb[15].mxu1 }
 0x2c0   : > { %8112 = vmatmul.mubr.bf16.gmra.mrb[56].mxu0 %v9969_v33  ;;  %v8391_v33 = vshrl.u32 %v8390_v9, 7 }
 0x2c1   : > { %8121 = vmatprep.mubr.bf16.mxu0 %v9972_v31 }
 0x2c2   : > { %v13958_v46 = vpop.f32.mrb[16].mxu1 }
 0x2c3   : > { %v13960_v6 = vpop.f32.mrb[17].mxu1 }
 0x2c4   : > { %v13962_v15 = vpop.f32.mrb[18].mxu1 }
 0x2c5   : > { %v13964_v10 = vpop.f32.mrb[19].mxu1 }
 0x2c8   : > { %8122 = vmatmul.mubr.bf16.gmra.mrb[60].mxu0 %v9971_v44 }
 0x2ca   : > { %v13966_v52 = vpop.f32.mrb[20].mxu1 }
 0x2cb   : > { %v13968_v22 = vpop.f32.mrb[21].mxu1 }
 0x2cc   : > { %v13970_v20 = vpop.f32.mrb[22].mxu1 }
 0x2cd   : > { %v13972_v55 = vpop.f32.mrb[23].mxu1 }
 0x2d2   : > { %v13974_v27 = vpop.f32.mrb[24].mxu1 }
 0x2d3   : > { %v13976_v51 = vpop.f32.mrb[25].mxu1 }
 0x2d4   : > { %v13978_v43 = vpop.f32.mrb[26].mxu1 }
 0x2d5   : > { %v13980_v57 = vpop.f32.mrb[27].mxu1 }
 0x2da   : > { %v13982_v48 = vpop.f32.mrb[28].mxu1 }
 0x2db   : > { %v13984_v18 = vpop.f32.mrb[29].mxu1 }
 0x2dc   : > { %v13986_v26 = vpop.f32.mrb[30].mxu1 }
 0x2dd   : > { %v13988_v8 = vpop.f32.mrb[31].mxu1 }
 0x2e2   : > { %v13990_v3 = vpop.f32.mrb[32].mxu1 }
 0x2e3   : > { %v13992_v50 = vpop.f32.mrb[33].mxu1 }
 0x2e4   : > { %v13994_v63 = vpop.f32.mrb[34].mxu1 }
 0x2e5   : > { %v13996_v49 = vpop.f32.mrb[35].mxu1 }
 0x2ea   : > { %v13998_v54 = vpop.f32.mrb[36].mxu1 }
 0x2eb   : > { %v14000_v5 = vpop.f32.mrb[37].mxu1 }
 0x2ec   : > { %v14002_v0 = vpop.f32.mrb[38].mxu1 }
 0x2ed   : > { %v14004_v4 = vpop.f32.mrb[39].mxu1 }
 0x2f2   : > { %v14006_v58 = vpop.f32.mrb[40].mxu1 }
 0x2f3   : > { %v14008_v13 = vpop.f32.mrb[41].mxu1 }
 0x2f4   : > { %v14010_v19 = vpop.f32.mrb[42].mxu1 }
 0x2f5   : > { %v14012_v29 = vpop.f32.mrb[43].mxu1 }
 0x2fa   : > { %v14014_v14 = vpop.f32.mrb[44].mxu1 }
 0x2fb   : > { %v14016_v2 = vpop.f32.mrb[45].mxu1 }
 0x2fc   : > { %v14018_v32 = vpop.f32.mrb[46].mxu1 }
 0x2fd   : > { %14334 = vst [vmem:[#allocation8_spill] sm:$0xff] %v14018_v32  ;;  %v14020_v11 = vpop.f32.mrb[47].mxu1 }
 0x2fe   : > { %14335 = vst [vmem:[#allocation9_spill] sm:$0xff] %v14020_v11 }
 0x302   : > { %v14022_v38 = vpop.f32.mrb[48].mxu1 }
 0x303   : > { %14336 = vst [vmem:[#allocation4_spill] sm:$0xff] %v14022_v38  ;;  %v14024_v45 = vpop.f32.mrb[49].mxu1 }
 0x304   : > { %14337 = vst [vmem:[#allocation5_spill] sm:$0xff] %v14024_v45  ;;  %v14026_v53 = vpop.f32.mrb[50].mxu1 }
 0x305   : > { %14338 = vst [vmem:[#allocation6_spill] sm:$0xff] %v14026_v53  ;;  %v14028_v21 = vpop.f32.mrb[51].mxu1 }
 0x306   : > { %14339 = vst [vmem:[#allocation7_spill] sm:$0xff] %v14028_v21 }
 0x30a   : > { %v14030_v28 = vpop.f32.mrb[52].mxu1 }
 0x30b   : > { %14340 = vst [vmem:[#allocation10_spill] sm:$0xff] %v14030_v28  ;;  %v14032_v12 = vpop.f32.mrb[53].mxu1 }
 0x30c   : > { %14341 = vst [vmem:[#allocation11_spill] sm:$0xff] %v14032_v12  ;;  %v14034_v7 = vpop.f32.mrb[54].mxu1 }
 0x30d   : > { %14342 = vst [vmem:[#allocation12_spill] sm:$0xff] %v14034_v7  ;;  %v14036_v41 = vpop.f32.mrb[55].mxu1  ;;  %v8392_v7 = vsub.s32 0, %v8391_v33 }
 0x30e   : > { %14343 = vst [vmem:[#allocation13_spill] sm:$0xff] %v14036_v41 }
 0x312   : > { %v14038_v40 = vpop.f32.mrb[56].mxu1 }
 0x313   : > { %14344 = vst [vmem:[#allocation14_spill] sm:$0xff] %v14038_v40  ;;  %v14040_v34 = vpop.f32.mrb[57].mxu1  ;;  %v8388_v40 = vld [vmem:[%s14275_s2] sm:$0x3] }
 0x314   : > { %14345 = vst [vmem:[#allocation15_spill] sm:$0xff] %v14040_v34  ;;  %v14042_v47 = vpop.f32.mrb[58].mxu1  ;;  %v8396_v34 = vsub.s32 1, %v8391_v33  ;;  %v14057_v41 = vrot.slane %v8388_v40, %v8392_v7 }
 0x315   : > { %14346 = vst [vmem:[#allocation3_spill] sm:$0xff] %v14042_v47  ;;  %v14044_v16 = vpop.f32.mrb[59].mxu1 }
 0x316   : > { %14347 = vst [vmem:[#allocation16_spill] sm:$0xff] %v14044_v16  ;;  %v14059_v16 = vrot.slane %v8388_v40, %v8396_v34 }
 0x31a   : > { %v14046_v31 = vpop.f32.mrb[60].mxu1 }
 0x31b   : > { %14348 = vst [vmem:[#allocation17_spill] sm:$0xff] %v14046_v31  ;;  %v14048_v44 = vpop.f32.mrb[61].mxu1 }
 0x31c   : > { %14349 = vst [vmem:[#allocation18_spill] sm:$0xff] %v14048_v44  ;;  %v14050_v28 = vpop.f32.mrb[62].mxu1 }
 0x31d   : > { %14350 = vst [vmem:[#allocation19_spill] sm:$0xff] %v14050_v28  ;;  %v14052_v12 = vpop.f32.mrb[63].mxu1 }
 0x31e   : > { %14351 = vst [vmem:[#allocation20_spill] sm:$0xff] %v14052_v12 }
 0x323   : > { %v7973_v47 = vpop.f32.mrb[0].mxu0 }
 0x324   : > { %v10137_v9 = vadd.f32 %v7973_v47, %v13906_v42  ;;  %v7975_v31 = vpop.f32.mrb[1].mxu0 }
 0x325   : > { %v10138_v44 = vadd.f32 %v7975_v31, %v13908_v24  ;;  %v7977_v21 = vpop.f32.mrb[2].mxu0 }
 0x326   : > { %v8400_v28 = vadd.f32 %v10137_v9, %v14057_v41  ;;  %v10139_v12 = vadd.f32 %v7977_v21, %v13910_v36  ;;  %v7979_v53 = vpop.f32.mrb[3].mxu0 }
 0x327   : > { %v8401_v45 = vadd.f32 %v10138_v44, %v14059_v16  ;;  %v10140_v33 = vadd.f32 %v7979_v53, %v13912_v62 }
 0x328   : > { %v8402_v7 = vadd.f32 %v10139_v12, %v14057_v41  ;;  %v8464_v34 = vmax.f32 %v8400_v28, 0.0 }
 0x329   : > { %v8403_v40 = vadd.f32 %v10140_v33, %v14059_v16  ;;  %v8465_v42 = vmax.f32 %v8401_v45, 0.0 }
 0x32a   : > { %v8466_v38 = vmax.f32 %v8402_v7, 0.0 }
 0x32b   : > { %v8467_v47 = vmax.f32 %v8403_v40, 0.0  ;;  %v7983_v11 = vpop.f32.mrb[4].mxu0 }
 0x32c   : > { %v8528_v24 = vpack.c.bf16 %v8466_v38, %v8464_v34  ;;  %v10141_v31 = vadd.f32 %v7983_v11, %v13921_v56  ;;  %v7985_v9 = vpop.f32.mrb[5].mxu0 }
 0x32d   : > { %v10142_v36 = vadd.f32 %v7985_v9, %v13923_v59  ;;  %v7987_v21 = vpop.f32.mrb[6].mxu0  ;;  %v8529_v32 = vpack.c.bf16 %v8467_v47, %v8465_v42 }
 0x32e   : > { %v8404_v44 = vadd.f32 %v10141_v31, %v14057_v41  ;;  %v10143_v62 = vadd.f32 %v7987_v21, %v13925_v60  ;;  %v7989_v53 = vpop.f32.mrb[7].mxu0 }
 0x32f   : > { %v8405_v12 = vadd.f32 %v10142_v36, %v14059_v16  ;;  %v10144_v28 = vadd.f32 %v7989_v53, %v13927_v35  ;;  %8727 = vmatprep.mubr.bf16.mxu1 %v8529_v32 }
 0x330   : > { %v8406_v45 = vadd.f32 %v10143_v62, %v14057_v41  ;;  %8728 = vmatmul.mubr.bf16.vlgmr.msra.gmra.mrb[64].mxu1 %v8528_v24  ;;  %v8468_v11 = vmax.f32 %v8404_v44, 0.0 }
 0x331   : > { %v8407_v56 = vadd.f32 %v10144_v28, %v14059_v16  ;;  %v8469_v59 = vmax.f32 %v8405_v12, 0.0 }
 0x332   : > { %v8470_v38 = vmax.f32 %v8406_v45, 0.0 }
 0x333   : > { %v8471_v33 = vmax.f32 %v8407_v56, 0.0  ;;  %v7993_v7 = vpop.f32.mrb[8].mxu0 }
 0x334   : > { %v10145_v40 = vadd.f32 %v7993_v7, %v13936_v17  ;;  %v7995_v34 = vpop.f32.mrb[9].mxu0  ;;  %v8530_v60 = vpack.c.bf16 %v8470_v38, %v8468_v11 }
 0x335   : > { %v10146_v42 = vadd.f32 %v7995_v34, %v13938_v30  ;;  %v7997_v47 = vpop.f32.mrb[10].mxu0  ;;  %v8531_v31 = vpack.c.bf16 %v8471_v33, %v8469_v59 }
 0x336   : > { %v8408_v35 = vadd.f32 %v10145_v40, %v14057_v41  ;;  %v10147_v32 = vadd.f32 %v7997_v47, %v13940_v23  ;;  %v7999_v24 = vpop.f32.mrb[11].mxu0 }
 0x337   : > { %v8409_v9 = vadd.f32 %v10146_v42, %v14059_v16  ;;  %v10148_v36 = vadd.f32 %v7999_v24, %v13942_v25  ;;  %8735 = vmatprep.mubr.bf16.mxu1 %v8531_v31 }
 0x338   : > { %v8410_v21 = vadd.f32 %v10147_v32, %v14057_v41  ;;  %8736 = vmatmul.mubr.bf16.gmra.mrb[68].mxu1 %v8530_v60  ;;  %v8472_v44 = vmax.f32 %v8408_v35, 0.0 }
 0x339   : > { %v8411_v17 = vadd.f32 %v10148_v36, %v14059_v16  ;;  %v8473_v30 = vmax.f32 %v8409_v9, 0.0 }
 0x33a   : > { %v8474_v62 = vmax.f32 %v8410_v21, 0.0 }
 0x33b   : > { %v8475_v53 = vmax.f32 %v8411_v17, 0.0  ;;  %v8003_v12 = vpop.f32.mrb[12].mxu0 }
 0x33c   : > { %v10149_v28 = vadd.f32 %v8003_v12, %v13950_v39  ;;  %v8005_v45 = vpop.f32.mrb[13].mxu0  ;;  %v8532_v23 = vpack.c.bf16 %v8474_v62, %v8472_v44 }
 0x33d   : > { %v10150_v56 = vadd.f32 %v8005_v45, %v13952_v1  ;;  %v8007_v11 = vpop.f32.mrb[14].mxu0  ;;  %v8533_v38 = vpack.c.bf16 %v8475_v53, %v8473_v30 }
 0x33e   : > { %v8412_v25 = vadd.f32 %v10149_v28, %v14057_v41  ;;  %v10151_v59 = vadd.f32 %v8007_v11, %v13954_v61  ;;  %v8009_v33 = vpop.f32.mrb[15].mxu0 }
 0x33f   : > { %v8413_v7 = vadd.f32 %v10150_v56, %v14059_v16  ;;  %v10152_v40 = vadd.f32 %v8009_v33, %v13956_v37  ;;  %8743 = vmatprep.mubr.bf16.mxu1 %v8533_v38 }
 0x340   : > { %v8414_v34 = vadd.f32 %v10151_v59, %v14057_v41  ;;  %8744 = vmatmul.mubr.bf16.gmra.mrb[72].mxu1 %v8532_v23  ;;  %v8476_v60 = vmax.f32 %v8412_v25, 0.0 }
 0x341   : > { %v8415_v39 = vadd.f32 %v10152_v40, %v14059_v16  ;;  %v8477_v1 = vmax.f32 %v8413_v7, 0.0 }
 0x342   : > { %v8478_v42 = vmax.f32 %v8414_v34, 0.0 }
 0x343   : > { %v8479_v47 = vmax.f32 %v8415_v39, 0.0  ;;  %v8013_v31 = vpop.f32.mrb[16].mxu0 }
 0x344   : > { %v10153_v35 = vadd.f32 %v8013_v31, %v13958_v46  ;;  %v8015_v32 = vpop.f32.mrb[17].mxu0  ;;  %v8534_v61 = vpack.c.bf16 %v8478_v42, %v8476_v60 }
 0x345   : > { %v10154_v24 = vadd.f32 %v8015_v32, %v13960_v6  ;;  %v8017_v9 = vpop.f32.mrb[18].mxu0  ;;  %v8535_v36 = vpack.c.bf16 %v8479_v47, %v8477_v1 }
 0x346   : > { %v8416_v37 = vadd.f32 %v10153_v35, %v14057_v41  ;;  %v10155_v21 = vadd.f32 %v8017_v9, %v13962_v15  ;;  %v8019_v17 = vpop.f32.mrb[19].mxu0 }
 0x347   : > { %v8417_v44 = vadd.f32 %v10154_v24, %v14059_v16  ;;  %v10156_v62 = vadd.f32 %v8019_v17, %v13964_v10  ;;  %8751 = vmatprep.mubr.bf16.mxu1 %v8535_v36 }
 0x348   : > { %v8418_v30 = vadd.f32 %v10155_v21, %v14057_v41  ;;  %8752 = vmatmul.mubr.bf16.gmra.mrb[76].mxu1 %v8534_v61  ;;  %v8480_v53 = vmax.f32 %v8416_v37, 0.0 }
 0x349   : > { %v8419_v46 = vadd.f32 %v10156_v62, %v14059_v16  ;;  %v8481_v6 = vmax.f32 %v8417_v44, 0.0 }
 0x34a   : > { %v8482_v12 = vmax.f32 %v8418_v30, 0.0 }
 0x34b   : > { %v8483_v28 = vmax.f32 %v8419_v46, 0.0  ;;  %v8023_v45 = vpop.f32.mrb[20].mxu0 }
 0x34c   : > { %v10157_v23 = vadd.f32 %v8023_v45, %v13966_v52  ;;  %v8025_v56 = vpop.f32.mrb[21].mxu0  ;;  %v8536_v15 = vpack.c.bf16 %v8482_v12, %v8480_v53 }
 0x34d   : > { %v10158_v11 = vadd.f32 %v8025_v56, %v13968_v22  ;;  %v8027_v38 = vpop.f32.mrb[22].mxu0  ;;  %v8537_v25 = vpack.c.bf16 %v8483_v28, %v8481_v6 }
 0x34e   : > { %v8420_v10 = vadd.f32 %v10157_v23, %v14057_v41  ;;  %v10159_v59 = vadd.f32 %v8027_v38, %v13970_v20  ;;  %v8029_v33 = vpop.f32.mrb[23].mxu0 }
 0x34f   : > { %v8421_v7 = vadd.f32 %v10158_v11, %v14059_v16  ;;  %v10160_v40 = vadd.f32 %v8029_v33, %v13972_v55  ;;  %8759 = vmatprep.mubr.bf16.mxu1 %v8537_v25 }
 0x350   : > { %v8422_v34 = vadd.f32 %v10159_v59, %v14057_v41  ;;  %8760 = vmatmul.mubr.bf16.gmra.mrb[80].mxu1 %v8536_v15  ;;  %v8484_v39 = vmax.f32 %v8420_v10, 0.0 }
 0x351   : > { %v8423_v52 = vadd.f32 %v10160_v40, %v14059_v16  ;;  %v8485_v22 = vmax.f32 %v8421_v7, 0.0 }
 0x352   : > { %v8486_v60 = vmax.f32 %v8422_v34, 0.0 }
 0x353   : > { %v8487_v42 = vmax.f32 %v8423_v52, 0.0  ;;  %v8033_v1 = vpop.f32.mrb[24].mxu0 }
 0x354   : > { %v10161_v47 = vadd.f32 %v8033_v1, %v13974_v27  ;;  %v8035_v31 = vpop.f32.mrb[25].mxu0  ;;  %v8538_v20 = vpack.c.bf16 %v8486_v60, %v8484_v39 }
 0x355   : > { %v10162_v35 = vadd.f32 %v8035_v31, %v13976_v51  ;;  %v8037_v32 = vpop.f32.mrb[26].mxu0  ;;  %v8539_v61 = vpack.c.bf16 %v8487_v42, %v8485_v22 }
 0x356   : > { %v8424_v55 = vadd.f32 %v10161_v47, %v14057_v41  ;;  %v10163_v24 = vadd.f32 %v8037_v32, %v13978_v43  ;;  %v8039_v9 = vpop.f32.mrb[27].mxu0 }
 0x357   : > { %v8425_v36 = vadd.f32 %v10162_v35, %v14059_v16  ;;  %v10164_v37 = vadd.f32 %v8039_v9, %v13980_v57  ;;  %8767 = vmatprep.mubr.bf16.mxu1 %v8539_v61 }
 0x358   : > { %v8426_v21 = vadd.f32 %v10163_v24, %v14057_v41  ;;  %8768 = vmatmul.mubr.bf16.gmra.mrb[84].mxu1 %v8538_v20  ;;  %v8488_v17 = vmax.f32 %v8424_v55, 0.0 }
 0x359   : > { %v8427_v27 = vadd.f32 %v10164_v37, %v14059_v16  ;;  %v8489_v51 = vmax.f32 %v8425_v36, 0.0 }
 0x35a   : > { %v8490_v44 = vmax.f32 %v8426_v21, 0.0 }
 0x35b   : > { %v8491_v62 = vmax.f32 %v8427_v27, 0.0  ;;  %v8043_v30 = vpop.f32.mrb[28].mxu0 }
 0x35c   : > { %v10165_v46 = vadd.f32 %v8043_v30, %v13982_v48  ;;  %v8045_v53 = vpop.f32.mrb[29].mxu0  ;;  %v8540_v43 = vpack.c.bf16 %v8490_v44, %v8488_v17 }
 0x35d   : > { %v10166_v12 = vadd.f32 %v8045_v53, %v13984_v18  ;;  %v8047_v6 = vpop.f32.mrb[30].mxu0  ;;  %v8541_v28 = vpack.c.bf16 %v8491_v62, %v8489_v51 }
 0x35e   : > { %v8428_v57 = vadd.f32 %v10165_v46, %v14057_v41  ;;  %v10167_v45 = vadd.f32 %v8047_v6, %v13986_v26  ;;  %v8049_v23 = vpop.f32.mrb[31].mxu0 }
 0x35f   : > { %v8429_v56 = vadd.f32 %v10166_v12, %v14059_v16  ;;  %v10168_v15 = vadd.f32 %v8049_v23, %v13988_v8  ;;  %8775 = vmatprep.mubr.bf16.mxu1 %v8541_v28 }
 0x360   : > { %v8430_v11 = vadd.f32 %v10167_v45, %v14057_v41  ;;  %8776 = vmatmul.mubr.bf16.gmra.mrb[88].mxu1 %v8540_v43  ;;  %v8492_v38 = vmax.f32 %v8428_v57, 0.0 }
 0x361   : > { %v8431_v48 = vadd.f32 %v10168_v15, %v14059_v16  ;;  %v8493_v18 = vmax.f32 %v8429_v56, 0.0 }
 0x362   : > { %v8494_v25 = vmax.f32 %v8430_v11, 0.0 }
 0x363   : > { %v8495_v10 = vmax.f32 %v8431_v48, 0.0  ;;  %v8053_v59 = vpop.f32.mrb[32].mxu0 }
 0x364   : > { %v10169_v33 = vadd.f32 %v8053_v59, %v13990_v3  ;;  %v8055_v7 = vpop.f32.mrb[33].mxu0  ;;  %v8542_v26 = vpack.c.bf16 %v8494_v25, %v8492_v38 }
 0x365   : > { %v10170_v40 = vadd.f32 %v8055_v7, %v13992_v50  ;;  %v8057_v34 = vpop.f32.mrb[34].mxu0  ;;  %v8543_v52 = vpack.c.bf16 %v8495_v10, %v8493_v18  ;;  %v14352_v7 = vld [vmem:[#allocation8_spill] sm:$0xff] }
 0x366   : > { %v8432_v8 = vadd.f32 %v10169_v33, %v14057_v41  ;;  %v10171_v39 = vadd.f32 %v8057_v34, %v13994_v63  ;;  %v8059_v60 = vpop.f32.mrb[35].mxu0 }
 0x367   : > { %v8433_v22 = vadd.f32 %v10170_v40, %v14059_v16  ;;  %v10172_v42 = vadd.f32 %v8059_v60, %v13996_v49  ;;  %8783 = vmatprep.mubr.bf16.mxu1 %v8543_v52  ;;  %v14353_v52 = vld [vmem:[#allocation9_spill] sm:$0xff] }
 0x368   : > { %v8434_v1 = vadd.f32 %v10171_v39, %v14057_v41  ;;  %8784 = vmatmul.mubr.bf16.gmra.mrb[92].mxu1 %v8542_v26  ;;  %v8496_v47 = vmax.f32 %v8432_v8, 0.0 }
 0x369   : > { %v8435_v3 = vadd.f32 %v10172_v42, %v14059_v16  ;;  %v8497_v50 = vmax.f32 %v8433_v22, 0.0 }
 0x36a   : > { %v8498_v31 = vmax.f32 %v8434_v1, 0.0 }
 0x36b   : > { %v8499_v20 = vmax.f32 %v8435_v3, 0.0  ;;  %v8063_v35 = vpop.f32.mrb[36].mxu0  ;;  %v14354_v3 = vld [vmem:[#allocation4_spill] sm:$0xff] }
 0x36c   : > { %v10173_v32 = vadd.f32 %v8063_v35, %v13998_v54  ;;  %v8065_v61 = vpop.f32.mrb[37].mxu0  ;;  %v8544_v63 = vpack.c.bf16 %v8498_v31, %v8496_v47 }
 0x36d   : > { %v10174_v55 = vadd.f32 %v8065_v61, %v14000_v5  ;;  %v8067_v24 = vpop.f32.mrb[38].mxu0  ;;  %v8545_v9 = vpack.c.bf16 %v8499_v20, %v8497_v50  ;;  %v14355_v20 = vld [vmem:[#allocation5_spill] sm:$0xff] }
 0x36e   : > { %v8436_v49 = vadd.f32 %v10173_v32, %v14057_v41  ;;  %v10175_v36 = vadd.f32 %v8067_v24, %v14002_v0  ;;  %v8069_v37 = vpop.f32.mrb[39].mxu0 }
 0x36f   : > { %v8437_v21 = vadd.f32 %v10174_v55, %v14059_v16  ;;  %v10176_v27 = vadd.f32 %v8069_v37, %v14004_v4  ;;  %8791 = vmatprep.mubr.bf16.mxu1 %v8545_v9  ;;  %v14356_v55 = vld [vmem:[#allocation6_spill] sm:$0xff] }
 0x370   : > { %v8438_v17 = vadd.f32 %v10175_v36, %v14057_v41  ;;  %8792 = vmatmul.mubr.bf16.gmra.mrb[96].mxu1 %v8544_v63  ;;  %v8500_v44 = vmax.f32 %v8436_v49, 0.0  ;;  %v14357_v36 = vld [vmem:[#allocation7_spill] sm:$0xff] }
 0x371   : > { %v8439_v54 = vadd.f32 %v10176_v27, %v14059_v16  ;;  %v8501_v5 = vmax.f32 %v8437_v21, 0.0 }
 0x372   : > { %v8502_v51 = vmax.f32 %v8438_v17, 0.0 }
 0x373   : > { %v8503_v62 = vmax.f32 %v8439_v54, 0.0  ;;  %v8073_v30 = vpop.f32.mrb[40].mxu0 }
 0x374   : > { %v10177_v46 = vadd.f32 %v8073_v30, %v14006_v58  ;;  %v8075_v53 = vpop.f32.mrb[41].mxu0  ;;  %v8546_v0 = vpack.c.bf16 %v8502_v51, %v8500_v44 }
 0x375   : > { %v10178_v43 = vadd.f32 %v8075_v53, %v14008_v13  ;;  %v8077_v12 = vpop.f32.mrb[42].mxu0  ;;  %v8547_v6 = vpack.c.bf16 %v8503_v62, %v8501_v5  ;;  %v14358_v62 = vld [vmem:[#allocation10_spill] sm:$0xff] }
 0x376   : > { %v8440_v4 = vadd.f32 %v10177_v46, %v14057_v41  ;;  %v10179_v28 = vadd.f32 %v8077_v12, %v14010_v19  ;;  %v8079_v57 = vpop.f32.mrb[43].mxu0 }
 0x377   : > { %v8441_v45 = vadd.f32 %v10178_v43, %v14059_v16  ;;  %v10180_v23 = vadd.f32 %v8079_v57, %v14012_v29  ;;  %8799 = vmatprep.mubr.bf16.mxu1 %v8547_v6 }
 0x378   : > { %v8442_v56 = vadd.f32 %v10179_v28, %v14057_v41  ;;  %8800 = vmatmul.mubr.bf16.gmra.mrb[100].mxu1 %v8546_v0  ;;  %v8504_v15 = vmax.f32 %v8440_v4, 0.0  ;;  %v14359_v0 = vld [vmem:[#allocation11_spill] sm:$0xff]  ;;  %v14360_v28 = vld [vmem:[#allocation12_spill] sm:$0xff] }
 0x379   : > { %v8443_v58 = vadd.f32 %v10180_v23, %v14059_v16  ;;  %v8505_v13 = vmax.f32 %v8441_v45, 0.0 }
 0x37a   : > { %v8506_v11 = vmax.f32 %v8442_v56, 0.0  ;;  %v14361_v56 = vld [vmem:[#allocation13_spill] sm:$0xff] }
 0x37b   : > { %v8507_v48 = vmax.f32 %v8443_v58, 0.0  ;;  %v8083_v38 = vpop.f32.mrb[44].mxu0 }
 0x37c   : > { %v10181_v25 = vadd.f32 %v8083_v38, %v14014_v14  ;;  %v8085_v18 = vpop.f32.mrb[45].mxu0  ;;  %v8548_v19 = vpack.c.bf16 %v8506_v11, %v8504_v15 }
 0x37d   : > { %v10182_v10 = vadd.f32 %v8085_v18, %v14016_v2  ;;  %v8087_v59 = vpop.f32.mrb[46].mxu0  ;;  %v8549_v33 = vpack.c.bf16 %v8507_v48, %v8505_v13 }
 0x37e   : > { %v8444_v29 = vadd.f32 %v10181_v25, %v14057_v41  ;;  %v10183_v26 = vadd.f32 %v8087_v59, %v14352_v7  ;;  %v8089_v40 = vpop.f32.mrb[47].mxu0 }
 0x37f   : > { %v8445_v34 = vadd.f32 %v10182_v10, %v14059_v16  ;;  %v10184_v8 = vadd.f32 %v8089_v40, %v14353_v52  ;;  %8807 = vmatprep.mubr.bf16.mxu1 %v8549_v33  ;;  %v14364_v52 = vld [vmem:[#allocation3_spill] sm:$0xff] }
 0x380   : > { %v8446_v39 = vadd.f32 %v10183_v26, %v14057_v41  ;;  %8808 = vmatmul.mubr.bf16.gmra.mrb[104].mxu1 %v8548_v19  ;;  %v8508_v60 = vmax.f32 %v8444_v29, 0.0  ;;  %v14362_v19 = vld [vmem:[#allocation14_spill] sm:$0xff]  ;;  %v14363_v29 = vld [vmem:[#allocation15_spill] sm:$0xff] }
 0x381   : > { %v8447_v14 = vadd.f32 %v10184_v8, %v14059_v16  ;;  %v8509_v2 = vmax.f32 %v8445_v34, 0.0 }
 0x382   : > { %v8510_v22 = vmax.f32 %v8446_v39, 0.0 }
 0x383   : > { %v8511_v42 = vmax.f32 %v8447_v14, 0.0  ;;  %v8093_v1 = vpop.f32.mrb[48].mxu0 }
 0x384   : > { %v10185_v47 = vadd.f32 %v8093_v1, %v14354_v3  ;;  %v8095_v31 = vpop.f32.mrb[49].mxu0  ;;  %v8550_v50 = vpack.c.bf16 %v8510_v22, %v8508_v60  ;;  %v14365_v60 = vld [vmem:[#allocation16_spill] sm:$0xff] }
 0x385   : > { %v10186_v35 = vadd.f32 %v8095_v31, %v14355_v20  ;;  %v8097_v32 = vpop.f32.mrb[50].mxu0  ;;  %v8551_v61 = vpack.c.bf16 %v8511_v42, %v8509_v2  ;;  %v14366_v20 = vld [vmem:[#allocation17_spill] sm:$0xff] }
 0x386   : > { %v8448_v63 = vadd.f32 %v10185_v47, %v14057_v41  ;;  %v10187_v24 = vadd.f32 %v8097_v32, %v14356_v55  ;;  %v8099_v9 = vpop.f32.mrb[51].mxu0 }
 0x387   : > { %v8449_v49 = vadd.f32 %v10186_v35, %v14059_v16  ;;  %v10188_v37 = vadd.f32 %v8099_v9, %v14357_v36  ;;  %8815 = vmatprep.mubr.bf16.mxu1 %v8551_v61  ;;  %v14368_v36 = vld [vmem:[#allocation19_spill] sm:$0xff] }
 0x388   : > { %v8450_v21 = vadd.f32 %v10187_v24, %v14057_v41  ;;  %8816 = vmatmul.mubr.bf16.gmra.mrb[108].mxu1 %v8550_v50  ;;  %v8512_v17 = vmax.f32 %v8448_v63, 0.0  ;;  %v14367_v63 = vld [vmem:[#allocation18_spill] sm:$0xff] }
 0x389   : > { %v8451_v27 = vadd.f32 %v10188_v37, %v14059_v16  ;;  %v8513_v44 = vmax.f32 %v8449_v49, 0.0 }
 0x38a   : > { %v8514_v54 = vmax.f32 %v8450_v21, 0.0 }
 0x38b   : > { %v8515_v51 = vmax.f32 %v8451_v27, 0.0  ;;  %v8103_v5 = vpop.f32.mrb[52].mxu0 }
 0x38c   : > { %v10189_v30 = vadd.f32 %v8103_v5, %v14358_v62  ;;  %v8105_v46 = vpop.f32.mrb[53].mxu0  ;;  %v8552_v53 = vpack.c.bf16 %v8514_v54, %v8512_v17  ;;  %v14369_v17 = vld [vmem:[#allocation20_spill] sm:$0xff] }
 0x38d   : > { %v10190_v43 = vadd.f32 %v8105_v46, %v14359_v0  ;;  %v8107_v12 = vpop.f32.mrb[54].mxu0  ;;  %v8553_v6 = vpack.c.bf16 %v8515_v51, %v8513_v44 }
 0x38e   : > { %v8452_v4 = vadd.f32 %v10189_v30, %v14057_v41  ;;  %v10191_v57 = vadd.f32 %v8107_v12, %v14360_v28  ;;  %v8109_v45 = vpop.f32.mrb[55].mxu0  ;;  %v14193_v12 = vld [vmem:[%s14277_s4] ss:$0 sm:$0xff] }
 0x38f   : > { %v8453_v23 = vadd.f32 %v10190_v43, %v14059_v16  ;;  %v10192_v58 = vadd.f32 %v8109_v45, %v14361_v56  ;;  %8823 = vmatprep.mubr.bf16.mxu1 %v8553_v6 }
 0x390   : > { %v8454_v15 = vadd.f32 %v10191_v57, %v14057_v41  ;;  %8824 = vmatmul.mubr.bf16.gmra.mrb[112].mxu1 %v8552_v53  ;;  %v8516_v13 = vmax.f32 %v8452_v4, 0.0 }
 0x391   : > { %v8455_v11 = vadd.f32 %v10192_v58, %v14059_v16  ;;  %v8517_v38 = vmax.f32 %v8453_v23, 0.0 }
 0x392   : > { %v8518_v48 = vmax.f32 %v8454_v15, 0.0 }
 0x393   : > { %v8519_v25 = vmax.f32 %v8455_v11, 0.0  ;;  %v8113_v18 = vpop.f32.mrb[56].mxu0 }
 0x394   : > { %v10193_v10 = vadd.f32 %v8113_v18, %v14362_v19  ;;  %v8115_v59 = vpop.f32.mrb[57].mxu0  ;;  %v8554_v33 = vpack.c.bf16 %v8518_v48, %v8516_v13 }
 0x395   : > { %v10194_v7 = vadd.f32 %v8115_v59, %v14363_v29  ;;  %v8117_v26 = vpop.f32.mrb[58].mxu0  ;;  %v8555_v40 = vpack.c.bf16 %v8519_v25, %v8517_v38 }
 0x396   : > { %v8456_v34 = vadd.f32 %v10193_v10, %v14057_v41  ;;  %v10195_v8 = vadd.f32 %v8117_v26, %v14364_v52  ;;  %v8119_v39 = vpop.f32.mrb[59].mxu0 }
 0x397   : > { %v8457_v14 = vadd.f32 %v10194_v7, %v14059_v16  ;;  %v10196_v22 = vadd.f32 %v8119_v39, %v14365_v60  ;;  %8831 = vmatprep.mubr.bf16.mxu1 %v8555_v40 }
 0x398   : > { %v8458_v2 = vadd.f32 %v10195_v8, %v14057_v41  ;;  %8832 = vmatmul.mubr.bf16.gmra.mrb[116].mxu1 %v8554_v33  ;;  %v8520_v1 = vmax.f32 %v8456_v34, 0.0 }
 0x399   : > { %v8459_v42 = vadd.f32 %v10196_v22, %v14059_v16  ;;  %v8521_v47 = vmax.f32 %v8457_v14, 0.0 }
 0x39a   : > { %v8522_v3 = vmax.f32 %v8458_v2, 0.0 }
 0x39b   : > { %v8523_v31 = vmax.f32 %v8459_v42, 0.0  ;;  %v8123_v50 = vpop.f32.mrb[60].mxu0 }
 0x39c   : > { %v10197_v35 = vadd.f32 %v8123_v50, %v14366_v20  ;;  %v8125_v32 = vpop.f32.mrb[61].mxu0  ;;  %v8556_v61 = vpack.c.bf16 %v8522_v3, %v8520_v1 }
 0x39d   : > { %v10198_v55 = vadd.f32 %v8125_v32, %v14367_v63  ;;  %v8127_v24 = vpop.f32.mrb[62].mxu0  ;;  %v8557_v9 = vpack.c.bf16 %v8523_v31, %v8521_v47 }
 0x39e   : > { %v8460_v49 = vadd.f32 %v10197_v35, %v14057_v41  ;;  %v10199_v37 = vadd.f32 %v8127_v24, %v14368_v36  ;;  %v8129_v21 = vpop.f32.mrb[63].mxu0 }
 0x39f   : > { %v8461_v27 = vadd.f32 %v10198_v55, %v14059_v16  ;;  %v10200_v54 = vadd.f32 %v8129_v21, %v14369_v17  ;;  %8839 = vmatprep.mubr.bf16.mxu1 %v8557_v9 }
 0x3a0   : > { %v8462_v44 = vadd.f32 %v10199_v37, %v14057_v41  ;;  %8840 = vmatmul.mubr.bf16.gmra.mrb[120].mxu1 %v8556_v61  ;;  %v8524_v5 = vmax.f32 %v8460_v49, 0.0 }
 0x3a1   : > { %v8463_v51 = vadd.f32 %v10200_v54, %v14059_v16  ;;  %v8525_v30 = vmax.f32 %v8461_v27, 0.0 }
 0x3a2   : > { %v8526_v62 = vmax.f32 %v8462_v44, 0.0 }
 0x3a3   : > { %v8527_v46 = vmax.f32 %v8463_v51, 0.0 }
 0x3a4   : > { %v8558_v53 = vpack.c.bf16 %v8526_v62, %v8524_v5 }
 0x3a5   : > { %v8559_v0 = vpack.c.bf16 %v8527_v46, %v8525_v30 }
 0x3a7   : > { %8847 = vmatprep.mubr.bf16.mxu1 %v8559_v0 }
 0x3a8   : > { %8848 = vmatmul.mubr.bf16.gmra.mrb[124].mxu1 %v8558_v53 }
 0x403   : > { %v10041_v43 = vpop.f32.mrb[64].mxu1 }
 0x404   : > { %v10042_v6 = vpop.f32.mrb[65].mxu1 }
 0x405   : > { %v10043_v41 = vadd.f32 %v10042_v6, %v10041_v43  ;;  %v10044_v4 = vpop.f32.mrb[66].mxu1 }
 0x406   : > { %v10045_v16 = vpop.f32.mrb[67].mxu1 }
 0x407   : > { %v8730_v28 = vadd.f32 %v10043_v41, %v14193_v12  ;;  %v10046_v57 = vadd.f32 %v10045_v16, %v10044_v4 }
 0x409   : > { %8856 = vst [vmem:[%s14198_s11] sm:$0xff] %v8730_v28  ;;  %v8733_v45 = vadd.f32 %v10046_v57, %v14193_v12 }
 0x40b   : > { %8857 = vst [vmem:[%s14198_s11 + $0x8] sm:$0xff] %v8733_v45  ;;  %v10047_v23 = vpop.f32.mrb[68].mxu1 }
 0x40c   : > { %v10048_v56 = vpop.f32.mrb[69].mxu1 }
 0x40d   : > { %v10049_v58 = vadd.f32 %v10048_v56, %v10047_v23  ;;  %v10050_v15 = vpop.f32.mrb[70].mxu1 }
 0x40e   : > { %v10051_v11 = vpop.f32.mrb[71].mxu1 }
 0x40f   : > { %v8738_v13 = vadd.f32 %v10049_v58, %v14193_v12  ;;  %v10052_v48 = vadd.f32 %v10051_v11, %v10050_v15 }
 0x411   : > { %8858 = vst [vmem:[%s14198_s11 + $0x10] sm:$0xff] %v8738_v13  ;;  %v8741_v38 = vadd.f32 %v10052_v48, %v14193_v12 }
 0x413   : > { %8859 = vst [vmem:[%s14198_s11 + $0x18] sm:$0xff] %v8741_v38  ;;  %v10053_v25 = vpop.f32.mrb[72].mxu1 }
 0x414   : > { %v10054_v18 = vpop.f32.mrb[73].mxu1 }
 0x415   : > { %v10055_v19 = vadd.f32 %v10054_v18, %v10053_v25  ;;  %v10056_v10 = vpop.f32.mrb[74].mxu1 }
 0x416   : > { %v10057_v59 = vpop.f32.mrb[75].mxu1 }
 0x417   : > { %v8746_v33 = vadd.f32 %v10055_v19, %v14193_v12  ;;  %v10058_v29 = vadd.f32 %v10057_v59, %v10056_v10 }
 0x419   : > { %8860 = vst [vmem:[%s14198_s11 + $0x20] sm:$0xff] %v8746_v33  ;;  %v8749_v7 = vadd.f32 %v10058_v29, %v14193_v12 }
 0x41b   : > { %8861 = vst [vmem:[%s14198_s11 + $0x28] sm:$0xff] %v8749_v7  ;;  %v10059_v26 = vpop.f32.mrb[76].mxu1 }
 0x41c   : > { %v10060_v40 = vpop.f32.mrb[77].mxu1 }
 0x41d   : > { %v10061_v34 = vadd.f32 %v10060_v40, %v10059_v26  ;;  %v10062_v52 = vpop.f32.mrb[78].mxu1 }
 0x41e   : > { %v10063_v8 = vpop.f32.mrb[79].mxu1 }
 0x41f   : > { %v8754_v39 = vadd.f32 %v10061_v34, %v14193_v12  ;;  %v10064_v14 = vadd.f32 %v10063_v8, %v10062_v52 }
 0x421   : > { %8862 = vst [vmem:[%s14198_s11 + $0x30] sm:$0xff] %v8754_v39  ;;  %v8757_v60 = vadd.f32 %v10064_v14, %v14193_v12 }
 0x423   : > { %8863 = vst [vmem:[%s14198_s11 + $0x38] sm:$0xff] %v8757_v60  ;;  %v10065_v22 = vpop.f32.mrb[80].mxu1 }
 0x424   : > { %v10066_v2 = vpop.f32.mrb[81].mxu1 }
 0x425   : > { %v10067_v42 = vadd.f32 %v10066_v2, %v10065_v22  ;;  %v10068_v1 = vpop.f32.mrb[82].mxu1 }
 0x426   : > { %v10069_v3 = vpop.f32.mrb[83].mxu1 }
 0x427   : > { %v8762_v47 = vadd.f32 %v10067_v42, %v14193_v12  ;;  %v10070_v31 = vadd.f32 %v10069_v3, %v10068_v1 }
 0x429   : > { %8864 = vst [vmem:[%s14198_s11 + $0x40] sm:$0xff] %v8762_v47  ;;  %v8765_v50 = vadd.f32 %v10070_v31, %v14193_v12 }
 0x42b   : > { %8865 = vst [vmem:[%s14198_s11 + $0x48] sm:$0xff] %v8765_v50  ;;  %v10071_v20 = vpop.f32.mrb[84].mxu1 }
 0x42c   : > { %v10072_v35 = vpop.f32.mrb[85].mxu1 }
 0x42d   : > { %v10073_v32 = vadd.f32 %v10072_v35, %v10071_v20  ;;  %v10074_v61 = vpop.f32.mrb[86].mxu1 }
 0x42e   : > { %v10075_v63 = vpop.f32.mrb[87].mxu1 }
 0x42f   : > { %v8770_v55 = vadd.f32 %v10073_v32, %v14193_v12  ;;  %v10076_v24 = vadd.f32 %v10075_v63, %v10074_v61 }
 0x431   : > { %8866 = vst [vmem:[%s14198_s11 + $0x50] sm:$0xff] %v8770_v55  ;;  %v8773_v9 = vadd.f32 %v10076_v24, %v14193_v12 }
 0x433   : > { %8867 = vst [vmem:[%s14198_s11 + $0x58] sm:$0xff] %v8773_v9  ;;  %v10077_v49 = vpop.f32.mrb[88].mxu1 }
 0x434   : > { %v10078_v36 = vpop.f32.mrb[89].mxu1 }
 0x435   : > { %v10079_v37 = vadd.f32 %v10078_v36, %v10077_v49  ;;  %v10080_v21 = vpop.f32.mrb[90].mxu1 }
 0x436   : > { %v10081_v27 = vpop.f32.mrb[91].mxu1 }
 0x437   : > { %v8778_v17 = vadd.f32 %v10079_v37, %v14193_v12  ;;  %v10082_v54 = vadd.f32 %v10081_v27, %v10080_v21 }
 0x439   : > { %8868 = vst [vmem:[%s14198_s11 + $0x60] sm:$0xff] %v8778_v17  ;;  %v8781_v44 = vadd.f32 %v10082_v54, %v14193_v12 }
 0x43b   : > { %8869 = vst [vmem:[%s14198_s11 + $0x68] sm:$0xff] %v8781_v44  ;;  %v10083_v51 = vpop.f32.mrb[92].mxu1 }
 0x43c   : > { %v10084_v5 = vpop.f32.mrb[93].mxu1 }
 0x43d   : > { %v10085_v62 = vadd.f32 %v10084_v5, %v10083_v51  ;;  %v10086_v30 = vpop.f32.mrb[94].mxu1 }
 0x43e   : > { %v10087_v46 = vpop.f32.mrb[95].mxu1 }
 0x43f   : > { %v8786_v53 = vadd.f32 %v10085_v62, %v14193_v12  ;;  %v10088_v0 = vadd.f32 %v10087_v46, %v10086_v30 }
 0x441   : > { %8870 = vst [vmem:[%s14198_s11 + $0x70] sm:$0xff] %v8786_v53  ;;  %v8789_v43 = vadd.f32 %v10088_v0, %v14193_v12 }
 0x443   : > { %8871 = vst [vmem:[%s14198_s11 + $0x78] sm:$0xff] %v8789_v43  ;;  %v10089_v6 = vpop.f32.mrb[96].mxu1 }
 0x444   : > { %v10090_v41 = vpop.f32.mrb[97].mxu1 }
 0x445   : > { %v10091_v4 = vadd.f32 %v10090_v41, %v10089_v6  ;;  %v10092_v16 = vpop.f32.mrb[98].mxu1 }
 0x446   : > { %v10093_v28 = vpop.f32.mrb[99].mxu1 }
 0x447   : > { %v8794_v57 = vadd.f32 %v10091_v4, %v14193_v12  ;;  %v10094_v45 = vadd.f32 %v10093_v28, %v10092_v16 }
 0x449   : > { %8872 = vst [vmem:[%s14198_s11 + $0x80] sm:$0xff] %v8794_v57  ;;  %v8797_v23 = vadd.f32 %v10094_v45, %v14193_v12 }
 0x44b   : > { %8873 = vst [vmem:[%s14198_s11 + $0x88] sm:$0xff] %v8797_v23  ;;  %v10095_v56 = vpop.f32.mrb[100].mxu1 }
 0x44c   : > { %v10096_v58 = vpop.f32.mrb[101].mxu1 }
 0x44d   : > { %v10097_v15 = vadd.f32 %v10096_v58, %v10095_v56  ;;  %v10098_v11 = vpop.f32.mrb[102].mxu1 }
 0x44e   : > { %v10099_v13 = vpop.f32.mrb[103].mxu1 }
 0x44f   : > { %v8802_v48 = vadd.f32 %v10097_v15, %v14193_v12  ;;  %v10100_v38 = vadd.f32 %v10099_v13, %v10098_v11 }
 0x451   : > { %8874 = vst [vmem:[%s14198_s11 + $0x90] sm:$0xff] %v8802_v48  ;;  %v8805_v25 = vadd.f32 %v10100_v38, %v14193_v12 }
 0x453   : > { %8875 = vst [vmem:[%s14198_s11 + $0x98] sm:$0xff] %v8805_v25  ;;  %v10101_v18 = vpop.f32.mrb[104].mxu1 }
 0x454   : > { %v10102_v19 = vpop.f32.mrb[105].mxu1 }
 0x455   : > { %v10103_v10 = vadd.f32 %v10102_v19, %v10101_v18  ;;  %v10104_v59 = vpop.f32.mrb[106].mxu1 }
 0x456   : > { %v10105_v33 = vpop.f32.mrb[107].mxu1 }
 0x457   : > { %v8810_v29 = vadd.f32 %v10103_v10, %v14193_v12  ;;  %v10106_v7 = vadd.f32 %v10105_v33, %v10104_v59 }
 0x459   : > { %8876 = vst [vmem:[%s14198_s11 + $0xa0] sm:$0xff] %v8810_v29  ;;  %v8813_v26 = vadd.f32 %v10106_v7, %v14193_v12 }
 0x45b   : > { %8877 = vst [vmem:[%s14198_s11 + $0xa8] sm:$0xff] %v8813_v26  ;;  %v10107_v40 = vpop.f32.mrb[108].mxu1 }
 0x45c   : > { %v10108_v34 = vpop.f32.mrb[109].mxu1 }
 0x45d   : > { %v10109_v52 = vadd.f32 %v10108_v34, %v10107_v40  ;;  %v10110_v8 = vpop.f32.mrb[110].mxu1 }
 0x45e   : > { %v10111_v39 = vpop.f32.mrb[111].mxu1 }
 0x45f   : > { %v8818_v14 = vadd.f32 %v10109_v52, %v14193_v12  ;;  %v10112_v60 = vadd.f32 %v10111_v39, %v10110_v8 }
 0x461   : > { %8878 = vst [vmem:[%s14198_s11 + $0xb0] sm:$0xff] %v8818_v14  ;;  %v8821_v22 = vadd.f32 %v10112_v60, %v14193_v12 }
 0x463   : > { %8879 = vst [vmem:[%s14198_s11 + $0xb8] sm:$0xff] %v8821_v22  ;;  %v10113_v2 = vpop.f32.mrb[112].mxu1 }
 0x464   : > { %v10114_v42 = vpop.f32.mrb[113].mxu1 }
 0x465   : > { %v10115_v1 = vadd.f32 %v10114_v42, %v10113_v2  ;;  %v10116_v3 = vpop.f32.mrb[114].mxu1 }
 0x466   : > { %v10117_v47 = vpop.f32.mrb[115].mxu1 }
 0x467   : > { %v8826_v31 = vadd.f32 %v10115_v1, %v14193_v12  ;;  %v10118_v50 = vadd.f32 %v10117_v47, %v10116_v3 }
 0x469   : > { %8880 = vst [vmem:[%s14198_s11 + $0xc0] sm:$0xff] %v8826_v31  ;;  %v8829_v20 = vadd.f32 %v10118_v50, %v14193_v12 }
 0x46b   : > { %8881 = vst [vmem:[%s14198_s11 + $0xc8] sm:$0xff] %v8829_v20  ;;  %v10119_v35 = vpop.f32.mrb[116].mxu1 }
 0x46c   : > { %v10120_v32 = vpop.f32.mrb[117].mxu1 }
 0x46d   : > { %v10121_v61 = vadd.f32 %v10120_v32, %v10119_v35  ;;  %v10122_v63 = vpop.f32.mrb[118].mxu1 }
 0x46e   : > { %v10123_v55 = vpop.f32.mrb[119].mxu1 }
 0x46f   : > { %v8834_v24 = vadd.f32 %v10121_v61, %v14193_v12  ;;  %v10124_v9 = vadd.f32 %v10123_v55, %v10122_v63 }
 0x471   : > { %8882 = vst [vmem:[%s14198_s11 + $0xd0] sm:$0xff] %v8834_v24  ;;  %v8837_v49 = vadd.f32 %v10124_v9, %v14193_v12 }
 0x473   : > { %8883 = vst [vmem:[%s14198_s11 + $0xd8] sm:$0xff] %v8837_v49  ;;  %v10125_v36 = vpop.f32.mrb[120].mxu1 }
 0x474   : > { %v10126_v37 = vpop.f32.mrb[121].mxu1 }
 0x475   : > { %v10127_v21 = vadd.f32 %v10126_v37, %v10125_v36  ;;  %v10128_v27 = vpop.f32.mrb[122].mxu1 }
 0x476   : > { %v10129_v17 = vpop.f32.mrb[123].mxu1 }
 0x477   : > { %v8842_v54 = vadd.f32 %v10127_v21, %v14193_v12  ;;  %v10130_v44 = vadd.f32 %v10129_v17, %v10128_v27 }
 0x479   : > { %8884 = vst [vmem:[%s14198_s11 + $0xe0] sm:$0xff] %v8842_v54  ;;  %v8845_v51 = vadd.f32 %v10130_v44, %v14193_v12 }
 0x47b   : > { %8885 = vst [vmem:[%s14198_s11 + $0xe8] sm:$0xff] %v8845_v51  ;;  %v10131_v5 = vpop.f32.mrb[124].mxu1 }
 0x47c   : > { %v10132_v62 = vpop.f32.mrb[125].mxu1 }
 0x47d   : > { %v10133_v30 = vadd.f32 %v10132_v62, %v10131_v5  ;;  %v10134_v46 = vpop.f32.mrb[126].mxu1 }
 0x47e   : > { %v10135_v53 = vpop.f32.mrb[127].mxu1 }
 0x47f   : > { %v8850_v0 = vadd.f32 %v10133_v30, %v14193_v12  ;;  %v10136_v43 = vadd.f32 %v10135_v53, %v10134_v46 }
 0x481   : > { %8886 = vst [vmem:[%s14198_s11 + $0xf0] sm:$0xff] %v8850_v0  ;;  %v8853_v6 = vadd.f32 %v10136_v43, %v14193_v12 }
 0x483   : > { %8887 = vst [vmem:[%s14198_s11 + $0xf8] sm:$0xff] %v8853_v6 }
 0x484 PF: > { %s15_s20 = sadd.s32 1, %s11366_s20   ;;  %s14370_s18 = smov %s11362_s19 }
 0x485   : > { %p12_p5 = scmp.ge.s32.totalorder %s15_s20, 4   ;;  %s14371_s19 = smov %s14373_s21 }
 0x487   :  { %14 = sbr.rel (!%p12_p5) target bundleno = 2 (0x2), region = 87 }

</bundles_post_ra>
